<compile_context>
chip_gen: v5e
topology: v5e:2x2
jax: 0.10.0
libtpu: 0.0.40
codegen_flags: <defaults>
</compile_context>

<pallas_src>
import jax
import jax.numpy as jnp
from jax.experimental import pallas as pl
from jax.experimental.pallas import tpu as pltpu

EPS = 1e-5
LANE = 128


def _round_up(x, m):
    return (x + m - 1) // m * m


def _row_tile(M, target=512):
    for cand in (1024, 512, 256, 128, 64, 32, 16, 8):
        if cand <= max(target, 8) and M % cand == 0:
            return cand
    return M


# --------------------------------------------------------------------------- #
# Kernel 1: conv3x3 (pre-BN) + per-channel sum / sum-of-squares accumulation.
# --------------------------------------------------------------------------- #
def conv3x3_stats(xp, w):
    """xp: (N, H+2, W+2, Cp) zero-padded NHWC input.  w: (9, Cp, Cq).
    Returns y (N, H, W, Cq) pre-BN conv output and stats s/ss of shape (1, Cq)."""
    N, Hp2, Wp2, Cp = xp.shape
    H, W = Hp2 - 2, Wp2 - 2
    Cq = w.shape[2]

    def kernel(xp_ref, w_ref, y_ref, s_ref, ss_ref):
        n = pl.program_id(0)

        @pl.when(n == 0)
        def _():
            s_ref[...] = jnp.zeros_like(s_ref)
            ss_ref[...] = jnp.zeros_like(ss_ref)

        x = xp_ref[0]                                        # (H+2, W+2, Cp)
        acc = jnp.zeros((H * W, Cq), jnp.float32)
        for k in range(9):                                   # 9 conv taps
            ky, kx = divmod(k, 3)
            patch = x[ky:ky + H, kx:kx + W, :].reshape(H * W, Cp)
            acc = acc + jnp.dot(patch, w_ref[k],
                                preferred_element_type=jnp.float32)
        y_ref[0] = acc.reshape(H, W, Cq)
        s_ref[...] += jnp.sum(acc, axis=0, keepdims=True)
        ss_ref[...] += jnp.sum(acc * acc, axis=0, keepdims=True)

    flops = 2 * N * H * W * 9 * Cp * Cq
    bytes_accessed = 4 * (xp.size + w.size + N * H * W * Cq + 2 * Cq)
    return pl.pallas_call(
        kernel,
        out_shape=(jax.ShapeDtypeStruct((N, H, W, Cq), jnp.float32),
                   jax.ShapeDtypeStruct((1, Cq), jnp.float32),
                   jax.ShapeDtypeStruct((1, Cq), jnp.float32)),
        grid=(N,),
        in_specs=[pl.BlockSpec((1, Hp2, Wp2, Cp), lambda n: (n, 0, 0, 0)),
                  pl.BlockSpec((9, Cp, Cq), lambda n: (0, 0, 0))],
        out_specs=(pl.BlockSpec((1, H, W, Cq), lambda n: (n, 0, 0, 0)),
                   pl.BlockSpec((1, Cq), lambda n: (0, 0)),
                   pl.BlockSpec((1, Cq), lambda n: (0, 0))),
        compiler_params=pltpu.CompilerParams(
            dimension_semantics=("arbitrary",)),
        cost_estimate=pl.CostEstimate(flops=flops, transcendentals=0,
                                      bytes_accessed=bytes_accessed),
    )(xp, w)


# --------------------------------------------------------------------------- #
# Kernel 2: BN1 (batch stats) + ReLU fused with conv3x3 #2 + stats for BN2.
# The activation h never touches HBM; it is zero-padded into a VMEM scratch.
# --------------------------------------------------------------------------- #
def bn_relu_conv3x3_stats(y1, s1, ss1, g1, b1, w2):
    N, H, W, Cp = y1.shape
    Cq = w2.shape[2]
    inv_m = 1.0 / (N * H * W)

    def kernel(y1_ref, s1_ref, ss1_ref, g_ref, bt_ref, w_ref,
               y2_ref, s2_ref, ss2_ref, hp_ref):
        n = pl.program_id(0)

        @pl.when(n == 0)
        def _():
            hp_ref[...] = jnp.zeros_like(hp_ref)   # halo border stays zero
            s2_ref[...] = jnp.zeros_like(s2_ref)
            ss2_ref[...] = jnp.zeros_like(ss2_ref)

        # BatchNorm1 (shared batch statistics) + ReLU, all f32.
        mean = s1_ref[...] * inv_m                           # (1, Cp)
        var = ss1_ref[...] * inv_m - mean * mean
        scale = jax.lax.rsqrt(var + EPS) * g_ref[...]
        shift = bt_ref[...] - mean * scale
        h = jnp.maximum(y1_ref[0] * scale + shift, 0.0)      # (H, W, Cp)

        # Zero-padded activation for conv2 (interior overwritten every step).
        hp_ref[1:H + 1, 1:W + 1, :] = h
        xh = hp_ref[...]                                     # (H+2, W+2, Cp)

        acc = jnp.zeros((H * W, Cq), jnp.float32)
        for k in range(9):
            ky, kx = divmod(k, 3)
            patch = xh[ky:ky + H, kx:kx + W, :].reshape(H * W, Cp)
            acc = acc + jnp.dot(patch, w_ref[k],
                                preferred_element_type=jnp.float32)
        y2_ref[0] = acc.reshape(H, W, Cq)
        s2_ref[...] += jnp.sum(acc, axis=0, keepdims=True)
        ss2_ref[...] += jnp.sum(acc * acc, axis=0, keepdims=True)

    flops = 2 * N * H * W * 9 * Cp * Cq + 8 * N * H * W * Cp
    bytes_accessed = 4 * (y1.size + w2.size + N * H * W * Cq + 6 * Cp)
    return pl.pallas_call(
        kernel,
        out_shape=(jax.ShapeDtypeStruct((N, H, W, Cq), jnp.float32),
                   jax.ShapeDtypeStruct((1, Cq), jnp.float32),
                   jax.ShapeDtypeStruct((1, Cq), jnp.float32)),
        grid=(N,),
        in_specs=[pl.BlockSpec((1, H, W, Cp), lambda n: (n, 0, 0, 0)),
                  pl.BlockSpec((1, Cp), lambda n: (0, 0)),
                  pl.BlockSpec((1, Cp), lambda n: (0, 0)),
                  pl.BlockSpec((1, Cp), lambda n: (0, 0)),
                  pl.BlockSpec((1, Cp), lambda n: (0, 0)),
                  pl.BlockSpec((9, Cp, Cq), lambda n: (0, 0, 0))],
        out_specs=(pl.BlockSpec((1, H, W, Cq), lambda n: (n, 0, 0, 0)),
                   pl.BlockSpec((1, Cq), lambda n: (0, 0)),
                   pl.BlockSpec((1, Cq), lambda n: (0, 0))),
        scratch_shapes=[pltpu.VMEM((H + 2, W + 2, Cp), jnp.float32)],
        compiler_params=pltpu.CompilerParams(
            dimension_semantics=("arbitrary",)),
        cost_estimate=pl.CostEstimate(flops=flops, transcendentals=0,
                                      bytes_accessed=bytes_accessed),
    )(y1, s1, ss1, g1, b1, w2)


# --------------------------------------------------------------------------- #
# Kernel 3: BN2 + residual add + ReLU, row-tiled over M = N*H*W ("parallel").
# --------------------------------------------------------------------------- #
def bn_add_relu(y2, s2, ss2, g2, b2, res):
    M, Cp = y2.shape
    inv_m = 1.0 / M
    TM = _row_tile(M)

    def kernel(y_ref, s_ref, ss_ref, g_ref, bt_ref, r_ref, o_ref):
        mean = s_ref[...] * inv_m
        var = ss_ref[...] * inv_m - mean * mean
        scale = jax.lax.rsqrt(var + EPS) * g_ref[...]
        shift = bt_ref[...] - mean * scale
        o_ref[...] = jnp.maximum(y_ref[...] * scale + shift + r_ref[...], 0.0)

    return pl.pallas_call(
        kernel,
        out_shape=jax.ShapeDtypeStruct((M, Cp), jnp.float32),
        grid=(M // TM,),
        in_specs=[pl.BlockSpec((TM, Cp), lambda i: (i, 0)),
                  pl.BlockSpec((1, Cp), lambda i: (0, 0)),
                  pl.BlockSpec((1, Cp), lambda i: (0, 0)),
                  pl.BlockSpec((1, Cp), lambda i: (0, 0)),
                  pl.BlockSpec((1, Cp), lambda i: (0, 0)),
                  pl.BlockSpec((TM, Cp), lambda i: (i, 0))],
        out_specs=pl.BlockSpec((TM, Cp), lambda i: (i, 0)),
        compiler_params=pltpu.CompilerParams(
            dimension_semantics=("parallel",)),
    )(y2, s2, ss2, g2, b2, res)


# --------------------------------------------------------------------------- #
# Forward pass (layout glue only outside the kernels: transpose, channel pad,
# 1-pixel halo pad — no 9x patch expansion).
# --------------------------------------------------------------------------- #
def residual_block_forward(x_nchw, params):
    N, Cin, H, W = x_nchw.shape
    Cout = params["w1"].shape[0]
    assert Cin == Cout, "residual add requires in_channels == out_channels"
    Cp = _round_up(max(Cin, Cout), LANE)
    M = N * H * W

    x_nhwc = jnp.transpose(x_nchw, (0, 2, 3, 1))
    x_c = jnp.pad(x_nhwc, ((0, 0), (0, 0), (0, 0), (0, Cp - Cin)))
    xp = jnp.pad(x_c, ((0, 0), (1, 1), (1, 1), (0, 0)))

    def prep_w(w):   # (Cout, Cin, 3, 3) -> (9, Cp, Cp), tap order k = 3*ky + kx
        co, ci = w.shape[0], w.shape[1]
        wm = jnp.transpose(w, (2, 3, 1, 0)).reshape(9, ci, co)
        return jnp.pad(wm, ((0, 0), (0, Cp - ci), (0, Cp - co)))

    def prep_vec(v):
        return jnp.pad(v, (0, Cp - v.shape[0])).reshape(1, Cp)

    w1, w2 = prep_w(params["w1"]), prep_w(params["w2"])
    g1, beta1 = prep_vec(params["g1"]), prep_vec(params["beta1"])
    g2, beta2 = prep_vec(params["g2"]), prep_vec(params["beta2"])
    # Conv biases b1/b2 are intentionally not used: with batch-stat BatchNorm
    # directly after each conv the bias is exactly cancelled by the mean
    # subtraction (would need to be reinstated for eval/running-stats BN).

    y1, s1, ss1 = conv3x3_stats(xp, w1)
    y2, s2, ss2 = bn_relu_conv3x3_stats(y1, s1, ss1, g1, beta1, w2)
    out = bn_add_relu(y2.reshape(M, Cp), s2, ss2, g2, beta2,
                      x_c.reshape(M, Cp))

    out = out.reshape(N, H, W, Cp)[..., :Cout]
    return jnp.transpose(out, (0, 3, 1, 2))  # back to NCHW


# ----------------------------- pure-JAX reference --------------------------- #
def _ref_forward(x_nchw, params):
    def conv(x, w, b):
        y = jax.lax.conv_general_dilated(
            x, w, (1, 1), "SAME", dimension_numbers=("NCHW", "OIHW", "NCHW"))
        return y + b.reshape(1, -1, 1, 1)

    def bn(x, g, bt):
        m = jnp.mean(x, axis=(0, 2, 3), keepdims=True)
        v = jnp.mean((x - m) ** 2, axis=(0, 2, 3), keepdims=True)
        return (x - m) * jax.lax.rsqrt(v + EPS) * g.reshape(1, -1, 1, 1) \
               + bt.reshape(1, -1, 1, 1)

    h = jnp.maximum(bn(conv(x_nchw, params["w1"], params["b1"]),
                       params["g1"], params["beta1"]), 0.0)
    h2 = bn(conv(h, params["w2"], params["b2"]), params["g2"], params["beta2"])
    return jnp.maximum(h2 + x_nchw, 0.0)


# ----------------------------------- main ----------------------------------- #
if __name__ == "__main__":
    key = jax.random.PRNGKey(0)
    N, Cin, H, W = 2, 4, 16, 16
    Cout = Cin  # residual add requires in_channels == out_channels

    keys = jax.random.split(key, 9)
    params = {
        "w1": 0.1 * jax.random.normal(keys[0], (Cout, Cin, 3, 3), jnp.float32),
        "b1": 0.1 * jax.random.normal(keys[1], (Cout,), jnp.float32),
        "g1": 1.0 + 0.1 * jax.random.normal(keys[2], (Cout,), jnp.float32),
        "beta1": 0.1 * jax.random.normal(keys[3], (Cout,), jnp.float32),
        "w2": 0.1 * jax.random.normal(keys[4], (Cout, Cout, 3, 3), jnp.float32),
        "b2": 0.1 * jax.random.normal(keys[5], (Cout,), jnp.float32),
        "g2": 1.0 + 0.1 * jax.random.normal(keys[6], (Cout,), jnp.float32),
        "beta2": 0.1 * jax.random.normal(keys[7], (Cout,), jnp.float32),
    }
    x = jax.random.normal(keys[8], (N, Cin, H, W), jnp.float32)

    fwd = jax.jit(residual_block_forward)
    out = jax.block_until_ready(fwd(x, params))
    ref = jax.block_until_ready(_ref_forward(x, params))

    assert out.shape == (N, Cout, H, W)
    assert jnp.allclose(out, ref, atol=5e-4, rtol=5e-4), "mismatch vs reference"

    print("KERNEL_OK")
</pallas_src>

<mosaic_0001>
module attributes {stable_mosaic.version = 11 : i64} {
  func.func @kernel(%arg0: i32, %arg1: memref<1x16x16x128xf32, #tpu.memory_space<vmem>>, %arg2: memref<1x128xf32, #tpu.memory_space<vmem>>, %arg3: memref<1x128xf32, #tpu.memory_space<vmem>>, %arg4: memref<1x128xf32, #tpu.memory_space<vmem>>, %arg5: memref<1x128xf32, #tpu.memory_space<vmem>>, %arg6: memref<9x128x128xf32, #tpu.memory_space<vmem>>, %arg7: memref<1x16x16x128xf32, #tpu.memory_space<vmem>>, %arg8: memref<1x128xf32, #tpu.memory_space<vmem>>, %arg9: memref<1x128xf32, #tpu.memory_space<vmem>>, %arg10: memref<18x18x128xf32, #tpu.memory_space<vmem>>) attributes {dimension_semantics = [#tpu.dimension_semantics<arbitrary>], iteration_bounds = array<i64: 2>, scalar_prefetch = 0 : i64, scratch_operands = 1 : i64, tpu.core_type = #tpu.core_type<tc>, window_params = [{transform_indices = @transform_0, window_bounds = array<i64: 1, 16, 16, 128>}, {pipeline_mode = #tpu.pipeline_mode<synchronous>, transform_indices = @transform_1, window_bounds = array<i64: 1, 128>}, {pipeline_mode = #tpu.pipeline_mode<synchronous>, transform_indices = @transform_2, window_bounds = array<i64: 1, 128>}, {pipeline_mode = #tpu.pipeline_mode<synchronous>, transform_indices = @transform_3, window_bounds = array<i64: 1, 128>}, {pipeline_mode = #tpu.pipeline_mode<synchronous>, transform_indices = @transform_4, window_bounds = array<i64: 1, 128>}, {pipeline_mode = #tpu.pipeline_mode<synchronous>, transform_indices = @transform_5, window_bounds = array<i64: 9, 128, 128>}, {transform_indices = @transform_6, window_bounds = array<i64: 1, 16, 16, 128>}, {pipeline_mode = #tpu.pipeline_mode<synchronous>, transform_indices = @transform_7, window_bounds = array<i64: 1, 128>}, {pipeline_mode = #tpu.pipeline_mode<synchronous>, transform_indices = @transform_8, window_bounds = array<i64: 1, 128>}]} {
    %c0_i32 = arith.constant 0 : i32
    %0 = arith.cmpi eq, %arg0, %c0_i32 : i32
    %1 = arith.extui %0 : i1 to i32
    %c0_i32_0 = arith.constant 0 : i32
    %2 = arith.cmpi ne, %1, %c0_i32_0 : i32
    scf.if %2 {
      %cst_64 = arith.constant 0.000000e+00 : f32
      %101 = vector.broadcast %cst_64 : f32 to vector<18x18x128xf32>
      %c0_65 = arith.constant 0 : index
      %c0_66 = arith.constant 0 : index
      %c0_67 = arith.constant 0 : index
      %102 = vector.load %arg10[%c0_65, %c0_66, %c0_67] : memref<18x18x128xf32, #tpu.memory_space<vmem>>, vector<18x18x128xf32>
      tpu.vector_store %arg10[%c0_65, %c0_66, %c0_67], %101 {strides = array<i32>} : memref<18x18x128xf32, #tpu.memory_space<vmem>>, vector<18x18x128xf32>,
      %cst_68 = arith.constant 0.000000e+00 : f32
      %103 = vector.broadcast %cst_68 : f32 to vector<1x128xf32>
      %c0_69 = arith.constant 0 : index
      %c0_70 = arith.constant 0 : index
      %104 = vector.load %arg8[%c0_69, %c0_70] : memref<1x128xf32, #tpu.memory_space<vmem>>, vector<1x128xf32>
      tpu.vector_store %arg8[%c0_69, %c0_70], %103 {strides = array<i32>} : memref<1x128xf32, #tpu.memory_space<vmem>>, vector<1x128xf32>,
      %cst_71 = arith.constant 0.000000e+00 : f32
      %105 = vector.broadcast %cst_71 : f32 to vector<1x128xf32>
      %c0_72 = arith.constant 0 : index
      %c0_73 = arith.constant 0 : index
      %106 = vector.load %arg9[%c0_72, %c0_73] : memref<1x128xf32, #tpu.memory_space<vmem>>, vector<1x128xf32>
      tpu.vector_store %arg9[%c0_72, %c0_73], %105 {strides = array<i32>} : memref<1x128xf32, #tpu.memory_space<vmem>>, vector<1x128xf32>,
    } else {
    }
    %c0 = arith.constant 0 : index
    %c0_1 = arith.constant 0 : index
    %3 = vector.load %arg2[%c0, %c0_1] : memref<1x128xf32, #tpu.memory_space<vmem>>, vector<1x128xf32>
    %cst = arith.constant 0.001953125 : f32
    %4 = vector.broadcast %cst : f32 to vector<1x128xf32>
    %5 = arith.mulf %3, %4 : vector<1x128xf32>
    %c0_2 = arith.constant 0 : index
    %c0_3 = arith.constant 0 : index
    %6 = vector.load %arg3[%c0_2, %c0_3] : memref<1x128xf32, #tpu.memory_space<vmem>>, vector<1x128xf32>
    %cst_4 = arith.constant 0.001953125 : f32
    %7 = vector.broadcast %cst_4 : f32 to vector<1x128xf32>
    %8 = arith.mulf %6, %7 : vector<1x128xf32>
    %9 = arith.mulf %5, %5 : vector<1x128xf32>
    %10 = arith.subf %8, %9 : vector<1x128xf32>
    %cst_5 = arith.constant 9.99999974E-6 : f32
    %11 = vector.broadcast %cst_5 : f32 to vector<1x128xf32>
    %12 = arith.addf %10, %11 : vector<1x128xf32>
    %13 = math.rsqrt %12 : vector<1x128xf32>
    %c0_6 = arith.constant 0 : index
    %c0_7 = arith.constant 0 : index
    %14 = vector.load %arg4[%c0_6, %c0_7] : memref<1x128xf32, #tpu.memory_space<vmem>>, vector<1x128xf32>
    %15 = arith.mulf %13, %14 : vector<1x128xf32>
    %c0_8 = arith.constant 0 : index
    %c0_9 = arith.constant 0 : index
    %16 = vector.load %arg5[%c0_8, %c0_9] : memref<1x128xf32, #tpu.memory_space<vmem>>, vector<1x128xf32>
    %17 = arith.mulf %5, %15 : vector<1x128xf32>
    %18 = arith.subf %16, %17 : vector<1x128xf32>
    %c0_10 = arith.constant 0 : index
    %c0_11 = arith.constant 0 : index
    %c0_12 = arith.constant 0 : index
    %c0_13 = arith.constant 0 : index
    %19 = vector.load %arg1[%c0_10, %c0_11, %c0_12, %c0_13] : memref<1x16x16x128xf32, #tpu.memory_space<vmem>>, vector<1x16x16x128xf32>
    %20 = vector.shape_cast %19 : vector<1x16x16x128xf32> to vector<16x16x128xf32>
    %21 = vector.shape_cast %15 : vector<1x128xf32> to vector<1x1x128xf32>
    %22 = vector.broadcast %21 : vector<1x1x128xf32> to vector<16x16x128xf32>
    %23 = arith.mulf %20, %22 : vector<16x16x128xf32>
    %24 = vector.shape_cast %18 : vector<1x128xf32> to vector<1x1x128xf32>
    %25 = vector.broadcast %24 : vector<1x1x128xf32> to vector<16x16x128xf32>
    %26 = arith.addf %23, %25 : vector<16x16x128xf32>
    %cst_14 = arith.constant 0.000000e+00 : f32
    %27 = vector.broadcast %cst_14 : f32 to vector<16x16x128xf32>
    %28 = arith.maximumf %26, %27 : vector<16x16x128xf32>
    %c1 = arith.constant 1 : index
    %c1_15 = arith.constant 1 : index
    %c0_16 = arith.constant 0 : index
    %29 = vector.load %arg10[%c1, %c1_15, %c0_16] : memref<18x18x128xf32, #tpu.memory_space<vmem>>, vector<16x16x128xf32>
    tpu.vector_store %arg10[%c1, %c1_15, %c0_16], %28 {strides = array<i32>} : memref<18x18x128xf32, #tpu.memory_space<vmem>>, vector<16x16x128xf32>,
    %c0_17 = arith.constant 0 : index
    %c0_18 = arith.constant 0 : index
    %c0_19 = arith.constant 0 : index
    %30 = vector.load %arg10[%c0_17, %c0_18, %c0_19] : memref<18x18x128xf32, #tpu.memory_space<vmem>>, vector<18x18x128xf32>
    %cst_20 = arith.constant 0.000000e+00 : f32
    %31 = vector.broadcast %cst_20 : f32 to vector<256x128xf32>
    %32 = vector.extract_strided_slice %30 {offsets = [0, 0, 0], sizes = [16, 16, 128], strides = [1, 1, 1]} : vector<18x18x128xf32> to vector<16x16x128xf32>
    %33 = vector.shape_cast %32 : vector<16x16x128xf32> to vector<256x128xf32>
    %c0_21 = arith.constant 0 : index
    %c0_22 = arith.constant 0 : index
    %c0_23 = arith.constant 0 : index
    %34 = vector.load %arg6[%c0_21, %c0_22, %c0_23] : memref<9x128x128xf32, #tpu.memory_space<vmem>>, vector<1x128x128xf32>
    %35 = vector.shape_cast %34 : vector<1x128x128xf32> to vector<128x128xf32>
    %cst_24 = arith.constant dense<0.000000e+00> : vector<256x128xf32>
    %36 = tpu.matmul %33, %35, %cst_24 {dimension_numbers = #tpu.dot_dimension_numbers<[1], [0], [0], [1], [0, 0, 1, 1], [], []>} : vector<256x128xf32>, vector<128x128xf32>, vector<256x128xf32> -> vector<256x128xf32>
    %37 = arith.addf %31, %36 : vector<256x128xf32>
    %38 = vector.extract_strided_slice %30 {offsets = [0, 1, 0], sizes = [16, 16, 128], strides = [1, 1, 1]} : vector<18x18x128xf32> to vector<16x16x128xf32>
    %39 = vector.shape_cast %38 : vector<16x16x128xf32> to vector<256x128xf32>
    %c1_25 = arith.constant 1 : index
    %c0_26 = arith.constant 0 : index
    %c0_27 = arith.constant 0 : index
    %40 = vector.load %arg6[%c1_25, %c0_26, %c0_27] : memref<9x128x128xf32, #tpu.memory_space<vmem>>, vector<1x128x128xf32>
    %41 = vector.shape_cast %40 : vector<1x128x128xf32> to vector<128x128xf32>
    %cst_28 = arith.constant dense<0.000000e+00> : vector<256x128xf32>
    %42 = tpu.matmul %39, %41, %cst_28 {dimension_numbers = #tpu.dot_dimension_numbers<[1], [0], [0], [1], [0, 0, 1, 1], [], []>} : vector<256x128xf32>, vector<128x128xf32>, vector<256x128xf32> -> vector<256x128xf32>
    %43 = arith.addf %37, %42 : vector<256x128xf32>
    %44 = vector.extract_strided_slice %30 {offsets = [0, 2, 0], sizes = [16, 16, 128], strides = [1, 1, 1]} : vector<18x18x128xf32> to vector<16x16x128xf32>
    %45 = vector.shape_cast %44 : vector<16x16x128xf32> to vector<256x128xf32>
    %c2 = arith.constant 2 : index
    %c0_29 = arith.constant 0 : index
    %c0_30 = arith.constant 0 : index
    %46 = vector.load %arg6[%c2, %c0_29, %c0_30] : memref<9x128x128xf32, #tpu.memory_space<vmem>>, vector<1x128x128xf32>
    %47 = vector.shape_cast %46 : vector<1x128x128xf32> to vector<128x128xf32>
    %cst_31 = arith.constant dense<0.000000e+00> : vector<256x128xf32>
    %48 = tpu.matmul %45, %47, %cst_31 {dimension_numbers = #tpu.dot_dimension_numbers<[1], [0], [0], [1], [0, 0, 1, 1], [], []>} : vector<256x128xf32>, vector<128x128xf32>, vector<256x128xf32> -> vector<256x128xf32>
    %49 = arith.addf %43, %48 : vector<256x128xf32>
    %50 = vector.extract_strided_slice %30 {offsets = [1, 0, 0], sizes = [16, 16, 128], strides = [1, 1, 1]} : vector<18x18x128xf32> to vector<16x16x128xf32>
    %51 = vector.shape_cast %50 : vector<16x16x128xf32> to vector<256x128xf32>
    %c3 = arith.constant 3 : index
    %c0_32 = arith.constant 0 : index
    %c0_33 = arith.constant 0 : index
    %52 = vector.load %arg6[%c3, %c0_32, %c0_33] : memref<9x128x128xf32, #tpu.memory_space<vmem>>, vector<1x128x128xf32>
    %53 = vector.shape_cast %52 : vector<1x128x128xf32> to vector<128x128xf32>
    %cst_34 = arith.constant dense<0.000000e+00> : vector<256x128xf32>
    %54 = tpu.matmul %51, %53, %cst_34 {dimension_numbers = #tpu.dot_dimension_numbers<[1], [0], [0], [1], [0, 0, 1, 1], [], []>} : vector<256x128xf32>, vector<128x128xf32>, vector<256x128xf32> -> vector<256x128xf32>
    %55 = arith.addf %49, %54 : vector<256x128xf32>
    %56 = vector.extract_strided_slice %30 {offsets = [1, 1, 0], sizes = [16, 16, 128], strides = [1, 1, 1]} : vector<18x18x128xf32> to vector<16x16x128xf32>
    %57 = vector.shape_cast %56 : vector<16x16x128xf32> to vector<256x128xf32>
    %c4 = arith.constant 4 : index
    %c0_35 = arith.constant 0 : index
    %c0_36 = arith.constant 0 : index
    %58 = vector.load %arg6[%c4, %c0_35, %c0_36] : memref<9x128x128xf32, #tpu.memory_space<vmem>>, vector<1x128x128xf32>
    %59 = vector.shape_cast %58 : vector<1x128x128xf32> to vector<128x128xf32>
    %cst_37 = arith.constant dense<0.000000e+00> : vector<256x128xf32>
    %60 = tpu.matmul %57, %59, %cst_37 {dimension_numbers = #tpu.dot_dimension_numbers<[1], [0], [0], [1], [0, 0, 1, 1], [], []>} : vector<256x128xf32>, vector<128x128xf32>, vector<256x128xf32> -> vector<256x128xf32>
    %61 = arith.addf %55, %60 : vector<256x128xf32>
    %62 = vector.extract_strided_slice %30 {offsets = [1, 2, 0], sizes = [16, 16, 128], strides = [1, 1, 1]} : vector<18x18x128xf32> to vector<16x16x128xf32>
    %63 = vector.shape_cast %62 : vector<16x16x128xf32> to vector<256x128xf32>
    %c5 = arith.constant 5 : index
    %c0_38 = arith.constant 0 : index
    %c0_39 = arith.constant 0 : index
    %64 = vector.load %arg6[%c5, %c0_38, %c0_39] : memref<9x128x128xf32, #tpu.memory_space<vmem>>, vector<1x128x128xf32>
    %65 = vector.shape_cast %64 : vector<1x128x128xf32> to vector<128x128xf32>
    %cst_40 = arith.constant dense<0.000000e+00> : vector<256x128xf32>
    %66 = tpu.matmul %63, %65, %cst_40 {dimension_numbers = #tpu.dot_dimension_numbers<[1], [0], [0], [1], [0, 0, 1, 1], [], []>} : vector<256x128xf32>, vector<128x128xf32>, vector<256x128xf32> -> vector<256x128xf32>
    %67 = arith.addf %61, %66 : vector<256x128xf32>
    %68 = vector.extract_strided_slice %30 {offsets = [2, 0, 0], sizes = [16, 16, 128], strides = [1, 1, 1]} : vector<18x18x128xf32> to vector<16x16x128xf32>
    %69 = vector.shape_cast %68 : vector<16x16x128xf32> to vector<256x128xf32>
    %c6 = arith.constant 6 : index
    %c0_41 = arith.constant 0 : index
    %c0_42 = arith.constant 0 : index
    %70 = vector.load %arg6[%c6, %c0_41, %c0_42] : memref<9x128x128xf32, #tpu.memory_space<vmem>>, vector<1x128x128xf32>
    %71 = vector.shape_cast %70 : vector<1x128x128xf32> to vector<128x128xf32>
    %cst_43 = arith.constant dense<0.000000e+00> : vector<256x128xf32>
    %72 = tpu.matmul %69, %71, %cst_43 {dimension_numbers = #tpu.dot_dimension_numbers<[1], [0], [0], [1], [0, 0, 1, 1], [], []>} : vector<256x128xf32>, vector<128x128xf32>, vector<256x128xf32> -> vector<256x128xf32>
    %73 = arith.addf %67, %72 : vector<256x128xf32>
    %74 = vector.extract_strided_slice %30 {offsets = [2, 1, 0], sizes = [16, 16, 128], strides = [1, 1, 1]} : vector<18x18x128xf32> to vector<16x16x128xf32>
    %75 = vector.shape_cast %74 : vector<16x16x128xf32> to vector<256x128xf32>
    %c7 = arith.constant 7 : index
    %c0_44 = arith.constant 0 : index
    %c0_45 = arith.constant 0 : index
    %76 = vector.load %arg6[%c7, %c0_44, %c0_45] : memref<9x128x128xf32, #tpu.memory_space<vmem>>, vector<1x128x128xf32>
    %77 = vector.shape_cast %76 : vector<1x128x128xf32> to vector<128x128xf32>
    %cst_46 = arith.constant dense<0.000000e+00> : vector<256x128xf32>
    %78 = tpu.matmul %75, %77, %cst_46 {dimension_numbers = #tpu.dot_dimension_numbers<[1], [0], [0], [1], [0, 0, 1, 1], [], []>} : vector<256x128xf32>, vector<128x128xf32>, vector<256x128xf32> -> vector<256x128xf32>
    %79 = arith.addf %73, %78 : vector<256x128xf32>
    %80 = vector.extract_strided_slice %30 {offsets = [2, 2, 0], sizes = [16, 16, 128], strides = [1, 1, 1]} : vector<18x18x128xf32> to vector<16x16x128xf32>
    %81 = vector.shape_cast %80 : vector<16x16x128xf32> to vector<256x128xf32>
    %c8 = arith.constant 8 : index
    %c0_47 = arith.constant 0 : index
    %c0_48 = arith.constant 0 : index
    %82 = vector.load %arg6[%c8, %c0_47, %c0_48] : memref<9x128x128xf32, #tpu.memory_space<vmem>>, vector<1x128x128xf32>
    %83 = vector.shape_cast %82 : vector<1x128x128xf32> to vector<128x128xf32>
    %cst_49 = arith.constant dense<0.000000e+00> : vector<256x128xf32>
    %84 = tpu.matmul %81, %83, %cst_49 {dimension_numbers = #tpu.dot_dimension_numbers<[1], [0], [0], [1], [0, 0, 1, 1], [], []>} : vector<256x128xf32>, vector<128x128xf32>, vector<256x128xf32> -> vector<256x128xf32>
    %85 = arith.addf %79, %84 : vector<256x128xf32>
    %86 = vector.shape_cast %85 : vector<256x128xf32> to vector<16x16x128xf32>
    %c0_50 = arith.constant 0 : index
    %c0_51 = arith.constant 0 : index
    %c0_52 = arith.constant 0 : index
    %c0_53 = arith.constant 0 : index
    %87 = vector.load %arg7[%c0_50, %c0_51, %c0_52, %c0_53] : memref<1x16x16x128xf32, #tpu.memory_space<vmem>>, vector<1x16x16x128xf32>
    %88 = vector.shape_cast %87 : vector<1x16x16x128xf32> to vector<16x16x128xf32>
    %89 = vector.shape_cast %86 : vector<16x16x128xf32> to vector<1x16x16x128xf32>
    tpu.vector_store %arg7[%c0_50, %c0_51, %c0_52, %c0_53], %89 {strides = array<i32>} : memref<1x16x16x128xf32, #tpu.memory_space<vmem>>, vector<1x16x16x128xf32>,
    %c0_54 = arith.constant 0 : index
    %c0_55 = arith.constant 0 : index
    %90 = vector.load %arg8[%c0_54, %c0_55] : memref<1x128xf32, #tpu.memory_space<vmem>>, vector<1x128xf32>
    %cst_56 = arith.constant dense<0.000000e+00> : vector<128xf32>
    %91 = vector.multi_reduction <add>, %85, %cst_56 [0] : vector<256x128xf32> to vector<128xf32>
    %92 = vector.shape_cast %91 : vector<128xf32> to vector<1x128xf32>
    %93 = arith.addf %90, %92 : vector<1x128xf32>
    %c0_57 = arith.constant 0 : index
    %c0_58 = arith.constant 0 : index
    %94 = vector.load %arg8[%c0_57, %c0_58] : memref<1x128xf32, #tpu.memory_space<vmem>>, vector<1x128xf32>
    tpu.vector_store %arg8[%c0_57, %c0_58], %93 {strides = array<i32>} : memref<1x128xf32, #tpu.memory_space<vmem>>, vector<1x128xf32>,
    %c0_59 = arith.constant 0 : index
    %c0_60 = arith.constant 0 : index
    %95 = vector.load %arg9[%c0_59, %c0_60] : memref<1x128xf32, #tpu.memory_space<vmem>>, vector<1x128xf32>
    %96 = arith.mulf %85, %85 : vector<256x128xf32>
    %cst_61 = arith.constant dense<0.000000e+00> : vector<128xf32>
    %97 = vector.multi_reduction <add>, %96, %cst_61 [0] : vector<256x128xf32> to vector<128xf32>
    %98 = vector.shape_cast %97 : vector<128xf32> to vector<1x128xf32>
    %99 = arith.addf %95, %98 : vector<1x128xf32>
    %c0_62 = arith.constant 0 : index
    %c0_63 = arith.constant 0 : index
    %100 = vector.load %arg9[%c0_62, %c0_63] : memref<1x128xf32, #tpu.memory_space<vmem>>, vector<1x128xf32>
    tpu.vector_store %arg9[%c0_62, %c0_63], %99 {strides = array<i32>} : memref<1x128xf32, #tpu.memory_space<vmem>>, vector<1x128xf32>,
    return
  }
  func.func @transform_0(%arg0: i32) -> (i32, i32, i32, i32) {
    %c0_i32 = arith.constant 0 : i32
    %c0_i32_0 = arith.constant 0 : i32
    %c0_i32_1 = arith.constant 0 : i32
    %c0_i32_2 = arith.constant 0 : i32
    return %arg0, %c0_i32, %c0_i32_0, %c0_i32_1 : i32, i32, i32, i32
  }
  func.func @transform_1(%arg0: i32) -> (i32, i32) {
    %c0_i32 = arith.constant 0 : i32
    %c0_i32_0 = arith.constant 0 : i32
    %c0_i32_1 = arith.constant 0 : i32
    return %c0_i32, %c0_i32_0 : i32, i32
  }
  func.func @transform_2(%arg0: i32) -> (i32, i32) {
    %c0_i32 = arith.constant 0 : i32
    %c0_i32_0 = arith.constant 0 : i32
    %c0_i32_1 = arith.constant 0 : i32
    return %c0_i32, %c0_i32_0 : i32, i32
  }
  func.func @transform_3(%arg0: i32) -> (i32, i32) {
    %c0_i32 = arith.constant 0 : i32
    %c0_i32_0 = arith.constant 0 : i32
    %c0_i32_1 = arith.constant 0 : i32
    return %c0_i32, %c0_i32_0 : i32, i32
  }
  func.func @transform_4(%arg0: i32) -> (i32, i32) {
    %c0_i32 = arith.constant 0 : i32
    %c0_i32_0 = arith.constant 0 : i32
    %c0_i32_1 = arith.constant 0 : i32
    return %c0_i32, %c0_i32_0 : i32, i32
  }
  func.func @transform_5(%arg0: i32) -> (i32, i32, i32) {
    %c0_i32 = arith.constant 0 : i32
    %c0_i32_0 = arith.constant 0 : i32
    %c0_i32_1 = arith.constant 0 : i32
    %c0_i32_2 = arith.constant 0 : i32
    return %c0_i32, %c0_i32_0, %c0_i32_1 : i32, i32, i32
  }
  func.func @transform_6(%arg0: i32) -> (i32, i32, i32, i32) {
    %c0_i32 = arith.constant 0 : i32
    %c0_i32_0 = arith.constant 0 : i32
    %c0_i32_1 = arith.constant 0 : i32
    %c0_i32_2 = arith.constant 0 : i32
    return %arg0, %c0_i32, %c0_i32_0, %c0_i32_1 : i32, i32, i32, i32
  }
  func.func @transform_7(%arg0: i32) -> (i32, i32) {
    %c0_i32 = arith.constant 0 : i32
    %c0_i32_0 = arith.constant 0 : i32
    %c0_i32_1 = arith.constant 0 : i32
    return %c0_i32, %c0_i32_0 : i32, i32
  }
  func.func @transform_8(%arg0: i32) -> (i32, i32) {
    %c0_i32 = arith.constant 0 : i32
    %c0_i32_0 = arith.constant 0 : i32
    %c0_i32_1 = arith.constant 0 : i32
    return %c0_i32, %c0_i32_0 : i32, i32
  }
}

module attributes {stable_mosaic.version = 11 : i64} {
  func.func @kernel(%arg0: i32, %arg1: memref<1x18x18x128xf32, #tpu.memory_space<vmem>>, %arg2: memref<9x128x128xf32, #tpu.memory_space<vmem>>, %arg3: memref<1x16x16x128xf32, #tpu.memory_space<vmem>>, %arg4: memref<1x128xf32, #tpu.memory_space<vmem>>, %arg5: memref<1x128xf32, #tpu.memory_space<vmem>>) attributes {dimension_semantics = [#tpu.dimension_semantics<arbitrary>], iteration_bounds = array<i64: 2>, scalar_prefetch = 0 : i64, scratch_operands = 0 : i64, tpu.core_type = #tpu.core_type<tc>, window_params = [{transform_indices = @transform_0, window_bounds = array<i64: 1, 18, 18, 128>}, {pipeline_mode = #tpu.pipeline_mode<synchronous>, transform_indices = @transform_1, window_bounds = array<i64: 9, 128, 128>}, {transform_indices = @transform_2, window_bounds = array<i64: 1, 16, 16, 128>}, {pipeline_mode = #tpu.pipeline_mode<synchronous>, transform_indices = @transform_3, window_bounds = array<i64: 1, 128>}, {pipeline_mode = #tpu.pipeline_mode<synchronous>, transform_indices = @transform_4, window_bounds = array<i64: 1, 128>}]} {
    %c0_i32 = arith.constant 0 : i32
    %0 = arith.cmpi eq, %arg0, %c0_i32 : i32
    %1 = arith.extui %0 : i1 to i32
    %c0_i32_0 = arith.constant 0 : i32
    %2 = arith.cmpi ne, %1, %c0_i32_0 : i32
    scf.if %2 {
      %cst_46 = arith.constant 0.000000e+00 : f32
      %75 = vector.broadcast %cst_46 : f32 to vector<1x128xf32>
      %c0_47 = arith.constant 0 : index
      %c0_48 = arith.constant 0 : index
      %76 = vector.load %arg4[%c0_47, %c0_48] : memref<1x128xf32, #tpu.memory_space<vmem>>, vector<1x128xf32>
      tpu.vector_store %arg4[%c0_47, %c0_48], %75 {strides = array<i32>} : memref<1x128xf32, #tpu.memory_space<vmem>>, vector<1x128xf32>,
      %cst_49 = arith.constant 0.000000e+00 : f32
      %77 = vector.broadcast %cst_49 : f32 to vector<1x128xf32>
      %c0_50 = arith.constant 0 : index
      %c0_51 = arith.constant 0 : index
      %78 = vector.load %arg5[%c0_50, %c0_51] : memref<1x128xf32, #tpu.memory_space<vmem>>, vector<1x128xf32>
      tpu.vector_store %arg5[%c0_50, %c0_51], %77 {strides = array<i32>} : memref<1x128xf32, #tpu.memory_space<vmem>>, vector<1x128xf32>,
    } else {
    }
    %c0 = arith.constant 0 : index
    %c0_1 = arith.constant 0 : index
    %c0_2 = arith.constant 0 : index
    %c0_3 = arith.constant 0 : index
    %3 = vector.load %arg1[%c0, %c0_1, %c0_2, %c0_3] : memref<1x18x18x128xf32, #tpu.memory_space<vmem>>, vector<1x18x18x128xf32>
    %4 = vector.shape_cast %3 : vector<1x18x18x128xf32> to vector<18x18x128xf32>
    %cst = arith.constant 0.000000e+00 : f32
    %5 = vector.broadcast %cst : f32 to vector<256x128xf32>
    %6 = vector.extract_strided_slice %4 {offsets = [0, 0, 0], sizes = [16, 16, 128], strides = [1, 1, 1]} : vector<18x18x128xf32> to vector<16x16x128xf32>
    %7 = vector.shape_cast %6 : vector<16x16x128xf32> to vector<256x128xf32>
    %c0_4 = arith.constant 0 : index
    %c0_5 = arith.constant 0 : index
    %c0_6 = arith.constant 0 : index
    %8 = vector.load %arg2[%c0_4, %c0_5, %c0_6] : memref<9x128x128xf32, #tpu.memory_space<vmem>>, vector<1x128x128xf32>
    %9 = vector.shape_cast %8 : vector<1x128x128xf32> to vector<128x128xf32>
    %cst_7 = arith.constant dense<0.000000e+00> : vector<256x128xf32>
    %10 = tpu.matmul %7, %9, %cst_7 {dimension_numbers = #tpu.dot_dimension_numbers<[1], [0], [0], [1], [0, 0, 1, 1], [], []>} : vector<256x128xf32>, vector<128x128xf32>, vector<256x128xf32> -> vector<256x128xf32>
    %11 = arith.addf %5, %10 : vector<256x128xf32>
    %12 = vector.extract_strided_slice %4 {offsets = [0, 1, 0], sizes = [16, 16, 128], strides = [1, 1, 1]} : vector<18x18x128xf32> to vector<16x16x128xf32>
    %13 = vector.shape_cast %12 : vector<16x16x128xf32> to vector<256x128xf32>
    %c1 = arith.constant 1 : index
    %c0_8 = arith.constant 0 : index
    %c0_9 = arith.constant 0 : index
    %14 = vector.load %arg2[%c1, %c0_8, %c0_9] : memref<9x128x128xf32, #tpu.memory_space<vmem>>, vector<1x128x128xf32>
    %15 = vector.shape_cast %14 : vector<1x128x128xf32> to vector<128x128xf32>
    %cst_10 = arith.constant dense<0.000000e+00> : vector<256x128xf32>
    %16 = tpu.matmul %13, %15, %cst_10 {dimension_numbers = #tpu.dot_dimension_numbers<[1], [0], [0], [1], [0, 0, 1, 1], [], []>} : vector<256x128xf32>, vector<128x128xf32>, vector<256x128xf32> -> vector<256x128xf32>
    %17 = arith.addf %11, %16 : vector<256x128xf32>
    %18 = vector.extract_strided_slice %4 {offsets = [0, 2, 0], sizes = [16, 16, 128], strides = [1, 1, 1]} : vector<18x18x128xf32> to vector<16x16x128xf32>
    %19 = vector.shape_cast %18 : vector<16x16x128xf32> to vector<256x128xf32>
    %c2 = arith.constant 2 : index
    %c0_11 = arith.constant 0 : index
    %c0_12 = arith.constant 0 : index
    %20 = vector.load %arg2[%c2, %c0_11, %c0_12] : memref<9x128x128xf32, #tpu.memory_space<vmem>>, vector<1x128x128xf32>
    %21 = vector.shape_cast %20 : vector<1x128x128xf32> to vector<128x128xf32>
    %cst_13 = arith.constant dense<0.000000e+00> : vector<256x128xf32>
    %22 = tpu.matmul %19, %21, %cst_13 {dimension_numbers = #tpu.dot_dimension_numbers<[1], [0], [0], [1], [0, 0, 1, 1], [], []>} : vector<256x128xf32>, vector<128x128xf32>, vector<256x128xf32> -> vector<256x128xf32>
    %23 = arith.addf %17, %22 : vector<256x128xf32>
    %24 = vector.extract_strided_slice %4 {offsets = [1, 0, 0], sizes = [16, 16, 128], strides = [1, 1, 1]} : vector<18x18x128xf32> to vector<16x16x128xf32>
    %25 = vector.shape_cast %24 : vector<16x16x128xf32> to vector<256x128xf32>
    %c3 = arith.constant 3 : index
    %c0_14 = arith.constant 0 : index
    %c0_15 = arith.constant 0 : index
    %26 = vector.load %arg2[%c3, %c0_14, %c0_15] : memref<9x128x128xf32, #tpu.memory_space<vmem>>, vector<1x128x128xf32>
    %27 = vector.shape_cast %26 : vector<1x128x128xf32> to vector<128x128xf32>
    %cst_16 = arith.constant dense<0.000000e+00> : vector<256x128xf32>
    %28 = tpu.matmul %25, %27, %cst_16 {dimension_numbers = #tpu.dot_dimension_numbers<[1], [0], [0], [1], [0, 0, 1, 1], [], []>} : vector<256x128xf32>, vector<128x128xf32>, vector<256x128xf32> -> vector<256x128xf32>
    %29 = arith.addf %23, %28 : vector<256x128xf32>
    %30 = vector.extract_strided_slice %4 {offsets = [1, 1, 0], sizes = [16, 16, 128], strides = [1, 1, 1]} : vector<18x18x128xf32> to vector<16x16x128xf32>
    %31 = vector.shape_cast %30 : vector<16x16x128xf32> to vector<256x128xf32>
    %c4 = arith.constant 4 : index
    %c0_17 = arith.constant 0 : index
    %c0_18 = arith.constant 0 : index
    %32 = vector.load %arg2[%c4, %c0_17, %c0_18] : memref<9x128x128xf32, #tpu.memory_space<vmem>>, vector<1x128x128xf32>
    %33 = vector.shape_cast %32 : vector<1x128x128xf32> to vector<128x128xf32>
    %cst_19 = arith.constant dense<0.000000e+00> : vector<256x128xf32>
    %34 = tpu.matmul %31, %33, %cst_19 {dimension_numbers = #tpu.dot_dimension_numbers<[1], [0], [0], [1], [0, 0, 1, 1], [], []>} : vector<256x128xf32>, vector<128x128xf32>, vector<256x128xf32> -> vector<256x128xf32>
    %35 = arith.addf %29, %34 : vector<256x128xf32>
    %36 = vector.extract_strided_slice %4 {offsets = [1, 2, 0], sizes = [16, 16, 128], strides = [1, 1, 1]} : vector<18x18x128xf32> to vector<16x16x128xf32>
    %37 = vector.shape_cast %36 : vector<16x16x128xf32> to vector<256x128xf32>
    %c5 = arith.constant 5 : index
    %c0_20 = arith.constant 0 : index
    %c0_21 = arith.constant 0 : index
    %38 = vector.load %arg2[%c5, %c0_20, %c0_21] : memref<9x128x128xf32, #tpu.memory_space<vmem>>, vector<1x128x128xf32>
    %39 = vector.shape_cast %38 : vector<1x128x128xf32> to vector<128x128xf32>
    %cst_22 = arith.constant dense<0.000000e+00> : vector<256x128xf32>
    %40 = tpu.matmul %37, %39, %cst_22 {dimension_numbers = #tpu.dot_dimension_numbers<[1], [0], [0], [1], [0, 0, 1, 1], [], []>} : vector<256x128xf32>, vector<128x128xf32>, vector<256x128xf32> -> vector<256x128xf32>
    %41 = arith.addf %35, %40 : vector<256x128xf32>
    %42 = vector.extract_strided_slice %4 {offsets = [2, 0, 0], sizes = [16, 16, 128], strides = [1, 1, 1]} : vector<18x18x128xf32> to vector<16x16x128xf32>
    %43 = vector.shape_cast %42 : vector<16x16x128xf32> to vector<256x128xf32>
    %c6 = arith.constant 6 : index
    %c0_23 = arith.constant 0 : index
    %c0_24 = arith.constant 0 : index
    %44 = vector.load %arg2[%c6, %c0_23, %c0_24] : memref<9x128x128xf32, #tpu.memory_space<vmem>>, vector<1x128x128xf32>
    %45 = vector.shape_cast %44 : vector<1x128x128xf32> to vector<128x128xf32>
    %cst_25 = arith.constant dense<0.000000e+00> : vector<256x128xf32>
    %46 = tpu.matmul %43, %45, %cst_25 {dimension_numbers = #tpu.dot_dimension_numbers<[1], [0], [0], [1], [0, 0, 1, 1], [], []>} : vector<256x128xf32>, vector<128x128xf32>, vector<256x128xf32> -> vector<256x128xf32>
    %47 = arith.addf %41, %46 : vector<256x128xf32>
    %48 = vector.extract_strided_slice %4 {offsets = [2, 1, 0], sizes = [16, 16, 128], strides = [1, 1, 1]} : vector<18x18x128xf32> to vector<16x16x128xf32>
    %49 = vector.shape_cast %48 : vector<16x16x128xf32> to vector<256x128xf32>
    %c7 = arith.constant 7 : index
    %c0_26 = arith.constant 0 : index
    %c0_27 = arith.constant 0 : index
    %50 = vector.load %arg2[%c7, %c0_26, %c0_27] : memref<9x128x128xf32, #tpu.memory_space<vmem>>, vector<1x128x128xf32>
    %51 = vector.shape_cast %50 : vector<1x128x128xf32> to vector<128x128xf32>
    %cst_28 = arith.constant dense<0.000000e+00> : vector<256x128xf32>
    %52 = tpu.matmul %49, %51, %cst_28 {dimension_numbers = #tpu.dot_dimension_numbers<[1], [0], [0], [1], [0, 0, 1, 1], [], []>} : vector<256x128xf32>, vector<128x128xf32>, vector<256x128xf32> -> vector<256x128xf32>
    %53 = arith.addf %47, %52 : vector<256x128xf32>
    %54 = vector.extract_strided_slice %4 {offsets = [2, 2, 0], sizes = [16, 16, 128], strides = [1, 1, 1]} : vector<18x18x128xf32> to vector<16x16x128xf32>
    %55 = vector.shape_cast %54 : vector<16x16x128xf32> to vector<256x128xf32>
    %c8 = arith.constant 8 : index
    %c0_29 = arith.constant 0 : index
    %c0_30 = arith.constant 0 : index
    %56 = vector.load %arg2[%c8, %c0_29, %c0_30] : memref<9x128x128xf32, #tpu.memory_space<vmem>>, vector<1x128x128xf32>
    %57 = vector.shape_cast %56 : vector<1x128x128xf32> to vector<128x128xf32>
    %cst_31 = arith.constant dense<0.000000e+00> : vector<256x128xf32>
    %58 = tpu.matmul %55, %57, %cst_31 {dimension_numbers = #tpu.dot_dimension_numbers<[1], [0], [0], [1], [0, 0, 1, 1], [], []>} : vector<256x128xf32>, vector<128x128xf32>, vector<256x128xf32> -> vector<256x128xf32>
    %59 = arith.addf %53, %58 : vector<256x128xf32>
    %60 = vector.shape_cast %59 : vector<256x128xf32> to vector<16x16x128xf32>
    %c0_32 = arith.constant 0 : index
    %c0_33 = arith.constant 0 : index
    %c0_34 = arith.constant 0 : index
    %c0_35 = arith.constant 0 : index
    %61 = vector.load %arg3[%c0_32, %c0_33, %c0_34, %c0_35] : memref<1x16x16x128xf32, #tpu.memory_space<vmem>>, vector<1x16x16x128xf32>
    %62 = vector.shape_cast %61 : vector<1x16x16x128xf32> to vector<16x16x128xf32>
    %63 = vector.shape_cast %60 : vector<16x16x128xf32> to vector<1x16x16x128xf32>
    tpu.vector_store %arg3[%c0_32, %c0_33, %c0_34, %c0_35], %63 {strides = array<i32>} : memref<1x16x16x128xf32, #tpu.memory_space<vmem>>, vector<1x16x16x128xf32>,
    %c0_36 = arith.constant 0 : index
    %c0_37 = arith.constant 0 : index
    %64 = vector.load %arg4[%c0_36, %c0_37] : memref<1x128xf32, #tpu.memory_space<vmem>>, vector<1x128xf32>
    %cst_38 = arith.constant dense<0.000000e+00> : vector<128xf32>
    %65 = vector.multi_reduction <add>, %59, %cst_38 [0] : vector<256x128xf32> to vector<128xf32>
    %66 = vector.shape_cast %65 : vector<128xf32> to vector<1x128xf32>
    %67 = arith.addf %64, %66 : vector<1x128xf32>
    %c0_39 = arith.constant 0 : index
    %c0_40 = arith.constant 0 : index
    %68 = vector.load %arg4[%c0_39, %c0_40] : memref<1x128xf32, #tpu.memory_space<vmem>>, vector<1x128xf32>
    tpu.vector_store %arg4[%c0_39, %c0_40], %67 {strides = array<i32>} : memref<1x128xf32, #tpu.memory_space<vmem>>, vector<1x128xf32>,
    %c0_41 = arith.constant 0 : index
    %c0_42 = arith.constant 0 : index
    %69 = vector.load %arg5[%c0_41, %c0_42] : memref<1x128xf32, #tpu.memory_space<vmem>>, vector<1x128xf32>
    %70 = arith.mulf %59, %59 : vector<256x128xf32>
    %cst_43 = arith.constant dense<0.000000e+00> : vector<128xf32>
    %71 = vector.multi_reduction <add>, %70, %cst_43 [0] : vector<256x128xf32> to vector<128xf32>
    %72 = vector.shape_cast %71 : vector<128xf32> to vector<1x128xf32>
    %73 = arith.addf %69, %72 : vector<1x128xf32>
    %c0_44 = arith.constant 0 : index
    %c0_45 = arith.constant 0 : index
    %74 = vector.load %arg5[%c0_44, %c0_45] : memref<1x128xf32, #tpu.memory_space<vmem>>, vector<1x128xf32>
    tpu.vector_store %arg5[%c0_44, %c0_45], %73 {strides = array<i32>} : memref<1x128xf32, #tpu.memory_space<vmem>>, vector<1x128xf32>,
    return
  }
  func.func @transform_0(%arg0: i32) -> (i32, i32, i32, i32) {
    %c0_i32 = arith.constant 0 : i32
    %c0_i32_0 = arith.constant 0 : i32
    %c0_i32_1 = arith.constant 0 : i32
    %c0_i32_2 = arith.constant 0 : i32
    return %arg0, %c0_i32, %c0_i32_0, %c0_i32_1 : i32, i32, i32, i32
  }
  func.func @transform_1(%arg0: i32) -> (i32, i32, i32) {
    %c0_i32 = arith.constant 0 : i32
    %c0_i32_0 = arith.constant 0 : i32
    %c0_i32_1 = arith.constant 0 : i32
    %c0_i32_2 = arith.constant 0 : i32
    return %c0_i32, %c0_i32_0, %c0_i32_1 : i32, i32, i32
  }
  func.func @transform_2(%arg0: i32) -> (i32, i32, i32, i32) {
    %c0_i32 = arith.constant 0 : i32
    %c0_i32_0 = arith.constant 0 : i32
    %c0_i32_1 = arith.constant 0 : i32
    %c0_i32_2 = arith.constant 0 : i32
    return %arg0, %c0_i32, %c0_i32_0, %c0_i32_1 : i32, i32, i32, i32
  }
  func.func @transform_3(%arg0: i32) -> (i32, i32) {
    %c0_i32 = arith.constant 0 : i32
    %c0_i32_0 = arith.constant 0 : i32
    %c0_i32_1 = arith.constant 0 : i32
    return %c0_i32, %c0_i32_0 : i32, i32
  }
  func.func @transform_4(%arg0: i32) -> (i32, i32) {
    %c0_i32 = arith.constant 0 : i32
    %c0_i32_0 = arith.constant 0 : i32
    %c0_i32_1 = arith.constant 0 : i32
    return %c0_i32, %c0_i32_0 : i32, i32
  }
}

module attributes {stable_mosaic.version = 11 : i64} {
  func.func @kernel(%arg0: i32, %arg1: memref<512x128xf32, #tpu.memory_space<vmem>>, %arg2: memref<1x128xf32, #tpu.memory_space<vmem>>, %arg3: memref<1x128xf32, #tpu.memory_space<vmem>>, %arg4: memref<1x128xf32, #tpu.memory_space<vmem>>, %arg5: memref<1x128xf32, #tpu.memory_space<vmem>>, %arg6: memref<512x128xf32, #tpu.memory_space<vmem>>, %arg7: memref<512x128xf32, #tpu.memory_space<vmem>>) attributes {dimension_semantics = [#tpu.dimension_semantics<parallel>], iteration_bounds = array<i64: 1>, scalar_prefetch = 0 : i64, scratch_operands = 0 : i64, tpu.core_type = #tpu.core_type<tc>, window_params = [{transform_indices = @transform_0, window_bounds = array<i64: 512, 128>}, {pipeline_mode = #tpu.pipeline_mode<synchronous>, transform_indices = @transform_1, window_bounds = array<i64: 1, 128>}, {pipeline_mode = #tpu.pipeline_mode<synchronous>, transform_indices = @transform_2, window_bounds = array<i64: 1, 128>}, {pipeline_mode = #tpu.pipeline_mode<synchronous>, transform_indices = @transform_3, window_bounds = array<i64: 1, 128>}, {pipeline_mode = #tpu.pipeline_mode<synchronous>, transform_indices = @transform_4, window_bounds = array<i64: 1, 128>}, {transform_indices = @transform_5, window_bounds = array<i64: 512, 128>}, {transform_indices = @transform_6, window_bounds = array<i64: 512, 128>}]} {
    %c0 = arith.constant 0 : index
    %c0_0 = arith.constant 0 : index
    %0 = vector.load %arg2[%c0, %c0_0] : memref<1x128xf32, #tpu.memory_space<vmem>>, vector<1x128xf32>
    %cst = arith.constant 0.001953125 : f32
    %1 = vector.broadcast %cst : f32 to vector<1x128xf32>
    %2 = arith.mulf %0, %1 : vector<1x128xf32>
    %c0_1 = arith.constant 0 : index
    %c0_2 = arith.constant 0 : index
    %3 = vector.load %arg3[%c0_1, %c0_2] : memref<1x128xf32, #tpu.memory_space<vmem>>, vector<1x128xf32>
    %cst_3 = arith.constant 0.001953125 : f32
    %4 = vector.broadcast %cst_3 : f32 to vector<1x128xf32>
    %5 = arith.mulf %3, %4 : vector<1x128xf32>
    %6 = arith.mulf %2, %2 : vector<1x128xf32>
    %7 = arith.subf %5, %6 : vector<1x128xf32>
    %cst_4 = arith.constant 9.99999974E-6 : f32
    %8 = vector.broadcast %cst_4 : f32 to vector<1x128xf32>
    %9 = arith.addf %7, %8 : vector<1x128xf32>
    %10 = math.rsqrt %9 : vector<1x128xf32>
    %c0_5 = arith.constant 0 : index
    %c0_6 = arith.constant 0 : index
    %11 = vector.load %arg4[%c0_5, %c0_6] : memref<1x128xf32, #tpu.memory_space<vmem>>, vector<1x128xf32>
    %12 = arith.mulf %10, %11 : vector<1x128xf32>
    %c0_7 = arith.constant 0 : index
    %c0_8 = arith.constant 0 : index
    %13 = vector.load %arg5[%c0_7, %c0_8] : memref<1x128xf32, #tpu.memory_space<vmem>>, vector<1x128xf32>
    %14 = arith.mulf %2, %12 : vector<1x128xf32>
    %15 = arith.subf %13, %14 : vector<1x128xf32>
    %c0_9 = arith.constant 0 : index
    %c0_10 = arith.constant 0 : index
    %16 = vector.load %arg1[%c0_9, %c0_10] : memref<512x128xf32, #tpu.memory_space<vmem>>, vector<512x128xf32>
    %17 = vector.broadcast %12 : vector<1x128xf32> to vector<512x128xf32>
    %18 = arith.mulf %16, %17 : vector<512x128xf32>
    %19 = vector.broadcast %15 : vector<1x128xf32> to vector<512x128xf32>
    %20 = arith.addf %18, %19 : vector<512x128xf32>
    %c0_11 = arith.constant 0 : index
    %c0_12 = arith.constant 0 : index
    %21 = vector.load %arg6[%c0_11, %c0_12] : memref<512x128xf32, #tpu.memory_space<vmem>>, vector<512x128xf32>
    %22 = arith.addf %20, %21 : vector<512x128xf32>
    %cst_13 = arith.constant 0.000000e+00 : f32
    %23 = vector.broadcast %cst_13 : f32 to vector<512x128xf32>
    %24 = arith.maximumf %22, %23 : vector<512x128xf32>
    %c0_14 = arith.constant 0 : index
    %c0_15 = arith.constant 0 : index
    %25 = vector.load %arg7[%c0_14, %c0_15] : memref<512x128xf32, #tpu.memory_space<vmem>>, vector<512x128xf32>
    tpu.vector_store %arg7[%c0_14, %c0_15], %24 {strides = array<i32>} : memref<512x128xf32, #tpu.memory_space<vmem>>, vector<512x128xf32>,
    return
  }
  func.func @transform_0(%arg0: i32) -> (i32, i32) {
    %c0_i32 = arith.constant 0 : i32
    %c0_i32_0 = arith.constant 0 : i32
    return %arg0, %c0_i32 : i32, i32
  }
  func.func @transform_1(%arg0: i32) -> (i32, i32) {
    %c0_i32 = arith.constant 0 : i32
    %c0_i32_0 = arith.constant 0 : i32
    %c0_i32_1 = arith.constant 0 : i32
    return %c0_i32, %c0_i32_0 : i32, i32
  }
  func.func @transform_2(%arg0: i32) -> (i32, i32) {
    %c0_i32 = arith.constant 0 : i32
    %c0_i32_0 = arith.constant 0 : i32
    %c0_i32_1 = arith.constant 0 : i32
    return %c0_i32, %c0_i32_0 : i32, i32
  }
  func.func @transform_3(%arg0: i32) -> (i32, i32) {
    %c0_i32 = arith.constant 0 : i32
    %c0_i32_0 = arith.constant 0 : i32
    %c0_i32_1 = arith.constant 0 : i32
    return %c0_i32, %c0_i32_0 : i32, i32
  }
  func.func @transform_4(%arg0: i32) -> (i32, i32) {
    %c0_i32 = arith.constant 0 : i32
    %c0_i32_0 = arith.constant 0 : i32
    %c0_i32_1 = arith.constant 0 : i32
    return %c0_i32, %c0_i32_0 : i32, i32
  }
  func.func @transform_5(%arg0: i32) -> (i32, i32) {
    %c0_i32 = arith.constant 0 : i32
    %c0_i32_0 = arith.constant 0 : i32
    return %arg0, %c0_i32 : i32, i32
  }
  func.func @transform_6(%arg0: i32) -> (i32, i32) {
    %c0_i32 = arith.constant 0 : i32
    %c0_i32_0 = arith.constant 0 : i32
    return %arg0, %c0_i32 : i32, i32
  }
}

</mosaic_0001>

<bundles_post_ra>
// kernel: residual_block_forward.5
= control target key start
LH: loop header
LB: loop body
LE: loop exit
PB: predicated region body
PF: predicated region fallthrough
CT: control target
= control target key end

     0   :  { %s1302_s1 = inlined_call_operand.vmem [shape: f32[1,128], index: 1, kind: input, shape index: {}]   ;;  %s1303_s2 = inlined_call_operand.vmem [shape: f32[1,128], index: 2, kind: input, shape index: {}]   ;;  %s1304_s3 = inlined_call_operand.vmem [shape: f32[1,128], index: 3, kind: input, shape index: {}]   ;;  %s1305_s0 = inlined_call_operand.vmem [shape: f32[512,128], index: 0, kind: input, shape index: {}]   ;;  %s1306_s4 = inlined_call_operand.vmem [shape: f32[1,128], index: 4, kind: input, shape index: {}]   ;;  %s1307_s5 = inlined_call_operand.vmem [shape: f32[512,128], index: 5, kind: input, shape index: {}]   ;;  %s1308_s6 = inlined_call_operand.vmem [shape: f32[512,128], index: 6, kind: output, shape index: {}]  }
   0x1   :  { %v23_v0 = vld [vmem:[%s1302_s1] sm:$0x1]  ;;  %v46_v18 = vld [vmem:[%s1305_s0 + $0x8] sm:$0xff]  ;;  %v47_v19 = vld [vmem:[%s1305_s0 + $0x10] sm:$0xff] }
   0x2   :  { %v25_v1 = vld [vmem:[%s1303_s2] sm:$0x1]  ;;  %v24_v2 = vmul.f32 0.001953125, %v23_v0  ;;  %v48_v20 = vld [vmem:[%s1305_s0 + $0x18] sm:$0xff]  ;;  %v50_v24 = vld [vmem:[%s1305_s0 + $0x28] sm:$0xff] }
   0x3   :  { %v26_v3 = vmul.f32 0.001953125, %v25_v1  ;;  %v40_v13 = vld [vmem:[%s1304_s3] sm:$0x1]  ;;  %v51_v25 = vld [vmem:[%s1305_s0 + $0x30] sm:$0xff]  ;;  %v52_v26 = vld [vmem:[%s1305_s0 + $0x38] sm:$0xff] }
   0x4   :  { %v27_v4 = vmul.f32 %v24_v2, %v24_v2  ;;  %v42_v16 = vld [vmem:[%s1306_s4] sm:$0x1]  ;;  %v54_v28 = vld [vmem:[%s1305_s0 + $0x48] sm:$0xff]  ;;  %v55_v29 = vld [vmem:[%s1305_s0 + $0x50] sm:$0xff] }
   0x5   :  { %v45_v17 = vld [vmem:[%s1305_s0] sm:$0xff]  ;;  %v56_v34 = vld [vmem:[%s1305_s0 + $0x58] sm:$0xff]  ;;  %v58_v36 = vld [vmem:[%s1305_s0 + $0x68] sm:$0xff] }
   0x6   :  { %v28_v5 = vsub.f32 %v26_v3, %v27_v4  ;;  %v49_v21 = vld [vmem:[%s1305_s0 + $0x20] sm:$0xff]  ;;  %v244_v43 = vld [vmem:[%s1307_s5 + $0x8] sm:$0xff]  ;;  %v245_v47 = vld [vmem:[%s1307_s5 + $0x10] sm:$0xff] }
   0x7   :  { %v53_v27 = vld [vmem:[%s1305_s0 + $0x40] sm:$0xff]  ;;  %v246_v48 = vld [vmem:[%s1307_s5 + $0x18] sm:$0xff]  ;;  %v248_v58 = vld [vmem:[%s1307_s5 + $0x28] sm:$0xff] }
   0x8   :  { %v29_v6 = vadd.f32 1e-05, %v28_v5  ;;  %v57_v35 = vld [vmem:[%s1305_s0 + $0x60] sm:$0xff]  ;;  %v249_v59 = vld [vmem:[%s1307_s5 + $0x30] sm:$0xff]  ;;  %v250_v60 = vld [vmem:[%s1307_s5 + $0x38] sm:$0xff] }
   0x9   :  { %v243_v42 = vld [vmem:[%s1307_s5] sm:$0xff] }
   0xa   :  { %503 = vrsqrt.f32 %v29_v6  ;;  %vm36_vm0 = vweird.f32 %v29_v6  ;;  %v247_v49 = vld [vmem:[%s1307_s5 + $0x20] sm:$0xff] }
  0x10   :  { %v504_v7 = vpop.eup %503 }
  0x11   :  { %v31_v8 = vmul.f32 %v504_v7, %v29_v6  ;;  %vm37_vm1 = vweird.f32 %v504_v7 }
  0x12   :  { %vm38_vm2 = vmor %vm36_vm0, %vm37_vm1 }
  0x13   :  { %v32_v9 = vmul.f32 %v504_v7, %v31_v8 }
  0x15   :  { %v33_v10 = vmul.f32 0.5, %v32_v9  ;;  %v251_v9 = vld [vmem:[%s1307_s5 + $0x40] sm:$0xff] }
  0x17   :  { %v34_v11 = vsub.f32 1.5, %v33_v10  ;;  %v252_v10 = vld [vmem:[%s1307_s5 + $0x48] sm:$0xff] }
  0x19   :  { %v35_v12 = vmul.f32 %v504_v7, %v34_v11 }
  0x1b   :  { %v39_v14 = vsel %vm38_vm2, %v504_v7, %v35_v12 }
  0x1c   :  { %v41_v15 = vmul.f32 %v40_v13, %v39_v14 }
  0x1e   :  { %v43_v22 = vmul.f32 %v41_v15, %v24_v2  ;;  %v567_v23 = vperm.slane %v41_v15, 0  ;;  %v59_v15 = vld [vmem:[%s1305_s0 + $0x70] sm:$0xff] }
  0x20   :  { %v44_v30 = vsub.f32 %v42_v16, %v43_v22  ;;  %v112_v31 = vmul.f32 %v567_v23, %v45_v17  ;;  %v113_v32 = vmul.f32 %v567_v23, %v46_v18  ;;  %v114_v33 = vmul.f32 %v567_v23, %v47_v19  ;;  %v60_v16 = vld [vmem:[%s1305_s0 + $0x78] sm:$0xff] }
  0x21   :  { %v115_v37 = vmul.f32 %v567_v23, %v48_v20  ;;  %v116_v38 = vmul.f32 %v567_v23, %v49_v21  ;;  %v117_v39 = vmul.f32 %v567_v23, %v50_v24  ;;  %v118_v40 = vmul.f32 %v567_v23, %v51_v25  ;;  %v253_v21 = vld [vmem:[%s1307_s5 + $0x50] sm:$0xff]  ;;  %v254_v22 = vld [vmem:[%s1307_s5 + $0x58] sm:$0xff] }
  0x22   :  { %v603_v41 = vperm.slane %v44_v30, 0  ;;  %v119_v44 = vmul.f32 %v567_v23, %v52_v26  ;;  %v120_v45 = vmul.f32 %v567_v23, %v53_v27  ;;  %v121_v46 = vmul.f32 %v567_v23, %v54_v28  ;;  %v255_v28 = vld [vmem:[%s1307_s5 + $0x60] sm:$0xff] }
  0x23   :  { %v122_v50 = vmul.f32 %v567_v23, %v55_v29  ;;  %v123_v51 = vmul.f32 %v567_v23, %v56_v34  ;;  %v124_v52 = vmul.f32 %v567_v23, %v57_v35  ;;  %v125_v53 = vmul.f32 %v567_v23, %v58_v36  ;;  %v256_v29 = vld [vmem:[%s1307_s5 + $0x68] sm:$0xff]  ;;  %v61_v34 = vld [vmem:[%s1305_s0 + $0x80] sm:$0xff] }
  0x24   :  { %v179_v54 = vadd.f32 %v603_v41, %v112_v31  ;;  %v180_v55 = vadd.f32 %v603_v41, %v113_v32  ;;  %v181_v56 = vadd.f32 %v603_v41, %v114_v33  ;;  %v182_v57 = vadd.f32 %v603_v41, %v115_v37 }
  0x25   :  { %v183_v61 = vadd.f32 %v603_v41, %v116_v38  ;;  %v184_v62 = vadd.f32 %v603_v41, %v117_v39  ;;  %v185_v63 = vadd.f32 %v603_v41, %v118_v40  ;;  %v186_v0 = vadd.f32 %v603_v41, %v119_v44  ;;  %v257_v39 = vld [vmem:[%s1307_s5 + $0x70] sm:$0xff]  ;;  %v258_v40 = vld [vmem:[%s1307_s5 + $0x78] sm:$0xff] }
  0x26   :  { %v307_v1 = vadd.f32 %v243_v42, %v179_v54  ;;  %v308_v2 = vadd.f32 %v244_v43, %v180_v55  ;;  %v309_v3 = vadd.f32 %v245_v47, %v181_v56  ;;  %v310_v4 = vadd.f32 %v246_v48, %v182_v57  ;;  %v62_v42 = vld [vmem:[%s1305_s0 + $0x88] sm:$0xff]  ;;  %v63_v47 = vld [vmem:[%s1305_s0 + $0x90] sm:$0xff]  ;;  %v64_v48 = vld [vmem:[%s1305_s0 + $0x98] sm:$0xff] }
  0x27   :  { %v311_v5 = vadd.f32 %v247_v49, %v183_v61  ;;  %v312_v6 = vadd.f32 %v248_v58, %v184_v62  ;;  %v313_v7 = vadd.f32 %v249_v59, %v185_v63  ;;  %v644_v8 = vadd.f32 %v250_v60, %v186_v0  ;;  %v65_v49 = vld [vmem:[%s1305_s0 + $0xa0] sm:$0xff]  ;;  %v66_v54 = vld [vmem:[%s1305_s0 + $0xa8] sm:$0xff]  ;;  %v67_v0 = vld [vmem:[%s1305_s0 + $0xb0] sm:$0xff] }
  0x28   :  { %v371_v11 = vmax.f32 %v307_v1, 0.0  ;;  %v372_v12 = vmax.f32 %v308_v2, 0.0  ;;  %v373_v13 = vmax.f32 %v309_v3, 0.0  ;;  %v374_v14 = vmax.f32 %v310_v4, 0.0  ;;  %v259_v60 = vld [vmem:[%s1307_s5 + $0x80] sm:$0xff]  ;;  %v68_v1 = vld [vmem:[%s1305_s0 + $0xb8] sm:$0xff] }
  0x29   :  { %v375_v17 = vmax.f32 %v311_v5, 0.0  ;;  %v376_v18 = vmax.f32 %v312_v6, 0.0  ;;  %v377_v19 = vmax.f32 %v313_v7, 0.0  ;;  %v378_v20 = vmax.f32 %v644_v8, 0.0  ;;  %v260_v4 = vld [vmem:[%s1307_s5 + $0x88] sm:$0xff]  ;;  %v261_v5 = vld [vmem:[%s1307_s5 + $0x90] sm:$0xff] }
  0x2a   :  { %435 = vst [vmem:[%s1308_s6] sm:$0xff] %v371_v11  ;;  %v187_v24 = vadd.f32 %v603_v41, %v120_v45  ;;  %v188_v25 = vadd.f32 %v603_v41, %v121_v46  ;;  %v189_v26 = vadd.f32 %v603_v41, %v122_v50  ;;  %v190_v27 = vadd.f32 %v603_v41, %v123_v51  ;;  %v262_v6 = vld [vmem:[%s1307_s5 + $0x98] sm:$0xff] }
  0x2b   :  { %436 = vst [vmem:[%s1308_s6 + $0x8] sm:$0xff] %v372_v12  ;;  %v191_v30 = vadd.f32 %v603_v41, %v124_v52  ;;  %v192_v31 = vadd.f32 %v603_v41, %v125_v53  ;;  %v126_v32 = vmul.f32 %v567_v23, %v59_v15  ;;  %v127_v33 = vmul.f32 %v567_v23, %v60_v16 }
  0x2c   :  { %437 = vst [vmem:[%s1308_s6 + $0x10] sm:$0xff] %v373_v13  ;;  %v315_v35 = vadd.f32 %v251_v9, %v187_v24  ;;  %v316_v36 = vadd.f32 %v252_v10, %v188_v25  ;;  %v317_v37 = vadd.f32 %v253_v21, %v189_v26  ;;  %v318_v38 = vadd.f32 %v254_v22, %v190_v27  ;;  %v263_v13 = vld [vmem:[%s1307_s5 + $0xa0] sm:$0xff]  ;;  %v265_v25 = vld [vmem:[%s1307_s5 + $0xb0] sm:$0xff]  ;;  %v266_v26 = vld [vmem:[%s1307_s5 + $0xb8] sm:$0xff] }
  0x2d   :  { %438 = vst [vmem:[%s1308_s6 + $0x18] sm:$0xff] %v374_v14  ;;  %v703_v43 = vadd.f32 %v255_v28, %v191_v30  ;;  %v705_v44 = vadd.f32 %v256_v29, %v192_v31  ;;  %v193_v45 = vadd.f32 %v603_v41, %v126_v32  ;;  %v194_v46 = vadd.f32 %v603_v41, %v127_v33  ;;  %v264_v14 = vld [vmem:[%s1307_s5 + $0xa8] sm:$0xff]  ;;  %v71_v32 = vld [vmem:[%s1305_s0 + $0xd0] sm:$0xff]  ;;  %v72_v33 = vld [vmem:[%s1305_s0 + $0xd8] sm:$0xff] }
  0x2e   :  { %439 = vst [vmem:[%s1308_s6 + $0x20] sm:$0xff] %v375_v17  ;;  %v379_v50 = vmax.f32 %v315_v35, 0.0  ;;  %v380_v51 = vmax.f32 %v316_v36, 0.0  ;;  %v381_v52 = vmax.f32 %v317_v37, 0.0  ;;  %v382_v53 = vmax.f32 %v318_v38, 0.0  ;;  %v70_v27 = vld [vmem:[%s1305_s0 + $0xc8] sm:$0xff] }
  0x2f   :  { %440 = vst [vmem:[%s1308_s6 + $0x28] sm:$0xff] %v376_v18  ;;  %v383_v55 = vmax.f32 %v703_v43, 0.0  ;;  %v384_v56 = vmax.f32 %v705_v44, 0.0  ;;  %v321_v57 = vadd.f32 %v257_v39, %v193_v45  ;;  %v729_v58 = vadd.f32 %v258_v40, %v194_v46  ;;  %v74_v39 = vld [vmem:[%s1305_s0 + $0xe8] sm:$0xff]  ;;  %v267_v46 = vld [vmem:[%s1307_s5 + $0xc0] sm:$0xff] }
  0x30   :  { %441 = vst [vmem:[%s1308_s6 + $0x30] sm:$0xff] %v377_v19  ;;  %v128_v59 = vmul.f32 %v567_v23, %v61_v34  ;;  %v129_v61 = vmul.f32 %v567_v23, %v62_v42  ;;  %v130_v62 = vmul.f32 %v567_v23, %v63_v47  ;;  %v131_v63 = vmul.f32 %v567_v23, %v64_v48  ;;  %v69_v19 = vld [vmem:[%s1305_s0 + $0xc0] sm:$0xff] }
  0x31   :  { %442 = vst [vmem:[%s1308_s6 + $0x38] sm:$0xff] %v378_v20  ;;  %v385_v2 = vmax.f32 %v321_v57, 0.0  ;;  %v386_v3 = vmax.f32 %v729_v58, 0.0  ;;  %v132_v7 = vmul.f32 %v567_v23, %v65_v49  ;;  %v133_v8 = vmul.f32 %v567_v23, %v66_v54  ;;  %v73_v34 = vld [vmem:[%s1305_s0 + $0xe0] sm:$0xff]  ;;  %v268_v54 = vld [vmem:[%s1307_s5 + $0xc8] sm:$0xff] }
  0x32   :  { %443 = vst [vmem:[%s1308_s6 + $0x40] sm:$0xff] %v379_v50  ;;  %v195_v9 = vadd.f32 %v603_v41, %v128_v59  ;;  %v196_v10 = vadd.f32 %v603_v41, %v129_v61  ;;  %v197_v11 = vadd.f32 %v603_v41, %v130_v62  ;;  %v198_v12 = vadd.f32 %v603_v41, %v131_v63  ;;  %v75_v50 = vld [vmem:[%s1305_s0 + $0xf0] sm:$0xff]  ;;  %v271_v63 = vld [vmem:[%s1307_s5 + $0xe0] sm:$0xff] }
  0x33   :  { %444 = vst [vmem:[%s1308_s6 + $0x48] sm:$0xff] %v380_v51  ;;  %v199_v15 = vadd.f32 %v603_v41, %v132_v7  ;;  %v200_v16 = vadd.f32 %v603_v41, %v133_v8  ;;  %v134_v17 = vmul.f32 %v567_v23, %v67_v0  ;;  %v135_v18 = vmul.f32 %v567_v23, %v68_v1  ;;  %v76_v51 = vld [vmem:[%s1305_s0 + $0xf8] sm:$0xff]  ;;  %v272_v0 = vld [vmem:[%s1307_s5 + $0xe8] sm:$0xff] }
  0x34   :  { %445 = vst [vmem:[%s1308_s6 + $0x50] sm:$0xff] %v381_v52  ;;  %v323_v20 = vadd.f32 %v259_v60, %v195_v9  ;;  %v324_v21 = vadd.f32 %v260_v4, %v196_v10  ;;  %v325_v22 = vadd.f32 %v261_v5, %v197_v11  ;;  %v326_v24 = vadd.f32 %v262_v6, %v198_v12  ;;  %v77_v5 = vld [vmem:[%s1305_s0 + $0x100] sm:$0xff]  ;;  %v273_v10 = vld [vmem:[%s1307_s5 + $0xf0] sm:$0xff]  ;;  %v274_v11 = vld [vmem:[%s1307_s5 + $0xf8] sm:$0xff] }
  0x35   :  { %446 = vst [vmem:[%s1308_s6 + $0x58] sm:$0xff] %v382_v53  ;;  %v800_v28 = vadd.f32 %v263_v13, %v199_v15  ;;  %v802_v29 = vadd.f32 %v264_v14, %v200_v16  ;;  %v201_v30 = vadd.f32 %v603_v41, %v134_v17  ;;  %v202_v31 = vadd.f32 %v603_v41, %v135_v18  ;;  %v78_v12 = vld [vmem:[%s1305_s0 + $0x108] sm:$0xff]  ;;  %v79_v17 = vld [vmem:[%s1305_s0 + $0x110] sm:$0xff]  ;;  %v80_v18 = vld [vmem:[%s1305_s0 + $0x118] sm:$0xff] }
  0x36   :  { %447 = vst [vmem:[%s1308_s6 + $0x60] sm:$0xff] %v383_v55  ;;  %v387_v35 = vmax.f32 %v323_v20, 0.0  ;;  %v388_v36 = vmax.f32 %v324_v21, 0.0  ;;  %v389_v37 = vmax.f32 %v325_v22, 0.0  ;;  %v390_v38 = vmax.f32 %v326_v24, 0.0  ;;  %v269_v55 = vld [vmem:[%s1307_s5 + $0xd0] sm:$0xff] }
  0x37   :  { %448 = vst [vmem:[%s1308_s6 + $0x68] sm:$0xff] %v384_v56  ;;  %v391_v40 = vmax.f32 %v800_v28, 0.0  ;;  %v392_v42 = vmax.f32 %v802_v29, 0.0  ;;  %v329_v43 = vadd.f32 %v265_v25, %v201_v30  ;;  %v826_v44 = vadd.f32 %v266_v26, %v202_v31  ;;  %v270_v56 = vld [vmem:[%s1307_s5 + $0xd8] sm:$0xff]  ;;  %v82_v25 = vld [vmem:[%s1305_s0 + $0x128] sm:$0xff]  ;;  %v275_v31 = vld [vmem:[%s1307_s5 + $0x100] sm:$0xff] }
  0x38   :  { %449 = vst [vmem:[%s1308_s6 + $0x70] sm:$0xff] %v385_v2  ;;  %v136_v45 = vmul.f32 %v567_v23, %v69_v19  ;;  %v137_v47 = vmul.f32 %v567_v23, %v70_v27  ;;  %v138_v48 = vmul.f32 %v567_v23, %v71_v32  ;;  %v139_v49 = vmul.f32 %v567_v23, %v72_v33  ;;  %v81_v19 = vld [vmem:[%s1305_s0 + $0x120] sm:$0xff] }
  0x39   :  { %450 = vst [vmem:[%s1308_s6 + $0x78] sm:$0xff] %v386_v3  ;;  %v393_v52 = vmax.f32 %v329_v43, 0.0  ;;  %v394_v53 = vmax.f32 %v826_v44, 0.0  ;;  %v140_v57 = vmul.f32 %v567_v23, %v73_v34  ;;  %v141_v58 = vmul.f32 %v567_v23, %v74_v39  ;;  %v276_v39 = vld [vmem:[%s1307_s5 + $0x108] sm:$0xff] }
  0x3a   :  { %451 = vst [vmem:[%s1308_s6 + $0x80] sm:$0xff] %v387_v35  ;;  %v203_v59 = vadd.f32 %v603_v41, %v136_v45  ;;  %v204_v60 = vadd.f32 %v603_v41, %v137_v47  ;;  %v205_v61 = vadd.f32 %v603_v41, %v138_v48  ;;  %v206_v62 = vadd.f32 %v603_v41, %v139_v49  ;;  %v83_v35 = vld [vmem:[%s1305_s0 + $0x130] sm:$0xff]  ;;  %v279_v49 = vld [vmem:[%s1307_s5 + $0x120] sm:$0xff] }
  0x3b   :  { %452 = vst [vmem:[%s1308_s6 + $0x88] sm:$0xff] %v388_v36  ;;  %v207_v1 = vadd.f32 %v603_v41, %v140_v57  ;;  %v208_v2 = vadd.f32 %v603_v41, %v141_v58  ;;  %v142_v3 = vmul.f32 %v567_v23, %v75_v50  ;;  %v143_v4 = vmul.f32 %v567_v23, %v76_v51  ;;  %v84_v36 = vld [vmem:[%s1305_s0 + $0x138] sm:$0xff]  ;;  %v280_v50 = vld [vmem:[%s1307_s5 + $0x128] sm:$0xff] }
  0x3c   :  { %453 = vst [vmem:[%s1308_s6 + $0x90] sm:$0xff] %v389_v37  ;;  %v331_v6 = vadd.f32 %v267_v46, %v203_v59  ;;  %v332_v7 = vadd.f32 %v268_v54, %v204_v60  ;;  %v333_v8 = vadd.f32 %v269_v55, %v205_v61  ;;  %v334_v9 = vadd.f32 %v270_v56, %v206_v62  ;;  %v85_v55 = vld [vmem:[%s1305_s0 + $0x140] sm:$0xff]  ;;  %v281_v60 = vld [vmem:[%s1307_s5 + $0x130] sm:$0xff]  ;;  %v282_v61 = vld [vmem:[%s1307_s5 + $0x138] sm:$0xff] }
  0x3d   :  { %454 = vst [vmem:[%s1308_s6 + $0x98] sm:$0xff] %v390_v38  ;;  %v897_v13 = vadd.f32 %v271_v63, %v207_v1  ;;  %v899_v14 = vadd.f32 %v272_v0, %v208_v2  ;;  %v209_v15 = vadd.f32 %v603_v41, %v142_v3  ;;  %v210_v16 = vadd.f32 %v603_v41, %v143_v4  ;;  %v86_v62 = vld [vmem:[%s1305_s0 + $0x148] sm:$0xff]  ;;  %v87_v3 = vld [vmem:[%s1305_s0 + $0x150] sm:$0xff]  ;;  %v88_v4 = vld [vmem:[%s1305_s0 + $0x158] sm:$0xff] }
  0x3e   :  { %455 = vst [vmem:[%s1308_s6 + $0xa0] sm:$0xff] %v391_v40  ;;  %v395_v20 = vmax.f32 %v331_v6, 0.0  ;;  %v396_v21 = vmax.f32 %v332_v7, 0.0  ;;  %v397_v22 = vmax.f32 %v333_v8, 0.0  ;;  %v398_v24 = vmax.f32 %v334_v9, 0.0  ;;  %v277_v40 = vld [vmem:[%s1307_s5 + $0x110] sm:$0xff] }
  0x3f   :  { %456 = vst [vmem:[%s1308_s6 + $0xa8] sm:$0xff] %v392_v42  ;;  %v399_v26 = vmax.f32 %v897_v13, 0.0  ;;  %v400_v27 = vmax.f32 %v899_v14, 0.0  ;;  %v337_v28 = vadd.f32 %v273_v10, %v209_v15  ;;  %v923_v29 = vadd.f32 %v274_v11, %v210_v16  ;;  %v278_v42 = vld [vmem:[%s1307_s5 + $0x118] sm:$0xff]  ;;  %v90_v10 = vld [vmem:[%s1305_s0 + $0x168] sm:$0xff]  ;;  %v283_v16 = vld [vmem:[%s1307_s5 + $0x140] sm:$0xff] }
  0x40   :  { %457 = vst [vmem:[%s1308_s6 + $0xb0] sm:$0xff] %v393_v52  ;;  %v144_v30 = vmul.f32 %v567_v23, %v77_v5  ;;  %v145_v32 = vmul.f32 %v567_v23, %v78_v12  ;;  %v146_v33 = vmul.f32 %v567_v23, %v79_v17  ;;  %v147_v34 = vmul.f32 %v567_v23, %v80_v18  ;;  %v89_v5 = vld [vmem:[%s1305_s0 + $0x160] sm:$0xff] }
  0x41   :  { %458 = vst [vmem:[%s1308_s6 + $0xb8] sm:$0xff] %v394_v53  ;;  %v401_v37 = vmax.f32 %v337_v28, 0.0  ;;  %v402_v38 = vmax.f32 %v923_v29, 0.0  ;;  %v148_v43 = vmul.f32 %v567_v23, %v81_v19  ;;  %v149_v44 = vmul.f32 %v567_v23, %v82_v25  ;;  %v284_v25 = vld [vmem:[%s1307_s5 + $0x148] sm:$0xff] }
  0x42   :  { %459 = vst [vmem:[%s1308_s6 + $0xc0] sm:$0xff] %v395_v20  ;;  %v211_v45 = vadd.f32 %v603_v41, %v144_v30  ;;  %v212_v46 = vadd.f32 %v603_v41, %v145_v32  ;;  %v213_v47 = vadd.f32 %v603_v41, %v146_v33  ;;  %v214_v48 = vadd.f32 %v603_v41, %v147_v34  ;;  %v91_v20 = vld [vmem:[%s1305_s0 + $0x170] sm:$0xff]  ;;  %v287_v34 = vld [vmem:[%s1307_s5 + $0x160] sm:$0xff] }
  0x43   :  { %460 = vst [vmem:[%s1308_s6 + $0xc8] sm:$0xff] %v396_v21  ;;  %v215_v51 = vadd.f32 %v603_v41, %v148_v43  ;;  %v216_v52 = vadd.f32 %v603_v41, %v149_v44  ;;  %v150_v53 = vmul.f32 %v567_v23, %v83_v35  ;;  %v151_v54 = vmul.f32 %v567_v23, %v84_v36  ;;  %v92_v21 = vld [vmem:[%s1305_s0 + $0x178] sm:$0xff]  ;;  %v288_v35 = vld [vmem:[%s1307_s5 + $0x168] sm:$0xff] }
  0x44   :  { %461 = vst [vmem:[%s1308_s6 + $0xd0] sm:$0xff] %v397_v22  ;;  %v339_v56 = vadd.f32 %v275_v31, %v211_v45  ;;  %v340_v57 = vadd.f32 %v276_v39, %v212_v46  ;;  %v341_v58 = vadd.f32 %v277_v40, %v213_v47  ;;  %v342_v59 = vadd.f32 %v278_v42, %v214_v48  ;;  %v93_v40 = vld [vmem:[%s1305_s0 + $0x180] sm:$0xff]  ;;  %v289_v46 = vld [vmem:[%s1307_s5 + $0x170] sm:$0xff]  ;;  %v290_v47 = vld [vmem:[%s1307_s5 + $0x178] sm:$0xff] }
  0x45   :  { %462 = vst [vmem:[%s1308_s6 + $0xd8] sm:$0xff] %v398_v24  ;;  %v994_v63 = vadd.f32 %v279_v49, %v215_v51  ;;  %v996_v0 = vadd.f32 %v280_v50, %v216_v52  ;;  %v217_v1 = vadd.f32 %v603_v41, %v150_v53  ;;  %v218_v2 = vadd.f32 %v603_v41, %v151_v54  ;;  %v94_v48 = vld [vmem:[%s1305_s0 + $0x188] sm:$0xff]  ;;  %v95_v53 = vld [vmem:[%s1305_s0 + $0x190] sm:$0xff]  ;;  %v96_v54 = vld [vmem:[%s1305_s0 + $0x198] sm:$0xff] }
  0x46   :  { %463 = vst [vmem:[%s1308_s6 + $0xe0] sm:$0xff] %v399_v26  ;;  %v403_v6 = vmax.f32 %v339_v56, 0.0  ;;  %v404_v7 = vmax.f32 %v340_v57, 0.0  ;;  %v405_v8 = vmax.f32 %v341_v58, 0.0  ;;  %v406_v9 = vmax.f32 %v342_v59, 0.0  ;;  %v285_v26 = vld [vmem:[%s1307_s5 + $0x150] sm:$0xff] }
  0x47   :  { %464 = vst [vmem:[%s1308_s6 + $0xe8] sm:$0xff] %v400_v27  ;;  %v407_v11 = vmax.f32 %v994_v63, 0.0  ;;  %v408_v12 = vmax.f32 %v996_v0, 0.0  ;;  %v345_v13 = vadd.f32 %v281_v60, %v217_v1  ;;  %v1020_v14 = vadd.f32 %v282_v61, %v218_v2  ;;  %v286_v27 = vld [vmem:[%s1307_s5 + $0x158] sm:$0xff]  ;;  %v98_v60 = vld [vmem:[%s1305_s0 + $0x1a8] sm:$0xff]  ;;  %v291_v2 = vld [vmem:[%s1307_s5 + $0x180] sm:$0xff] }
  0x48   :  { %465 = vst [vmem:[%s1308_s6 + $0xf0] sm:$0xff] %v401_v37  ;;  %v152_v15 = vmul.f32 %v567_v23, %v85_v55  ;;  %v153_v17 = vmul.f32 %v567_v23, %v86_v62  ;;  %v154_v18 = vmul.f32 %v567_v23, %v87_v3  ;;  %v155_v19 = vmul.f32 %v567_v23, %v88_v4  ;;  %v97_v55 = vld [vmem:[%s1305_s0 + $0x1a0] sm:$0xff] }
  0x49   :  { %466 = vst [vmem:[%s1308_s6 + $0xf8] sm:$0xff] %v402_v38  ;;  %v409_v22 = vmax.f32 %v345_v13, 0.0  ;;  %v410_v24 = vmax.f32 %v1020_v14, 0.0  ;;  %v156_v28 = vmul.f32 %v567_v23, %v89_v5  ;;  %v157_v29 = vmul.f32 %v567_v23, %v90_v10  ;;  %v292_v10 = vld [vmem:[%s1307_s5 + $0x188] sm:$0xff] }
  0x4a   :  { %467 = vst [vmem:[%s1308_s6 + $0x100] sm:$0xff] %v403_v6  ;;  %v219_v30 = vadd.f32 %v603_v41, %v152_v15  ;;  %v220_v31 = vadd.f32 %v603_v41, %v153_v17  ;;  %v221_v32 = vadd.f32 %v603_v41, %v154_v18  ;;  %v222_v33 = vadd.f32 %v603_v41, %v155_v19  ;;  %v99_v6 = vld [vmem:[%s1305_s0 + $0x1b0] sm:$0xff]  ;;  %v295_v19 = vld [vmem:[%s1307_s5 + $0x1a0] sm:$0xff] }
  0x4b   :  { %468 = vst [vmem:[%s1308_s6 + $0x108] sm:$0xff] %v404_v7  ;;  %v223_v36 = vadd.f32 %v603_v41, %v156_v28  ;;  %v224_v37 = vadd.f32 %v603_v41, %v157_v29  ;;  %v158_v38 = vmul.f32 %v567_v23, %v91_v20  ;;  %v159_v39 = vmul.f32 %v567_v23, %v92_v21  ;;  %v100_v7 = vld [vmem:[%s1305_s0 + $0x1b8] sm:$0xff]  ;;  %v296_v20 = vld [vmem:[%s1307_s5 + $0x1a8] sm:$0xff] }
  0x4c   :  { %469 = vst [vmem:[%s1308_s6 + $0x110] sm:$0xff] %v405_v8  ;;  %v347_v42 = vadd.f32 %v283_v16, %v219_v30  ;;  %v348_v43 = vadd.f32 %v284_v25, %v220_v31  ;;  %v349_v44 = vadd.f32 %v285_v26, %v221_v32  ;;  %v350_v45 = vadd.f32 %v286_v27, %v222_v33  ;;  %v297_v30 = vld [vmem:[%s1307_s5 + $0x1b0] sm:$0xff]  ;;  %v101_v31 = vld [vmem:[%s1305_s0 + $0x1c0] sm:$0xff] }
  0x4d   :  { %470 = vst [vmem:[%s1308_s6 + $0x118] sm:$0xff] %v406_v9  ;;  %v351_v49 = vadd.f32 %v287_v34, %v223_v36  ;;  %v1091_v50 = vadd.f32 %v288_v35, %v224_v37  ;;  %v225_v51 = vadd.f32 %v603_v41, %v158_v38  ;;  %v226_v52 = vadd.f32 %v603_v41, %v159_v39  ;;  %v102_v36 = vld [vmem:[%s1305_s0 + $0x1c8] sm:$0xff]  ;;  %v103_v37 = vld [vmem:[%s1305_s0 + $0x1d0] sm:$0xff]  ;;  %v104_v38 = vld [vmem:[%s1305_s0 + $0x1d8] sm:$0xff] }
  0x4e   :  { %471 = vst [vmem:[%s1308_s6 + $0x120] sm:$0xff] %v407_v11  ;;  %v411_v56 = vmax.f32 %v347_v42, 0.0  ;;  %v412_v57 = vmax.f32 %v348_v43, 0.0  ;;  %v413_v58 = vmax.f32 %v349_v44, 0.0  ;;  %v414_v59 = vmax.f32 %v350_v45, 0.0  ;;  %v293_v11 = vld [vmem:[%s1307_s5 + $0x190] sm:$0xff] }
  0x4f   :  { %472 = vst [vmem:[%s1308_s6 + $0x128] sm:$0xff] %v408_v12  ;;  %v415_v61 = vmax.f32 %v351_v49, 0.0  ;;  %v416_v62 = vmax.f32 %v1091_v50, 0.0  ;;  %v353_v63 = vadd.f32 %v289_v46, %v225_v51  ;;  %v354_v0 = vadd.f32 %v290_v47, %v226_v52  ;;  %v294_v12 = vld [vmem:[%s1307_s5 + $0x198] sm:$0xff]  ;;  %v105_v43 = vld [vmem:[%s1305_s0 + $0x1e0] sm:$0xff]  ;;  %v106_v44 = vld [vmem:[%s1305_s0 + $0x1e8] sm:$0xff] }
  0x50   :  { %473 = vst [vmem:[%s1308_s6 + $0x130] sm:$0xff] %v409_v22  ;;  %v160_v1 = vmul.f32 %v567_v23, %v93_v40  ;;  %v161_v3 = vmul.f32 %v567_v23, %v94_v48  ;;  %v162_v4 = vmul.f32 %v567_v23, %v95_v53  ;;  %v163_v5 = vmul.f32 %v567_v23, %v96_v54  ;;  %v298_v42 = vld [vmem:[%s1307_s5 + $0x1b8] sm:$0xff]  ;;  %v107_v53 = vld [vmem:[%s1305_s0 + $0x1f0] sm:$0xff] }
  0x51   :  { %474 = vst [vmem:[%s1308_s6 + $0x138] sm:$0xff] %v410_v24  ;;  %v417_v8 = vmax.f32 %v353_v63, 0.0  ;;  %v418_v9 = vmax.f32 %v354_v0, 0.0  ;;  %v164_v13 = vmul.f32 %v567_v23, %v97_v55  ;;  %v165_v14 = vmul.f32 %v567_v23, %v98_v60  ;;  %v108_v54 = vld [vmem:[%s1305_s0 + $0x1f8] sm:$0xff] }
  0x52   :  { %475 = vst [vmem:[%s1308_s6 + $0x140] sm:$0xff] %v411_v56  ;;  %v227_v15 = vadd.f32 %v603_v41, %v160_v1  ;;  %v228_v16 = vadd.f32 %v603_v41, %v161_v3  ;;  %v229_v17 = vadd.f32 %v603_v41, %v162_v4  ;;  %v230_v18 = vadd.f32 %v603_v41, %v163_v5  ;;  %v303_v4 = vld [vmem:[%s1307_s5 + $0x1e0] sm:$0xff] }
  0x53   :  { %476 = vst [vmem:[%s1308_s6 + $0x148] sm:$0xff] %v412_v57  ;;  %v231_v21 = vadd.f32 %v603_v41, %v164_v13  ;;  %v232_v22 = vadd.f32 %v603_v41, %v165_v14  ;;  %v166_v24 = vmul.f32 %v567_v23, %v99_v6  ;;  %v167_v25 = vmul.f32 %v567_v23, %v100_v7  ;;  %v299_v57 = vld [vmem:[%s1307_s5 + $0x1c0] sm:$0xff] }
  0x54   :  { %477 = vst [vmem:[%s1308_s6 + $0x150] sm:$0xff] %v413_v58  ;;  %v355_v26 = vadd.f32 %v291_v2, %v227_v15  ;;  %v356_v27 = vadd.f32 %v292_v10, %v228_v16  ;;  %v357_v28 = vadd.f32 %v293_v11, %v229_v17  ;;  %v358_v29 = vadd.f32 %v294_v12, %v230_v18  ;;  %v300_v58 = vld [vmem:[%s1307_s5 + $0x1c8] sm:$0xff]  ;;  %v302_v2 = vld [vmem:[%s1307_s5 + $0x1d8] sm:$0xff]  ;;  %v305_v15 = vld [vmem:[%s1307_s5 + $0x1f0] sm:$0xff] }
  0x55   :  { %478 = vst [vmem:[%s1308_s6 + $0x158] sm:$0xff] %v414_v59  ;;  %v359_v32 = vadd.f32 %v295_v19, %v231_v21  ;;  %v360_v33 = vadd.f32 %v296_v20, %v232_v22  ;;  %v233_v34 = vadd.f32 %v603_v41, %v166_v24  ;;  %v234_v35 = vadd.f32 %v603_v41, %v167_v25  ;;  %v301_v59 = vld [vmem:[%s1307_s5 + $0x1d0] sm:$0xff]  ;;  %v304_v12 = vld [vmem:[%s1307_s5 + $0x1e8] sm:$0xff]  ;;  %v306_v19 = vld [vmem:[%s1307_s5 + $0x1f8] sm:$0xff] }
  0x56   :  { %479 = vst [vmem:[%s1308_s6 + $0x160] sm:$0xff] %v415_v61  ;;  %v419_v39 = vmax.f32 %v355_v26, 0.0  ;;  %v420_v40 = vmax.f32 %v356_v27, 0.0  ;;  %v421_v45 = vmax.f32 %v357_v28, 0.0  ;;  %v422_v46 = vmax.f32 %v358_v29, 0.0 }
  0x57   :  { %480 = vst [vmem:[%s1308_s6 + $0x168] sm:$0xff] %v416_v62  ;;  %v423_v47 = vmax.f32 %v359_v32, 0.0  ;;  %v361_v48 = vadd.f32 %v297_v30, %v233_v34  ;;  %v168_v49 = vmul.f32 %v567_v23, %v101_v31  ;;  %v169_v50 = vmul.f32 %v567_v23, %v102_v36 }
  0x58   :  { %481 = vst [vmem:[%s1308_s6 + $0x170] sm:$0xff] %v417_v8  ;;  %v170_v51 = vmul.f32 %v567_v23, %v103_v37  ;;  %v171_v52 = vmul.f32 %v567_v23, %v104_v38  ;;  %v424_v55 = vmax.f32 %v360_v33, 0.0  ;;  %v362_v56 = vadd.f32 %v298_v42, %v234_v35 }
  0x59   :  { %482 = vst [vmem:[%s1308_s6 + $0x178] sm:$0xff] %v418_v9  ;;  %v172_v60 = vmul.f32 %v567_v23, %v105_v43  ;;  %v173_v61 = vmul.f32 %v567_v23, %v106_v44  ;;  %v235_v62 = vadd.f32 %v603_v41, %v168_v49  ;;  %v236_v63 = vadd.f32 %v603_v41, %v169_v50 }
  0x5a   :  { %483 = vst [vmem:[%s1308_s6 + $0x180] sm:$0xff] %v419_v39  ;;  %v237_v0 = vadd.f32 %v603_v41, %v170_v51  ;;  %v238_v1 = vadd.f32 %v603_v41, %v171_v52  ;;  %v174_v6 = vmul.f32 %v567_v23, %v107_v53  ;;  %v175_v7 = vmul.f32 %v567_v23, %v108_v54 }
  0x5b   :  { %484 = vst [vmem:[%s1308_s6 + $0x188] sm:$0xff] %v420_v40  ;;  %v239_v3 = vadd.f32 %v603_v41, %v172_v60  ;;  %v240_v5 = vadd.f32 %v603_v41, %v173_v61  ;;  %v425_v8 = vmax.f32 %v361_v48, 0.0  ;;  %v363_v9 = vadd.f32 %v299_v57, %v235_v62 }
  0x5c   :  { %485 = vst [vmem:[%s1308_s6 + $0x190] sm:$0xff] %v421_v45  ;;  %v364_v10 = vadd.f32 %v300_v58, %v236_v63  ;;  %v365_v11 = vadd.f32 %v301_v59, %v237_v0  ;;  %v426_v13 = vmax.f32 %v362_v56, 0.0  ;;  %v366_v14 = vadd.f32 %v302_v2, %v238_v1 }
  0x5d   :  { %486 = vst [vmem:[%s1308_s6 + $0x198] sm:$0xff] %v422_v46  ;;  %v241_v23 = vadd.f32 %v603_v41, %v174_v6  ;;  %v242_v16 = vadd.f32 %v603_v41, %v175_v7  ;;  %v427_v17 = vmax.f32 %v363_v9, 0.0  ;;  %v367_v18 = vadd.f32 %v303_v4, %v239_v3 }
  0x5e   :  { %487 = vst [vmem:[%s1308_s6 + $0x1a0] sm:$0xff] %v423_v47  ;;  %v428_v20 = vmax.f32 %v364_v10, 0.0  ;;  %v368_v21 = vadd.f32 %v304_v12, %v240_v5  ;;  %v429_v41 = vmax.f32 %v365_v11, 0.0  ;;  %v430_v24 = vmax.f32 %v366_v14, 0.0 }
  0x5f   :  { %488 = vst [vmem:[%s1308_s6 + $0x1a8] sm:$0xff] %v424_v55  ;;  %v369_v22 = vadd.f32 %v305_v15, %v241_v23  ;;  %v370_v25 = vadd.f32 %v306_v19, %v242_v16  ;;  %v431_v26 = vmax.f32 %v367_v18, 0.0 }
  0x60   :  { %489 = vst [vmem:[%s1308_s6 + $0x1b0] sm:$0xff] %v425_v8  ;;  %v432_v27 = vmax.f32 %v368_v21, 0.0 }
  0x61   :  { %490 = vst [vmem:[%s1308_s6 + $0x1b8] sm:$0xff] %v426_v13  ;;  %v433_v28 = vmax.f32 %v369_v22, 0.0  ;;  %v434_v29 = vmax.f32 %v370_v25, 0.0 }
  0x62   :  { %491 = vst [vmem:[%s1308_s6 + $0x1c0] sm:$0xff] %v427_v17 }
  0x63   :  { %492 = vst [vmem:[%s1308_s6 + $0x1c8] sm:$0xff] %v428_v20 }
  0x64   :  { %493 = vst [vmem:[%s1308_s6 + $0x1d0] sm:$0xff] %v429_v41 }
  0x65   :  { %494 = vst [vmem:[%s1308_s6 + $0x1d8] sm:$0xff] %v430_v24 }
  0x66   :  { %495 = vst [vmem:[%s1308_s6 + $0x1e0] sm:$0xff] %v431_v26 }
  0x67   :  { %496 = vst [vmem:[%s1308_s6 + $0x1e8] sm:$0xff] %v432_v27 }
  0x68   :  { %497 = vst [vmem:[%s1308_s6 + $0x1f0] sm:$0xff] %v433_v28 }
  0x69   :  { %498 = vst [vmem:[%s1308_s6 + $0x1f8] sm:$0xff] %v434_v29 }

// kernel: residual_block_forward.3
= control target key start
LH: loop header
LB: loop body
LE: loop exit
PB: predicated region body
PF: predicated region fallthrough
CT: control target
= control target key end

     0   :  { %s2428_s15 = smov 0   ;;  %s3891_s0 = inlined_call_operand.vmem [shape: f32[2,18,18,128], index: 0, kind: input, shape index: {}]   ;;  %s3892_s1 = inlined_call_operand.vmem [shape: f32[9,128,128], index: 1, kind: input, shape index: {}]   ;;  %s3893_s2 = inlined_call_operand.vmem [shape: f32[2,16,16,128], index: 2, kind: output, shape index: {0}]   ;;  %s3894_s3 = inlined_call_operand.vmem [shape: f32[1,128], index: 3, kind: output, shape index: {1}]   ;;  %s3895_s4 = inlined_call_operand.vmem [shape: f32[1,128], index: 4, kind: output, shape index: {2}]  }
   0x1 LB: > { %s2165_s16 = sadd.s32 4294967295, %s2400_s15   ;;  %p2169_p0 = scmp.ge.s32.totalorder %s2400_s15, 1  ;;  %s2400_s15 = sphi %s2428_s15, %s15_s15  }
   0x2   : > { %p157_p1 = scmp.lt.s32.totalorder %s2400_s15, 3 }
   0x4   : > { %p158_p2 = pnand %p2169_p0, %p157_p1 }
   0x6   : > { %161 = sbr.rel (%p158_p2) target bundleno = 779 (0x30b), region = 28 }
   0xb   : > { %p183_p3 = scmp.lt.s32.totalorder %s2165_s16, 1  ;;  %p2173_p4 = scmp.ne.s32.totalorder %s2165_s16, 0 }
   0xd   : > { %s184_s17 = scalar_select %p183_p3, %s2165_s16, 1 }
   0xe   : > { %196 = sbr.rel (%p2173_p4) target bundleno = 22 (0x16), region = 32 }
   0xf   : > { %s2353_s18 = smul.u32 432, %s184_s17  ;;  %s2304_s19 = sshll.u32 %s184_s17, 8 }
  0x10   : > { %s2439_s22 = scalar_lea.vmem %s3893_s2, %s2304_s19 }
  0x11   : > { %s2444_s25 = scalar_lea.vmem %s3891_s0, %s2353_s18 }
  0x13   : > { %v2402_v0 = vmov 0.0  }
  0x14   : > { %197 = vst [vmem:[%s3894_s3] sm:$0x1] %v2402_v0 }
  0x15   : > { %198 = vst [vmem:[%s3895_s4] sm:$0x1] %v2402_v0 }
  0x16 PF: > { %v2189_v1 = vld [vmem:[%s3892_s1 + $0xf8] sm:$0xff]  ;;  %v2188_v2 = vld [vmem:[%s3892_s1 + $0xf0] sm:$0xff]  ;;  %v2187_v3 = vld [vmem:[%s3892_s1 + $0xe8] sm:$0xff]  ;;  %vm317_vm0 = vcmask 1046528   ;;  %vm673_vm1 = vcmask 1045504  }
  0x17   : > { %2305 = vmatpush.msra.mxu1 %v2189_v1  ;;  %2306 = vmatpush.msra.mxu2 %v2189_v1  ;;  %v2186_v4 = vld [vmem:[%s3892_s1 + $0xe0] sm:$0xff]  ;;  %v2185_v5 = vld [vmem:[%s3892_s1 + $0xd8] sm:$0xff]  ;;  %v2184_v6 = vld [vmem:[%s3892_s1 + $0xd0] sm:$0xff] }
  0x18   : > { %2307 = vmatpush.msra.mxu3 %v2189_v1  ;;  %447 = vmatpush.msra.mxu0 %v2189_v1  ;;  %v2183_v7 = vld [vmem:[%s3892_s1 + $0xc8] sm:$0xff]  ;;  %v2182_v8 = vld [vmem:[%s3892_s1 + $0xc0] sm:$0xff]  ;;  %v2181_v9 = vld [vmem:[%s3892_s1 + $0xb8] sm:$0xff] }
  0x19   : > { %2308 = vmatpush.msra.mxu1 %v2188_v2  ;;  %2309 = vmatpush.msra.mxu2 %v2188_v2  ;;  %v2180_v10 = vld [vmem:[%s3892_s1 + $0xb0] sm:$0xff]  ;;  %v2179_v11 = vld [vmem:[%s3892_s1 + $0xa8] sm:$0xff]  ;;  %v2178_v12 = vld [vmem:[%s3892_s1 + $0xa0] sm:$0xff] }
  0x1a   : > { %2310 = vmatpush.msra.mxu3 %v2188_v2  ;;  %448 = vmatpush.msra.mxu0 %v2188_v2  ;;  %v2177_v13 = vld [vmem:[%s3892_s1 + $0x98] sm:$0xff]  ;;  %v2492_v14 = vld [vmem:[%s2444_s25 + $0x60] sm:$0xff]  ;;  %v2495_v15 = vld [vmem:[%s2444_s25 + $0x68] sm:$0xff] }
  0x1b   : > { %2311 = vmatpush.msra.mxu1 %v2187_v3  ;;  %2312 = vmatpush.msra.mxu2 %v2187_v3  ;;  %v2498_v16 = vld [vmem:[%s2444_s25 + $0xc0] sm:$0xff]  ;;  %v2501_v17 = vld [vmem:[%s2444_s25 + $0xc8] sm:$0xff]  ;;  %v2176_v18 = vld [vmem:[%s3892_s1 + $0x90] sm:$0xff]  ;;  %v338_v21 = vrot.slane %v2492_v14, 1  ;;  %v339_v22 = vrot.slane %v2495_v15, 1 }
  0x1c   : > { %2313 = vmatpush.msra.mxu3 %v2187_v3  ;;  %449 = vmatpush.msra.mxu0 %v2187_v3  ;;  %v235_v19 = vld [vmem:[%s2444_s25 + $0x120] sm:$0xff]  ;;  %v2508_v20 = vld [vmem:[%s2444_s25 + $0x128] sm:$0xff]  ;;  %v358_v23 = vrot.slane %v2498_v16, 1  ;;  %v359_v24 = vrot.slane %v2501_v17, 1  ;;  %v2205_v33 = vld [vmem:[%s3892_s1 + $0x178] sm:$0xff] }
  0x1d   : > { %2314 = vmatpush.msra.mxu1 %v2186_v4  ;;  %2315 = vmatpush.msra.mxu2 %v2186_v4  ;;  %v2175_v25 = vld [vmem:[%s3892_s1 + $0x88] sm:$0xff]  ;;  %v378_v26 = vrot.slane %v235_v19, 1  ;;  %v379_v27 = vrot.slane %v2508_v20, 1  ;;  %v2174_v28 = vld [vmem:[%s3892_s1 + $0x80] sm:$0xff]  ;;  %v2528_v31 = vsel %vm317_vm0, %v338_v21, %v339_v22  ;;  %v2537_v34 = vld [vmem:[%s2444_s25 + $0x70] sm:$0x3] }
  0x1e   : > { %2316 = vmatpush.msra.mxu3 %v2186_v4  ;;  %450 = vmatpush.msra.mxu0 %v2186_v4  ;;  %v2522_v29 = vld [vmem:[%s2444_s25] sm:$0xff]  ;;  %v2525_v30 = vld [vmem:[%s2444_s25 + $0x8] sm:$0xff]  ;;  %v2531_v32 = vsel %vm317_vm0, %v358_v23, %v359_v24  ;;  %v2540_v35 = vld [vmem:[%s2444_s25 + $0xd0] sm:$0x3]  ;;  %v341_v43 = vrot.slane %v2537_v34, 1 }
  0x1f   : > { %2317 = vmatpush.msra.mxu1 %v2185_v5  ;;  %2318 = vmatpush.msra.mxu2 %v2185_v5  ;;  %3961 = vst [vmem:[#allocation2_spill] sm:$0xff] %v2531_v32  ;;  %v2543_v36 = vsel %vm317_vm0, %v378_v26, %v379_v27  ;;  %v268_v37 = vld [vmem:[%s3892_s1 + $0x78] sm:$0xff]  ;;  %v318_v38 = vrot.slane %v2522_v29, 1  ;;  %v319_v39 = vrot.slane %v2525_v30, 1  ;;  %v2204_v41 = vld [vmem:[%s3892_s1 + $0x170] sm:$0xff]  ;;  %v361_v44 = vrot.slane %v2540_v35, 1 }
  0x20   : > { %2319 = vmatpush.msra.mxu3 %v2185_v5  ;;  %451 = vmatpush.msra.mxu0 %v2185_v5  ;;  %3962 = vst [vmem:[#allocation3_spill] sm:$0xff] %v2543_v36  ;;  %v2221_v40 = vld [vmem:[%s3892_s1 + $0x1f8] sm:$0xff]  ;;  %v237_v42 = vld [vmem:[%s2444_s25 + $0x130] sm:$0x3]  ;;  %v2203_v47 = vld [vmem:[%s3892_s1 + $0x168] sm:$0xff]  ;;  %v2587_v54 = vsel %vm317_vm0, %v339_v22, %v341_v43 }
  0x21   : > { %2320 = vmatpush.msra.mxu1 %v2184_v6  ;;  %2321 = vmatpush.msra.mxu2 %v2184_v6  ;;  %v267_v45 = vld [vmem:[%s3892_s1 + $0x70] sm:$0xff]  ;;  %v320_v48 = vsel %vm317_vm0, %v318_v38, %v319_v39  ;;  %v381_v49 = vrot.slane %v237_v42, 1  ;;  %v266_v50 = vld [vmem:[%s3892_s1 + $0x68] sm:$0xff]  ;;  %v2237_v52 = vld [vmem:[%s3892_s1 + $0x278] sm:$0xff]  ;;  %v2590_v55 = vsel %vm317_vm0, %v359_v24, %v361_v44 }
  0x22   : > { %2322 = vmatpush.msra.mxu3 %v2184_v6  ;;  %452 = vmatpush.msra.mxu0 %v2184_v6  ;;  %v2220_v46 = vld [vmem:[%s3892_s1 + $0x1f0] sm:$0xff]  ;;  %v2219_v51 = vld [vmem:[%s3892_s1 + $0x1e8] sm:$0xff]  ;;  %3963 = vst [vmem:[#allocation4_spill] sm:$0xff] %v2590_v55  ;;  %v2202_v56 = vld [vmem:[%s3892_s1 + $0x160] sm:$0xff] }
  0x23   : > { %2323 = vmatpush.msra.mxu1 %v2183_v7  ;;  %2324 = vmatpush.msra.mxu2 %v2183_v7  ;;  %v2584_v53 = vld [vmem:[%s2444_s25 + $0x10] sm:$0x3]  ;;  %v2218_v57 = vld [vmem:[%s3892_s1 + $0x1e0] sm:$0xff]  ;;  %v2599_v58 = vld [vmem:[%s2444_s25 + $0x78] sm:$0xff]  ;;  %v2611_v62 = vsel %vm317_vm0, %v379_v27, %v381_v49 }
  0x24   : > { %2325 = vmatpush.msra.mxu3 %v2183_v7  ;;  %453 = vmatpush.msra.mxu0 %v2183_v7  ;;  %v2602_v59 = vld [vmem:[%s2444_s25 + $0x80] sm:$0xff]  ;;  %v2605_v60 = vld [vmem:[%s2444_s25 + $0xd8] sm:$0xff]  ;;  %3964 = vst [vmem:[#allocation5_spill] sm:$0xff] %v2611_v62  ;;  %v2236_v63 = vld [vmem:[%s3892_s1 + $0x270] sm:$0xff]  ;;  %v321_v0 = vrot.slane %v2584_v53, 1  ;;  %v343_v5 = vrot.slane %v2599_v58, 1 }
  0x25   : > { %2326 = vmatpush.msra.mxu1 %v2182_v8  ;;  %2327 = vmatpush.msra.mxu2 %v2182_v8  ;;  %v2608_v61 = vld [vmem:[%s2444_s25 + $0xe0] sm:$0xff]  ;;  %v238_v1 = vld [vmem:[%s2444_s25 + $0x138] sm:$0xff]  ;;  %v344_v6 = vrot.slane %v2602_v59, 1  ;;  %v363_v7 = vrot.slane %v2605_v60, 1  ;;  %v2216_v19 = vld [vmem:[%s3892_s1 + $0x1d0] sm:$0xff] }
  0x26   : > { %2328 = vmatpush.msra.mxu3 %v2182_v8  ;;  %454 = vmatpush.msra.mxu0 %v2182_v8  ;;  %v265_v2 = vld [vmem:[%s3892_s1 + $0x60] sm:$0xff]  ;;  %v2201_v3 = vld [vmem:[%s3892_s1 + $0x158] sm:$0xff]  ;;  %v364_v8 = vrot.slane %v2608_v61, 1  ;;  %v383_v17 = vrot.slane %v238_v1, 1  ;;  %v263_v21 = vld [vmem:[%s3892_s1 + $0x50] sm:$0xff] }
  0x27   : > { %2329 = vmatpush.msra.mxu1 %v2181_v9  ;;  %2330 = vmatpush.msra.mxu2 %v2181_v9  ;;  %v2627_v4 = vld [vmem:[%s2444_s25 + $0x140] sm:$0xff]  ;;  %v2660_v22 = vld [vmem:[%s2444_s25 + $0x18] sm:$0xff]  ;;  %v2668_v24 = vsel %vm317_vm0, %v343_v5, %v344_v6  ;;  %v2674_v26 = vld [vmem:[%s2444_s25 + $0x88] sm:$0x3] }
  0x28   : > { %2331 = vmatpush.msra.mxu3 %v2181_v9  ;;  %455 = vmatpush.msra.mxu0 %v2181_v9  ;;  %v2217_v9 = vld [vmem:[%s3892_s1 + $0x1d8] sm:$0xff]  ;;  %v2234_v20 = vld [vmem:[%s3892_s1 + $0x260] sm:$0xff]  ;;  %3965 = vst [vmem:[#allocation6_spill] sm:$0xff] %v2668_v24  ;;  %v2677_v27 = vld [vmem:[%s2444_s25 + $0xe8] sm:$0x3]  ;;  %v323_v38 = vrot.slane %v2660_v22, 1 }
  0x29   : > { %2332 = vmatpush.msra.mxu1 %v2180_v10  ;;  %2333 = vmatpush.msra.mxu2 %v2180_v10  ;;  %v2663_v23 = vld [vmem:[%s2444_s25 + $0x20] sm:$0xff]  ;;  %v262_v42 = vld [vmem:[%s3892_s1 + $0x48] sm:$0xff]  ;;  %v346_v44 = vrot.slane %v2674_v26, 1  ;;  %v2197_v49 = vld [vmem:[%s3892_s1 + $0x138] sm:$0xff] }
  0x2a   : > { %2334 = vmatpush.msra.mxu3 %v2180_v10  ;;  %456 = vmatpush.msra.mxu0 %v2180_v10  ;;  %v2235_v10 = vld [vmem:[%s3892_s1 + $0x268] sm:$0xff]  ;;  %v2198_v43 = vld [vmem:[%s3892_s1 + $0x140] sm:$0xff]  ;;  %v2753_v5 = vld [vmem:[%s2444_s25 + $0xf8] sm:$0xff] }
  0x2b   : > { %2335 = vmatpush.msra.mxu1 %v2179_v11  ;;  %2336 = vmatpush.msra.mxu2 %v2179_v11 }
  0x2c   : > { %2337 = vmatpush.msra.mxu3 %v2179_v11  ;;  %457 = vmatpush.msra.mxu0 %v2179_v11  ;;  %v264_v11 = vld [vmem:[%s3892_s1 + $0x58] sm:$0xff] }
  0x2d   : > { %2338 = vmatpush.msra.mxu1 %v2178_v12  ;;  %2339 = vmatpush.msra.mxu2 %v2178_v12 }
  0x2e   : > { %2340 = vmatpush.msra.mxu3 %v2178_v12  ;;  %458 = vmatpush.msra.mxu0 %v2178_v12  ;;  %v2200_v12 = vld [vmem:[%s3892_s1 + $0x150] sm:$0xff] }
  0x2f   : > { %2341 = vmatpush.msra.mxu1 %v2177_v13  ;;  %2342 = vmatpush.msra.mxu2 %v2177_v13 }
  0x30   : > { %2343 = vmatpush.msra.mxu3 %v2177_v13  ;;  %459 = vmatpush.msra.mxu0 %v2177_v13  ;;  %v322_v13 = vsel %vm317_vm0, %v319_v39, %v321_v0  ;;  %v324_v39 = vrot.slane %v2663_v23, 1  ;;  %v2737_v0 = vsel %vm317_vm0, %v344_v6, %v346_v44  ;;  %v2196_v6 = vld [vmem:[%s3892_s1 + $0x130] sm:$0xff] }
  0x31   : > { %2344 = vmatpush.msra.mxu1 %v2176_v18  ;;  %2345 = vmatpush.msra.mxu2 %v2176_v18  ;;  %3967 = vst [vmem:[#allocation8_spill] sm:$0xff] %v2737_v0  ;;  %v2804_v44 = vld [vmem:[%s2444_s25 + $0x30] sm:$0xff] }
  0x32   : > { %2346 = vmatpush.msra.mxu3 %v2176_v18  ;;  %460 = vmatpush.msra.mxu0 %v2176_v18  ;;  %v384_v18 = vrot.slane %v2627_v4, 1  ;;  %v2749_v4 = vld [vmem:[%s2444_s25 + $0xf0] sm:$0xff] }
  0x33   : > { %2347 = vmatpush.msra.mxu1 %v2175_v25  ;;  %2348 = vmatpush.msra.mxu2 %v2175_v25 }
  0x34   : > { %2349 = vmatpush.msra.mxu3 %v2175_v25  ;;  %461 = vmatpush.msra.mxu0 %v2175_v25  ;;  %v2671_v25 = vsel %vm317_vm0, %v363_v7, %v364_v8  ;;  %v2212_v7 = vld [vmem:[%s3892_s1 + $0x1b0] sm:$0xff] }
  0x35   : > { %2350 = vmatpush.msra.mxu1 %v2174_v28  ;;  %2351 = vmatpush.msra.mxu2 %v2174_v28 }
  0x36   : > { %487 = vmatmul.f32.vlgmr.msra.gmra.mxu1 %v2528_v31  ;;  %511 = vmatmul.f32.vlgmr.msra.gmra.mxu2 %v2531_v32 }
  0x37   : > { %803 = vmatpush.msrb.mxu2 %v2205_v33  ;;  %2352 = vmatpush.msra.mxu3 %v2174_v28  ;;  %v2215_v33 = vld [vmem:[%s3892_s1 + $0x1c8] sm:$0xff] }
  0x38   : > { %535 = vmatmul.f32.vlgmr.msra.gmra.mxu3 %v2543_v36  ;;  %560 = vmatpush.msrb.mxu1 %v268_v37  ;;  %v2686_v37 = vsel %vm317_vm0, %v383_v17, %v384_v18  ;;  %v2195_v17 = vld [vmem:[%s3892_s1 + $0x128] sm:$0xff] }
  0x39   : > { %965 = vmatpush.msrb.mxu3 %v2221_v40  ;;  %804 = vmatpush.msrb.mxu2 %v2204_v41  ;;  %3966 = vst [vmem:[#allocation7_spill] sm:$0xff] %v2686_v37  ;;  %v2233_v40 = vld [vmem:[%s3892_s1 + $0x258] sm:$0xff]  ;;  %v240_v41 = vld [vmem:[%s2444_s25 + $0x148] sm:$0x3] }
  0x3a   : > { %561 = vmatpush.msrb.mxu1 %v267_v45  ;;  %462 = vmatpush.msra.mxu0 %v2174_v28  ;;  %v2199_v28 = vld [vmem:[%s3892_s1 + $0x148] sm:$0xff]  ;;  %v366_v45 = vrot.slane %v2677_v27, 1 }
  0x3b   : > { %966 = vmatpush.msrb.mxu3 %v2220_v46  ;;  %805 = vmatpush.msrb.mxu2 %v2203_v47  ;;  %v2214_v46 = vld [vmem:[%s3892_s1 + $0x1c0] sm:$0xff]  ;;  %v2232_v47 = vld [vmem:[%s3892_s1 + $0x250] sm:$0xff]  ;;  %v2966_v36 = vld [vmem:[%s2444_s25 + $0x48] sm:$0xff] }
  0x3c   : > { %463 = vmatmul.f32.vlgmr.msra.gmra.mxu0 %v320_v48  ;;  %562 = vmatpush.msrb.mxu1 %v266_v50  ;;  %v261_v48 = vld [vmem:[%s3892_s1 + $0x40] sm:$0xff]  ;;  %v2720_v50 = vsel %vm317_vm0, %v323_v38, %v324_v39  ;;  %v2740_v1 = vsel %vm317_vm0, %v364_v8, %v366_v45  ;;  %v258_v38 = vld [vmem:[%s3892_s1 + $0x28] sm:$0xff] }
  0x3d   : > { %967 = vmatpush.msrb.mxu3 %v2219_v51  ;;  %1137 = vmatpush.msrb.mxu0 %v2237_v52  ;;  %v386_v51 = vrot.slane %v240_v41, 1  ;;  %v2213_v52 = vld [vmem:[%s3892_s1 + $0x1b8] sm:$0xff]  ;;  %v2210_v45 = vld [vmem:[%s3892_s1 + $0x1a0] sm:$0xff] }
  0x3e   : > { %490 = vmatmul.f32.gmra.mxu1 %v2587_v54  ;;  %514 = vmatmul.f32.gmra.mxu2 %v2590_v55 }
  0x3f   : > { %806 = vmatpush.msrb.mxu2 %v2202_v56  ;;  %968 = vmatpush.msrb.mxu3 %v2218_v57  ;;  %v2726_v56 = vld [vmem:[%s2444_s25 + $0x28] sm:$0x3]  ;;  %v2762_v8 = vsel %vm317_vm0, %v384_v18, %v386_v51  ;;  %v2829_v51 = vld [vmem:[%s2444_s25 + $0xa0] sm:$0x3] }
  0x40   : > { %538 = vmatmul.f32.gmra.mxu3 %v2611_v62  ;;  %1138 = vmatpush.msrb.mxu0 %v2236_v63  ;;  %v2231_v57 = vld [vmem:[%s3892_s1 + $0x248] sm:$0xff]  ;;  %v260_v63 = vld [vmem:[%s3892_s1 + $0x38] sm:$0xff]  ;;  %3968 = vst [vmem:[#allocation9_spill] sm:$0xff] %v2762_v8 }
  0x41   : > { %563 = vmatpush.msrb.mxu1 %v265_v2  ;;  %807 = vmatpush.msrb.mxu2 %v2201_v3  ;;  %v2743_v2 = vld [vmem:[%s2444_s25 + $0x90] sm:$0xff]  ;;  %v2746_v3 = vld [vmem:[%s2444_s25 + $0x98] sm:$0xff] }
  0x42   : > { %969 = vmatpush.msrb.mxu3 %v2217_v9  ;;  %1139 = vmatpush.msrb.mxu0 %v2235_v10  ;;  %v326_v9 = vrot.slane %v2726_v56, 1  ;;  %v241_v10 = vld [vmem:[%s2444_s25 + $0x150] sm:$0xff]  ;;  %v348_v18 = vrot.slane %v2743_v2, 1 }
  0x43   : > { %564 = vmatpush.msrb.mxu1 %v264_v11  ;;  %808 = vmatpush.msrb.mxu2 %v2200_v12  ;;  %v2230_v11 = vld [vmem:[%s3892_s1 + $0x240] sm:$0xff]  ;;  %v2772_v12 = vld [vmem:[%s2444_s25 + $0x158] sm:$0xff] }
  0x44   : > { %466 = vmatmul.f32.gmra.mxu0 %v322_v13  ;;  %970 = vmatpush.msrb.mxu3 %v2216_v19  ;;  %v259_v13 = vld [vmem:[%s3892_s1 + $0x30] sm:$0xff]  ;;  %v349_v19 = vrot.slane %v2746_v3, 1  ;;  %v2800_v41 = vsel %vm317_vm0, %v324_v39, %v326_v9 }
  0x45   : > { %1140 = vmatpush.msrb.mxu0 %v2234_v20  ;;  %565 = vmatpush.msrb.mxu1 %v263_v21  ;;  %v368_v20 = vrot.slane %v2749_v4, 1  ;;  %v369_v21 = vrot.slane %v2753_v5, 1  ;;  %v2228_v39 = vld [vmem:[%s3892_s1 + $0x230] sm:$0xff] }
  0x46   : > { %493 = vmatmul.f32.gmra.mxu1 %v2668_v24  ;;  %517 = vmatmul.f32.gmra.mxu2 %v2671_v25 }
  0x47   : > { %809 = vmatpush.msrb.mxu2 %v2199_v28  ;;  %971 = vmatpush.msrb.mxu3 %v2215_v33  ;;  %v2211_v28 = vld [vmem:[%s3892_s1 + $0x1a8] sm:$0xff]  ;;  %v2229_v33 = vld [vmem:[%s3892_s1 + $0x238] sm:$0xff] }
  0x48   : > { %541 = vmatmul.f32.gmra.mxu3 %v2686_v37  ;;  %1141 = vmatpush.msrb.mxu0 %v2233_v40  ;;  %v2194_v40 = vld [vmem:[%s3892_s1 + $0x120] sm:$0xff] }
  0x49   : > { %566 = vmatpush.msrb.mxu1 %v262_v42  ;;  %810 = vmatpush.msrb.mxu2 %v2198_v43  ;;  %v388_v42 = vrot.slane %v241_v10, 1  ;;  %v389_v43 = vrot.slane %v2772_v12, 1  ;;  %v2227_v10 = vld [vmem:[%s3892_s1 + $0x228] sm:$0xff]  ;;  %v253_v12 = vld [vmem:[%s3892_s1] sm:$0xff] }
  0x4a   : > { %972 = vmatpush.msrb.mxu3 %v2214_v46  ;;  %1142 = vmatpush.msrb.mxu0 %v2232_v47  ;;  %v2810_v46 = vld [vmem:[%s2444_s25 + $0x38] sm:$0xff]  ;;  %v257_v47 = vld [vmem:[%s3892_s1 + $0x20] sm:$0xff] }
  0x4b   : > { %567 = vmatpush.msrb.mxu1 %v261_v48  ;;  %811 = vmatpush.msrb.mxu2 %v2197_v49  ;;  %v2821_v48 = vsel %vm317_vm0, %v348_v18, %v349_v19  ;;  %v2826_v49 = vsel %vm317_vm0, %v368_v20, %v369_v21  ;;  %v3896_v9 = vrot.slane %v2810_v46, 1  ;;  %v351_v18 = vrot.slane %v2829_v51, 1 }
  0x4c   : > { %469 = vmatmul.f32.gmra.mxu0 %v2720_v50  ;;  %973 = vmatpush.msrb.mxu3 %v2213_v52  ;;  %3969 = vst [vmem:[#allocation10_spill] sm:$0xff] %v2821_v48  ;;  %v2833_v52 = vld [vmem:[%s2444_s25 + $0x100] sm:$0x3]  ;;  %v3977_v37 = vrot.slane %v2810_v46, 1 }
  0x4d   : > { %1143 = vmatpush.msrb.mxu0 %v2231_v57  ;;  %568 = vmatpush.msrb.mxu1 %v260_v63  ;;  %v2193_v57 = vld [vmem:[%s3892_s1 + $0x118] sm:$0xff]  ;;  %v371_v20 = vrot.slane %v2833_v52, 1 }
  0x4e   : > { %496 = vmatmul.f32.gmra.mxu1 %v2737_v0  ;;  %520 = vmatmul.f32.gmra.mxu2 %v2740_v1  ;;  %v2209_v63 = vld [vmem:[%s3892_s1 + $0x198] sm:$0xff] }
  0x4f   : > { %812 = vmatpush.msrb.mxu2 %v2196_v6  ;;  %974 = vmatpush.msrb.mxu3 %v2212_v7  ;;  %v2844_v6 = vsel %vm317_vm0, %v388_v42, %v389_v43  ;;  %v328_v7 = vrot.slane %v2804_v44, 1 }
  0x50   : > { %544 = vmatmul.f32.gmra.mxu3 %v2762_v8  ;;  %1144 = vmatpush.msrb.mxu0 %v2230_v11  ;;  %3970 = vst [vmem:[#allocation11_spill] sm:$0xff] %v2844_v6  ;;  %v243_v11 = vld [vmem:[%s2444_s25 + $0x160] sm:$0x3]  ;;  %v2253_v8 = vld [vmem:[%s3892_s1 + $0x2f8] sm:$0xff] }
  0x51   : > { %569 = vmatpush.msrb.mxu1 %v259_v13  ;;  %813 = vmatpush.msrb.mxu2 %v2195_v17  ;;  %v256_v13 = vld [vmem:[%s3892_s1 + $0x18] sm:$0xff]  ;;  %v2192_v17 = vld [vmem:[%s3892_s1 + $0x110] sm:$0xff]  ;;  %v2878_v42 = vsel %vm317_vm0, %v328_v7, %v3896_v9  ;;  %v2895_v7 = vsel %vm317_vm0, %v349_v19, %v351_v18  ;;  %v2190_v19 = vld [vmem:[%s3892_s1 + $0x100] sm:$0xff] }
  0x52   : > { %975 = vmatpush.msrb.mxu3 %v2211_v28  ;;  %1145 = vmatpush.msrb.mxu0 %v2229_v33  ;;  %v2208_v28 = vld [vmem:[%s3892_s1 + $0x190] sm:$0xff]  ;;  %v2226_v33 = vld [vmem:[%s3892_s1 + $0x220] sm:$0xff]  ;;  %3971 = vst [vmem:[#allocation12_spill] sm:$0xff] %v2895_v7  ;;  %v2223_v9 = vld [vmem:[%s3892_s1 + $0x208] sm:$0xff] }
  0x53   : > { %570 = vmatpush.msrb.mxu1 %v258_v38  ;;  %814 = vmatpush.msrb.mxu2 %v2194_v40  ;;  %v255_v38 = vld [vmem:[%s3892_s1 + $0x10] sm:$0xff]  ;;  %v2191_v40 = vld [vmem:[%s3892_s1 + $0x108] sm:$0xff] }
  0x54   : > { %472 = vmatmul.f32.gmra.mxu0 %v2800_v41  ;;  %976 = vmatpush.msrb.mxu3 %v2210_v45  ;;  %v391_v45 = vrot.slane %v243_v11, 1  ;;  %v2903_v11 = vld [vmem:[%s2444_s25 + $0xa8] sm:$0xff] }
  0x55   : > { %1146 = vmatpush.msrb.mxu0 %v2228_v39  ;;  %571 = vmatpush.msrb.mxu1 %v257_v47  ;;  %v2207_v39 = vld [vmem:[%s3892_s1 + $0x188] sm:$0xff]  ;;  %v2884_v47 = vld [vmem:[%s2444_s25 + $0x40] sm:$0x3] }
  0x56   : > { %499 = vmatmul.f32.gmra.mxu1 %v2821_v48  ;;  %523 = vmatmul.f32.gmra.mxu2 %v2826_v49  ;;  %v2924_v18 = vsel %vm317_vm0, %v389_v43, %v391_v45  ;;  %v2269_v43 = vld [vmem:[%s3892_s1 + $0x378] sm:$0xff]  ;;  %v353_v45 = vrot.slane %v2903_v11, 1 }
  0x57   : > { %815 = vmatpush.msrb.mxu2 %v2193_v57  ;;  %977 = vmatpush.msrb.mxu3 %v2209_v63  ;;  %v2225_v57 = vld [vmem:[%s3892_s1 + $0x218] sm:$0xff]  ;;  %v254_v63 = vld [vmem:[%s3892_s1 + $0x8] sm:$0xff]  ;;  %3974 = vst [vmem:[#allocation15_spill] sm:$0xff] %v2924_v18 }
  0x58   : > { %547 = vmatmul.f32.gmra.mxu3 %v2844_v6  ;;  %1147 = vmatpush.msrb.mxu0 %v2227_v10  ;;  %v2900_v10 = vsel %vm317_vm0, %v369_v21, %v371_v20  ;;  %v2206_v21 = vld [vmem:[%s3892_s1 + $0x180] sm:$0xff]  ;;  %v331_v20 = vrot.slane %v2884_v47, 1  ;;  %v2285_v6 = vld [vmem:[%s3892_s1 + $0x3f8] sm:$0xff] }
  0x59   : > { %572 = vmatpush.msrb.mxu1 %v256_v13  ;;  %816 = vmatpush.msrb.mxu2 %v2192_v17  ;;  %v2906_v13 = vld [vmem:[%s2444_s25 + $0xb0] sm:$0xff]  ;;  %v2909_v17 = vld [vmem:[%s2444_s25 + $0x108] sm:$0xff] }
  0x5a   : > { %978 = vmatpush.msrb.mxu3 %v2208_v28  ;;  %1148 = vmatpush.msrb.mxu0 %v2226_v33  ;;  %3972 = vst [vmem:[#allocation13_spill] sm:$0xff] %v2909_v17  ;;  %v2913_v28 = vld [vmem:[%s2444_s25 + $0x110] sm:$0xff]  ;;  %v2928_v33 = vld [vmem:[%s2444_s25 + $0x168] sm:$0xff] }
  0x5b   : > { %573 = vmatpush.msrb.mxu1 %v255_v38  ;;  %817 = vmatpush.msrb.mxu2 %v2191_v40  ;;  %3973 = vst [vmem:[#allocation14_spill] sm:$0xff] %v2913_v28  ;;  %v2224_v38 = vld [vmem:[%s3892_s1 + $0x210] sm:$0xff] }
  0x5c   : > { %475 = vmatmul.f32.gmra.mxu0 %v2878_v42  ;;  %979 = vmatpush.msrb.mxu3 %v2207_v39  ;;  %3975 = vst [vmem:[#allocation16_spill] sm:$0xff] %v2928_v33  ;;  %v2936_v40 = vld [vmem:[%s2444_s25 + $0x170] sm:$0xff]  ;;  %v354_v39 = vrot.slane %v2906_v13, 1 }
  0x5d   : > { %1149 = vmatpush.msrb.mxu0 %v2225_v57  ;;  %574 = vmatpush.msrb.mxu1 %v254_v63  ;;  %3976 = vst [vmem:[#allocation17_spill] sm:$0xff] %v2936_v40  ;;  %v373_v57 = vrot.slane %v2909_v17, 1  ;;  %v374_v63 = vrot.slane %v2913_v28, 1  ;;  %v394_v62 = vrot.slane %v2936_v40, 1  ;;  %v2252_v28 = vld [vmem:[%s3892_s1 + $0x2f0] sm:$0xff] }
  0x5e   : > { %502 = vmatmul.f32.gmra.mxu1 %v2895_v7  ;;  %526 = vmatmul.f32.gmra.mxu2 %v2900_v10 }
  0x5f   : > { %818 = vmatpush.msrb.mxu2 %v2190_v19  ;;  %980 = vmatpush.msrb.mxu3 %v2206_v21  ;;  %v2961_v19 = vsel %vm317_vm0, %v3977_v37, %v331_v20  ;;  %v393_v21 = vrot.slane %v2928_v33, 1  ;;  %v2975_v37 = vsel %vm317_vm0, %v353_v45, %v354_v39  ;;  %v2978_v20 = vsel %vm317_vm0, %v373_v57, %v374_v63  ;;  %v2268_v57 = vld [vmem:[%s3892_s1 + $0x370] sm:$0xff] }
  0x60   : > { %550 = vmatmul.f32.gmra.mxu3 %v2924_v18  ;;  %1150 = vmatpush.msrb.mxu0 %v2224_v38  ;;  %v2969_v38 = vld [vmem:[%s2444_s25 + $0x50] sm:$0xff]  ;;  %v2222_v18 = vld [vmem:[%s3892_s1 + $0x200] sm:$0xff]  ;;  %3978 = vst [vmem:[#allocation18_spill] sm:$0xff] %v2975_v37  ;;  %v333_v45 = vrot.slane %v2966_v36, 1 }
  0x61   : > { %575 = vmatpush.msrb.mxu1 %v253_v12  ;;  %1468 = vmatpush.msra.mxu2 %v2269_v43  ;;  %3979 = vst [vmem:[#allocation19_spill] sm:$0xff] %v2978_v20  ;;  %v2982_v12 = vld [vmem:[%s2444_s25 + $0xb8] sm:$0x3]  ;;  %v334_v40 = vrot.slane %v2969_v38, 1 }
  0x62   : > { %1151 = vmatpush.msrb.mxu0 %v2223_v9  ;;  %1640 = vmatpush.msra.mxu3 %v2285_v6  ;;  %v2985_v43 = vld [vmem:[%s2444_s25 + $0x118] sm:$0x3]  ;;  %v2991_v9 = vsel %vm317_vm0, %v393_v21, %v394_v62  ;;  %v356_v33 = vrot.slane %v2982_v12, 1 }
  0x63   : > { %1306 = vmatpush.msra.mxu1 %v2253_v8  ;;  %3980 = vst [vmem:[#allocation20_spill] sm:$0xff] %v2985_v43  ;;  %v2301_v6 = vld [vmem:[%s3892_s1 + $0x478] sm:$0xff]  ;;  %v376_v21 = vrot.slane %v2985_v43, 1  ;;  %1469 = vmatpush.msra.mxu2 %v2268_v57 }
  0x64   : > { %478 = vmatmul.f32.gmra.mxu0 %v2961_v19  ;;  %3981 = vst [vmem:[#allocation21_spill] sm:$0xff] %v2991_v9  ;;  %v2998_v8 = vld [vmem:[%s2444_s25 + $0x178] sm:$0x3] }
  0x65   : > { %1152 = vmatpush.msrb.mxu0 %v2222_v18  ;;  %v2284_v18 = vld [vmem:[%s3892_s1 + $0x3f0] sm:$0xff]  ;;  %v396_v17 = vrot.slane %v2998_v8, 1  ;;  %1307 = vmatpush.msra.mxu1 %v2252_v28  ;;  %v3017_v43 = vld [vmem:[%s2444_s25 + $0x58] sm:$0x3]  ;;  %v3023_v57 = vsel %vm317_vm0, %v374_v63, %v376_v21  ;;  %v674_v28 = vrot.slane %v2522_v29, 2  ;;  %v677_v63 = vrot.slane %v2584_v53, 2 }
  0x66   : > { %505 = vmatmul.f32.gmra.mxu1 %v2975_v37  ;;  %529 = vmatmul.f32.gmra.mxu2 %v2978_v20  ;;  %v3013_v20 = vsel %vm317_vm0, %v333_v45, %v334_v40  ;;  %3983 = vst [vmem:[#allocation23_spill] sm:$0xff] %v3023_v57  ;;  %v336_v45 = vrot.slane %v3017_v43, 1  ;;  %v2251_v21 = vld [vmem:[%s3892_s1 + $0x2e8] sm:$0xff]  ;;  %v679_v53 = vrot.slane %v2660_v22, 2 }
  0x67   : > { %1809 = vmatpush.msra.mxu0 %v2301_v6  ;;  %1641 = vmatpush.msra.mxu3 %v2284_v18  ;;  %v3020_v6 = vsel %vm317_vm0, %v354_v39, %v356_v33  ;;  %v675_v18 = vrot.slane %v2525_v30, 2  ;;  %v2300_v33 = vld [vmem:[%s3892_s1 + $0x470] sm:$0xff]  ;;  %v2267_v39 = vld [vmem:[%s3892_s1 + $0x368] sm:$0xff] }
  0x68   : > { %553 = vmatmul.f32.gmra.mxu3 %v2991_v9  ;;  %3982 = vst [vmem:[#allocation22_spill] sm:$0xff] %v3020_v6  ;;  %v3027_v9 = vsel %vm317_vm0, %v394_v62, %v396_v17  ;;  %v3039_v62 = vsel %vm317_vm0, %v334_v40, %v336_v45  ;;  %1470 = vmatpush.msra.mxu2 %v2267_v39  ;;  %v2283_v40 = vld [vmem:[%s3892_s1 + $0x3e8] sm:$0xff]  ;;  %v680_v45 = vrot.slane %v2663_v23, 2  ;;  %v2298_v39 = vld [vmem:[%s3892_s1 + $0x460] sm:$0xff] }
  0x69   : > { %3984 = vst [vmem:[#allocation24_spill] sm:$0xff] %v3027_v9  ;;  %1810 = vmatpush.msra.mxu0 %v2300_v33  ;;  %v676_v17 = vsel %vm673_vm1, %v674_v28, %v675_v18  ;;  %1642 = vmatpush.msra.mxu3 %v2283_v40  ;;  %v2299_v28 = vld [vmem:[%s3892_s1 + $0x468] sm:$0xff]  ;;  %v687_v40 = vrot.slane %v2884_v47, 2  ;;  %v689_v47 = vrot.slane %v2966_v36, 2 }
  0x6a   : > { %1308 = vmatpush.msra.mxu1 %v2251_v21  ;;  %v3065_v33 = vsel %vm673_vm1, %v679_v53, %v680_v45  ;;  %v2281_v21 = vld [vmem:[%s3892_s1 + $0x3d8] sm:$0xff]  ;;  %v690_v53 = vrot.slane %v2969_v38, 2 }
  0x6b   : > { %1811 = vmatpush.msra.mxu0 %v2299_v28 }
  0x6c   : > { %481 = vmatmul.f32.gmra.mxu0 %v3013_v20  ;;  %v3123_v28 = vsel %vm673_vm1, %v689_v47, %v690_v53 }
  0x6d   : > { %1812 = vmatpush.msra.mxu0 %v2298_v39 }
  0x6e   : > { %508 = vmatmul.f32.gmra.mxu1 %v3020_v6  ;;  %532 = vmatmul.f32.gmra.mxu2 %v3023_v57 }
  0x70   : > { %556 = vmatmul.f32.gmra.mxu3 %v3027_v9 }
  0x74   : > { %484 = vmatmul.f32.gmra.mxu0 %v3039_v62 }
  0x76   : > { %576 = vmatmul.f32.vlgmr.msrb.gmra.mxu1 %v2522_v29  ;;  %819 = vmatmul.f32.vlgmr.msrb.gmra.mxu2 %v676_v17  ;;  %v678_v29 = vsel %vm673_vm1, %v675_v18, %v677_v63  ;;  %v2282_v18 = vld [vmem:[%s3892_s1 + $0x3e0] sm:$0xff]  ;;  %v685_v17 = vrot.slane %v2810_v46, 2 }
  0x77   : > { %1643 = vmatpush.msra.mxu3 %v2282_v18 }
  0x78   : > { %981 = vmatmul.f32.vlgmr.msrb.gmra.mxu3 %v2660_v22 }
  0x79   : > { %1644 = vmatpush.msra.mxu3 %v2281_v21 }
  0x7c   : > { %1153 = vmatmul.f32.vlgmr.msrb.gmra.mxu0 %v2720_v50  ;;  %v682_v50 = vrot.slane %v2726_v56, 2  ;;  %v684_v56 = vrot.slane %v2804_v44, 2 }
  0x7e   : > { %579 = vmatmul.f32.gmra.mxu1 %v2525_v30  ;;  %822 = vmatmul.f32.gmra.mxu2 %v678_v29  ;;  %v2266_v30 = vld [vmem:[%s3892_s1 + $0x360] sm:$0xff]  ;;  %v3094_v63 = vsel %vm673_vm1, %v684_v56, %v685_v17  ;;  %v3111_v29 = vsel %vm673_vm1, %v685_v17, %v687_v40  ;;  %v2296_v56 = vld [vmem:[%s3892_s1 + $0x450] sm:$0xff]  ;;  %v2279_v40 = vld [vmem:[%s3892_s1 + $0x3c8] sm:$0xff] }
  0x7f   : > { %1471 = vmatpush.msra.mxu2 %v2266_v30  ;;  %v692_v30 = vrot.slane %v3017_v43, 2  ;;  %v694_v43 = vrot.slane %v2492_v14, 2 }
  0x80   : > { %984 = vmatmul.f32.gmra.mxu3 %v2663_v23 }
  0x81   : > { %v3140_v18 = vsel %vm673_vm1, %v690_v53, %v692_v30  ;;  %v2295_v30 = vld [vmem:[%s3892_s1 + $0x448] sm:$0xff] }
  0x84   : > { %1156 = vmatmul.f32.gmra.mxu0 %v2800_v41  ;;  %v2250_v41 = vld [vmem:[%s3892_s1 + $0x2e0] sm:$0xff] }
  0x85   : > { %1309 = vmatpush.msra.mxu1 %v2250_v41  ;;  %v695_v41 = vrot.slane %v2495_v15, 2 }
  0x86   : > { %582 = vmatmul.f32.gmra.mxu1 %v2660_v22  ;;  %825 = vmatmul.f32.gmra.mxu2 %v3065_v33  ;;  %v3082_v22 = vsel %vm673_vm1, %v680_v45, %v682_v50  ;;  %v2297_v45 = vld [vmem:[%s3892_s1 + $0x458] sm:$0xff]  ;;  %v2280_v50 = vld [vmem:[%s3892_s1 + $0x3d0] sm:$0xff] }
  0x87   : > { %1813 = vmatpush.msra.mxu0 %v2297_v45  ;;  %1645 = vmatpush.msra.mxu3 %v2280_v50  ;;  %v3154_v39 = vsel %vm673_vm1, %v694_v43, %v695_v41  ;;  %v699_v45 = vrot.slane %v2599_v58, 2 }
  0x88   : > { %987 = vmatmul.f32.gmra.mxu3 %v2804_v44 }
  0x89   : > { %1814 = vmatpush.msra.mxu0 %v2296_v56  ;;  %1646 = vmatpush.msra.mxu3 %v2279_v40  ;;  %v2262_v56 = vld [vmem:[%s3892_s1 + $0x340] sm:$0xff] }
  0x8b   : > { %1815 = vmatpush.msra.mxu0 %v2295_v30 }
  0x8c   : > { %1159 = vmatmul.f32.gmra.mxu0 %v2878_v42 }
  0x8e   : > { %585 = vmatmul.f32.gmra.mxu1 %v2663_v23  ;;  %828 = vmatmul.f32.gmra.mxu2 %v3082_v22  ;;  %v2265_v23 = vld [vmem:[%s3892_s1 + $0x358] sm:$0xff] }
  0x8f   : > { %1472 = vmatpush.msra.mxu2 %v2265_v23  ;;  %v697_v23 = vrot.slane %v2537_v34, 2 }
  0x90   : > { %990 = vmatmul.f32.gmra.mxu3 %v2810_v46 }
  0x91   : > { %v3179_v53 = vsel %vm673_vm1, %v695_v41, %v697_v23  ;;  %v2278_v23 = vld [vmem:[%s3892_s1 + $0x3c0] sm:$0xff] }
  0x92   : > { %1647 = vmatpush.msra.mxu3 %v2278_v23  ;;  %v705_v23 = vrot.slane %v2746_v3, 2 }
  0x94   : > { %1162 = vmatmul.f32.gmra.mxu0 %v2961_v19 }
  0x96   : > { %588 = vmatmul.f32.gmra.mxu1 %v2804_v44  ;;  %831 = vmatmul.f32.gmra.mxu2 %v3094_v63  ;;  %v2249_v44 = vld [vmem:[%s3892_s1 + $0x2d8] sm:$0xff] }
  0x97   : > { %1310 = vmatpush.msra.mxu1 %v2249_v44 }
  0x98   : > { %993 = vmatmul.f32.gmra.mxu3 %v2966_v36 }
  0x9c   : > { %1165 = vmatmul.f32.gmra.mxu0 %v3013_v20 }
  0x9e   : > { %591 = vmatmul.f32.gmra.mxu1 %v2810_v46  ;;  %834 = vmatmul.f32.gmra.mxu2 %v3111_v29  ;;  %v2264_v46 = vld [vmem:[%s3892_s1 + $0x350] sm:$0xff] }
  0x9f   : > { %1473 = vmatpush.msra.mxu2 %v2264_v46  ;;  %v700_v46 = vrot.slane %v2602_v59, 2 }
  0xa0   : > { %996 = vmatmul.f32.gmra.mxu3 %v2969_v38 }
  0xa1   : > { %v3199_v41 = vsel %vm673_vm1, %v699_v45, %v700_v46 }
  0xa2   : > { %3987 = vst [vmem:[#allocation27_spill] sm:$0xff] %v3199_v41 }
  0xa4   : > { %1168 = vmatmul.f32.gmra.mxu0 %v3039_v62 }
  0xa6   : > { %594 = vmatmul.f32.gmra.mxu1 %v2966_v36  ;;  %837 = vmatmul.f32.gmra.mxu2 %v3123_v28  ;;  %v2248_v36 = vld [vmem:[%s3892_s1 + $0x2d0] sm:$0xff] }
  0xa7   : > { %1311 = vmatpush.msra.mxu1 %v2248_v36 }
  0xa8   : > { %999 = vmatmul.f32.gmra.mxu3 %v2492_v14 }
  0xac   : > { %1171 = vmatmul.f32.gmra.mxu0 %v2528_v31 }
  0xae   : > { %597 = vmatmul.f32.gmra.mxu1 %v2969_v38  ;;  %840 = vmatmul.f32.gmra.mxu2 %v3140_v18  ;;  %v2263_v38 = vld [vmem:[%s3892_s1 + $0x348] sm:$0xff] }
  0xaf   : > { %1474 = vmatpush.msra.mxu2 %v2263_v38  ;;  %v702_v38 = vrot.slane %v2674_v26, 2 }
  0xb0   : > { %1002 = vmatmul.f32.gmra.mxu3 %v2495_v15 }
  0xb1   : > { %1475 = vmatpush.msra.mxu2 %v2262_v56  ;;  %v3224_v30 = vsel %vm673_vm1, %v700_v46, %v702_v38  ;;  %v704_v56 = vrot.slane %v2743_v2, 2 }
  0xb2   : > { %3989 = vst [vmem:[#allocation29_spill] sm:$0xff] %v3224_v30 }
  0xb3   : > { %v3151_v17 = vpop.f32.mrf.mxu1 }
  0xb4   : > { %1174 = vmatmul.f32.gmra.mxu0 %v2587_v54 }
  0xb6   : > { %600 = vmatmul.f32.gmra.mxu1 %v2492_v14  ;;  %843 = vmatmul.f32.gmra.mxu2 %v3154_v39  ;;  %v2247_v14 = vld [vmem:[%s3892_s1 + $0x2c8] sm:$0xff] }
  0xb7   : > { %1312 = vmatpush.msra.mxu1 %v2247_v14 }
  0xb8   : > { %1005 = vmatmul.f32.gmra.mxu3 %v2599_v58 }
  0xb9   : > { %v3167_v21 = vpop.f32.mrf.mxu2  ;;  %v3169_v44 = vpop.f32.mrf.mxu0 }
  0xbb   : > { %v3174_v47 = vpop.f32.mrf.mxu1  ;;  %v3176_v34 = vpop.f32.mrf.mxu3 }
  0xbc   : > { %3985 = vst [vmem:[#allocation25_spill] sm:$0xff] %v3176_v34  ;;  %1177 = vmatmul.f32.gmra.mxu0 %v2668_v24  ;;  %v707_v34 = vrot.slane %v2829_v51, 2  ;;  %v709_v51 = vrot.slane %v2903_v11, 2 }
  0xbe   : > { %603 = vmatmul.f32.gmra.mxu1 %v2495_v15  ;;  %846 = vmatmul.f32.gmra.mxu2 %v3179_v53 }
  0xc0   : > { %1008 = vmatmul.f32.gmra.mxu3 %v2602_v59 }
  0xc1   : > { %v3190_v50 = vpop.f32.mrf.mxu2  ;;  %v3192_v36 = vpop.f32.mrf.mxu0 }
  0xc3   : > { %v3194_v43 = vpop.f32.mrf.mxu1  ;;  %v3196_v15 = vpop.f32.mrf.mxu3 }
  0xc4   : > { %3986 = vst [vmem:[#allocation26_spill] sm:$0xff] %v3196_v15  ;;  %1180 = vmatmul.f32.gmra.mxu0 %v2737_v0  ;;  %v3244_v15 = vsel %vm673_vm1, %v704_v56, %v705_v23  ;;  %v2277_v56 = vld [vmem:[%s3892_s1 + $0x3b8] sm:$0xff] }
  0xc5   : > { %3991 = vst [vmem:[#allocation31_spill] sm:$0xff] %v3244_v15  ;;  %1648 = vmatpush.msra.mxu3 %v2277_v56  ;;  %v710_v56 = vrot.slane %v2906_v13, 2 }
  0xc6   : > { %606 = vmatmul.f32.gmra.mxu1 %v2599_v58  ;;  %849 = vmatmul.f32.gmra.mxu2 %v3199_v41  ;;  %v2246_v58 = vld [vmem:[%s3892_s1 + $0x2c0] sm:$0xff] }
  0xc7   : > { %1313 = vmatpush.msra.mxu1 %v2246_v58  ;;  %v2294_v58 = vld [vmem:[%s3892_s1 + $0x440] sm:$0xff] }
  0xc8   : > { %1011 = vmatmul.f32.gmra.mxu3 %v2743_v2  ;;  %1816 = vmatpush.msra.mxu0 %v2294_v58 }
  0xc9   : > { %v3212_v40 = vpop.f32.mrf.mxu2  ;;  %v3214_v14 = vpop.f32.mrf.mxu0 }
  0xcb   : > { %v3219_v45 = vpop.f32.mrf.mxu1  ;;  %v3221_v26 = vpop.f32.mrf.mxu3 }
  0xcc   : > { %3988 = vst [vmem:[#allocation28_spill] sm:$0xff] %v3221_v26  ;;  %1183 = vmatmul.f32.gmra.mxu0 %v2821_v48  ;;  %v2261_v48 = vld [vmem:[%s3892_s1 + $0x338] sm:$0xff] }
  0xcd   : > { %1476 = vmatpush.msra.mxu2 %v2261_v48  ;;  %v3269_v48 = vsel %vm673_vm1, %v705_v23, %v707_v34 }
  0xce   : > { %609 = vmatmul.f32.gmra.mxu1 %v2602_v59  ;;  %852 = vmatmul.f32.gmra.mxu2 %v3224_v30  ;;  %3993 = vst [vmem:[#allocation33_spill] sm:$0xff] %v3269_v48 }
  0xd0   : > { %1014 = vmatmul.f32.gmra.mxu3 %v2746_v3 }
  0xd1   : > { %v3235_v26 = vpop.f32.mrf.mxu2  ;;  %v3237_v46 = vpop.f32.mrf.mxu0 }
  0xd3   : > { %v3239_v38 = vpop.f32.mrf.mxu1  ;;  %v3241_v59 = vpop.f32.mrf.mxu3 }
  0xd4   : > { %3990 = vst [vmem:[#allocation30_spill] sm:$0xff] %v3241_v59  ;;  %1186 = vmatmul.f32.gmra.mxu0 %v2895_v7 }
  0xd6   : > { %612 = vmatmul.f32.gmra.mxu1 %v2743_v2  ;;  %855 = vmatmul.f32.gmra.mxu2 %v3244_v15  ;;  %v2245_v2 = vld [vmem:[%s3892_s1 + $0x2b8] sm:$0xff] }
  0xd7   : > { %1314 = vmatpush.msra.mxu1 %v2245_v2  ;;  %v3289_v2 = vsel %vm673_vm1, %v709_v51, %v710_v56  ;;  %v2276_v51 = vld [vmem:[%s3892_s1 + $0x3b0] sm:$0xff] }
  0xd8   : > { %1017 = vmatmul.f32.gmra.mxu3 %v2903_v11  ;;  %3995 = vst [vmem:[#allocation35_spill] sm:$0xff] %v3289_v2 }
  0xd9   : > { %v3257_v58 = vpop.f32.mrf.mxu2  ;;  %v3259_v59 = vpop.f32.mrf.mxu0  ;;  %1649 = vmatpush.msra.mxu3 %v2276_v51 }
  0xdb   : > { %v3264_v7 = vpop.f32.mrf.mxu1  ;;  %v3266_v15 = vpop.f32.mrf.mxu3 }
  0xdc   : > { %3992 = vst [vmem:[#allocation32_spill] sm:$0xff] %v3266_v15  ;;  %1189 = vmatmul.f32.gmra.mxu0 %v2975_v37  ;;  %v2293_v15 = vld [vmem:[%s3892_s1 + $0x438] sm:$0xff]  ;;  %v2260_v37 = vld [vmem:[%s3892_s1 + $0x330] sm:$0xff] }
  0xdd   : > { %1817 = vmatpush.msra.mxu0 %v2293_v15  ;;  %v712_v15 = vrot.slane %v2982_v12, 2  ;;  %1477 = vmatpush.msra.mxu2 %v2260_v37 }
  0xde   : > { %615 = vmatmul.f32.gmra.mxu1 %v2746_v3  ;;  %858 = vmatmul.f32.gmra.mxu2 %v3269_v48  ;;  %v3324_v48 = vld [vmem:[%s2444_s25 + $0xc8] sm:$0xff] }
  0xdf   : > { %v3314_v37 = vsel %vm673_vm1, %v710_v56, %v712_v15  ;;  %v715_v0 = vrot.slane %v3324_v48, 2 }
  0xe0   : > { %1020 = vmatmul.f32.gmra.mxu3 %v2906_v13  ;;  %3997 = vst [vmem:[#allocation37_spill] sm:$0xff] %v3314_v37 }
  0xe1   : > { %v3280_v30 = vpop.f32.mrf.mxu2  ;;  %v3282_v34 = vpop.f32.mrf.mxu0 }
  0xe3   : > { %v3284_v23 = vpop.f32.mrf.mxu1  ;;  %v3286_v3 = vpop.f32.mrf.mxu3 }
  0xe4   : > { %3994 = vst [vmem:[#allocation34_spill] sm:$0xff] %v3286_v3  ;;  %1192 = vmatmul.f32.gmra.mxu0 %v3020_v6  ;;  %v2244_v6 = vld [vmem:[%s3892_s1 + $0x2b0] sm:$0xff] }
  0xe5   : > { %1315 = vmatpush.msra.mxu1 %v2244_v6  ;;  %v2292_v6 = vld [vmem:[%s3892_s1 + $0x430] sm:$0xff] }
  0xe6   : > { %618 = vmatmul.f32.gmra.mxu1 %v2903_v11  ;;  %861 = vmatmul.f32.gmra.mxu2 %v3289_v2 }
  0xe7   : > { %1818 = vmatpush.msra.mxu0 %v2292_v6 }
  0xe8   : > { %1023 = vmatmul.f32.gmra.mxu3 %v2498_v16  ;;  %v3320_v16 = vld [vmem:[%s2444_s25 + $0xc0] sm:$0xff] }
  0xe9   : > { %v3302_v3 = vpop.f32.mrf.mxu2  ;;  %v3304_v11 = vpop.f32.mrf.mxu0  ;;  %3998 = vst [vmem:[#allocation38_spill] sm:$0xff] %v3320_v16  ;;  %v714_v51 = vrot.slane %v3320_v16, 2 }
  0xeb   : > { %v3309_v2 = vpop.f32.mrf.mxu1  ;;  %v3311_v12 = vpop.f32.mrf.mxu3 }
  0xec   : > { %3996 = vst [vmem:[#allocation36_spill] sm:$0xff] %v3311_v12  ;;  %1195 = vmatmul.f32.gmra.mxu0 %v2531_v32  ;;  %v3338_v32 = vsel %vm673_vm1, %v714_v51, %v715_v0  ;;  %v2275_v51 = vld [vmem:[%s3892_s1 + $0x3a8] sm:$0xff] }
  0xed   : > { %4001 = vst [vmem:[#allocation41_spill] sm:$0xff] %v3338_v32  ;;  %1650 = vmatpush.msra.mxu3 %v2275_v51 }
  0xee   : > { %621 = vmatmul.f32.gmra.mxu1 %v2906_v13  ;;  %864 = vmatmul.f32.gmra.mxu2 %v3314_v37  ;;  %v2259_v37 = vld [vmem:[%s3892_s1 + $0x328] sm:$0xff] }
  0xef   : > { %1478 = vmatpush.msra.mxu2 %v2259_v37  ;;  %v719_v37 = vrot.slane %v2605_v60, 2 }
  0xf0   : > { %1026 = vmatmul.f32.gmra.mxu3 %v3324_v48 }
  0xf1   : > { %v3331_v56 = vpop.f32.mrf.mxu2  ;;  %v3333_v15 = vpop.f32.mrf.mxu0 }
  0xf2   : > { %3999 = vst [vmem:[#allocation39_spill] sm:$0xff] %v3331_v56  ;;  %v717_v56 = vrot.slane %v2540_v35, 2 }
  0xf3   : > { %v3335_v13 = vpop.f32.mrf.mxu3  ;;  %v577_v12 = vpop.f32.mrf.mxu1 }
  0xf4   : > { %4000 = vst [vmem:[#allocation40_spill] sm:$0xff] %v3335_v13  ;;  %1198 = vmatmul.f32.gmra.mxu0 %v2590_v55  ;;  %v578_v6 = vadd.f32 %v577_v12, %v3169_v44  ;;  %v3356_v35 = vsel %vm673_vm1, %v715_v0, %v717_v56 }
  0xf6   : > { %624 = vmatmul.f32.gmra.mxu1 %v3320_v16  ;;  %867 = vmatmul.f32.gmra.mxu2 %v3338_v32  ;;  %v2243_v32 = vld [vmem:[%s3892_s1 + $0x2a8] sm:$0xff] }
  0xf7   : > { %1316 = vmatpush.msra.mxu1 %v2243_v32  ;;  %v2291_v32 = vld [vmem:[%s3892_s1 + $0x428] sm:$0xff] }
  0xf8   : > { %1029 = vmatmul.f32.gmra.mxu3 %v2605_v60  ;;  %1819 = vmatpush.msra.mxu0 %v2291_v32 }
  0xf9   : > { %v820_v13 = vpop.f32.mrf.mxu2  ;;  %v1154_v55 = vpop.f32.mrf.mxu0 }
  0xfa   : > { %v916_v16 = vadd.f32 %v820_v13, %v578_v6  ;;  %v720_v13 = vrot.slane %v2608_v61, 2 }
  0xfb   : > { %v580_v41 = vpop.f32.mrf.mxu1  ;;  %v982_v24 = vpop.f32.mrf.mxu3 }
  0xfc   : > { %v1078_v44 = vadd.f32 %v982_v24, %v916_v16  ;;  %1201 = vmatmul.f32.gmra.mxu0 %v2671_v25  ;;  %v581_v6 = vadd.f32 %v580_v41, %v3192_v36  ;;  %v3371_v51 = vsel %vm673_vm1, %v719_v37, %v720_v13  ;;  %v2258_v36 = vld [vmem:[%s3892_s1 + $0x320] sm:$0xff]  ;;  %v722_v41 = vrot.slane %v2677_v27, 2 }
  0xfd   : > { %1479 = vmatpush.msra.mxu2 %v2258_v36  ;;  %v2274_v37 = vld [vmem:[%s3892_s1 + $0x3a0] sm:$0xff]  ;;  %v725_v36 = vrot.slane %v2753_v5, 2 }
  0xfe   : > { %v3359_v12 = vadd.f32 %v1154_v55, %v1078_v44  ;;  %627 = vmatmul.f32.gmra.mxu1 %v3324_v48  ;;  %870 = vmatmul.f32.gmra.mxu2 %v3356_v35  ;;  %v3391_v27 = vsel %vm673_vm1, %v720_v13, %v722_v41  ;;  %v2290_v13 = vld [vmem:[%s3892_s1 + $0x420] sm:$0xff] }
  0xff   : > { %1651 = vmatpush.msra.mxu3 %v2274_v37  ;;  %1820 = vmatpush.msra.mxu0 %v2290_v13 }
 0x100   : > { %4002 = vst [vmem:[#allocation42_spill] sm:$0xff] %v3359_v12  ;;  %1032 = vmatmul.f32.gmra.mxu3 %v2608_v61 }
 0x101   : > { %v823_v24 = vpop.f32.mrf.mxu2  ;;  %v1157_v0 = vpop.f32.mrf.mxu0 }
 0x102   : > { %v917_v55 = vadd.f32 %v823_v24, %v581_v6 }
 0x103   : > { %v583_v16 = vpop.f32.mrf.mxu1  ;;  %v985_v56 = vpop.f32.mrf.mxu3 }
 0x104   : > { %v1079_v44 = vadd.f32 %v985_v56, %v917_v55  ;;  %1204 = vmatmul.f32.gmra.mxu0 %v2740_v1  ;;  %v584_v6 = vadd.f32 %v583_v16, %v3214_v14 }
 0x106   : > { %v3374_v12 = vadd.f32 %v1157_v0, %v1079_v44  ;;  %630 = vmatmul.f32.gmra.mxu1 %v2605_v60  ;;  %873 = vmatmul.f32.gmra.mxu2 %v3371_v51  ;;  %v2242_v0 = vld [vmem:[%s3892_s1 + $0x2a0] sm:$0xff]  ;;  %v724_v44 = vrot.slane %v2749_v4, 2 }
 0x107   : > { %1317 = vmatpush.msra.mxu1 %v2242_v0 }
 0x108   : > { %1035 = vmatmul.f32.gmra.mxu3 %v2749_v4 }
 0x109   : > { %v826_v32 = vpop.f32.mrf.mxu2  ;;  %v1160_v24 = vpop.f32.mrf.mxu0 }
 0x10a   : > { %v918_v60 = vadd.f32 %v826_v32, %v584_v6 }
 0x10b   : > { %v586_v55 = vpop.f32.mrf.mxu1  ;;  %v988_v56 = vpop.f32.mrf.mxu3 }
 0x10c   : > { %v1080_v14 = vadd.f32 %v988_v56, %v918_v60  ;;  %1207 = vmatmul.f32.gmra.mxu0 %v2826_v49  ;;  %v587_v6 = vadd.f32 %v586_v55, %v3237_v46  ;;  %v3406_v60 = vsel %vm673_vm1, %v724_v44, %v725_v36  ;;  %v2257_v46 = vld [vmem:[%s3892_s1 + $0x318] sm:$0xff]  ;;  %v727_v55 = vrot.slane %v2833_v52, 2 }
 0x10d   : > { %1480 = vmatpush.msra.mxu2 %v2257_v46  ;;  %v4003_v44 = vld [vmem:[#allocation13_spill] sm:$0xff] }
 0x10e   : > { %v3394_v16 = vadd.f32 %v1160_v24, %v1080_v14  ;;  %633 = vmatmul.f32.gmra.mxu1 %v2608_v61  ;;  %876 = vmatmul.f32.gmra.mxu2 %v3391_v27  ;;  %v3426_v52 = vsel %vm673_vm1, %v725_v36, %v727_v55  ;;  %v729_v46 = vrot.slane %v4003_v44, 2  ;;  %v2289_v36 = vld [vmem:[%s3892_s1 + $0x418] sm:$0xff] }
 0x10f   : > { %1821 = vmatpush.msra.mxu0 %v2289_v36  ;;  %v4008_v36 = vld [vmem:[#allocation20_spill] sm:$0xff] }
 0x110   : > { %1038 = vmatmul.f32.gmra.mxu3 %v2753_v5 }
 0x111   : > { %v829_v41 = vpop.f32.mrf.mxu2  ;;  %v1163_v37 = vpop.f32.mrf.mxu0 }
 0x112   : > { %v919_v32 = vadd.f32 %v829_v41, %v587_v6  ;;  %v2273_v6 = vld [vmem:[%s3892_s1 + $0x398] sm:$0xff] }
 0x113   : > { %v589_v24 = vpop.f32.mrf.mxu1  ;;  %v991_v61 = vpop.f32.mrf.mxu3  ;;  %1652 = vmatpush.msra.mxu3 %v2273_v6 }
 0x114   : > { %v1081_v0 = vadd.f32 %v991_v61, %v919_v32  ;;  %1210 = vmatmul.f32.gmra.mxu0 %v2900_v10  ;;  %v590_v14 = vadd.f32 %v589_v24, %v3259_v59  ;;  %v4004_v24 = vld [vmem:[#allocation19_spill] sm:$0xff] }
 0x116   : > { %v3409_v56 = vadd.f32 %v1163_v37, %v1081_v0  ;;  %636 = vmatmul.f32.gmra.mxu1 %v2749_v4  ;;  %879 = vmatmul.f32.gmra.mxu2 %v3406_v60  ;;  %v2241_v37 = vld [vmem:[%s3892_s1 + $0x298] sm:$0xff] }
 0x117   : > { %1318 = vmatpush.msra.mxu1 %v2241_v37 }
 0x118   : > { %1041 = vmatmul.f32.gmra.mxu3 %v4003_v44 }
 0x119   : > { %v832_v13 = vpop.f32.mrf.mxu2  ;;  %v1166_v41 = vpop.f32.mrf.mxu0 }
 0x11a   : > { %v920_v4 = vadd.f32 %v832_v13, %v590_v14  ;;  %v4006_v14 = vld [vmem:[#allocation14_spill] sm:$0xff] }
 0x11b   : > { %v592_v32 = vpop.f32.mrf.mxu1  ;;  %v994_v61 = vpop.f32.mrf.mxu3  ;;  %v730_v6 = vrot.slane %v4006_v14, 2 }
 0x11c   : > { %v1082_v59 = vadd.f32 %v994_v61, %v920_v4  ;;  %1213 = vmatmul.f32.gmra.mxu0 %v4004_v24  ;;  %v593_v13 = vadd.f32 %v592_v32, %v3282_v34  ;;  %v2256_v32 = vld [vmem:[%s3892_s1 + $0x310] sm:$0xff] }
 0x11d   : > { %v3441_v61 = vsel %vm673_vm1, %v729_v46, %v730_v6  ;;  %1481 = vmatpush.msra.mxu2 %v2256_v32  ;;  %v3454_v46 = vld [vmem:[%s2444_s25 + $0x120] sm:$0xff] }
 0x11e   : > { %v3429_v0 = vadd.f32 %v1166_v41, %v1082_v59  ;;  %639 = vmatmul.f32.gmra.mxu1 %v2753_v5  ;;  %882 = vmatmul.f32.gmra.mxu2 %v3426_v52 }
 0x120   : > { %4005 = vst [vmem:[#allocation13_spill] sm:$0xff] %v3429_v0  ;;  %1044 = vmatmul.f32.gmra.mxu3 %v4006_v14 }
 0x121   : > { %v835_v55 = vpop.f32.mrf.mxu2  ;;  %v1169_v41 = vpop.f32.mrf.mxu0 }
 0x122   : > { %v921_v4 = vadd.f32 %v835_v55, %v593_v13  ;;  %v732_v13 = vrot.slane %v4008_v36, 2 }
 0x123   : > { %v595_v5 = vpop.f32.mrf.mxu1  ;;  %v997_v37 = vpop.f32.mrf.mxu3 }
 0x124   : > { %v1083_v59 = vadd.f32 %v997_v37, %v921_v4  ;;  %1216 = vmatmul.f32.gmra.mxu0 %v3023_v57  ;;  %v596_v55 = vadd.f32 %v595_v5, %v3304_v11  ;;  %v3464_v11 = vsel %vm673_vm1, %v730_v6, %v732_v13  ;;  %v2288_v6 = vld [vmem:[%s3892_s1 + $0x410] sm:$0xff] }
 0x125   : > { %1822 = vmatpush.msra.mxu0 %v2288_v6  ;;  %v2367_v6 = vld [vmem:[%s2444_s25 + $0x130] sm:$0x3] }
 0x126   : > { %v3444_v34 = vadd.f32 %v1169_v41, %v1083_v59  ;;  %642 = vmatmul.f32.gmra.mxu1 %v4003_v44  ;;  %885 = vmatmul.f32.gmra.mxu2 %v3441_v61  ;;  %v2272_v41 = vld [vmem:[%s3892_s1 + $0x390] sm:$0xff] }
 0x127   : > { %1653 = vmatpush.msra.mxu3 %v2272_v41  ;;  %v2240_v59 = vld [vmem:[%s3892_s1 + $0x290] sm:$0xff]  ;;  %v3473_v41 = vld [vmem:[%s2444_s25 + $0x128] sm:$0xff] }
 0x128   : > { %4007 = vst [vmem:[#allocation19_spill] sm:$0xff] %v3444_v34  ;;  %1047 = vmatmul.f32.gmra.mxu3 %v3454_v46  ;;  %1319 = vmatpush.msra.mxu1 %v2240_v59  ;;  %v4009_v34 = vld [vmem:[#allocation3_spill] sm:$0xff] }
 0x129   : > { %v838_v44 = vpop.f32.mrf.mxu2  ;;  %v1172_v4 = vpop.f32.mrf.mxu0 }
 0x12a   : > { %v922_v37 = vadd.f32 %v838_v44, %v596_v55  ;;  %v734_v55 = vrot.slane %v3454_v46, 2  ;;  %v735_v44 = vrot.slane %v3473_v41, 2 }
 0x12b   : > { %v598_v32 = vpop.f32.mrf.mxu1  ;;  %v1000_v36 = vpop.f32.mrf.mxu3 }
 0x12c   : > { %v1084_v5 = vadd.f32 %v1000_v36, %v922_v37  ;;  %1219 = vmatmul.f32.gmra.mxu0 %v4009_v34  ;;  %v599_v57 = vadd.f32 %v598_v32, %v3333_v15  ;;  %v3482_v36 = vsel %vm673_vm1, %v734_v55, %v735_v44  ;;  %v2255_v32 = vld [vmem:[%s3892_s1 + $0x308] sm:$0xff]  ;;  %v3495_v55 = vld [vmem:[%s2444_s25 + $0x138] sm:$0xff] }
 0x12d   : > { %4011 = vst [vmem:[#allocation20_spill] sm:$0xff] %v3482_v36  ;;  %1482 = vmatpush.msra.mxu2 %v2255_v32 }
 0x12e   : > { %v3467_v0 = vadd.f32 %v1172_v4, %v1084_v5  ;;  %645 = vmatmul.f32.gmra.mxu1 %v4006_v14  ;;  %888 = vmatmul.f32.gmra.mxu2 %v3464_v11  ;;  %4014 = vst [vmem:[#allocation44_spill] sm:$0xff] %v3495_v55 }
 0x130   : > { %4010 = vst [vmem:[#allocation14_spill] sm:$0xff] %v3467_v0  ;;  %1050 = vmatmul.f32.gmra.mxu3 %v3473_v41  ;;  %v4012_v0 = vld [vmem:[#allocation5_spill] sm:$0xff] }
 0x131   : > { %v841_v13 = vpop.f32.mrf.mxu2  ;;  %v1175_v4 = vpop.f32.mrf.mxu0 }
 0x132   : > { %v923_v14 = vadd.f32 %v841_v13, %v599_v57  ;;  %v737_v57 = vrot.slane %v2367_v6, 2  ;;  %v2239_v6 = vld [vmem:[%s3892_s1 + $0x288] sm:$0xff] }
 0x133   : > { %v601_v37 = vpop.f32.mrf.mxu1  ;;  %v1003_v59 = vpop.f32.mrf.mxu3  ;;  %1320 = vmatpush.msra.mxu1 %v2239_v6 }
 0x134   : > { %v1085_v5 = vadd.f32 %v1003_v59, %v923_v14  ;;  %1222 = vmatmul.f32.gmra.mxu0 %v4012_v0  ;;  %v602_v13 = vadd.f32 %v601_v37, %v3151_v17  ;;  %v3505_v17 = vsel %vm673_vm1, %v735_v44, %v737_v57  ;;  %v4016_v0 = vld [vmem:[#allocation7_spill] sm:$0xff] }
 0x135   : > { %4015 = vst [vmem:[#allocation45_spill] sm:$0xff] %v3505_v17  ;;  %v2287_v44 = vld [vmem:[%s3892_s1 + $0x408] sm:$0xff] }
 0x136   : > { %v3485_v15 = vadd.f32 %v1175_v4, %v1085_v5  ;;  %648 = vmatmul.f32.gmra.mxu1 %v3454_v46  ;;  %891 = vmatmul.f32.gmra.mxu2 %v3482_v36  ;;  %v2271_v4 = vld [vmem:[%s3892_s1 + $0x388] sm:$0xff] }
 0x137   : > { %1654 = vmatpush.msra.mxu3 %v2271_v4  ;;  %v3514_v4 = vld [vmem:[%s2444_s25 + $0x140] sm:$0xff]  ;;  %1823 = vmatpush.msra.mxu0 %v2287_v44  ;;  %v2370_v44 = vld [vmem:[%s2444_s25 + $0x148] sm:$0x3] }
 0x138   : > { %4013 = vst [vmem:[#allocation43_spill] sm:$0xff] %v3485_v15  ;;  %1053 = vmatmul.f32.gmra.mxu3 %v3495_v55 }
 0x139   : > { %v844_v14 = vpop.f32.mrf.mxu2  ;;  %v1178_v59 = vpop.f32.mrf.mxu0  ;;  %4018 = vst [vmem:[#allocation47_spill] sm:$0xff] %v3514_v4 }
 0x13a   : > { %v924_v5 = vadd.f32 %v844_v14, %v602_v13  ;;  %v739_v13 = vrot.slane %v3495_v55, 2  ;;  %v740_v14 = vrot.slane %v3514_v4, 2 }
 0x13b   : > { %v604_v32 = vpop.f32.mrf.mxu1  ;;  %v1006_v15 = vpop.f32.mrf.mxu3 }
 0x13c   : > { %v1086_v37 = vadd.f32 %v1006_v15, %v924_v5  ;;  %1225 = vmatmul.f32.gmra.mxu0 %v4016_v0  ;;  %v605_v34 = vadd.f32 %v604_v32, %v3174_v47  ;;  %v4020_v0 = vld [vmem:[#allocation9_spill] sm:$0xff]  ;;  %v2254_v32 = vld [vmem:[%s3892_s1 + $0x300] sm:$0xff] }
 0x13d   : > { %1483 = vmatpush.msra.mxu2 %v2254_v32 }
 0x13e   : > { %v3508_v36 = vadd.f32 %v1178_v59, %v1086_v37  ;;  %651 = vmatmul.f32.gmra.mxu1 %v3473_v41  ;;  %894 = vmatmul.f32.gmra.mxu2 %v3505_v17  ;;  %v3523_v37 = vsel %vm673_vm1, %v739_v13, %v740_v14  ;;  %v3536_v13 = vld [vmem:[%s2444_s25 + $0x150] sm:$0xff] }
 0x13f   : > { %4019 = vst [vmem:[#allocation48_spill] sm:$0xff] %v3523_v37 }
 0x140   : > { %4017 = vst [vmem:[#allocation46_spill] sm:$0xff] %v3508_v36  ;;  %1056 = vmatmul.f32.gmra.mxu3 %v3514_v4 }
 0x141   : > { %v847_v15 = vpop.f32.mrf.mxu2  ;;  %v1181_v57 = vpop.f32.mrf.mxu0 }
 0x142   : > { %v925_v59 = vadd.f32 %v847_v15, %v605_v34  ;;  %v742_v34 = vrot.slane %v2370_v44, 2  ;;  %v2238_v44 = vld [vmem:[%s3892_s1 + $0x280] sm:$0xff] }
 0x143   : > { %v607_v5 = vpop.f32.mrf.mxu1  ;;  %v1009_v6 = vpop.f32.mrf.mxu3  ;;  %1321 = vmatpush.msra.mxu1 %v2238_v44 }
 0x144   : > { %v1087_v36 = vadd.f32 %v1009_v6, %v925_v59  ;;  %1228 = vmatmul.f32.gmra.mxu0 %v4020_v0  ;;  %v608_v15 = vadd.f32 %v607_v5, %v3194_v43  ;;  %v3546_v43 = vsel %vm673_vm1, %v740_v14, %v742_v34  ;;  %v4023_v0 = vld [vmem:[#allocation11_spill] sm:$0xff] }
 0x145   : > { %4022 = vst [vmem:[#allocation50_spill] sm:$0xff] %v3546_v43 }
 0x146   : > { %v3526_v47 = vadd.f32 %v1181_v57, %v1087_v36  ;;  %654 = vmatmul.f32.gmra.mxu1 %v3495_v55  ;;  %897 = vmatmul.f32.gmra.mxu2 %v3523_v37  ;;  %v2270_v36 = vld [vmem:[%s3892_s1 + $0x380] sm:$0xff] }
 0x147   : > { %1655 = vmatpush.msra.mxu3 %v2270_v36  ;;  %v3555_v36 = vld [vmem:[%s2444_s25 + $0x158] sm:$0xff] }
 0x148   : > { %4021 = vst [vmem:[#allocation49_spill] sm:$0xff] %v3526_v47  ;;  %1059 = vmatmul.f32.gmra.mxu3 %v3536_v13 }
 0x149   : > { %v850_v57 = vpop.f32.mrf.mxu2  ;;  %v1184_v59 = vpop.f32.mrf.mxu0 }
 0x14a   : > { %v926_v6 = vadd.f32 %v850_v57, %v608_v15  ;;  %v744_v15 = vrot.slane %v3536_v13, 2  ;;  %v745_v57 = vrot.slane %v3555_v36, 2 }
 0x14b   : > { %v610_v32 = vpop.f32.mrf.mxu1  ;;  %v1012_v47 = vpop.f32.mrf.mxu3 }
 0x14c   : > { %v1088_v5 = vadd.f32 %v1012_v47, %v926_v6  ;;  %1231 = vmatmul.f32.gmra.mxu0 %v4023_v0  ;;  %v611_v14 = vadd.f32 %v610_v32, %v3219_v45  ;;  %v2286_v47 = vld [vmem:[%s3892_s1 + $0x400] sm:$0xff] }
 0x14d   : > { %1824 = vmatpush.msra.mxu0 %v2286_v47  ;;  %v2373_v45 = vld [vmem:[%s2444_s25 + $0x160] sm:$0x3] }
 0x14e   : > { %v3549_v37 = vadd.f32 %v1184_v59, %v1088_v5  ;;  %657 = vmatmul.f32.gmra.mxu1 %v3514_v4  ;;  %900 = vmatmul.f32.gmra.mxu2 %v3546_v43  ;;  %v4025_v43 = vld [vmem:[#allocation15_spill] sm:$0xff]  ;;  %v747_v32 = vrot.slane %v2373_v45, 2  ;;  %v4031_v45 = vld [vmem:[#allocation17_spill] sm:$0xff] }
 0x150   : > { %4024 = vst [vmem:[#allocation51_spill] sm:$0xff] %v3549_v37  ;;  %1062 = vmatmul.f32.gmra.mxu3 %v3555_v36  ;;  %v3564_v37 = vsel %vm673_vm1, %v744_v15, %v745_v57 }
 0x151   : > { %v853_v34 = vpop.f32.mrf.mxu2  ;;  %v1187_v59 = vpop.f32.mrf.mxu0 }
 0x152   : > { %v927_v6 = vadd.f32 %v853_v34, %v611_v14  ;;  %v4027_v14 = vld [vmem:[#allocation16_spill] sm:$0xff] }
 0x153   : > { %v613_v44 = vpop.f32.mrf.mxu1  ;;  %v1015_v5 = vpop.f32.mrf.mxu3 }
 0x154   : > { %v1089_v0 = vadd.f32 %v1015_v5, %v927_v6  ;;  %1234 = vmatmul.f32.gmra.mxu0 %v4025_v43  ;;  %v614_v47 = vadd.f32 %v613_v44, %v3239_v38  ;;  %v4029_v5 = vld [vmem:[#allocation21_spill] sm:$0xff]  ;;  %v3583_v38 = vld [vmem:[%s2444_s25 + $0x168] sm:$0xff] }
 0x155   : > { %v749_v44 = vrot.slane %v3583_v38, 2 }
 0x156   : > { %v3567_v4 = vadd.f32 %v1187_v59, %v1089_v0  ;;  %660 = vmatmul.f32.gmra.mxu1 %v3536_v13  ;;  %903 = vmatmul.f32.gmra.mxu2 %v3564_v37  ;;  %v3575_v0 = vsel %vm673_vm1, %v745_v57, %v747_v32 }
 0x157   : > { %4028 = vst [vmem:[#allocation16_spill] sm:$0xff] %v3575_v0 }
 0x158   : > { %4026 = vst [vmem:[#allocation15_spill] sm:$0xff] %v3567_v4  ;;  %1065 = vmatmul.f32.gmra.mxu3 %v4027_v14 }
 0x159   : > { %v856_v34 = vpop.f32.mrf.mxu2  ;;  %v1190_v55 = vpop.f32.mrf.mxu0 }
 0x15a   : > { %v928_v15 = vadd.f32 %v856_v34, %v614_v47  ;;  %v750_v47 = vrot.slane %v4031_v45, 2 }
 0x15b   : > { %v616_v17 = vpop.f32.mrf.mxu1  ;;  %v1018_v6 = vpop.f32.mrf.mxu3 }
 0x15c   : > { %v1090_v59 = vadd.f32 %v1018_v6, %v928_v15  ;;  %1237 = vmatmul.f32.gmra.mxu0 %v4029_v5  ;;  %v617_v14 = vadd.f32 %v616_v17, %v3264_v7  ;;  %v3596_v5 = vld [vmem:[%s2444_s25 + $0x180] sm:$0xff] }
 0x15d   : > { %v1113_v7 = vrot.slane %v3596_v5, 1 }
 0x15e   : > { %v3578_v4 = vadd.f32 %v1190_v55, %v1090_v59  ;;  %663 = vmatmul.f32.gmra.mxu1 %v3555_v36  ;;  %906 = vmatmul.f32.gmra.mxu2 %v3575_v0  ;;  %v3590_v55 = vld [vmem:[%s2444_s25 + $0x188] sm:$0xff]  ;;  %v3593_v59 = vsel %vm673_vm1, %v749_v44, %v750_v47  ;;  %v752_v44 = vrot.slane %v2998_v8, 2  ;;  %v3612_v0 = vld [vmem:[%s2444_s25 + $0x190] sm:$0x3] }
 0x15f   : > { %4032 = vst [vmem:[#allocation17_spill] sm:$0xff] %v3593_v59  ;;  %v1114_v17 = vrot.slane %v3590_v55, 1  ;;  %v1116_v8 = vrot.slane %v3612_v0, 1 }
 0x160   : > { %4030 = vst [vmem:[#allocation52_spill] sm:$0xff] %v3578_v4  ;;  %1068 = vmatmul.f32.gmra.mxu3 %v4031_v45 }
 0x161   : > { %v859_v57 = vpop.f32.mrf.mxu2  ;;  %v1193_v32 = vpop.f32.mrf.mxu0  ;;  %4034 = vst [vmem:[#allocation54_spill] sm:$0xff] %v3612_v0 }
 0x162   : > { %v929_v34 = vadd.f32 %v859_v57, %v617_v14 }
 0x163   : > { %v619_v15 = vpop.f32.mrf.mxu1  ;;  %v1021_v6 = vpop.f32.mrf.mxu3 }
 0x164   : > { %v1091_v4 = vadd.f32 %v1021_v6, %v929_v34  ;;  %1240 = vmatmul.f32.gmra.mxu0 %v3027_v9  ;;  %v620_v14 = vadd.f32 %v619_v15, %v3284_v23  ;;  %v3609_v6 = vsel %vm317_vm0, %v1113_v7, %v1114_v17  ;;  %v3622_v15 = vld [vmem:[%s2444_s25 + $0x170] sm:$0xff] }
 0x166   : > { %v3601_v45 = vadd.f32 %v1193_v32, %v1091_v4  ;;  %666 = vmatmul.f32.gmra.mxu1 %v3583_v38  ;;  %909 = vmatmul.f32.gmra.mxu2 %v3593_v59 }
 0x168   : > { %4033 = vst [vmem:[#allocation53_spill] sm:$0xff] %v3601_v45  ;;  %1071 = vmatmul.f32.gmra.mxu3 %v3596_v5  ;;  %v3615_v45 = vsel %vm673_vm1, %v750_v47, %v752_v44 }
 0x169   : > { %v862_v57 = vpop.f32.mrf.mxu2  ;;  %v1196_v34 = vpop.f32.mrf.mxu0 }
 0x16a   : > { %v930_v9 = vadd.f32 %v862_v57, %v620_v14 }
 0x16b   : > { %v622_v4 = vpop.f32.mrf.mxu1  ;;  %v1024_v32 = vpop.f32.mrf.mxu3 }
 0x16c   : > { %v1092_v59 = vadd.f32 %v1024_v32, %v930_v9  ;;  %1243 = vmatmul.f32.gmra.mxu0 %v3609_v6  ;;  %v623_v7 = vadd.f32 %v622_v4, %v3309_v2  ;;  %v3629_v9 = vsel %vm317_vm0, %v1114_v17, %v1116_v8 }
 0x16e   : > { %v3619_v23 = vadd.f32 %v1196_v34, %v1092_v59  ;;  %669 = vmatmul.f32.gmra.mxu1 %v3622_v15  ;;  %912 = vmatmul.f32.gmra.mxu2 %v3615_v45 }
 0x170   : > { %4035 = vst [vmem:[#allocation55_spill] sm:$0xff] %v3619_v23  ;;  %1074 = vmatmul.f32.gmra.mxu3 %v3590_v55  ;;  %v2376_v23 = vld [vmem:[%s2444_s25 + $0x30] sm:$0xff] }
 0x171   : > { %v865_v47 = vpop.f32.mrf.mxu2  ;;  %v1199_v44 = vpop.f32.mrf.mxu0 }
 0x172   : > { %v931_v14 = vadd.f32 %v865_v47, %v623_v7 }
 0x173   : > { %v625_v57 = vpop.f32.mrf.mxu1  ;;  %v1027_v59 = vpop.f32.mrf.mxu3 }
 0x174   : > { %v1093_v34 = vadd.f32 %v1027_v59, %v931_v14  ;;  %1246 = vmatmul.f32.gmra.mxu0 %v3629_v9  ;;  %v626_v2 = vadd.f32 %v625_v57, %v3167_v21 }
 0x176   : > { %v3632_v32 = vadd.f32 %v1199_v44, %v1093_v34  ;;  %1322 = vmatmul.f32.vlgmr.msra.gmra.mxu1 %v3065_v33  ;;  %1484 = vmatmul.f32.vlgmr.msra.gmra.mxu2 %v2376_v23  ;;  %v2377_v33 = vld [vmem:[%s2444_s25 + $0x38] sm:$0xff] }
 0x178   : > { %1656 = vmatmul.f32.vlgmr.msra.gmra.mxu3 %v2878_v42 }
 0x179   : > { %v868_v4 = vpop.f32.mrf.mxu2  ;;  %v1202_v17 = vpop.f32.mrf.mxu0 }
 0x17a   : > { %v932_v8 = vadd.f32 %v868_v4, %v626_v2 }
 0x17b   : > { %v628_v7 = vpop.f32.mrf.mxu1  ;;  %v1030_v47 = vpop.f32.mrf.mxu3 }
 0x17c   : > { %v1094_v0 = vadd.f32 %v1030_v47, %v932_v8  ;;  %1825 = vmatmul.f32.vlgmr.msra.gmra.mxu0 %v3094_v63  ;;  %v629_v23 = vadd.f32 %v628_v7, %v3190_v50 }
 0x17e   : > { %v3639_v14 = vadd.f32 %v1202_v17, %v1094_v0  ;;  %1325 = vmatmul.f32.gmra.mxu1 %v3082_v22  ;;  %1487 = vmatmul.f32.gmra.mxu2 %v2377_v33  ;;  %v2378_v22 = vld [vmem:[%s2444_s25 + $0x48] sm:$0xff] }
 0x180   : > { %1659 = vmatmul.f32.gmra.mxu3 %v2961_v19 }
 0x181   : > { %v871_v42 = vpop.f32.mrf.mxu2  ;;  %v1205_v21 = vpop.f32.mrf.mxu0 }
 0x182   : > { %v933_v44 = vadd.f32 %v871_v42, %v629_v23 }
 0x183   : > { %v631_v57 = vpop.f32.mrf.mxu1  ;;  %v1033_v59 = vpop.f32.mrf.mxu3 }
 0x184   : > { %v1095_v34 = vadd.f32 %v1033_v59, %v933_v44  ;;  %1828 = vmatmul.f32.gmra.mxu0 %v3111_v29  ;;  %v632_v0 = vadd.f32 %v631_v57, %v3212_v40 }
 0x186   : > { %v3646_v2 = vadd.f32 %v1205_v21, %v1095_v34  ;;  %1328 = vmatmul.f32.gmra.mxu1 %v3094_v63  ;;  %1490 = vmatmul.f32.gmra.mxu2 %v2378_v22  ;;  %v2379_v63 = vld [vmem:[%s2444_s25 + $0x50] sm:$0xff] }
 0x188   : > { %1662 = vmatmul.f32.gmra.mxu3 %v3013_v20 }
 0x189   : > { %v874_v19 = vpop.f32.mrf.mxu2  ;;  %v1208_v50 = vpop.f32.mrf.mxu0 }
 0x18a   : > { %v934_v4 = vadd.f32 %v874_v19, %v632_v0 }
 0x18b   : > { %v634_v17 = vpop.f32.mrf.mxu1  ;;  %v1036_v8 = vpop.f32.mrf.mxu3 }
 0x18c   : > { %v1096_v7 = vadd.f32 %v1036_v8, %v934_v4  ;;  %1831 = vmatmul.f32.gmra.mxu0 %v3123_v28  ;;  %v635_v33 = vadd.f32 %v634_v17, %v3235_v26 }
 0x18e   : > { %v3653_v47 = vadd.f32 %v1208_v50, %v1096_v7  ;;  %1331 = vmatmul.f32.gmra.mxu1 %v3111_v29  ;;  %1493 = vmatmul.f32.gmra.mxu2 %v2379_v63  ;;  %v2380_v29 = vld [vmem:[%s2444_s25 + $0x60] sm:$0xff] }
 0x190   : > { %1665 = vmatmul.f32.gmra.mxu3 %v3039_v62 }
 0x191   : > { %v877_v20 = vpop.f32.mrf.mxu2  ;;  %v1211_v40 = vpop.f32.mrf.mxu0 }
 0x192   : > { %v935_v23 = vadd.f32 %v877_v20, %v635_v33 }
 0x193   : > { %v637_v42 = vpop.f32.mrf.mxu1  ;;  %v1039_v21 = vpop.f32.mrf.mxu3 }
 0x194   : > { %v1097_v44 = vadd.f32 %v1039_v21, %v935_v23  ;;  %1834 = vmatmul.f32.gmra.mxu0 %v3140_v18  ;;  %v638_v59 = vadd.f32 %v637_v42, %v3257_v58 }
 0x196   : > { %v3660_v57 = vadd.f32 %v1211_v40, %v1097_v44  ;;  %1334 = vmatmul.f32.gmra.mxu1 %v3123_v28  ;;  %1496 = vmatmul.f32.gmra.mxu2 %v2380_v29  ;;  %v2381_v28 = vld [vmem:[%s2444_s25 + $0x68] sm:$0xff] }
 0x197   : > { %v4037_v29 = vld [vmem:[#allocation27_spill] sm:$0xff] }
 0x198   : > { %1668 = vmatmul.f32.gmra.mxu3 %v2528_v31 }
 0x199   : > { %v880_v62 = vpop.f32.mrf.mxu2  ;;  %v1214_v26 = vpop.f32.mrf.mxu0 }
 0x19a   : > { %v936_v34 = vadd.f32 %v880_v62, %v638_v59  ;;  %v4038_v62 = vld [vmem:[#allocation39_spill] sm:$0xff] }
 0x19b   : > { %v640_v22 = vpop.f32.mrf.mxu1  ;;  %v1042_v0 = vpop.f32.mrf.mxu3 }
 0x19c   : > { %v1098_v19 = vadd.f32 %v1042_v0, %v936_v34  ;;  %1837 = vmatmul.f32.gmra.mxu0 %v3154_v39  ;;  %v641_v4 = vadd.f32 %v640_v22, %v3280_v30  ;;  %v4036_v30 = vld [vmem:[#allocation6_spill] sm:$0xff] }
 0x19e   : > { %v3667_v50 = vadd.f32 %v1214_v26, %v1098_v19  ;;  %1337 = vmatmul.f32.gmra.mxu1 %v3140_v18  ;;  %1499 = vmatmul.f32.gmra.mxu2 %v2381_v28  ;;  %v2382_v18 = vld [vmem:[%s2444_s25 + $0x78] sm:$0xff] }
 0x1a0   : > { %1671 = vmatmul.f32.gmra.mxu3 %v2587_v54 }
 0x1a1   : > { %v883_v31 = vpop.f32.mrf.mxu2  ;;  %v1217_v58 = vpop.f32.mrf.mxu0 }
 0x1a2   : > { %v937_v17 = vadd.f32 %v883_v31, %v641_v4  ;;  %v4040_v31 = vld [vmem:[#allocation29_spill] sm:$0xff] }
 0x1a3   : > { %v643_v8 = vpop.f32.mrf.mxu1  ;;  %v1045_v7 = vpop.f32.mrf.mxu3 }
 0x1a4   : > { %v1099_v63 = vadd.f32 %v1045_v7, %v937_v17  ;;  %1840 = vmatmul.f32.gmra.mxu0 %v3179_v53  ;;  %v644_v20 = vadd.f32 %v643_v8, %v3302_v3  ;;  %v4039_v3 = vld [vmem:[#allocation8_spill] sm:$0xff]  ;;  %v4041_v17 = vld [vmem:[#allocation25_spill] sm:$0xff]  ;;  %v4042_v7 = vld [vmem:[#allocation10_spill] sm:$0xff] }
 0x1a6   : > { %v3674_v33 = vadd.f32 %v1217_v58, %v1099_v63  ;;  %1340 = vmatmul.f32.gmra.mxu1 %v3154_v39  ;;  %1502 = vmatmul.f32.gmra.mxu2 %v2382_v18  ;;  %v2383_v39 = vld [vmem:[%s2444_s25 + $0x80] sm:$0xff] }
 0x1a8   : > { %1674 = vmatmul.f32.gmra.mxu3 %v4036_v30 }
 0x1a9   : > { %v886_v54 = vpop.f32.mrf.mxu2  ;;  %v1220_v40 = vpop.f32.mrf.mxu0 }
 0x1aa   : > { %v938_v23 = vadd.f32 %v886_v54, %v644_v20 }
 0x1ab   : > { %v646_v42 = vpop.f32.mrf.mxu1  ;;  %v1048_v21 = vpop.f32.mrf.mxu3 }
 0x1ac   : > { %v1100_v44 = vadd.f32 %v1048_v21, %v938_v23  ;;  %1843 = vmatmul.f32.gmra.mxu0 %v4037_v29  ;;  %v647_v26 = vadd.f32 %v646_v42, %v4038_v62  ;;  %v4043_v23 = vld [vmem:[#allocation31_spill] sm:$0xff]  ;;  %v2385_v21 = vld [vmem:[%s2444_s25 + $0x98] sm:$0xff] }
 0x1ae   : > { %v3681_v59 = vadd.f32 %v1220_v40, %v1100_v44  ;;  %1343 = vmatmul.f32.gmra.mxu1 %v3179_v53  ;;  %1505 = vmatmul.f32.gmra.mxu2 %v2383_v39  ;;  %v2384_v53 = vld [vmem:[%s2444_s25 + $0x90] sm:$0xff]  ;;  %v4044_v44 = vld [vmem:[#allocation26_spill] sm:$0xff] }
 0x1af   : > { %v4045_v39 = vld [vmem:[#allocation12_spill] sm:$0xff] }
 0x1b0   : > { %1677 = vmatmul.f32.gmra.mxu3 %v4039_v3 }
 0x1b1   : > { %v889_v34 = vpop.f32.mrf.mxu2  ;;  %v1223_v22 = vpop.f32.mrf.mxu0 }
 0x1b2   : > { %v939_v0 = vadd.f32 %v889_v34, %v647_v26 }
 0x1b3   : > { %v649_v19 = vpop.f32.mrf.mxu1  ;;  %v1051_v28 = vpop.f32.mrf.mxu3 }
 0x1b4   : > { %v1101_v4 = vadd.f32 %v1051_v28, %v939_v0  ;;  %1846 = vmatmul.f32.gmra.mxu0 %v4040_v31  ;;  %v650_v8 = vadd.f32 %v649_v19, %v4041_v17  ;;  %v4046_v19 = vld [vmem:[#allocation33_spill] sm:$0xff]  ;;  %v4048_v17 = vld [vmem:[#allocation18_spill] sm:$0xff] }
 0x1b6   : > { %v3688_v58 = vadd.f32 %v1223_v22, %v1101_v4  ;;  %1346 = vmatmul.f32.gmra.mxu1 %v4037_v29  ;;  %1508 = vmatmul.f32.gmra.mxu2 %v2384_v53  ;;  %v2386_v4 = vld [vmem:[%s2444_s25 + $0xa8] sm:$0xff] }
 0x1b8   : > { %1680 = vmatmul.f32.gmra.mxu3 %v4042_v7 }
 0x1b9   : > { %v892_v63 = vpop.f32.mrf.mxu2  ;;  %v1226_v18 = vpop.f32.mrf.mxu0 }
 0x1ba   : > { %v940_v20 = vadd.f32 %v892_v63, %v650_v8 }
 0x1bb   : > { %v652_v30 = vpop.f32.mrf.mxu1  ;;  %v1054_v54 = vpop.f32.mrf.mxu3 }
 0x1bc   : > { %v1102_v40 = vadd.f32 %v1054_v54, %v940_v20  ;;  %1849 = vmatmul.f32.gmra.mxu0 %v4043_v23  ;;  %v653_v29 = vadd.f32 %v652_v30, %v4044_v44  ;;  %v4049_v54 = vld [vmem:[#allocation35_spill] sm:$0xff] }
 0x1be   : > { %v3695_v42 = vadd.f32 %v1226_v18, %v1102_v40  ;;  %1349 = vmatmul.f32.gmra.mxu1 %v4040_v31  ;;  %1511 = vmatmul.f32.gmra.mxu2 %v2385_v21  ;;  %v4047_v31 = vld [vmem:[#allocation28_spill] sm:$0xff] }
 0x1bf   : > { %v2387_v21 = vld [vmem:[%s2444_s25 + $0xb0] sm:$0xff] }
 0x1c0   : > { %1683 = vmatmul.f32.gmra.mxu3 %v4045_v39 }
 0x1c1   : > { %v895_v62 = vpop.f32.mrf.mxu2  ;;  %v1229_v26 = vpop.f32.mrf.mxu0 }
 0x1c2   : > { %v941_v3 = vadd.f32 %v895_v62, %v653_v29  ;;  %v4051_v29 = vld [vmem:[#allocation22_spill] sm:$0xff] }
 0x1c3   : > { %v655_v34 = vpop.f32.mrf.mxu1  ;;  %v1057_v22 = vpop.f32.mrf.mxu3 }
 0x1c4   : > { %v1103_v0 = vadd.f32 %v1057_v22, %v941_v3  ;;  %1852 = vmatmul.f32.gmra.mxu0 %v4046_v19  ;;  %v656_v53 = vadd.f32 %v655_v34, %v4047_v31  ;;  %v4053_v31 = vld [vmem:[#allocation38_spill] sm:$0xff] }
 0x1c6   : > { %v3702_v28 = vadd.f32 %v1229_v26, %v1103_v0  ;;  %1352 = vmatmul.f32.gmra.mxu1 %v4043_v23  ;;  %1514 = vmatmul.f32.gmra.mxu2 %v2386_v4  ;;  %v4050_v23 = vld [vmem:[#allocation30_spill] sm:$0xff]  ;;  %v4052_v0 = vld [vmem:[#allocation37_spill] sm:$0xff] }
 0x1c8   : > { %1686 = vmatmul.f32.gmra.mxu3 %v4048_v17  ;;  %v4055_v17 = vld [vmem:[#allocation2_spill] sm:$0xff] }
 0x1c9   : > { %v898_v8 = vpop.f32.mrf.mxu2  ;;  %v1232_v7 = vpop.f32.mrf.mxu0 }
 0x1ca   : > { %v942_v63 = vadd.f32 %v898_v8, %v656_v53 }
 0x1cb   : > { %v658_v18 = vpop.f32.mrf.mxu1  ;;  %v1060_v20 = vpop.f32.mrf.mxu3 }
 0x1cc   : > { %v1104_v30 = vadd.f32 %v1060_v20, %v942_v63  ;;  %1855 = vmatmul.f32.gmra.mxu0 %v4049_v54  ;;  %v659_v44 = vadd.f32 %v658_v18, %v4050_v23 }
 0x1ce   : > { %v3709_v40 = vadd.f32 %v1232_v7, %v1104_v30  ;;  %1355 = vmatmul.f32.gmra.mxu1 %v4046_v19  ;;  %1517 = vmatmul.f32.gmra.mxu2 %v2387_v21  ;;  %v4054_v19 = vld [vmem:[#allocation32_spill] sm:$0xff]  ;;  %v4056_v21 = vld [vmem:[#allocation41_spill] sm:$0xff] }
 0x1d0   : > { %1689 = vmatmul.f32.gmra.mxu3 %v4051_v29  ;;  %v4058_v29 = vld [vmem:[#allocation4_spill] sm:$0xff] }
 0x1d1   : > { %v901_v39 = vpop.f32.mrf.mxu2  ;;  %v1235_v62 = vpop.f32.mrf.mxu0 }
 0x1d2   : > { %v943_v26 = vadd.f32 %v901_v39, %v659_v44 }
 0x1d3   : > { %v661_v3 = vpop.f32.mrf.mxu1  ;;  %v1063_v34 = vpop.f32.mrf.mxu3 }
 0x1d4   : > { %v1105_v22 = vadd.f32 %v1063_v34, %v943_v26  ;;  %1858 = vmatmul.f32.gmra.mxu0 %v4052_v0  ;;  %v662_v53 = vadd.f32 %v661_v3, %v4054_v19 }
 0x1d6   : > { %v3716_v4 = vadd.f32 %v1235_v62, %v1105_v22  ;;  %1358 = vmatmul.f32.gmra.mxu1 %v4049_v54  ;;  %1520 = vmatmul.f32.gmra.mxu2 %v4053_v31  ;;  %v4057_v54 = vld [vmem:[#allocation34_spill] sm:$0xff] }
 0x1d8   : > { %1692 = vmatmul.f32.gmra.mxu3 %v4055_v17 }
 0x1d9   : > { %v904_v8 = vpop.f32.mrf.mxu2  ;;  %v1238_v7 = vpop.f32.mrf.mxu0 }
 0x1da   : > { %v944_v63 = vadd.f32 %v904_v8, %v662_v53 }
 0x1db   : > { %v664_v18 = vpop.f32.mrf.mxu1  ;;  %v1066_v20 = vpop.f32.mrf.mxu3 }
 0x1dc   : > { %v1106_v30 = vadd.f32 %v1066_v20, %v944_v63  ;;  %1861 = vmatmul.f32.gmra.mxu0 %v4056_v21  ;;  %v665_v44 = vadd.f32 %v664_v18, %v4057_v54 }
 0x1de   : > { %v3723_v23 = vadd.f32 %v1238_v7, %v1106_v30  ;;  %1361 = vmatmul.f32.gmra.mxu1 %v4052_v0  ;;  %1523 = vmatmul.f32.gmra.mxu2 %v3324_v48  ;;  %v2388_v0 = vld [vmem:[%s2444_s25 + $0xd8] sm:$0xff]  ;;  %v4059_v48 = vld [vmem:[#allocation36_spill] sm:$0xff]  ;;  %v2389_v30 = vld [vmem:[%s2444_s25 + $0xe0] sm:$0xff] }
 0x1e0   : > { %1695 = vmatmul.f32.gmra.mxu3 %v4058_v29 }
 0x1e1   : > { %v907_v39 = vpop.f32.mrf.mxu2  ;;  %v1241_v62 = vpop.f32.mrf.mxu0 }
 0x1e2   : > { %v945_v26 = vadd.f32 %v907_v39, %v665_v44 }
 0x1e3   : > { %v667_v3 = vpop.f32.mrf.mxu1  ;;  %v1069_v34 = vpop.f32.mrf.mxu3 }
 0x1e4   : > { %v1107_v22 = vadd.f32 %v1069_v34, %v945_v26  ;;  %1864 = vmatmul.f32.gmra.mxu0 %v3356_v35  ;;  %v668_v19 = vadd.f32 %v667_v3, %v4059_v48  ;;  %v4061_v34 = vld [vmem:[#allocation42_spill] sm:$0xff] }
 0x1e6   : > { %v3730_v31 = vadd.f32 %v1241_v62, %v1107_v22  ;;  %1364 = vmatmul.f32.gmra.mxu1 %v4056_v21  ;;  %1526 = vmatmul.f32.gmra.mxu2 %v2388_v0  ;;  %v4060_v21 = vld [vmem:[#allocation40_spill] sm:$0xff] }
 0x1e8   : > { %1698 = vmatmul.f32.gmra.mxu3 %v2671_v25 }
 0x1e9   : > { %v910_v53 = vpop.f32.mrf.mxu2  ;;  %v1244_v17 = vpop.f32.mrf.mxu0 }
 0x1ea   : > { %v946_v8 = vadd.f32 %v910_v53, %v668_v19 }
 0x1eb   : > { %v670_v7 = vpop.f32.mrf.mxu1  ;;  %v1072_v63 = vpop.f32.mrf.mxu3 }
 0x1ec   : > { %v1108_v18 = vadd.f32 %v1072_v63, %v946_v8  ;;  %1867 = vmatmul.f32.gmra.mxu0 %v3371_v51  ;;  %v671_v54 = vadd.f32 %v670_v7, %v4060_v21 }
 0x1ee   : > { %v3737_v20 = vadd.f32 %v1244_v17, %v1108_v18  ;;  %1367 = vmatmul.f32.gmra.mxu1 %v3356_v35  ;;  %1529 = vmatmul.f32.gmra.mxu2 %v2389_v30  ;;  %v2390_v35 = vld [vmem:[%s2444_s25 + $0xf0] sm:$0xff] }
 0x1f0   : > { %1701 = vmatmul.f32.gmra.mxu3 %v2740_v1 }
 0x1f1   : > { %v913_v25 = vpop.f32.mrf.mxu2  ;;  %v1247_v44 = vpop.f32.mrf.mxu0 }
 0x1f2   : > { %v947_v29 = vadd.f32 %v913_v25, %v671_v54 }
 0x1f3   : > { %v1075_v39 = vpop.f32.mrf.mxu3  ;;  %v1323_v62 = vpop.f32.mrf.mxu1 }
 0x1f4   : > { %v1109_v26 = vadd.f32 %v1075_v39, %v947_v29  ;;  %1870 = vmatmul.f32.gmra.mxu0 %v3391_v27  ;;  %v1419_v22 = vadd.f32 %v1323_v62, %v4061_v34 }
 0x1f6   : > { %v3744_v3 = vadd.f32 %v1247_v44, %v1109_v26  ;;  %1370 = vmatmul.f32.gmra.mxu1 %v3371_v51  ;;  %1532 = vmatmul.f32.gmra.mxu2 %v2390_v35  ;;  %v2391_v51 = vld [vmem:[%s2444_s25 + $0xf8] sm:$0xff] }
 0x1f8   : > { %1704 = vmatmul.f32.gmra.mxu3 %v2826_v49 }
 0x1f9   : > { %v1485_v1 = vpop.f32.mrf.mxu2  ;;  %v1826_v0 = vpop.f32.mrf.mxu0 }
 0x1fa   : > { %v1581_v48 = vadd.f32 %v1485_v1, %v1419_v22 }
 0x1fb   : > { %v1326_v19 = vpop.f32.mrf.mxu1  ;;  %v1657_v53 = vpop.f32.mrf.mxu3 }
 0x1fc   : > { %v1753_v17 = vadd.f32 %v1657_v53, %v1581_v48  ;;  %1873 = vmatmul.f32.gmra.mxu0 %v3406_v60  ;;  %v1420_v7 = vadd.f32 %v1326_v19, %v3374_v12  ;;  %v4062_v19 = vld [vmem:[#allocation23_spill] sm:$0xff] }
 0x1fe   : > { %v1922_v8 = vadd.f32 %v1826_v0, %v1753_v17  ;;  %1373 = vmatmul.f32.gmra.mxu1 %v3391_v27  ;;  %1535 = vmatmul.f32.gmra.mxu2 %v2391_v51  ;;  %v2392_v27 = vld [vmem:[%s2444_s25 + $0x108] sm:$0xff]  ;;  %v2393_v0 = vld [vmem:[%s2444_s25 + $0x110] sm:$0xff] }
 0x200   : > { %1954 = vst [vmem:[%s2439_s22] sm:$0xff] %v1922_v8  ;;  %1707 = vmatmul.f32.gmra.mxu3 %v2900_v10  ;;  %v2027_v44 = vmul.f32 %v1922_v8, %v1922_v8 }
 0x201   : > { %v1488_v49 = vpop.f32.mrf.mxu2  ;;  %v1829_v63 = vpop.f32.mrf.mxu0 }
 0x202   : > { %v1582_v18 = vadd.f32 %v1488_v49, %v1420_v7 }
 0x203   : > { %v1329_v30 = vpop.f32.mrf.mxu1  ;;  %v1660_v21 = vpop.f32.mrf.mxu3 }
 0x204   : > { %v1754_v54 = vadd.f32 %v1660_v21, %v1582_v18  ;;  %1876 = vmatmul.f32.gmra.mxu0 %v3426_v52  ;;  %v1421_v12 = vadd.f32 %v1329_v30, %v3394_v16 }
 0x206   : > { %v1923_v25 = vadd.f32 %v1829_v63, %v1754_v54  ;;  %1376 = vmatmul.f32.gmra.mxu1 %v3406_v60  ;;  %1538 = vmatmul.f32.gmra.mxu2 %v2392_v27  ;;  %v4064_v54 = vld [vmem:[#allocation3_spill] sm:$0xff] }
 0x208   : > { %1955 = vst [vmem:[%s2439_s22 + $0x8] sm:$0xff] %v1923_v25  ;;  %v1987_v29 = vadd.f32 %v1923_v25, %v1922_v8  ;;  %v2028_v10 = vmul.f32 %v1923_v25, %v1923_v25  ;;  %1710 = vmatmul.f32.gmra.mxu3 %v4004_v24 }
 0x209   : > { %v1491_v39 = vpop.f32.mrf.mxu2  ;;  %v1832_v62 = vpop.f32.mrf.mxu0 }
 0x20a   : > { %v2059_v26 = vadd.f32 %v2028_v10, %v2027_v44  ;;  %v1583_v35 = vadd.f32 %v1491_v39, %v1421_v12 }
 0x20b   : > { %v1332_v34 = vpop.f32.mrf.mxu1  ;;  %v1663_v22 = vpop.f32.mrf.mxu3 }
 0x20c   : > { %v1755_v1 = vadd.f32 %v1663_v22, %v1583_v35  ;;  %1879 = vmatmul.f32.gmra.mxu0 %v3441_v61  ;;  %v1422_v16 = vadd.f32 %v1332_v34, %v3409_v56  ;;  %v4063_v56 = vld [vmem:[#allocation13_spill] sm:$0xff] }
 0x20d   : > { %v4067_v22 = vld [vmem:[#allocation5_spill] sm:$0xff] }
 0x20e   : > { %v1924_v60 = vadd.f32 %v1832_v62, %v1755_v1  ;;  %1379 = vmatmul.f32.gmra.mxu1 %v3426_v52  ;;  %1541 = vmatmul.f32.gmra.mxu2 %v2393_v0  ;;  %v4065_v62 = vld [vmem:[#allocation20_spill] sm:$0xff] }
 0x210   : > { %1956 = vst [vmem:[%s2439_s22 + $0x10] sm:$0xff] %v1924_v60  ;;  %v1988_v48 = vadd.f32 %v1987_v29, %v1924_v60  ;;  %v2029_v24 = vmul.f32 %v1924_v60, %v1924_v60  ;;  %1713 = vmatmul.f32.gmra.mxu3 %v4062_v19 }
 0x211   : > { %v1494_v53 = vpop.f32.mrf.mxu2  ;;  %v1835_v17 = vpop.f32.mrf.mxu0 }
 0x212   : > { %v2060_v8 = vadd.f32 %v2059_v26, %v2029_v24  ;;  %v1584_v51 = vadd.f32 %v1494_v53, %v1422_v16  ;;  %v4068_v53 = vld [vmem:[#allocation45_spill] sm:$0xff] }
 0x213   : > { %v1335_v7 = vpop.f32.mrf.mxu1  ;;  %v1666_v49 = vpop.f32.mrf.mxu3 }
 0x214   : > { %v1756_v63 = vadd.f32 %v1666_v49, %v1584_v51  ;;  %1882 = vmatmul.f32.gmra.mxu0 %v3464_v11  ;;  %v1423_v18 = vadd.f32 %v1335_v7, %v4063_v56  ;;  %v4071_v49 = vld [vmem:[#allocation7_spill] sm:$0xff] }
 0x216   : > { %v1925_v52 = vadd.f32 %v1835_v17, %v1756_v63  ;;  %1382 = vmatmul.f32.gmra.mxu1 %v3441_v61  ;;  %1544 = vmatmul.f32.gmra.mxu2 %v3454_v46  ;;  %v4066_v46 = vld [vmem:[#allocation19_spill] sm:$0xff]  ;;  %v4070_v17 = vld [vmem:[#allocation14_spill] sm:$0xff] }
 0x218   : > { %1957 = vst [vmem:[%s2439_s22 + $0x18] sm:$0xff] %v1925_v52  ;;  %v1989_v30 = vadd.f32 %v1988_v48, %v1925_v52  ;;  %v2030_v21 = vmul.f32 %v1925_v52, %v1925_v52  ;;  %1716 = vmatmul.f32.gmra.mxu3 %v4064_v54 }
 0x219   : > { %v1497_v25 = vpop.f32.mrf.mxu2  ;;  %v1838_v27 = vpop.f32.mrf.mxu0 }
 0x21a   : > { %v2061_v44 = vadd.f32 %v2060_v8, %v2030_v21  ;;  %v1585_v12 = vadd.f32 %v1497_v25, %v1423_v18  ;;  %v4072_v25 = vld [vmem:[#allocation48_spill] sm:$0xff] }
 0x21b   : > { %v1338_v29 = vpop.f32.mrf.mxu1  ;;  %v1669_v10 = vpop.f32.mrf.mxu3 }
 0x21c   : > { %v1757_v39 = vadd.f32 %v1669_v10, %v1585_v12  ;;  %1885 = vmatmul.f32.gmra.mxu0 %v4065_v62  ;;  %v1424_v26 = vadd.f32 %v1338_v29, %v4066_v46  ;;  %v4074_v12 = vld [vmem:[#allocation43_spill] sm:$0xff] }
 0x21e   : > { %v1926_v61 = vadd.f32 %v1838_v27, %v1757_v39  ;;  %1385 = vmatmul.f32.gmra.mxu1 %v3464_v11  ;;  %1547 = vmatmul.f32.gmra.mxu2 %v3473_v41  ;;  %v4069_v41 = vld [vmem:[#allocation44_spill] sm:$0xff] }
 0x220   : > { %1958 = vst [vmem:[%s2439_s22 + $0x20] sm:$0xff] %v1926_v61  ;;  %v1990_v35 = vadd.f32 %v1989_v30, %v1926_v61  ;;  %v2031_v34 = vmul.f32 %v1926_v61, %v1926_v61  ;;  %1719 = vmatmul.f32.gmra.mxu3 %v4067_v22 }
 0x221   : > { %v1500_v1 = vpop.f32.mrf.mxu2  ;;  %v1841_v60 = vpop.f32.mrf.mxu0 }
 0x222   : > { %v2062_v0 = vadd.f32 %v2061_v44, %v2031_v34  ;;  %v1586_v16 = vadd.f32 %v1500_v1, %v1424_v26  ;;  %v4073_v44 = vld [vmem:[#allocation47_spill] sm:$0xff] }
 0x223   : > { %v1341_v48 = vpop.f32.mrf.mxu1  ;;  %v1672_v24 = vpop.f32.mrf.mxu3 }
 0x224   : > { %v1758_v19 = vadd.f32 %v1672_v24, %v1586_v16  ;;  %1888 = vmatmul.f32.gmra.mxu0 %v4068_v53  ;;  %v1425_v8 = vadd.f32 %v1341_v48, %v4070_v17  ;;  %v4077_v16 = vld [vmem:[#allocation46_spill] sm:$0xff] }
 0x226   : > { %v1927_v11 = vadd.f32 %v1841_v60, %v1758_v19  ;;  %1388 = vmatmul.f32.gmra.mxu1 %v4065_v62  ;;  %1550 = vmatmul.f32.gmra.mxu2 %v4069_v41  ;;  %v4075_v62 = vld [vmem:[#allocation9_spill] sm:$0xff]  ;;  %v4076_v60 = vld [vmem:[#allocation50_spill] sm:$0xff] }
 0x228   : > { %1959 = vst [vmem:[%s2439_s22 + $0x28] sm:$0xff] %v1927_v11  ;;  %v1991_v51 = vadd.f32 %v1990_v35, %v1927_v11  ;;  %v2032_v7 = vmul.f32 %v1927_v11, %v1927_v11  ;;  %1722 = vmatmul.f32.gmra.mxu3 %v4071_v49 }
 0x229   : > { %v1503_v63 = vpop.f32.mrf.mxu2  ;;  %v1844_v52 = vpop.f32.mrf.mxu0 }
 0x22a   : > { %v2063_v56 = vadd.f32 %v2062_v0, %v2032_v7  ;;  %v1587_v18 = vadd.f32 %v1503_v63, %v1425_v8 }
 0x22b   : > { %v1344_v30 = vpop.f32.mrf.mxu1  ;;  %v1675_v21 = vpop.f32.mrf.mxu3 }
 0x22c   : > { %v1759_v54 = vadd.f32 %v1675_v21, %v1587_v18  ;;  %1891 = vmatmul.f32.gmra.mxu0 %v4072_v25  ;;  %v1426_v29 = vadd.f32 %v1344_v30, %v4074_v12 }
 0x22e   : > { %v1928_v27 = vadd.f32 %v1844_v52, %v1759_v54  ;;  %1391 = vmatmul.f32.gmra.mxu1 %v4068_v53  ;;  %1553 = vmatmul.f32.gmra.mxu2 %v4073_v44  ;;  %v4078_v53 = vld [vmem:[#allocation11_spill] sm:$0xff] }
 0x230   : > { %1960 = vst [vmem:[%s2439_s22 + $0x30] sm:$0xff] %v1928_v27  ;;  %v1992_v10 = vadd.f32 %v1991_v51, %v1928_v27  ;;  %v2033_v39 = vmul.f32 %v1928_v27, %v1928_v27  ;;  %1725 = vmatmul.f32.gmra.mxu3 %v4075_v62 }
 0x231   : > { %v1506_v61 = vpop.f32.mrf.mxu2  ;;  %v1847_v46 = vpop.f32.mrf.mxu0 }
 0x232   : > { %v2064_v26 = vadd.f32 %v2063_v56, %v2033_v39  ;;  %v1588_v35 = vadd.f32 %v1506_v61, %v1426_v29  ;;  %v4080_v29 = vld [vmem:[#allocation16_spill] sm:$0xff]  ;;  %v4082_v61 = vld [vmem:[#allocation21_spill] sm:$0xff] }
 0x233   : > { %v1347_v34 = vpop.f32.mrf.mxu1  ;;  %v1678_v22 = vpop.f32.mrf.mxu3 }
 0x234   : > { %v1760_v1 = vadd.f32 %v1678_v22, %v1588_v35  ;;  %1894 = vmatmul.f32.gmra.mxu0 %v4076_v60  ;;  %v1427_v48 = vadd.f32 %v1347_v34, %v4077_v16 }
 0x236   : > { %v1929_v0 = vadd.f32 %v1847_v46, %v1760_v1  ;;  %1394 = vmatmul.f32.gmra.mxu1 %v4072_v25  ;;  %1556 = vmatmul.f32.gmra.mxu2 %v3536_v13  ;;  %v4079_v13 = vld [vmem:[#allocation49_spill] sm:$0xff] }
 0x238   : > { %1961 = vst [vmem:[%s2439_s22 + $0x38] sm:$0xff] %v1929_v0  ;;  %v1993_v24 = vadd.f32 %v1992_v10, %v1929_v0  ;;  %v2034_v19 = vmul.f32 %v1929_v0, %v1929_v0  ;;  %1728 = vmatmul.f32.gmra.mxu3 %v4078_v53  ;;  %v4083_v0 = vld [vmem:[#allocation17_spill] sm:$0xff] }
 0x239   : > { %v1509_v11 = vpop.f32.mrf.mxu2  ;;  %v1850_v41 = vpop.f32.mrf.mxu0 }
 0x23a   : > { %v2065_v17 = vadd.f32 %v2064_v26, %v2034_v19  ;;  %v1589_v8 = vadd.f32 %v1509_v11, %v1427_v48  ;;  %v4085_v19 = vld [vmem:[#allocation24_spill] sm:$0xff] }
 0x23b   : > { %v1350_v51 = vpop.f32.mrf.mxu1  ;;  %v1681_v7 = vpop.f32.mrf.mxu3 }
 0x23c   : > { %v1761_v49 = vadd.f32 %v1681_v7, %v1589_v8  ;;  %1897 = vmatmul.f32.gmra.mxu0 %v3564_v37  ;;  %v1428_v52 = vadd.f32 %v1350_v51, %v4079_v13  ;;  %v4086_v13 = vld [vmem:[#allocation52_spill] sm:$0xff] }
 0x23e   : > { %v1930_v63 = vadd.f32 %v1850_v41, %v1761_v49  ;;  %1397 = vmatmul.f32.gmra.mxu1 %v4076_v60  ;;  %1559 = vmatmul.f32.gmra.mxu2 %v3555_v36  ;;  %v4081_v36 = vld [vmem:[#allocation51_spill] sm:$0xff]  ;;  %v1282_v49 = vrot.slane %v3596_v5, 2 }
 0x240   : > { %1962 = vst [vmem:[%s2439_s22 + $0x40] sm:$0xff] %v1930_v63  ;;  %v1994_v56 = vadd.f32 %v1993_v24, %v1930_v63  ;;  %v2035_v18 = vmul.f32 %v1930_v63, %v1930_v63  ;;  %1731 = vmatmul.f32.gmra.mxu3 %v4025_v43 }
 0x241   : > { %v1512_v30 = vpop.f32.mrf.mxu2  ;;  %v1853_v21 = vpop.f32.mrf.mxu0 }
 0x242   : > { %v2066_v54 = vadd.f32 %v2065_v17, %v2035_v18  ;;  %v1590_v25 = vadd.f32 %v1512_v30, %v1428_v52 }
 0x243   : > { %v1353_v27 = vpop.f32.mrf.mxu1  ;;  %v1684_v44 = vpop.f32.mrf.mxu3 }
 0x244   : > { %v1762_v12 = vadd.f32 %v1684_v44, %v1590_v25  ;;  %1900 = vmatmul.f32.gmra.mxu0 %v4080_v29  ;;  %v1429_v39 = vadd.f32 %v1353_v27, %v4081_v36 }
 0x246   : > { %v1931_v10 = vadd.f32 %v1853_v21, %v1762_v12  ;;  %1400 = vmatmul.f32.gmra.mxu1 %v3564_v37  ;;  %1562 = vmatmul.f32.gmra.mxu2 %v3583_v38  ;;  %v4084_v38 = vld [vmem:[#allocation15_spill] sm:$0xff] }
 0x248   : > { %1963 = vst [vmem:[%s2439_s22 + $0x48] sm:$0xff] %v1931_v10  ;;  %v1995_v62 = vadd.f32 %v1994_v56, %v1931_v10  ;;  %v2036_v43 = vmul.f32 %v1931_v10, %v1931_v10  ;;  %1734 = vmatmul.f32.gmra.mxu3 %v4082_v61 }
 0x249   : > { %v1515_v46 = vpop.f32.mrf.mxu2  ;;  %v1856_v26 = vpop.f32.mrf.mxu0 }
 0x24a   : > { %v2067_v35 = vadd.f32 %v2066_v54, %v2036_v43  ;;  %v1591_v34 = vadd.f32 %v1515_v46, %v1429_v39  ;;  %v250_v39 = vld [vmem:[%s2444_s25 + $0x198] sm:$0xff] }
 0x24b   : > { %v1356_v22 = vpop.f32.mrf.mxu1  ;;  %v1687_v1 = vpop.f32.mrf.mxu3 }
 0x24c   : > { %v1763_v60 = vadd.f32 %v1687_v1, %v1591_v34  ;;  %1903 = vmatmul.f32.gmra.mxu0 %v4083_v0  ;;  %v1430_v16 = vadd.f32 %v1356_v22, %v4084_v38  ;;  %v1616_v34 = vrot.slane %v250_v39, 1  ;;  %v1785_v38 = vrot.slane %v250_v39, 2 }
 0x24e   : > { %v1932_v37 = vadd.f32 %v1856_v26, %v1763_v60  ;;  %1403 = vmatmul.f32.gmra.mxu1 %v4080_v29  ;;  %1565 = vmatmul.f32.gmra.mxu2 %v3622_v15  ;;  %v1283_v15 = vrot.slane %v3590_v55, 2 }
 0x250   : > { %1964 = vst [vmem:[%s2439_s22 + $0x50] sm:$0xff] %v1932_v37  ;;  %v1996_v48 = vadd.f32 %v1995_v62, %v1932_v37  ;;  %v2037_v24 = vmul.f32 %v1932_v37, %v1932_v37  ;;  %1737 = vmatmul.f32.gmra.mxu3 %v4085_v19  ;;  %v1284_v54 = vsel %vm673_vm1, %v1282_v49, %v1283_v15  ;;  %v4088_v62 = vld [vmem:[#allocation53_spill] sm:$0xff]  ;;  %v4089_v19 = vld [vmem:[#allocation55_spill] sm:$0xff] }
 0x251   : > { %v1518_v53 = vpop.f32.mrf.mxu2  ;;  %v1859_v11 = vpop.f32.mrf.mxu0 }
 0x252   : > { %v2068_v41 = vadd.f32 %v2067_v35, %v2037_v24  ;;  %v1592_v17 = vadd.f32 %v1518_v53, %v1430_v16 }
 0x253   : > { %v1359_v8 = vpop.f32.mrf.mxu1  ;;  %v1690_v51 = vpop.f32.mrf.mxu3 }
 0x254   : > { %v1764_v7 = vadd.f32 %v1690_v51, %v1592_v17  ;;  %1906 = vmatmul.f32.gmra.mxu0 %v3615_v45  ;;  %v1431_v52 = vadd.f32 %v1359_v8, %v4086_v13 }
 0x256   : > { %v1933_v63 = vadd.f32 %v1859_v11, %v1764_v7  ;;  %1406 = vmatmul.f32.gmra.mxu1 %v4083_v0  ;;  %1568 = vmatmul.f32.gmra.mxu2 %v3596_v5  ;;  %v4087_v5 = vld [vmem:[#allocation54_spill] sm:$0xff] }
 0x257   : > { %v1285_v10 = vrot.slane %v4087_v5, 2 }
 0x258   : > { %1965 = vst [vmem:[%s2439_s22 + $0x58] sm:$0xff] %v1933_v63  ;;  %v1997_v56 = vadd.f32 %v1996_v48, %v1933_v63  ;;  %v2038_v18 = vmul.f32 %v1933_v63, %v1933_v63  ;;  %1740 = vmatmul.f32.gmra.mxu3 %v3609_v6  ;;  %v251_v6 = vld [vmem:[%s2444_s25 + $0x1a0] sm:$0xff] }
 0x259   : > { %v1521_v30 = vpop.f32.mrf.mxu2  ;;  %v1862_v21 = vpop.f32.mrf.mxu0  ;;  %v1617_v22 = vrot.slane %v251_v6, 1  ;;  %v1286_v1 = vsel %vm673_vm1, %v1283_v15, %v1285_v10  ;;  %v1786_v48 = vrot.slane %v251_v6, 2 }
 0x25a   : > { %v2069_v25 = vadd.f32 %v2068_v41, %v2038_v18  ;;  %v1593_v27 = vadd.f32 %v1521_v30, %v1431_v52 }
 0x25b   : > { %v1362_v44 = vpop.f32.mrf.mxu1  ;;  %v1693_v12 = vpop.f32.mrf.mxu3  ;;  %v1618_v16 = vsel %vm317_vm0, %v1616_v34, %v1617_v22  ;;  %v1787_v7 = vsel %vm673_vm1, %v1785_v38, %v1786_v48 }
 0x25c   : > { %v1765_v29 = vadd.f32 %v1693_v12, %v1593_v27  ;;  %1909 = vmatmul.f32.gmra.mxu0 %v1284_v54  ;;  %v1432_v43 = vadd.f32 %v1362_v44, %v4088_v62 }
 0x25e   : > { %v1934_v36 = vadd.f32 %v1862_v21, %v1765_v29  ;;  %1409 = vmatmul.f32.gmra.mxu1 %v3615_v45  ;;  %1571 = vmatmul.f32.gmra.mxu2 %v3590_v55 }
 0x260   : > { %1966 = vst [vmem:[%s2439_s22 + $0x60] sm:$0xff] %v1934_v36  ;;  %v1998_v61 = vadd.f32 %v1997_v56, %v1934_v36  ;;  %v2039_v46 = vmul.f32 %v1934_v36, %v1934_v36  ;;  %1743 = vmatmul.f32.gmra.mxu3 %v3629_v9  ;;  %v252_v9 = vld [vmem:[%s2444_s25 + $0x1a8] sm:$0x3] }
 0x261   : > { %v1524_v26 = vpop.f32.mrf.mxu2  ;;  %v1865_v35 = vpop.f32.mrf.mxu0  ;;  %v1619_v51 = vrot.slane %v252_v9, 1  ;;  %v1788_v18 = vrot.slane %v252_v9, 2 }
 0x262   : > { %v2070_v45 = vadd.f32 %v2069_v25, %v2039_v46  ;;  %v1594_v60 = vadd.f32 %v1524_v26, %v1432_v43 }
 0x263   : > { %v1365_v55 = vpop.f32.mrf.mxu1  ;;  %v1696_v0 = vpop.f32.mrf.mxu3  ;;  %v1620_v56 = vsel %vm317_vm0, %v1617_v22, %v1619_v51  ;;  %v1789_v12 = vsel %vm673_vm1, %v1786_v48, %v1788_v18 }
 0x264   : > { %v1766_v37 = vadd.f32 %v1696_v0, %v1594_v60  ;;  %1912 = vmatmul.f32.gmra.mxu0 %v1286_v1  ;;  %v1433_v53 = vadd.f32 %v1365_v55, %v4089_v19 }
 0x266   : > { %v1935_v24 = vadd.f32 %v1865_v35, %v1766_v37  ;;  %1412 = vmatmul.f32.gmra.mxu1 %v1284_v54  ;;  %1574 = vmatmul.f32.gmra.mxu2 %v250_v39 }
 0x268   : > { %1967 = vst [vmem:[%s2439_s22 + $0x68] sm:$0xff] %v1935_v24  ;;  %v1999_v11 = vadd.f32 %v1998_v61, %v1935_v24  ;;  %v2040_v41 = vmul.f32 %v1935_v24, %v1935_v24  ;;  %1746 = vmatmul.f32.gmra.mxu3 %v1618_v16 }
 0x269   : > { %v1527_v17 = vpop.f32.mrf.mxu2  ;;  %v1868_v8 = vpop.f32.mrf.mxu0 }
 0x26a   : > { %v2071_v49 = vadd.f32 %v2070_v45, %v2040_v41  ;;  %v1595_v15 = vadd.f32 %v1527_v17, %v1433_v53 }
 0x26b   : > { %v1368_v63 = vpop.f32.mrf.mxu1  ;;  %v1699_v13 = vpop.f32.mrf.mxu3 }
 0x26c   : > { %v1767_v52 = vadd.f32 %v1699_v13, %v1595_v15  ;;  %1915 = vmatmul.f32.gmra.mxu0 %v1787_v7  ;;  %v1434_v21 = vadd.f32 %v1368_v63, %v3632_v32 }
 0x26e   : > { %v1936_v30 = vadd.f32 %v1868_v8, %v1767_v52  ;;  %1415 = vmatmul.f32.gmra.mxu1 %v1286_v1  ;;  %1577 = vmatmul.f32.gmra.mxu2 %v251_v6 }
 0x270   : > { %1968 = vst [vmem:[%s2439_s22 + $0x70] sm:$0xff] %v1936_v30  ;;  %v2000_v54 = vadd.f32 %v1999_v11, %v1936_v30  ;;  %v2041_v25 = vmul.f32 %v1936_v30, %v1936_v30  ;;  %1749 = vmatmul.f32.gmra.mxu3 %v1620_v56 }
 0x271   : > { %v1530_v27 = vpop.f32.mrf.mxu2  ;;  %v1871_v44 = vpop.f32.mrf.mxu0 }
 0x272   : > { %v2072_v29 = vadd.f32 %v2071_v49, %v2041_v25  ;;  %v1596_v5 = vadd.f32 %v1530_v27, %v1434_v21 }
 0x273   : > { %v1371_v10 = vpop.f32.mrf.mxu1  ;;  %v1702_v36 = vpop.f32.mrf.mxu3 }
 0x274   : > { %v1768_v39 = vadd.f32 %v1702_v36, %v1596_v5  ;;  %1918 = vmatmul.f32.gmra.mxu0 %v1789_v12  ;;  %v1435_v6 = vadd.f32 %v1371_v10, %v3639_v14 }
 0x276   : > { %v1937_v62 = vadd.f32 %v1871_v44, %v1768_v39 }
 0x278   : > { %1969 = vst [vmem:[%s2439_s22 + $0x78] sm:$0xff] %v1937_v62  ;;  %v2001_v32 = vadd.f32 %v2000_v54, %v1937_v62  ;;  %v2042_v43 = vmul.f32 %v1937_v62, %v1937_v62 }
 0x279   : > { %v1533_v61 = vpop.f32.mrf.mxu2  ;;  %v1874_v46 = vpop.f32.mrf.mxu0 }
 0x27a   : > { %v2073_v26 = vadd.f32 %v2072_v29, %v2042_v43  ;;  %v1597_v35 = vadd.f32 %v1533_v61, %v1435_v6 }
 0x27b   : > { %v1374_v34 = vpop.f32.mrf.mxu1  ;;  %v1705_v22 = vpop.f32.mrf.mxu3 }
 0x27c   : > { %v1769_v1 = vadd.f32 %v1705_v22, %v1597_v35  ;;  %v1436_v60 = vadd.f32 %v1374_v34, %v3646_v2 }
 0x27e   : > { %v1938_v45 = vadd.f32 %v1874_v46, %v1769_v1 }
 0x280   : > { %1970 = vst [vmem:[%s2439_s22 + $0x80] sm:$0xff] %v1938_v45  ;;  %v2002_v55 = vadd.f32 %v2001_v32, %v1938_v45  ;;  %v2043_v0 = vmul.f32 %v1938_v45, %v1938_v45 }
 0x281   : > { %v1536_v37 = vpop.f32.mrf.mxu2  ;;  %v1877_v38 = vpop.f32.mrf.mxu0 }
 0x282   : > { %v2074_v14 = vadd.f32 %v2073_v26, %v2043_v0  ;;  %v1598_v16 = vadd.f32 %v1536_v37, %v1436_v60 }
 0x283   : > { %v1377_v48 = vpop.f32.mrf.mxu1  ;;  %v1708_v24 = vpop.f32.mrf.mxu3 }
 0x284   : > { %v1770_v9 = vadd.f32 %v1708_v24, %v1598_v16  ;;  %v1437_v53 = vadd.f32 %v1377_v48, %v3653_v47 }
 0x286   : > { %v1939_v19 = vadd.f32 %v1877_v38, %v1770_v9 }
 0x288   : > { %1971 = vst [vmem:[%s2439_s22 + $0x88] sm:$0xff] %v1939_v19  ;;  %v2003_v11 = vadd.f32 %v2002_v55, %v1939_v19  ;;  %v2044_v41 = vmul.f32 %v1939_v19, %v1939_v19 }
 0x289   : > { %v1539_v17 = vpop.f32.mrf.mxu2  ;;  %v1880_v8 = vpop.f32.mrf.mxu0 }
 0x28a   : > { %v2075_v2 = vadd.f32 %v2074_v14, %v2044_v41  ;;  %v1599_v51 = vadd.f32 %v1539_v17, %v1437_v53 }
 0x28b   : > { %v1380_v7 = vpop.f32.mrf.mxu1  ;;  %v1711_v49 = vpop.f32.mrf.mxu3 }
 0x28c   : > { %v1771_v15 = vadd.f32 %v1711_v49, %v1599_v51  ;;  %v1438_v13 = vadd.f32 %v1380_v7, %v3660_v57 }
 0x28e   : > { %v1940_v63 = vadd.f32 %v1880_v8, %v1771_v15 }
 0x290   : > { %1972 = vst [vmem:[%s2439_s22 + $0x90] sm:$0xff] %v1940_v63  ;;  %v2004_v52 = vadd.f32 %v2003_v11, %v1940_v63  ;;  %v2045_v56 = vmul.f32 %v1940_v63, %v1940_v63 }
 0x291   : > { %v1542_v18 = vpop.f32.mrf.mxu2  ;;  %v1883_v30 = vpop.f32.mrf.mxu0 }
 0x292   : > { %v2076_v47 = vadd.f32 %v2075_v2, %v2045_v56  ;;  %v1600_v21 = vadd.f32 %v1542_v18, %v1438_v13 }
 0x293   : > { %v1383_v54 = vpop.f32.mrf.mxu1  ;;  %v1714_v25 = vpop.f32.mrf.mxu3 }
 0x294   : > { %v1772_v27 = vadd.f32 %v1714_v25, %v1600_v21  ;;  %v1439_v12 = vadd.f32 %v1383_v54, %v3667_v50 }
 0x296   : > { %v1941_v44 = vadd.f32 %v1883_v30, %v1772_v27 }
 0x298   : > { %1973 = vst [vmem:[%s2439_s22 + $0x98] sm:$0xff] %v1941_v44  ;;  %v2005_v29 = vadd.f32 %v2004_v52, %v1941_v44  ;;  %v2046_v5 = vmul.f32 %v1941_v44, %v1941_v44 }
 0x299   : > { %v1545_v10 = vpop.f32.mrf.mxu2  ;;  %v1886_v36 = vpop.f32.mrf.mxu0 }
 0x29a   : > { %v2077_v57 = vadd.f32 %v2076_v47, %v2046_v5  ;;  %v1601_v39 = vadd.f32 %v1545_v10, %v1439_v12 }
 0x29b   : > { %v1386_v62 = vpop.f32.mrf.mxu1  ;;  %v1717_v6 = vpop.f32.mrf.mxu3 }
 0x29c   : > { %v1773_v32 = vadd.f32 %v1717_v6, %v1601_v39  ;;  %v1440_v61 = vadd.f32 %v1386_v62, %v3674_v33 }
 0x29e   : > { %v1942_v43 = vadd.f32 %v1886_v36, %v1773_v32 }
 0x2a0   : > { %1974 = vst [vmem:[%s2439_s22 + $0xa0] sm:$0xff] %v1942_v43  ;;  %v2006_v46 = vadd.f32 %v2005_v29, %v1942_v43  ;;  %v2047_v26 = vmul.f32 %v1942_v43, %v1942_v43 }
 0x2a1   : > { %v1548_v35 = vpop.f32.mrf.mxu2  ;;  %v1889_v34 = vpop.f32.mrf.mxu0 }
 0x2a2   : > { %v2078_v50 = vadd.f32 %v2077_v57, %v2047_v26  ;;  %v1602_v22 = vadd.f32 %v1548_v35, %v1440_v61 }
 0x2a3   : > { %v1389_v1 = vpop.f32.mrf.mxu1  ;;  %v1720_v45 = vpop.f32.mrf.mxu3 }
 0x2a4   : > { %v1774_v60 = vadd.f32 %v1720_v45, %v1602_v22  ;;  %v1441_v0 = vadd.f32 %v1389_v1, %v3681_v59 }
 0x2a6   : > { %v1943_v55 = vadd.f32 %v1889_v34, %v1774_v60 }
 0x2a8   : > { %1975 = vst [vmem:[%s2439_s22 + $0xa8] sm:$0xff] %v1943_v55  ;;  %v2007_v37 = vadd.f32 %v2006_v46, %v1943_v55  ;;  %v2048_v38 = vmul.f32 %v1943_v55, %v1943_v55 }
 0x2a9   : > { %v1551_v14 = vpop.f32.mrf.mxu2  ;;  %v1892_v16 = vpop.f32.mrf.mxu0 }
 0x2aa   : > { %v2079_v33 = vadd.f32 %v2078_v50, %v2048_v38  ;;  %v1603_v48 = vadd.f32 %v1551_v14, %v1441_v0 }
 0x2ab   : > { %v1392_v24 = vpop.f32.mrf.mxu1  ;;  %v1723_v9 = vpop.f32.mrf.mxu3 }
 0x2ac   : > { %v1775_v19 = vadd.f32 %v1723_v9, %v1603_v48  ;;  %v1442_v11 = vadd.f32 %v1392_v24, %v3688_v58 }
 0x2ae   : > { %v1944_v53 = vadd.f32 %v1892_v16, %v1775_v19 }
 0x2b0   : > { %1976 = vst [vmem:[%s2439_s22 + $0xb0] sm:$0xff] %v1944_v53  ;;  %v2008_v41 = vadd.f32 %v2007_v37, %v1944_v53  ;;  %v2049_v17 = vmul.f32 %v1944_v53, %v1944_v53 }
 0x2b1   : > { %v1554_v8 = vpop.f32.mrf.mxu2  ;;  %v1895_v2 = vpop.f32.mrf.mxu0 }
 0x2b2   : > { %v2080_v59 = vadd.f32 %v2079_v33, %v2049_v17  ;;  %v1604_v51 = vadd.f32 %v1554_v8, %v1442_v11 }
 0x2b3   : > { %v1395_v7 = vpop.f32.mrf.mxu1  ;;  %v1726_v49 = vpop.f32.mrf.mxu3 }
 0x2b4   : > { %v1776_v15 = vadd.f32 %v1726_v49, %v1604_v51  ;;  %v1443_v13 = vadd.f32 %v1395_v7, %v3695_v42 }
 0x2b6   : > { %v1945_v63 = vadd.f32 %v1895_v2, %v1776_v15 }
 0x2b8   : > { %1977 = vst [vmem:[%s2439_s22 + $0xb8] sm:$0xff] %v1945_v63  ;;  %v2009_v52 = vadd.f32 %v2008_v41, %v1945_v63  ;;  %v2050_v56 = vmul.f32 %v1945_v63, %v1945_v63 }
 0x2b9   : > { %v1557_v18 = vpop.f32.mrf.mxu2  ;;  %v1898_v30 = vpop.f32.mrf.mxu0 }
 0x2ba   : > { %v2081_v58 = vadd.f32 %v2080_v59, %v2050_v56  ;;  %v1605_v47 = vadd.f32 %v1557_v18, %v1443_v13 }
 0x2bb   : > { %v1398_v21 = vpop.f32.mrf.mxu1  ;;  %v1729_v54 = vpop.f32.mrf.mxu3 }
 0x2bc   : > { %v1777_v25 = vadd.f32 %v1729_v54, %v1605_v47  ;;  %v1444_v44 = vadd.f32 %v1398_v21, %v3702_v28 }
 0x2be   : > { %v1946_v27 = vadd.f32 %v1898_v30, %v1777_v25 }
 0x2c0   : > { %1978 = vst [vmem:[%s2439_s22 + $0xc0] sm:$0xff] %v1946_v27  ;;  %v2010_v12 = vadd.f32 %v2009_v52, %v1946_v27  ;;  %v2051_v29 = vmul.f32 %v1946_v27, %v1946_v27 }
 0x2c1   : > { %v1560_v5 = vpop.f32.mrf.mxu2  ;;  %v1901_v10 = vpop.f32.mrf.mxu0 }
 0x2c2   : > { %v2082_v42 = vadd.f32 %v2081_v58, %v2051_v29  ;;  %v1606_v36 = vadd.f32 %v1560_v5, %v1444_v44 }
 0x2c3   : > { %v1401_v57 = vpop.f32.mrf.mxu1  ;;  %v1732_v39 = vpop.f32.mrf.mxu3 }
 0x2c4   : > { %v1778_v62 = vadd.f32 %v1732_v39, %v1606_v36  ;;  %v1445_v32 = vadd.f32 %v1401_v57, %v3709_v40 }
 0x2c6   : > { %v1947_v6 = vadd.f32 %v1901_v10, %v1778_v62 }
 0x2c8   : > { %1979 = vst [vmem:[%s2439_s22 + $0xc8] sm:$0xff] %v1947_v6  ;;  %v2011_v43 = vadd.f32 %v2010_v12, %v1947_v6  ;;  %v2052_v61 = vmul.f32 %v1947_v6, %v1947_v6 }
 0x2c9   : > { %v1563_v46 = vpop.f32.mrf.mxu2  ;;  %v1904_v26 = vpop.f32.mrf.mxu0 }
 0x2ca   : > { %v2083_v28 = vadd.f32 %v2082_v42, %v2052_v61  ;;  %v1607_v35 = vadd.f32 %v1563_v46, %v1445_v32 }
 0x2cb   : > { %v1404_v34 = vpop.f32.mrf.mxu1  ;;  %v1735_v50 = vpop.f32.mrf.mxu3 }
 0x2cc   : > { %v1779_v22 = vadd.f32 %v1735_v50, %v1607_v35  ;;  %v1446_v45 = vadd.f32 %v1404_v34, %v3716_v4 }
 0x2ce   : > { %v1948_v1 = vadd.f32 %v1904_v26, %v1779_v22 }
 0x2d0   : > { %1980 = vst [vmem:[%s2439_s22 + $0xd0] sm:$0xff] %v1948_v1  ;;  %v2012_v60 = vadd.f32 %v2011_v43, %v1948_v1  ;;  %v2053_v55 = vmul.f32 %v1948_v1, %v1948_v1 }
 0x2d1   : > { %v1566_v0 = vpop.f32.mrf.mxu2  ;;  %v1907_v37 = vpop.f32.mrf.mxu0 }
 0x2d2   : > { %v2084_v40 = vadd.f32 %v2083_v28, %v2053_v55  ;;  %v1608_v38 = vadd.f32 %v1566_v0, %v1446_v45  ;;  %v1986_v55 = vld [vmem:[%s3894_s3] sm:$0x1] }
 0x2d3   : > { %v1407_v14 = vpop.f32.mrf.mxu1  ;;  %v1738_v16 = vpop.f32.mrf.mxu3 }
 0x2d4   : > { %v1780_v33 = vadd.f32 %v1738_v16, %v1608_v38  ;;  %v1447_v24 = vadd.f32 %v1407_v14, %v3723_v23 }
 0x2d6   : > { %v1949_v48 = vadd.f32 %v1907_v37, %v1780_v33 }
 0x2d8   : > { %1981 = vst [vmem:[%s2439_s22 + $0xd8] sm:$0xff] %v1949_v48  ;;  %v2013_v9 = vadd.f32 %v2012_v60, %v1949_v48  ;;  %v2054_v19 = vmul.f32 %v1949_v48, %v1949_v48 }
 0x2d9   : > { %v1569_v53 = vpop.f32.mrf.mxu2  ;;  %v1910_v11 = vpop.f32.mrf.mxu0 }
 0x2da   : > { %v2085_v4 = vadd.f32 %v2084_v40, %v2054_v19  ;;  %v1609_v41 = vadd.f32 %v1569_v53, %v1447_v24  ;;  %v2026_v40 = vld [vmem:[%s3895_s4] sm:$0x1] }
 0x2db   : > { %v1410_v17 = vpop.f32.mrf.mxu1  ;;  %v1741_v8 = vpop.f32.mrf.mxu3 }
 0x2dc   : > { %v1781_v2 = vadd.f32 %v1741_v8, %v1609_v41  ;;  %v1448_v51 = vadd.f32 %v1410_v17, %v3730_v31 }
 0x2de   : > { %v1950_v59 = vadd.f32 %v1910_v11, %v1781_v2 }
 0x2e0   : > { %1982 = vst [vmem:[%s2439_s22 + $0xe0] sm:$0xff] %v1950_v59  ;;  %v2014_v7 = vadd.f32 %v2013_v9, %v1950_v59  ;;  %v2055_v49 = vmul.f32 %v1950_v59, %v1950_v59 }
 0x2e1   : > { %v1572_v15 = vpop.f32.mrf.mxu2  ;;  %v1913_v63 = vpop.f32.mrf.mxu0 }
 0x2e2   : > { %v2086_v23 = vadd.f32 %v2085_v4, %v2055_v49  ;;  %v1610_v13 = vadd.f32 %v1572_v15, %v1448_v51 }
 0x2e3   : > { %v1413_v52 = vpop.f32.mrf.mxu1  ;;  %v1744_v56 = vpop.f32.mrf.mxu3 }
 0x2e4   : > { %v1782_v18 = vadd.f32 %v1744_v56, %v1610_v13  ;;  %v1449_v58 = vadd.f32 %v1413_v52, %v3737_v20 }
 0x2e6   : > { %v1951_v30 = vadd.f32 %v1913_v63, %v1782_v18 }
 0x2e8   : > { %1983 = vst [vmem:[%s2439_s22 + $0xe8] sm:$0xff] %v1951_v30  ;;  %v2015_v47 = vadd.f32 %v2014_v7, %v1951_v30  ;;  %v2056_v21 = vmul.f32 %v1951_v30, %v1951_v30 }
 0x2e9   : > { %v1575_v54 = vpop.f32.mrf.mxu2  ;;  %v1916_v25 = vpop.f32.mrf.mxu0 }
 0x2ea   : > { %v2087_v31 = vadd.f32 %v2086_v23, %v2056_v21  ;;  %v1611_v27 = vadd.f32 %v1575_v54, %v1449_v58 }
 0x2eb   : > { %v1747_v44 = vpop.f32.mrf.mxu3  ;;  %v1416_v29 = vpop.f32.mrf.mxu1 }
 0x2ec   : > { %v1783_v12 = vadd.f32 %v1747_v44, %v1611_v27  ;;  %v1450_v10 = vadd.f32 %v1416_v29, %v3744_v3 }
 0x2ee   : > { %v1952_v5 = vadd.f32 %v1916_v25, %v1783_v12 }
 0x2f0   : > { %1984 = vst [vmem:[%s2439_s22 + $0xf0] sm:$0xff] %v1952_v5  ;;  %v2016_v42 = vadd.f32 %v2015_v47, %v1952_v5  ;;  %v2057_v36 = vmul.f32 %v1952_v5, %v1952_v5 }
 0x2f1   : > { %v1578_v57 = vpop.f32.mrf.mxu2  ;;  %v1919_v6 = vpop.f32.mrf.mxu0 }
 0x2f2   : > { %v2088_v39 = vadd.f32 %v2087_v31, %v2057_v36  ;;  %v1612_v20 = vadd.f32 %v1578_v57, %v1450_v10 }
 0x2f3   : > { %v1750_v62 = vpop.f32.mrf.mxu3 }
 0x2f4   : > { %v1784_v32 = vadd.f32 %v1750_v62, %v1612_v20 }
 0x2f6   : > { %v1953_v43 = vadd.f32 %v1919_v6, %v1784_v32 }
 0x2f8   : > { %1985 = vst [vmem:[%s2439_s22 + $0xf8] sm:$0xff] %v1953_v43  ;;  %v2017_v61 = vadd.f32 %v2016_v42, %v1953_v43  ;;  %v2058_v46 = vmul.f32 %v1953_v43, %v1953_v43 }
 0x2fa   : > { %v2018_v26 = vrot.slane %v2017_v61, 4  ;;  %v2089_v28 = vadd.f32 %v2088_v39, %v2058_v46 }
 0x2fc   : > { %v2019_v35 = vadd.f32 %v2018_v26, %v2017_v61  ;;  %v2090_v34 = vrot.slane %v2089_v28, 4 }
 0x2fe   : > { %v2020_v50 = vrot.slane %v2019_v35, 2  ;;  %v2091_v22 = vadd.f32 %v2090_v34, %v2089_v28 }
 0x300   : > { %v2021_v3 = vadd.f32 %v2020_v50, %v2019_v35  ;;  %v2092_v1 = vrot.slane %v2091_v22, 2 }
 0x302   : > { %v2022_v45 = vrot.slane %v2021_v3, 1  ;;  %v2093_v60 = vadd.f32 %v2092_v1, %v2091_v22 }
 0x304   : > { %v2023_v0 = vadd.f32 %v2022_v45, %v2021_v3  ;;  %v2094_v37 = vrot.slane %v2093_v60, 1 }
 0x306   : > { %v2024_v38 = vadd.f32 %v2023_v0, %v1986_v55  ;;  %v2095_v14 = vadd.f32 %v2094_v37, %v2093_v60 }
 0x308   : > { %2025 = vst [vmem:[%s3894_s3] sm:$0x1] %v2024_v38  ;;  %v2096_v16 = vadd.f32 %v2095_v14, %v2026_v40 }
 0x30a   : > { %2097 = vst [vmem:[%s3895_s4] sm:$0x1] %v2096_v16 }
 0x30b PF: > { %s15_s15 = sadd.s32 1, %s2400_s15  }
 0x30c   : > { %p12_p5 = scmp.ge.s32.totalorder %s15_s15, 4  }
 0x30e   :  { %14 = sbr.rel (!%p12_p5) target bundleno = 1 (0x1), region = 86 }

// kernel: residual_block_forward.4
= control target key start
LH: loop header
LB: loop body
LE: loop exit
PB: predicated region body
PF: predicated region fallthrough
CT: control target
= control target key end

     0   :  { %s2802_s27 = smov 0   ;;  %s4297_s0 = inlined_call_operand.vmem [shape: f32[2,16,16,128], index: 0, kind: input, shape index: {}]   ;;  %s4298_s1 = inlined_call_operand.vmem [shape: f32[1,128], index: 1, kind: input, shape index: {}]   ;;  %s4299_s2 = inlined_call_operand.vmem [shape: f32[1,128], index: 2, kind: input, shape index: {}]   ;;  %s4300_s3 = inlined_call_operand.vmem [shape: f32[1,128], index: 3, kind: input, shape index: {}]   ;;  %s4301_s4 = inlined_call_operand.vmem [shape: f32[1,128], index: 4, kind: input, shape index: {}]   ;;  %s4302_s5 = inlined_call_operand.vmem [shape: f32[9,128,128], index: 5, kind: input, shape index: {}]   ;;  %s4303_s6 = inlined_call_operand.vmem [shape: f32[2,16,16,128], index: 6, kind: output, shape index: {0}]   ;;  %s4304_s7 = inlined_call_operand.vmem [shape: f32[1,128], index: 7, kind: output, shape index: {1}]   ;;  %s4305_s8 = inlined_call_operand.vmem [shape: f32[1,128], index: 8, kind: output, shape index: {2}]  }
   0x1 LB: > { %s2516_s28 = sadd.s32 4294967295, %s2754_s27   ;;  %p2520_p0 = scmp.ge.s32.totalorder %s2754_s27, 1  ;;  %s2754_s27 = sphi %s2802_s27, %s19_s27  }
   0x2   : > { %p257_p1 = scmp.lt.s32.totalorder %s2754_s27, 3 }
   0x4   : > { %p258_p2 = pnand %p2520_p0, %p257_p1 }
   0x6   : > { %261 = sbr.rel (%p258_p2) target bundleno = 856 (0x358), region = 44 }
   0xb   : > { %p291_p3 = scmp.lt.s32.totalorder %s2516_s28, 1  ;;  %p2525_p4 = scmp.ne.s32.totalorder %s2516_s28, 0 }
   0xd   : > { %s292_s29 = scalar_select %p291_p3, %s2516_s28, 1 }
   0xe   : > { %304 = sbr.rel (%p2525_p4) target bundleno = 76 (0x4c), region = 48 }
   0xf   : > { %s2656_s30 = sshll.u32 %s292_s29, 8 }
  0x10   : > { %s2813_s11 = scalar_lea.vmem %s4297_s0, %s2656_s30  ;;  %s2818_s14 = scalar_lea.vmem %s4303_s6, %s2656_s30 }
  0x13   : > { %v2756_v0 = vmov 0.0  }
  0x14   : > { %305 = vst [vmem:[#allocation2] sm:$0xff] %v2756_v0 }
  0x15   : > { %306 = vst [vmem:[#allocation2 + $0x8] sm:$0xff] %v2756_v0 }
  0x16   : > { %307 = vst [vmem:[#allocation2 + $0x10] sm:$0x3] %v2756_v0 }
  0x17   : > { %308 = vst [vmem:[#allocation2 + $0x18] sm:$0xff] %v2756_v0 }
  0x18   : > { %309 = vst [vmem:[#allocation2 + $0x20] sm:$0xff] %v2756_v0 }
  0x19   : > { %310 = vst [vmem:[#allocation2 + $0x28] sm:$0x3] %v2756_v0 }
  0x1a   : > { %311 = vst [vmem:[#allocation2 + $0x30] sm:$0xff] %v2756_v0 }
  0x1b   : > { %312 = vst [vmem:[#allocation2 + $0x38] sm:$0xff] %v2756_v0 }
  0x1c   : > { %313 = vst [vmem:[#allocation2 + $0x40] sm:$0x3] %v2756_v0 }
  0x1d   : > { %314 = vst [vmem:[#allocation2 + $0x48] sm:$0xff] %v2756_v0 }
  0x1e   : > { %315 = vst [vmem:[#allocation2 + $0x50] sm:$0xff] %v2756_v0 }
  0x1f   : > { %316 = vst [vmem:[#allocation2 + $0x58] sm:$0x3] %v2756_v0 }
  0x20   : > { %317 = vst [vmem:[#allocation2 + $0x60] sm:$0xff] %v2756_v0 }
  0x21   : > { %318 = vst [vmem:[#allocation2 + $0x68] sm:$0xff] %v2756_v0 }
  0x22   : > { %319 = vst [vmem:[#allocation2 + $0x70] sm:$0x3] %v2756_v0 }
  0x23   : > { %320 = vst [vmem:[#allocation2 + $0x78] sm:$0xff] %v2756_v0 }
  0x24   : > { %321 = vst [vmem:[#allocation2 + $0x80] sm:$0xff] %v2756_v0 }
  0x25   : > { %322 = vst [vmem:[#allocation2 + $0x88] sm:$0x3] %v2756_v0 }
  0x26   : > { %323 = vst [vmem:[#allocation2 + $0x90] sm:$0xff] %v2756_v0 }
  0x27   : > { %324 = vst [vmem:[#allocation2 + $0x98] sm:$0xff] %v2756_v0 }
  0x28   : > { %325 = vst [vmem:[#allocation2 + $0xa0] sm:$0x3] %v2756_v0 }
  0x29   : > { %326 = vst [vmem:[#allocation2 + $0xa8] sm:$0xff] %v2756_v0 }
  0x2a   : > { %327 = vst [vmem:[#allocation2 + $0xb0] sm:$0xff] %v2756_v0 }
  0x2b   : > { %328 = vst [vmem:[#allocation2 + $0xb8] sm:$0x3] %v2756_v0 }
  0x2c   : > { %329 = vst [vmem:[#allocation2 + $0xc0] sm:$0xff] %v2756_v0 }
  0x2d   : > { %330 = vst [vmem:[#allocation2 + $0xc8] sm:$0xff] %v2756_v0 }
  0x2e   : > { %331 = vst [vmem:[#allocation2 + $0xd0] sm:$0x3] %v2756_v0 }
  0x2f   : > { %332 = vst [vmem:[#allocation2 + $0xd8] sm:$0xff] %v2756_v0 }
  0x30   : > { %333 = vst [vmem:[#allocation2 + $0xe0] sm:$0xff] %v2756_v0 }
  0x31   : > { %334 = vst [vmem:[#allocation2 + $0xe8] sm:$0x3] %v2756_v0 }
  0x32   : > { %335 = vst [vmem:[#allocation2 + $0xf0] sm:$0xff] %v2756_v0 }
  0x33   : > { %336 = vst [vmem:[#allocation2 + $0xf8] sm:$0xff] %v2756_v0 }
  0x34   : > { %337 = vst [vmem:[#allocation2 + $0x100] sm:$0x3] %v2756_v0 }
  0x35   : > { %338 = vst [vmem:[#allocation2 + $0x108] sm:$0xff] %v2756_v0 }
  0x36   : > { %339 = vst [vmem:[#allocation2 + $0x110] sm:$0xff] %v2756_v0 }
  0x37   : > { %340 = vst [vmem:[#allocation2 + $0x118] sm:$0x3] %v2756_v0 }
  0x38   : > { %341 = vst [vmem:[#allocation2 + $0x120] sm:$0xff] %v2756_v0 }
  0x39   : > { %342 = vst [vmem:[#allocation2 + $0x128] sm:$0xff] %v2756_v0 }
  0x3a   : > { %343 = vst [vmem:[#allocation2 + $0x130] sm:$0x3] %v2756_v0 }
  0x3b   : > { %344 = vst [vmem:[#allocation2 + $0x138] sm:$0xff] %v2756_v0 }
  0x3c   : > { %345 = vst [vmem:[#allocation2 + $0x140] sm:$0xff] %v2756_v0 }
  0x3d   : > { %346 = vst [vmem:[#allocation2 + $0x148] sm:$0x3] %v2756_v0 }
  0x3e   : > { %347 = vst [vmem:[#allocation2 + $0x150] sm:$0xff] %v2756_v0 }
  0x3f   : > { %348 = vst [vmem:[#allocation2 + $0x158] sm:$0xff] %v2756_v0 }
  0x40   : > { %349 = vst [vmem:[#allocation2 + $0x160] sm:$0x3] %v2756_v0 }
  0x41   : > { %350 = vst [vmem:[#allocation2 + $0x168] sm:$0xff] %v2756_v0 }
  0x42   : > { %351 = vst [vmem:[#allocation2 + $0x170] sm:$0xff] %v2756_v0 }
  0x43   : > { %352 = vst [vmem:[#allocation2 + $0x178] sm:$0x3] %v2756_v0 }
  0x44   : > { %353 = vst [vmem:[#allocation2 + $0x180] sm:$0xff] %v2756_v0 }
  0x45   : > { %354 = vst [vmem:[#allocation2 + $0x188] sm:$0xff] %v2756_v0 }
  0x46   : > { %355 = vst [vmem:[#allocation2 + $0x190] sm:$0x3] %v2756_v0 }
  0x47   : > { %356 = vst [vmem:[#allocation2 + $0x198] sm:$0xff] %v2756_v0 }
  0x48   : > { %357 = vst [vmem:[#allocation2 + $0x1a0] sm:$0xff] %v2756_v0 }
  0x49   : > { %358 = vst [vmem:[#allocation2 + $0x1a8] sm:$0x3] %v2756_v0 }
  0x4a   : > { %359 = vst [vmem:[%s4304_s7] sm:$0x1] %v2756_v0 }
  0x4b   : > { %360 = vst [vmem:[%s4305_s8] sm:$0x1] %v2756_v0 }
  0x4c PF: > { %v2541_v1 = vld [vmem:[%s4302_s5 + $0xf8] sm:$0xff]  ;;  %v2540_v2 = vld [vmem:[%s4302_s5 + $0xf0] sm:$0xff]  ;;  %v2539_v3 = vld [vmem:[%s4302_s5 + $0xe8] sm:$0xff]  ;;  %vm668_vm3 = vcmask 1046528   ;;  %vm1024_vm4 = vcmask 1045504  }
  0x4d   : > { %2658 = vmatpush.msra.mxu1 %v2541_v1  ;;  %2659 = vmatpush.msra.mxu2 %v2541_v1  ;;  %v2538_v4 = vld [vmem:[%s4302_s5 + $0xe0] sm:$0xff]  ;;  %v2537_v7 = vld [vmem:[%s4302_s5 + $0xd8] sm:$0xff]  ;;  %v2536_v10 = vld [vmem:[%s4302_s5 + $0xd0] sm:$0xff] }
  0x4e   : > { %2660 = vmatpush.msra.mxu3 %v2541_v1  ;;  %798 = vmatpush.msra.mxu0 %v2541_v1  ;;  %v361_v5 = vld [vmem:[%s4298_s1] sm:$0x1]  ;;  %v2535_v12 = vld [vmem:[%s4302_s5 + $0xc8] sm:$0xff]  ;;  %v2533_v16 = vld [vmem:[%s4302_s5 + $0xb8] sm:$0xff] }
  0x4f   : > { %2661 = vmatpush.msra.mxu1 %v2540_v2  ;;  %2662 = vmatpush.msra.mxu2 %v2540_v2  ;;  %v363_v6 = vld [vmem:[%s4299_s2] sm:$0x1]  ;;  %v2847_v8 = vmul.f32 0.001953125, %v361_v5  ;;  %v2532_v17 = vld [vmem:[%s4302_s5 + $0xb0] sm:$0xff]  ;;  %v2531_v18 = vld [vmem:[%s4302_s5 + $0xa8] sm:$0xff] }
  0x50   : > { %2663 = vmatpush.msra.mxu3 %v2540_v2  ;;  %799 = vmatpush.msra.mxu0 %v2540_v2  ;;  %v364_v9 = vmul.f32 0.001953125, %v363_v6  ;;  %v2534_v14 = vld [vmem:[%s4302_s5 + $0xc0] sm:$0xff]  ;;  %v2529_v22 = vld [vmem:[%s4302_s5 + $0x98] sm:$0xff]  ;;  %v2528_v24 = vld [vmem:[%s4302_s5 + $0x90] sm:$0xff] }
  0x51   : > { %2664 = vmatpush.msra.mxu1 %v2539_v3  ;;  %2665 = vmatpush.msra.mxu2 %v2539_v3  ;;  %v365_v11 = vmul.f32 %v2847_v8, %v2847_v8  ;;  %v2530_v20 = vld [vmem:[%s4302_s5 + $0xa0] sm:$0xff]  ;;  %v2527_v26 = vld [vmem:[%s4302_s5 + $0x88] sm:$0xff]  ;;  %v2557_v32 = vld [vmem:[%s4302_s5 + $0x178] sm:$0xff] }
  0x52   : > { %2666 = vmatpush.msra.mxu3 %v2539_v3  ;;  %800 = vmatpush.msra.mxu0 %v2539_v3  ;;  %v2526_v28 = vld [vmem:[%s4302_s5 + $0x80] sm:$0xff]  ;;  %v2573_v33 = vld [vmem:[%s4302_s5 + $0x1f8] sm:$0xff]  ;;  %v389_v37 = vld [vmem:[%s2813_s11 + $0x30] sm:$0xff] }
  0x53   : > { %2667 = vmatpush.msra.mxu1 %v2538_v4  ;;  %2668 = vmatpush.msra.mxu2 %v2538_v4  ;;  %v366_v13 = vsub.f32 %v364_v9, %v365_v11  ;;  %v378_v31 = vld [vmem:[%s4300_s3] sm:$0x1]  ;;  %v619_v34 = vld [vmem:[%s4302_s5 + $0x78] sm:$0xff]  ;;  %v2556_v39 = vld [vmem:[%s4302_s5 + $0x170] sm:$0xff] }
  0x54   : > { %2669 = vmatpush.msra.mxu3 %v2538_v4  ;;  %801 = vmatpush.msra.mxu0 %v2538_v4  ;;  %v380_v36 = vld [vmem:[%s4301_s4] sm:$0x1]  ;;  %v390_v38 = vld [vmem:[%s2813_s11 + $0x38] sm:$0xff]  ;;  %v2572_v41 = vld [vmem:[%s4302_s5 + $0x1f0] sm:$0xff] }
  0x55   : > { %2670 = vmatpush.msra.mxu1 %v2537_v7  ;;  %2671 = vmatpush.msra.mxu2 %v2537_v7  ;;  %v367_v15 = vadd.f32 1e-05, %v366_v13  ;;  %v2913_v42 = vld [vmem:[#allocation2] sm:$0xff]  ;;  %v2915_v43 = vld [vmem:[#allocation2 + $0x8] sm:$0xff]  ;;  %v397_v44 = vld [vmem:[%s2813_s11 + $0x70] sm:$0xff] }
  0x56   : > { %2672 = vmatpush.msra.mxu3 %v2537_v7  ;;  %802 = vmatpush.msra.mxu0 %v2537_v7  ;;  %v398_v45 = vld [vmem:[%s2813_s11 + $0x78] sm:$0xff]  ;;  %v405_v46 = vld [vmem:[%s2813_s11 + $0xb0] sm:$0xff]  ;;  %v669_v47 = vrot.slane %v2913_v42, 1  ;;  %v670_v48 = vrot.slane %v2915_v43, 1  ;;  %v2555_v53 = vld [vmem:[%s4302_s5 + $0x168] sm:$0xff] }
  0x57   : > { %2673 = vmatpush.msra.mxu1 %v2536_v10  ;;  %2674 = vmatpush.msra.mxu2 %v2536_v10  ;;  %2715 = vrsqrt.f32 %v367_v15  ;;  %vm374_vm0 = vweird.f32 %v367_v15  ;;  %v406_v51 = vld [vmem:[%s2813_s11 + $0xb8] sm:$0xff]  ;;  %v618_v52 = vld [vmem:[%s4302_s5 + $0x70] sm:$0xff]  ;;  %v391_v55 = vld [vmem:[%s2813_s11 + $0x40] sm:$0xff] }
  0x58   : > { %2675 = vmatpush.msra.mxu3 %v2536_v10  ;;  %803 = vmatpush.msra.mxu0 %v2536_v10  ;;  %v671_v54 = vsel %vm668_vm3, %v669_v47, %v670_v48  ;;  %v392_v56 = vld [vmem:[%s2813_s11 + $0x48] sm:$0xff]  ;;  %v399_v57 = vld [vmem:[%s2813_s11 + $0x80] sm:$0xff]  ;;  %v2589_v63 = vld [vmem:[%s4302_s5 + $0x278] sm:$0xff] }
  0x59   : > { %2676 = vmatpush.msra.mxu1 %v2535_v12  ;;  %2677 = vmatpush.msra.mxu2 %v2535_v12  ;;  %v2571_v62 = vld [vmem:[%s4302_s5 + $0x1e8] sm:$0xff]  ;;  %v2554_v4 = vld [vmem:[%s4302_s5 + $0x160] sm:$0xff]  ;;  %v2588_v6 = vld [vmem:[%s4302_s5 + $0x270] sm:$0xff] }
  0x5a   : > { %2678 = vmatpush.msra.mxu3 %v2535_v12  ;;  %804 = vmatpush.msra.mxu0 %v2535_v12  ;;  %v617_v0 = vld [vmem:[%s4302_s5 + $0x68] sm:$0xff]  ;;  %v2570_v5 = vld [vmem:[%s4302_s5 + $0x1e0] sm:$0xff]  ;;  %v2553_v29 = vld [vmem:[%s4302_s5 + $0x158] sm:$0xff] }
  0x5b   : > { %2679 = vmatpush.msra.mxu1 %v2534_v14  ;;  %2680 = vmatpush.msra.mxu2 %v2534_v14  ;;  %v400_v9 = vld [vmem:[%s2813_s11 + $0x88] sm:$0xff]  ;;  %v407_v10 = vld [vmem:[%s2813_s11 + $0xc0] sm:$0xff] }
  0x5c   : > { %2681 = vmatpush.msra.mxu3 %v2534_v14  ;;  %805 = vmatpush.msra.mxu0 %v2534_v14  ;;  %v2586_v47 = vld [vmem:[%s4302_s5 + $0x260] sm:$0xff] }
  0x5d   : > { %2682 = vmatpush.msra.mxu1 %v2533_v16  ;;  %2683 = vmatpush.msra.mxu2 %v2533_v16  ;;  %v2716_v19 = vpop.eup %2715 }
  0x5e   : > { %2684 = vmatpush.msra.mxu3 %v2533_v16  ;;  %806 = vmatpush.msra.mxu0 %v2533_v16  ;;  %v369_v21 = vmul.f32 %v2716_v19, %v367_v15  ;;  %vm375_vm1 = vweird.f32 %v2716_v19 }
  0x5f   : > { %2685 = vmatpush.msra.mxu1 %v2532_v17  ;;  %2686 = vmatpush.msra.mxu2 %v2532_v17  ;;  %vm2884_vm2 = vmor %vm374_vm0, %vm375_vm1 }
  0x60   : > { %2687 = vmatpush.msra.mxu3 %v2532_v17  ;;  %807 = vmatpush.msra.mxu0 %v2532_v17  ;;  %v370_v23 = vmul.f32 %v2716_v19, %v369_v21  ;;  %v408_v17 = vld [vmem:[%s2813_s11 + $0xc8] sm:$0xff]  ;;  %v2977_v21 = vld [vmem:[#allocation2 + $0x10] sm:$0x3] }
  0x61   : > { %2688 = vmatpush.msra.mxu1 %v2531_v18  ;;  %2689 = vmatpush.msra.mxu2 %v2531_v18 }
  0x62   : > { %2690 = vmatpush.msra.mxu3 %v2531_v18  ;;  %808 = vmatpush.msra.mxu0 %v2531_v18  ;;  %v371_v25 = vmul.f32 0.5, %v370_v23  ;;  %v383_v23 = vld [vmem:[%s2813_s11] sm:$0xff] }
  0x63   : > { %2691 = vmatpush.msra.mxu1 %v2530_v20  ;;  %2692 = vmatpush.msra.mxu2 %v2530_v20 }
  0x64   : > { %2693 = vmatpush.msra.mxu3 %v2530_v20  ;;  %809 = vmatpush.msra.mxu0 %v2530_v20  ;;  %v372_v27 = vsub.f32 1.5, %v371_v25 }
  0x65   : > { %2694 = vmatpush.msra.mxu1 %v2529_v22  ;;  %2695 = vmatpush.msra.mxu2 %v2529_v22 }
  0x66   : > { %2696 = vmatpush.msra.mxu3 %v2529_v22  ;;  %810 = vmatpush.msra.mxu0 %v2529_v22  ;;  %v373_v30 = vmul.f32 %v2716_v19, %v372_v27 }
  0x67   : > { %2697 = vmatpush.msra.mxu1 %v2528_v24  ;;  %2698 = vmatpush.msra.mxu2 %v2528_v24 }
  0x68   : > { %2699 = vmatpush.msra.mxu3 %v2528_v24  ;;  %811 = vmatpush.msra.mxu0 %v2528_v24  ;;  %v377_v35 = vsel %vm2884_vm2, %v2716_v19, %v373_v30  ;;  %v384_v30 = vld [vmem:[%s2813_s11 + $0x8] sm:$0xff] }
  0x69   : > { %2700 = vmatpush.msra.mxu1 %v2527_v26  ;;  %2701 = vmatpush.msra.mxu2 %v2527_v26  ;;  %v379_v40 = vmul.f32 %v378_v31, %v377_v35  ;;  %v393_v35 = vld [vmem:[%s2813_s11 + $0x50] sm:$0xff] }
  0x6a   : > { %2702 = vmatpush.msra.mxu3 %v2527_v26  ;;  %812 = vmatpush.msra.mxu0 %v2527_v26 }
  0x6b   : > { %2703 = vmatpush.msra.mxu1 %v2526_v28  ;;  %2704 = vmatpush.msra.mxu2 %v2526_v28  ;;  %v381_v49 = vmul.f32 %v379_v40, %v2847_v8  ;;  %v2923_v50 = vperm.slane %v379_v40, 0  ;;  %v2587_v40 = vld [vmem:[%s4302_s5 + $0x268] sm:$0xff] }
  0x6c   : > { %2705 = vmatpush.msra.mxu3 %v2526_v28  ;;  %813 = vmatpush.msra.mxu0 %v2526_v28  ;;  %v616_v28 = vld [vmem:[%s4302_s5 + $0x60] sm:$0xff] }
  0x6d   : > { %1154 = vmatpush.msrb.mxu2 %v2557_v32  ;;  %911 = vmatpush.msrb.mxu1 %v619_v34  ;;  %4375 = vst [vmem:[#allocation3_spill] sm:$0xff] %v2923_v50  ;;  %v382_v58 = vsub.f32 %v380_v36, %v381_v49  ;;  %v424_v59 = vmul.f32 %v2923_v50, %v389_v37 }
  0x6e   : > { %1316 = vmatpush.msrb.mxu3 %v2573_v33  ;;  %v425_v60 = vmul.f32 %v2923_v50, %v390_v38  ;;  %v432_v61 = vmul.f32 %v2923_v50, %v397_v44  ;;  %v433_v1 = vmul.f32 %v2923_v50, %v398_v45  ;;  %v440_v2 = vmul.f32 %v2923_v50, %v405_v46  ;;  %v2552_v45 = vld [vmem:[%s4302_s5 + $0x150] sm:$0xff] }
  0x6f   : > { %1155 = vmatpush.msrb.mxu2 %v2556_v39  ;;  %912 = vmatpush.msrb.mxu1 %v618_v52  ;;  %v441_v3 = vmul.f32 %v2923_v50, %v406_v51  ;;  %v2962_v7 = vperm.slane %v382_v58, 0  ;;  %v426_v8 = vmul.f32 %v2923_v50, %v391_v55  ;;  %v427_v11 = vmul.f32 %v2923_v50, %v392_v56  ;;  %v2569_v39 = vld [vmem:[%s4302_s5 + $0x1d8] sm:$0xff]  ;;  %v2568_v46 = vld [vmem:[%s4302_s5 + $0x1d0] sm:$0xff] }
  0x70   : > { %1317 = vmatpush.msrb.mxu3 %v2572_v41  ;;  %814 = vmatmul.f32.vlgmr.msra.gmra.mxu0 %v671_v54  ;;  %v434_v12 = vmul.f32 %v2923_v50, %v399_v57  ;;  %v435_v20 = vmul.f32 %v2923_v50, %v400_v9  ;;  %v442_v22 = vmul.f32 %v2923_v50, %v407_v10  ;;  %v672_v38 = vrot.slane %v2977_v21, 1  ;;  %v615_v41 = vld [vmem:[%s4302_s5 + $0x58] sm:$0xff] }
  0x71   : > { %1156 = vmatpush.msrb.mxu2 %v2555_v53  ;;  %4376 = vst [vmem:[#allocation4_spill] sm:$0xff] %v2962_v7  ;;  %1488 = vmatpush.msrb.mxu0 %v2589_v63  ;;  %v459_v13 = vadd.f32 %v2962_v7, %v424_v59  ;;  %v460_v14 = vadd.f32 %v2962_v7, %v425_v60  ;;  %v394_v57 = vld [vmem:[%s2813_s11 + $0x58] sm:$0xff] }
  0x72   : > { %1318 = vmatpush.msrb.mxu3 %v2571_v62  ;;  %913 = vmatpush.msrb.mxu1 %v617_v0  ;;  %v467_v15 = vadd.f32 %v2962_v7, %v432_v61  ;;  %v468_v16 = vadd.f32 %v2962_v7, %v433_v1  ;;  %v475_v18 = vadd.f32 %v2962_v7, %v440_v2  ;;  %v401_v62 = vld [vmem:[%s2813_s11 + $0x90] sm:$0xff]  ;;  %v2551_v1 = vld [vmem:[%s4302_s5 + $0x148] sm:$0xff] }
  0x73   : > { %1157 = vmatpush.msrb.mxu2 %v2554_v4  ;;  %1489 = vmatpush.msrb.mxu0 %v2588_v6  ;;  %v476_v19 = vadd.f32 %v2962_v7, %v441_v3  ;;  %v491_v24 = vmax.f32 %v459_v13, 0.0  ;;  %v492_v25 = vmax.f32 %v460_v14, 0.0  ;;  %v461_v27 = vadd.f32 %v2962_v7, %v426_v8  ;;  %v614_v0 = vld [vmem:[%s4302_s5 + $0x50] sm:$0xff]  ;;  %v410_v14 = vld [vmem:[%s2813_s11 + $0xd8] sm:$0xff] }
  0x74   : > { %1319 = vmatpush.msrb.mxu3 %v2570_v5  ;;  %v499_v26 = vmax.f32 %v467_v15, 0.0  ;;  %v500_v31 = vmax.f32 %v468_v16, 0.0  ;;  %v507_v32 = vmax.f32 %v475_v18, 0.0  ;;  %v462_v33 = vadd.f32 %v2962_v7, %v427_v11  ;;  %914 = vmatpush.msrb.mxu1 %v616_v28  ;;  %v402_v5 = vld [vmem:[%s2813_s11 + $0x98] sm:$0xff]  ;;  %v409_v6 = vld [vmem:[%s2813_s11 + $0xd0] sm:$0xff]  ;;  %v2567_v11 = vld [vmem:[%s4302_s5 + $0x1c8] sm:$0xff] }
  0x75   : > { %1158 = vmatpush.msrb.mxu2 %v2553_v29  ;;  %v443_v34 = vmul.f32 %v2923_v50, %v408_v17  ;;  %524 = vst [vmem:[#allocation2 + $0x61] sm:$0xff] %v491_v24  ;;  %v508_v36 = vmax.f32 %v476_v19, 0.0  ;;  %v469_v37 = vadd.f32 %v2962_v7, %v434_v12  ;;  %v470_v44 = vadd.f32 %v2962_v7, %v435_v20  ;;  %v2585_v18 = vld [vmem:[%s4302_s5 + $0x258] sm:$0xff]  ;;  %v613_v19 = vld [vmem:[%s4302_s5 + $0x48] sm:$0xff]  ;;  %v385_v20 = vld [vmem:[%s2813_s11 + $0x10] sm:$0xff] }
  0x76   : > { %525 = vst [vmem:[#allocation2 + $0x69] sm:$0xff] %v492_v25  ;;  %1320 = vmatpush.msrb.mxu3 %v2569_v39  ;;  %1490 = vmatpush.msrb.mxu0 %v2587_v40  ;;  %v418_v49 = vmul.f32 %v2923_v50, %v383_v23  ;;  %v419_v51 = vmul.f32 %v2923_v50, %v384_v30  ;;  %v493_v52 = vmax.f32 %v461_v27, 0.0  ;;  %v494_v55 = vmax.f32 %v462_v33, 0.0  ;;  %v2584_v33 = vld [vmem:[%s4302_s5 + $0x250] sm:$0xff] }
  0x77   : > { %532 = vst [vmem:[#allocation2 + $0xc1] sm:$0xff] %v499_v26  ;;  %v673_v53 = vsel %vm668_vm3, %v670_v48, %v672_v38  ;;  %v477_v54 = vadd.f32 %v2962_v7, %v442_v22  ;;  %915 = vmatpush.msrb.mxu1 %v615_v41  ;;  %1159 = vmatpush.msrb.mxu2 %v2552_v45  ;;  %v501_v58 = vmax.f32 %v469_v37, 0.0  ;;  %v502_v60 = vmax.f32 %v470_v44, 0.0  ;;  %v386_v22 = vld [vmem:[%s2813_s11 + $0x18] sm:$0xff]  ;;  %v2550_v26 = vld [vmem:[%s4302_s5 + $0x140] sm:$0xff] }
  0x78   : > { %533 = vst [vmem:[#allocation2 + $0xc9] sm:$0xff] %v500_v31  ;;  %817 = vmatmul.f32.gmra.mxu0 %v673_v53  ;;  %v478_v56 = vadd.f32 %v2962_v7, %v443_v34  ;;  %1321 = vmatpush.msrb.mxu3 %v2568_v46  ;;  %v453_v59 = vadd.f32 %v2962_v7, %v418_v49  ;;  %v395_v46 = vld [vmem:[%s2813_s11 + $0x60] sm:$0xff] }
  0x79   : > { %540 = vst [vmem:[#allocation2 + $0x121] sm:$0xff] %v507_v32  ;;  %1491 = vmatpush.msrb.mxu0 %v2586_v47  ;;  %v428_v48 = vmul.f32 %v2923_v50, %v393_v35  ;;  %v454_v61 = vadd.f32 %v2962_v7, %v419_v51  ;;  %v509_v63 = vmax.f32 %v477_v54, 0.0  ;;  %v429_v2 = vmul.f32 %v2923_v50, %v394_v57  ;;  %v2566_v32 = vld [vmem:[%s4302_s5 + $0x1c0] sm:$0xff]  ;;  %v396_v54 = vld [vmem:[%s2813_s11 + $0x68] sm:$0xff] }
  0x7a   : > { %541 = vst [vmem:[#allocation2 + $0x129] sm:$0xff] %v508_v36  ;;  %v510_v4 = vmax.f32 %v478_v56, 0.0  ;;  %916 = vmatpush.msrb.mxu1 %v614_v0  ;;  %1160 = vmatpush.msrb.mxu2 %v2551_v1  ;;  %v485_v10 = vmax.f32 %v453_v59, 0.0  ;;  %v436_v13 = vmul.f32 %v2923_v50, %v401_v62  ;;  %v437_v28 = vmul.f32 %v2923_v50, %v402_v5  ;;  %v612_v57 = vld [vmem:[%s4302_s5 + $0x40] sm:$0xff] }
  0x7b   : > { %526 = vst [vmem:[#allocation2 + $0x79] sm:$0xff] %v493_v52  ;;  %v463_v12 = vadd.f32 %v2962_v7, %v428_v48  ;;  %v486_v17 = vmax.f32 %v454_v61, 0.0  ;;  %1322 = vmatpush.msrb.mxu3 %v2567_v11  ;;  %1492 = vmatpush.msrb.mxu0 %v2585_v18  ;;  %v464_v27 = vadd.f32 %v2962_v7, %v429_v2  ;;  %v2565_v2 = vld [vmem:[%s4302_s5 + $0x1b8] sm:$0xff] }
  0x7c   : > { %v3032_v3 = vld [vmem:[#allocation2 + $0x60] sm:$0xff]  ;;  %527 = vst [vmem:[#allocation2 + $0x81] sm:$0xff] %v494_v55  ;;  %917 = vmatpush.msrb.mxu1 %v613_v19  ;;  %1161 = vmatpush.msrb.mxu2 %v2550_v26  ;;  %v471_v38 = vadd.f32 %v2962_v7, %v436_v13  ;;  %v444_v39 = vmul.f32 %v2923_v50, %v409_v6  ;;  %v611_v18 = vld [vmem:[%s4302_s5 + $0x38] sm:$0xff]  ;;  %v2548_v19 = vld [vmem:[%s4302_s5 + $0x130] sm:$0xff] }
  0x7d   : > { %v3036_v8 = vld [vmem:[#allocation2 + $0x68] sm:$0xff]  ;;  %v689_v9 = vrot.slane %v3032_v3, 1  ;;  %534 = vst [vmem:[#allocation2 + $0xd9] sm:$0xff] %v501_v58  ;;  %v3059_v25 = vld [vmem:[#allocation2 + $0x70] sm:$0x3]  ;;  %1323 = vmatpush.msrb.mxu3 %v2566_v32  ;;  %v495_v37 = vmax.f32 %v463_v12, 0.0  ;;  %1493 = vmatpush.msrb.mxu0 %v2584_v33  ;;  %v445_v45 = vmul.f32 %v2923_v50, %v410_v14  ;;  %v472_v51 = vadd.f32 %v2962_v7, %v437_v28 }
  0x7e   : > { %v690_v15 = vrot.slane %v3036_v8, 1  ;;  %v3046_v16 = vld [vmem:[#allocation2 + $0xc0] sm:$0xff]  ;;  %535 = vst [vmem:[#allocation2 + $0xe1] sm:$0xff] %v502_v60  ;;  %v692_v44 = vrot.slane %v3059_v25, 1  ;;  %v496_v49 = vmax.f32 %v464_v27, 0.0  ;;  %v420_v52 = vmul.f32 %v2923_v50, %v385_v20  ;;  %v2549_v58 = vld [vmem:[%s4302_s5 + $0x138] sm:$0xff]  ;;  %918 = vmatpush.msrb.mxu1 %v612_v57 }
  0x7f   : > { %v3056_v23 = vld [vmem:[#allocation2 + $0xc8] sm:$0xff]  ;;  %v709_v24 = vrot.slane %v3046_v16, 1  ;;  %542 = vst [vmem:[#allocation2 + $0x139] sm:$0xff] %v509_v63  ;;  %v3079_v36 = vld [vmem:[#allocation2 + $0xd0] sm:$0x3]  ;;  %v421_v53 = vmul.f32 %v2923_v50, %v386_v22  ;;  %v430_v59 = vmul.f32 %v2923_v50, %v395_v46  ;;  %v503_v61 = vmax.f32 %v471_v38, 0.0  ;;  %1162 = vmatpush.msrb.mxu2 %v2549_v58  ;;  %1324 = vmatpush.msrb.mxu3 %v2565_v2 }
  0x80   : > { %v3067_v29 = vsel %vm668_vm3, %v689_v9, %v690_v15  ;;  %v710_v30 = vrot.slane %v3056_v23, 1  ;;  %v586_v31 = vld [vmem:[#allocation2 + $0x120] sm:$0xff]  ;;  %543 = vst [vmem:[#allocation2 + $0x141] sm:$0xff] %v510_v4  ;;  %v712_v56 = vrot.slane %v3079_v36, 1  ;;  %v479_v62 = vadd.f32 %v2962_v7, %v444_v39  ;;  %v2583_v4 = vld [vmem:[%s4302_s5 + $0x248] sm:$0xff]  ;;  %919 = vmatpush.msrb.mxu1 %v611_v18  ;;  %v2581_v58 = vld [vmem:[%s4302_s5 + $0x238] sm:$0xff] }
  0x81   : > { %838 = vmatmul.f32.vlgmr.msra.gmra.mxu1 %v3067_v29  ;;  %v3077_v34 = vld [vmem:[#allocation2 + $0x128] sm:$0xff]  ;;  %v729_v35 = vrot.slane %v586_v31, 1  ;;  %518 = vst [vmem:[#allocation2 + $0x19] sm:$0xff] %v485_v10  ;;  %v588_v47 = vld [vmem:[#allocation2 + $0x130] sm:$0x3]  ;;  %v3113_v63 = vsel %vm668_vm3, %v690_v15, %v692_v44  ;;  %v480_v1 = vadd.f32 %v2962_v7, %v445_v45  ;;  %v431_v5 = vmul.f32 %v2923_v50, %v396_v54 }
  0x82   : > { %v3084_v40 = vsel %vm668_vm3, %v709_v24, %v710_v30  ;;  %v730_v41 = vrot.slane %v3077_v34, 1  ;;  %519 = vst [vmem:[#allocation2 + $0x21] sm:$0xff] %v486_v17  ;;  %v3107_v48 = vld [vmem:[#allocation2 + $0x78] sm:$0xff]  ;;  %v732_v0 = vrot.slane %v588_v47, 1  ;;  %v504_v10 = vmax.f32 %v472_v51, 0.0  ;;  %1494 = vmatpush.msrb.mxu0 %v2583_v4  ;;  %1163 = vmatpush.msrb.mxu2 %v2548_v19  ;;  %v2564_v34 = vld [vmem:[%s4302_s5 + $0x1b0] sm:$0xff] }
  0x83   : > { %4377 = vst [vmem:[#allocation5_spill] sm:$0xff] %v3084_v40  ;;  %862 = vmatmul.f32.vlgmr.msra.gmra.mxu2 %v3084_v40  ;;  %v3109_v60 = vld [vmem:[#allocation2 + $0x80] sm:$0xff]  ;;  %v455_v11 = vadd.f32 %v2962_v7, %v420_v52  ;;  %v456_v12 = vadd.f32 %v2962_v7, %v421_v53  ;;  %v3130_v13 = vsel %vm668_vm3, %v710_v30, %v712_v56  ;;  %v694_v14 = vrot.slane %v3107_v48, 1  ;;  %v2547_v44 = vld [vmem:[%s4302_s5 + $0x128] sm:$0xff] }
  0x84   : > { %528 = vst [vmem:[#allocation2 + $0x91] sm:$0xff] %v495_v37  ;;  %v3096_v55 = vsel %vm668_vm3, %v729_v35, %v730_v41  ;;  %v3123_v6 = vld [vmem:[#allocation2 + $0xd8] sm:$0xff]  ;;  %v695_v15 = vrot.slane %v3109_v60, 1  ;;  %v465_v20 = vadd.f32 %v2962_v7, %v430_v59  ;;  %v511_v28 = vmax.f32 %v479_v62, 0.0  ;;  %v2582_v35 = vld [vmem:[%s4302_s5 + $0x240] sm:$0xff]  ;;  %1325 = vmatpush.msrb.mxu3 %v2564_v34  ;;  %v2563_v57 = vld [vmem:[%s4302_s5 + $0x1a8] sm:$0xff]  ;;  %1164 = vmatpush.msrb.mxu2 %v2547_v44 }
  0x85   : > { %4378 = vst [vmem:[#allocation6_spill] sm:$0xff] %v3096_v55  ;;  %886 = vmatmul.f32.vlgmr.msra.gmra.mxu3 %v3096_v55  ;;  %v3125_v9 = vld [vmem:[#allocation2 + $0xe0] sm:$0xff]  ;;  %v3152_v30 = vsel %vm668_vm3, %v730_v41, %v732_v0  ;;  %v714_v31 = vrot.slane %v3123_v6, 1  ;;  %v466_v37 = vadd.f32 %v2962_v7, %v431_v5  ;;  %v512_v39 = vmax.f32 %v480_v1, 0.0  ;;  %v610_v41 = vld [vmem:[%s4302_s5 + $0x30] sm:$0xff]  ;;  %1495 = vmatpush.msrb.mxu0 %v2582_v35  ;;  %v609_v59 = vld [vmem:[%s4302_s5 + $0x28] sm:$0xff] }
  0x86   : > { %529 = vst [vmem:[#allocation2 + $0x99] sm:$0xff] %v496_v49  ;;  %v3144_v22 = vld [vmem:[#allocation2 + $0x138] sm:$0xff]  ;;  %v715_v38 = vrot.slane %v3125_v9, 1  ;;  %v487_v45 = vmax.f32 %v455_v11, 0.0  ;;  %v3174_v47 = vld [vmem:[#allocation2 + $0x88] sm:$0x3]  ;;  %920 = vmatpush.msrb.mxu1 %v610_v41  ;;  %v3197_v62 = vsel %vm668_vm3, %v694_v14, %v695_v15  ;;  %1326 = vmatpush.msrb.mxu3 %v2563_v57 }
  0x87   : > { %536 = vst [vmem:[#allocation2 + $0xf1] sm:$0xff] %v503_v61  ;;  %v3146_v24 = vld [vmem:[#allocation2 + $0x140] sm:$0xff]  ;;  %v734_v46 = vrot.slane %v3144_v22, 1  ;;  %v488_v51 = vmax.f32 %v456_v12, 0.0  ;;  %v497_v52 = vmax.f32 %v465_v20, 0.0  ;;  %v498_v2 = vmax.f32 %v466_v37, 0.0  ;;  %1496 = vmatpush.msrb.mxu0 %v2581_v58 }
  0x88   : > { %4379 = vst [vmem:[#allocation7_spill] sm:$0xff] %v3130_v13  ;;  %v3134_v17 = vld [vmem:[#allocation2 + $0x18] sm:$0xff]  ;;  %v403_v53 = vld [vmem:[%s2813_s11 + $0xa0] sm:$0xff]  ;;  %v735_v54 = vrot.slane %v3146_v24, 1  ;;  %v3208_v4 = vsel %vm668_vm3, %v714_v31, %v715_v38  ;;  %v697_v5 = vrot.slane %v3174_v47, 1  ;;  %921 = vmatpush.msrb.mxu1 %v609_v59  ;;  %v404_v11 = vld [vmem:[%s2813_s11 + $0xa8] sm:$0xff] }
  0x89   : > { %841 = vmatmul.f32.gmra.mxu1 %v3113_v63  ;;  %v3148_v26 = vld [vmem:[#allocation2 + $0x20] sm:$0xff]  ;;  %v674_v27 = vrot.slane %v3134_v17, 1  ;;  %537 = vst [vmem:[#allocation2 + $0xf9] sm:$0xff] %v504_v10  ;;  %v3156_v33 = vld [vmem:[#allocation2 + $0x28] sm:$0x3]  ;;  %v438_v61 = vmul.f32 %v2923_v50, %v403_v53  ;;  %v2580_v10 = vld [vmem:[%s4302_s5 + $0x230] sm:$0xff]  ;;  %v439_v14 = vmul.f32 %v2923_v50, %v404_v11 }
  0x8a   : > { %4380 = vst [vmem:[#allocation8_spill] sm:$0xff] %v3152_v30  ;;  %v675_v32 = vrot.slane %v3148_v26, 1  ;;  %v677_v56 = vrot.slane %v3156_v33, 1  ;;  %v2546_v0 = vld [vmem:[%s4302_s5 + $0x120] sm:$0xff]  ;;  %v412_v19 = vld [vmem:[%s2813_s11 + $0xe8] sm:$0xff]  ;;  %v3224_v22 = vsel %vm668_vm3, %v734_v46, %v735_v54  ;;  %1497 = vmatpush.msrb.mxu0 %v2580_v10  ;;  %v2545_v46 = vld [vmem:[%s4302_s5 + $0x118] sm:$0xff]  ;;  %v3251_v58 = vsel %vm668_vm3, %v695_v15, %v697_v5 }
  0x8b   : > { %865 = vmatmul.f32.gmra.mxu2 %v3130_v13  ;;  %544 = vst [vmem:[#allocation2 + $0x151] sm:$0xff] %v511_v28  ;;  %v2562_v1 = vld [vmem:[%s4302_s5 + $0x1a0] sm:$0xff]  ;;  %v473_v18 = vadd.f32 %v2962_v7, %v438_v61  ;;  %v447_v31 = vmul.f32 %v2923_v50, %v412_v19  ;;  %v388_v35 = vld [vmem:[%s2813_s11 + $0x28] sm:$0xff]  ;;  %v3262_v10 = vld [vmem:[#allocation2 + $0x90] sm:$0xff] }
  0x8c   : > { %v3177_v49 = vsel %vm668_vm3, %v674_v27, %v675_v32  ;;  %545 = vst [vmem:[#allocation2 + $0x159] sm:$0xff] %v512_v39  ;;  %v411_v12 = vld [vmem:[%s2813_s11 + $0xe0] sm:$0xff]  ;;  %1165 = vmatpush.msrb.mxu2 %v2546_v0  ;;  %1327 = vmatpush.msrb.mxu3 %v2562_v1  ;;  %v3226_v27 = vld [vmem:[#allocation2 + $0xe8] sm:$0x3]  ;;  %v3229_v28 = vsel %vm668_vm3, %v675_v32, %v677_v56  ;;  %v2561_v1 = vld [vmem:[%s4302_s5 + $0x198] sm:$0xff] }
  0x8d   : > { %889 = vmatmul.f32.gmra.mxu3 %v3152_v30  ;;  %820 = vmatmul.f32.gmra.mxu0 %v3177_v49  ;;  %520 = vst [vmem:[#allocation2 + $0x31] sm:$0xff] %v487_v45  ;;  %v446_v20 = vmul.f32 %v2923_v50, %v411_v12  ;;  %v387_v34 = vld [vmem:[%s2813_s11 + $0x20] sm:$0xff]  ;;  %v591_v37 = vld [vmem:[#allocation2 + $0x148] sm:$0x3]  ;;  %v474_v39 = vadd.f32 %v2962_v7, %v439_v14  ;;  %v505_v41 = vmax.f32 %v473_v18, 0.0  ;;  %v607_v5 = vld [vmem:[%s4302_s5 + $0x18] sm:$0xff] }
  0x8e   : > { %4381 = vst [vmem:[#allocation9_spill] sm:$0xff] %v3208_v4  ;;  %v422_v45 = vmul.f32 %v2923_v50, %v387_v34  ;;  %v608_v32 = vld [vmem:[%s4302_s5 + $0x20] sm:$0xff]  ;;  %1166 = vmatpush.msrb.mxu2 %v2545_v46  ;;  %v423_v57 = vmul.f32 %v2923_v50, %v388_v35  ;;  %v737_v59 = vrot.slane %v591_v37, 1  ;;  %1328 = vmatpush.msrb.mxu3 %v2561_v1  ;;  %v3272_v18 = vld [vmem:[#allocation2 + $0x98] sm:$0xff] }
  0x8f   : > { %521 = vst [vmem:[#allocation2 + $0x39] sm:$0xff] %v488_v51  ;;  %v481_v44 = vadd.f32 %v2962_v7, %v446_v20  ;;  %v482_v51 = vadd.f32 %v2962_v7, %v447_v31  ;;  %v506_v53 = vmax.f32 %v474_v39, 0.0  ;;  %922 = vmatpush.msrb.mxu1 %v608_v32  ;;  %v2544_v20 = vld [vmem:[%s4302_s5 + $0x110] sm:$0xff]  ;;  %v2578_v35 = vld [vmem:[%s4302_s5 + $0x220] sm:$0xff]  ;;  %v699_v39 = vrot.slane %v3262_v10, 1 }
  0x90   : > { %530 = vst [vmem:[#allocation2 + $0xa9] sm:$0xff] %v497_v52  ;;  %v717_v52 = vrot.slane %v3226_v27, 1  ;;  %v457_v12 = vadd.f32 %v2962_v7, %v422_v45  ;;  %v458_v14 = vadd.f32 %v2962_v7, %v423_v57  ;;  %v2560_v31 = vld [vmem:[%s4302_s5 + $0x190] sm:$0xff]  ;;  %1167 = vmatpush.msrb.mxu2 %v2544_v20  ;;  %v3293_v37 = vsel %vm668_vm3, %v735_v54, %v737_v59  ;;  %v2559_v59 = vld [vmem:[%s4302_s5 + $0x188] sm:$0xff]  ;;  %v2542_v20 = vld [vmem:[%s4302_s5 + $0x100] sm:$0xff] }
  0x91   : > { %844 = vmatmul.f32.gmra.mxu1 %v3197_v62  ;;  %4382 = vst [vmem:[#allocation10_spill] sm:$0xff] %v3224_v22  ;;  %v513_v56 = vmax.f32 %v481_v44, 0.0  ;;  %v514_v0 = vmax.f32 %v482_v51, 0.0  ;;  %1329 = vmatpush.msrb.mxu3 %v2560_v31  ;;  %v700_v44 = vrot.slane %v3272_v18, 1 }
  0x92   : > { %531 = vst [vmem:[#allocation2 + $0xb1] sm:$0xff] %v498_v2  ;;  %v2579_v2 = vld [vmem:[%s4302_s5 + $0x228] sm:$0xff]  ;;  %923 = vmatpush.msrb.mxu1 %v607_v5  ;;  %v3284_v34 = vsel %vm668_vm3, %v715_v38, %v717_v52  ;;  %v3298_v38 = vld [vmem:[#allocation2 + $0xf8] sm:$0xff]  ;;  %v592_v45 = vld [vmem:[#allocation2 + $0x150] sm:$0xff]  ;;  %v489_v51 = vmax.f32 %v457_v12, 0.0  ;;  %v490_v24 = vmax.f32 %v458_v14, 0.0 }
  0x93   : > { %868 = vmatmul.f32.gmra.mxu2 %v3208_v4  ;;  %538 = vst [vmem:[#allocation2 + $0x109] sm:$0xff] %v505_v41  ;;  %1498 = vmatpush.msrb.mxu0 %v2579_v2  ;;  %v3296_v41 = vld [vmem:[#allocation2 + $0xf0] sm:$0xff]  ;;  %v3301_v32 = vld [vmem:[#allocation2 + $0x158] sm:$0xff]  ;;  %v720_v57 = vrot.slane %v3298_v38, 1  ;;  %v739_v1 = vrot.slane %v592_v45, 1  ;;  %v605_v12 = vld [vmem:[%s4302_s5 + $0x8] sm:$0xff] }
  0x94   : > { %4383 = vst [vmem:[#allocation11_spill] sm:$0xff] %v3251_v58  ;;  %v3254_v61 = vld [vmem:[#allocation2 + $0x30] sm:$0xff]  ;;  %v740_v2 = vrot.slane %v3301_v32, 1  ;;  %1330 = vmatpush.msrb.mxu3 %v2559_v59  ;;  %v2577_v5 = vld [vmem:[%s4302_s5 + $0x218] sm:$0xff]  ;;  %v3333_v14 = vld [vmem:[#allocation2 + $0xa0] sm:$0x3] }
  0x95   : > { %892 = vmatmul.f32.gmra.mxu3 %v3224_v22  ;;  %823 = vmatmul.f32.gmra.mxu0 %v3229_v28  ;;  %v679_v15 = vrot.slane %v3254_v61, 1  ;;  %539 = vst [vmem:[#allocation2 + $0x111] sm:$0xff] %v506_v53  ;;  %v606_v52 = vld [vmem:[%s4302_s5 + $0x10] sm:$0xff]  ;;  %v2543_v53 = vld [vmem:[%s4302_s5 + $0x108] sm:$0xff]  ;;  %v604_v45 = vld [vmem:[%s4302_s5] sm:$0xff] }
  0x96   : > { %v3264_v11 = vld [vmem:[#allocation2 + $0x38] sm:$0xff]  ;;  %546 = vst [vmem:[#allocation2 + $0x169] sm:$0xff] %v513_v56  ;;  %1499 = vmatpush.msrb.mxu0 %v2578_v35  ;;  %v3307_v54 = vld [vmem:[#allocation2 + $0x40] sm:$0x3]  ;;  %v719_v56 = vrot.slane %v3296_v41, 1  ;;  %924 = vmatpush.msrb.mxu1 %v606_v52 }
  0x97   : > { %v680_v19 = vrot.slane %v3264_v11, 1  ;;  %4384 = vst [vmem:[#allocation12_spill] sm:$0xff] %v3284_v34  ;;  %1168 = vmatpush.msrb.mxu2 %v2543_v53  ;;  %v2558_v35 = vld [vmem:[%s4302_s5 + $0x180] sm:$0xff]  ;;  %v2621_v59 = vld [vmem:[%s4302_s5 + $0x378] sm:$0xff] }
  0x98   : > { %547 = vst [vmem:[#allocation2 + $0x171] sm:$0xff] %v514_v0  ;;  %v3323_v0 = vsel %vm668_vm3, %v699_v39, %v700_v44  ;;  %1500 = vmatpush.msrb.mxu0 %v2577_v5  ;;  %925 = vmatpush.msrb.mxu1 %v605_v12  ;;  %v3339_v31 = vsel %vm668_vm3, %v719_v56, %v720_v57  ;;  %v2576_v39 = vld [vmem:[%s4302_s5 + $0x210] sm:$0xff]  ;;  %v3351_v32 = vld [vmem:[#allocation2 + $0x100] sm:$0x3]  ;;  %v2605_v12 = vld [vmem:[%s4302_s5 + $0x2f8] sm:$0xff] }
  0x99   : > { %847 = vmatmul.f32.gmra.mxu1 %v3251_v58  ;;  %4385 = vst [vmem:[#allocation13_spill] sm:$0xff] %v3293_v37  ;;  %v3304_v46 = vsel %vm668_vm3, %v679_v15, %v680_v19  ;;  %v682_v15 = vrot.slane %v3307_v54, 1  ;;  %1169 = vmatpush.msrb.mxu2 %v2542_v20  ;;  %v594_v53 = vld [vmem:[#allocation2 + $0x160] sm:$0x3]  ;;  %v722_v5 = vrot.slane %v3351_v32, 1  ;;  %v3390_v7 = vld [vmem:[#allocation2 + $0xb0] sm:$0xff] }
  0x9a   : > { %4386 = vst [vmem:[#allocation14_spill] sm:$0xff] %v3298_v38  ;;  %1331 = vmatpush.msrb.mxu3 %v2558_v35  ;;  %1501 = vmatpush.msrb.mxu0 %v2576_v39  ;;  %v742_v35 = vrot.slane %v594_v53, 1  ;;  %v1026_v38 = vrot.slane %v2915_v43, 2 }
  0x9b   : > { %871 = vmatmul.f32.gmra.mxu2 %v3284_v34  ;;  %522 = vst [vmem:[#allocation2 + $0x49] sm:$0xff] %v489_v51  ;;  %v3354_v51 = vsel %vm668_vm3, %v739_v1, %v740_v2  ;;  %v3358_v52 = vsel %vm668_vm3, %v680_v19, %v682_v15  ;;  %926 = vmatpush.msrb.mxu1 %v604_v45  ;;  %v2575_v19 = vld [vmem:[%s4302_s5 + $0x208] sm:$0xff]  ;;  %v2637_v15 = vld [vmem:[%s4302_s5 + $0x3f8] sm:$0xff] }
  0x9c   : > { %523 = vst [vmem:[#allocation2 + $0x51] sm:$0xff] %v490_v24  ;;  %v702_v24 = vrot.slane %v3333_v14, 1  ;;  %1819 = vmatpush.msra.mxu2 %v2621_v59  ;;  %1502 = vmatpush.msrb.mxu0 %v2575_v19  ;;  %v2574_v59 = vld [vmem:[%s4302_s5 + $0x200] sm:$0xff]  ;;  %v3393_v50 = vsel %vm668_vm3, %v720_v57, %v722_v5  ;;  %v3401_v53 = vsel %vm668_vm3, %v740_v2, %v742_v35  ;;  %v2653_v35 = vld [vmem:[%s4302_s5 + $0x478] sm:$0xff] }
  0x9d   : > { %895 = vmatmul.f32.gmra.mxu3 %v3293_v37  ;;  %826 = vmatmul.f32.gmra.mxu0 %v3304_v46  ;;  %4387 = vst [vmem:[#allocation15_spill] sm:$0xff] %v3323_v0  ;;  %v3409_v57 = vld [vmem:[#allocation2 + $0x168] sm:$0xff] }
  0x9e   : > { %4388 = vst [vmem:[#allocation16_spill] sm:$0xff] %v3339_v31  ;;  %v3381_v20 = vsel %vm668_vm3, %v700_v44, %v702_v24  ;;  %1991 = vmatpush.msra.mxu3 %v2637_v15  ;;  %1657 = vmatpush.msra.mxu1 %v2605_v12  ;;  %v3396_v44 = vld [vmem:[#allocation2 + $0x108] sm:$0xff]  ;;  %v3398_v24 = vld [vmem:[#allocation2 + $0x110] sm:$0xff]  ;;  %v705_v15 = vrot.slane %v3390_v7, 1  ;;  %v744_v22 = vrot.slane %v3409_v57, 1 }
  0x9f   : > { %4389 = vst [vmem:[#allocation17_spill] sm:$0xff] %v3351_v32  ;;  %1503 = vmatpush.msrb.mxu0 %v2574_v59  ;;  %v3411_v5 = vld [vmem:[#allocation2 + $0x170] sm:$0xff]  ;;  %v724_v59 = vrot.slane %v3396_v44, 1  ;;  %v725_v2 = vrot.slane %v3398_v24, 1 }
  0xa0   : > { %4390 = vst [vmem:[#allocation18_spill] sm:$0xff] %v3354_v51  ;;  %v745_v30 = vrot.slane %v3411_v5, 1 }
  0xa1   : > { %850 = vmatmul.f32.gmra.mxu1 %v3323_v0  ;;  %4391 = vst [vmem:[#allocation19_spill] sm:$0xff] %v3381_v20  ;;  %2160 = vmatpush.msra.mxu0 %v2653_v35  ;;  %v3444_v35 = vld [vmem:[#allocation2 + $0x178] sm:$0x3] }
  0xa2   : > { %v3361_v56 = vld [vmem:[#allocation2 + $0x48] sm:$0xff]  ;;  %4392 = vst [vmem:[#allocation20_spill] sm:$0xff] %v3393_v50  ;;  %v3437_v32 = vsel %vm668_vm3, %v744_v22, %v745_v30  ;;  %v2604_v22 = vld [vmem:[%s4302_s5 + $0x2f0] sm:$0xff] }
  0xa3   : > { %874 = vmatmul.f32.gmra.mxu2 %v3339_v31  ;;  %v3367_v1 = vld [vmem:[#allocation2 + $0x50] sm:$0xff]  ;;  %v684_v39 = vrot.slane %v3361_v56, 1  ;;  %4393 = vst [vmem:[#allocation21_spill] sm:$0xff] %v3396_v44  ;;  %v3413_v12 = vld [vmem:[#allocation2 + $0x58] sm:$0x3]  ;;  %1658 = vmatpush.msra.mxu1 %v2604_v22 }
  0xa4   : > { %v685_v45 = vrot.slane %v3367_v1, 1  ;;  %4394 = vst [vmem:[#allocation22_spill] sm:$0xff] %v3398_v24  ;;  %v687_v55 = vrot.slane %v3413_v12, 1  ;;  %v3428_v44 = vld [vmem:[#allocation2 + $0xb8] sm:$0x3] }
  0xa5   : > { %898 = vmatmul.f32.gmra.mxu3 %v3354_v51  ;;  %829 = vmatmul.f32.gmra.mxu0 %v3358_v52  ;;  %v3388_v51 = vld [vmem:[#allocation2 + $0xa8] sm:$0xff]  ;;  %4395 = vst [vmem:[#allocation23_spill] sm:$0xff] %v3401_v53  ;;  %v3434_v24 = vld [vmem:[#allocation2 + $0x118] sm:$0x3] }
  0xa6   : > { %v704_v19 = vrot.slane %v3388_v51, 1  ;;  %v3406_v37 = vsel %vm668_vm3, %v684_v39, %v685_v45  ;;  %4396 = vst [vmem:[#allocation24_spill] sm:$0xff] %v3409_v57  ;;  %v3441_v57 = vsel %vm668_vm3, %v685_v45, %v687_v55  ;;  %v2636_v55 = vld [vmem:[%s4302_s5 + $0x3f0] sm:$0xff] }
  0xa7   : > { %4397 = vst [vmem:[#allocation25_spill] sm:$0xff] %v3411_v5  ;;  %v727_v5 = vrot.slane %v3434_v24, 1  ;;  %1992 = vmatpush.msra.mxu3 %v2636_v55  ;;  %v2634_v55 = vld [vmem:[%s4302_s5 + $0x3e0] sm:$0xff] }
  0xa8   : > { %v3423_v39 = vsel %vm668_vm3, %v704_v19, %v705_v15  ;;  %4400 = vst [vmem:[#allocation28_spill] sm:$0xff] %v3434_v24  ;;  %v707_v19 = vrot.slane %v3428_v44, 1  ;;  %v1025_v24 = vrot.slane %v2913_v42, 2 }
  0xa9   : > { %853 = vmatmul.f32.gmra.mxu1 %v3381_v20  ;;  %4398 = vst [vmem:[#allocation26_spill] sm:$0xff] %v3423_v39 }
  0xaa   : > { %4401 = vst [vmem:[#allocation29_spill] sm:$0xff] %v3437_v32  ;;  %v3459_v45 = vsel %vm668_vm3, %v705_v15, %v707_v19  ;;  %v2652_v15 = vld [vmem:[%s4302_s5 + $0x470] sm:$0xff] }
  0xab   : > { %877 = vmatmul.f32.gmra.mxu2 %v3393_v50  ;;  %4402 = vst [vmem:[#allocation30_spill] sm:$0xff] %v3459_v45  ;;  %2161 = vmatpush.msra.mxu0 %v2652_v15  ;;  %v1036_v15 = vrot.slane %v3264_v11, 2 }
  0xad   : > { %901 = vmatmul.f32.gmra.mxu3 %v3401_v53  ;;  %832 = vmatmul.f32.gmra.mxu0 %v3406_v37  ;;  %v3431_v53 = vsel %vm668_vm3, %v724_v59, %v725_v2  ;;  %v2620_v59 = vld [vmem:[%s4302_s5 + $0x370] sm:$0xff] }
  0xae   : > { %4399 = vst [vmem:[#allocation27_spill] sm:$0xff] %v3431_v53  ;;  %1820 = vmatpush.msra.mxu2 %v2620_v59  ;;  %v3463_v59 = vsel %vm668_vm3, %v725_v2, %v727_v5  ;;  %v1027_v5 = vsel %vm1024_vm4, %v1025_v24, %v1026_v38  ;;  %v1031_v2 = vrot.slane %v3148_v26, 2 }
  0xaf   : > { %4403 = vst [vmem:[#allocation31_spill] sm:$0xff] %v3463_v59 }
  0xb1   : > { %856 = vmatmul.f32.gmra.mxu1 %v3423_v39 }
  0xb3   : > { %880 = vmatmul.f32.gmra.mxu2 %v3431_v53  ;;  %v747_v53 = vrot.slane %v3444_v35, 1 }
  0xb5   : > { %904 = vmatmul.f32.gmra.mxu3 %v3437_v32  ;;  %835 = vmatmul.f32.gmra.mxu0 %v3441_v57  ;;  %v3467_v32 = vsel %vm668_vm3, %v745_v30, %v747_v53  ;;  %v2619_v30 = vld [vmem:[%s4302_s5 + $0x368] sm:$0xff]  ;;  %v1028_v53 = vrot.slane %v2977_v21, 2  ;;  %v1030_v21 = vrot.slane %v3134_v17, 2 }
  0xb6   : > { %4404 = vst [vmem:[#allocation32_spill] sm:$0xff] %v3467_v32  ;;  %1821 = vmatpush.msra.mxu2 %v2619_v30 }
  0xb7   : > { %v1029_v24 = vsel %vm1024_vm4, %v1026_v38, %v1028_v53  ;;  %v3501_v19 = vsel %vm1024_vm4, %v1030_v21, %v1031_v2  ;;  %v1033_v38 = vrot.slane %v3156_v33, 2  ;;  %v1035_v33 = vrot.slane %v3254_v61, 2  ;;  %v2649_v21 = vld [vmem:[%s4302_s5 + $0x458] sm:$0xff] }
  0xb8   : > { %v1038_v53 = vrot.slane %v3307_v54, 2  ;;  %v1040_v54 = vrot.slane %v3361_v56, 2 }
  0xb9   : > { %859 = vmatmul.f32.gmra.mxu1 %v3459_v45  ;;  %v3518_v22 = vsel %vm1024_vm4, %v1031_v2, %v1033_v38  ;;  %v3530_v30 = vsel %vm1024_vm4, %v1035_v33, %v1036_v15  ;;  %v2648_v33 = vld [vmem:[%s4302_s5 + $0x450] sm:$0xff] }
  0xbb   : > { %883 = vmatmul.f32.gmra.mxu2 %v3463_v59 }
  0xbd   : > { %907 = vmatmul.f32.gmra.mxu3 %v3467_v32  ;;  %1504 = vmatmul.f32.vlgmr.msrb.gmra.mxu0 %v3177_v49  ;;  %v2635_v49 = vld [vmem:[%s4302_s5 + $0x3e8] sm:$0xff] }
  0xbe   : > { %1993 = vmatpush.msra.mxu3 %v2635_v49  ;;  %v2633_v49 = vld [vmem:[%s4302_s5 + $0x3d8] sm:$0xff] }
  0xc0   : > { %1994 = vmatpush.msra.mxu3 %v2634_v55 }
  0xc1   : > { %927 = vmatmul.f32.vlgmr.msrb.gmra.mxu1 %v2913_v42  ;;  %v2603_v42 = vld [vmem:[%s4302_s5 + $0x2e8] sm:$0xff] }
  0xc2   : > { %1659 = vmatpush.msra.mxu1 %v2603_v42  ;;  %1995 = vmatpush.msra.mxu3 %v2633_v49  ;;  %v3547_v42 = vsel %vm1024_vm4, %v1036_v15, %v1038_v53  ;;  %v1048_v53 = vrot.slane %v3059_v25, 2  ;;  %v2631_v49 = vld [vmem:[%s4302_s5 + $0x3c8] sm:$0xff] }
  0xc3   : > { %1170 = vmatmul.f32.vlgmr.msrb.gmra.mxu2 %v1027_v5  ;;  %v2650_v5 = vld [vmem:[%s4302_s5 + $0x460] sm:$0xff] }
  0xc5   : > { %1332 = vmatmul.f32.vlgmr.msrb.gmra.mxu3 %v3134_v17  ;;  %1507 = vmatmul.f32.gmra.mxu0 %v3229_v28  ;;  %v2651_v28 = vld [vmem:[%s4302_s5 + $0x468] sm:$0xff] }
  0xc6   : > { %2162 = vmatpush.msra.mxu0 %v2651_v28  ;;  %v1043_v28 = vrot.slane %v3413_v12, 2  ;;  %v1045_v12 = vrot.slane %v3032_v3, 2 }
  0xc8   : > { %2163 = vmatpush.msra.mxu0 %v2650_v5 }
  0xc9   : > { %930 = vmatmul.f32.gmra.mxu1 %v2915_v43  ;;  %v2618_v43 = vld [vmem:[%s4302_s5 + $0x360] sm:$0xff] }
  0xca   : > { %1822 = vmatpush.msra.mxu2 %v2618_v43  ;;  %2164 = vmatpush.msra.mxu0 %v2649_v21  ;;  %v2632_v43 = vld [vmem:[%s4302_s5 + $0x3d0] sm:$0xff] }
  0xcb   : > { %1173 = vmatmul.f32.gmra.mxu2 %v1029_v24  ;;  %v1041_v24 = vrot.slane %v3367_v1, 2  ;;  %1996 = vmatpush.msra.mxu3 %v2632_v43  ;;  %v2647_v43 = vld [vmem:[%s4302_s5 + $0x448] sm:$0xff] }
  0xcc   : > { %2165 = vmatpush.msra.mxu0 %v2648_v33 }
  0xcd   : > { %1335 = vmatmul.f32.gmra.mxu3 %v3148_v26  ;;  %1510 = vmatmul.f32.gmra.mxu0 %v3304_v46  ;;  %v3559_v2 = vsel %vm1024_vm4, %v1040_v54, %v1041_v24  ;;  %v3578_v55 = vsel %vm1024_vm4, %v1041_v24, %v1043_v28  ;;  %v2599_v54 = vld [vmem:[%s4302_s5 + $0x2c8] sm:$0xff]  ;;  %v1051_v28 = vrot.slane %v3109_v60, 2 }
  0xce   : > { %1997 = vmatpush.msra.mxu3 %v2631_v49  ;;  %2166 = vmatpush.msra.mxu0 %v2647_v43  ;;  %v2630_v49 = vld [vmem:[%s4302_s5 + $0x3c0] sm:$0xff] }
  0xd0   : > { %1998 = vmatpush.msra.mxu3 %v2630_v49  ;;  %v1056_v49 = vrot.slane %v3272_v18, 2 }
  0xd1   : > { %933 = vmatmul.f32.gmra.mxu1 %v3134_v17  ;;  %v2602_v17 = vld [vmem:[%s4302_s5 + $0x2e0] sm:$0xff] }
  0xd2   : > { %1660 = vmatpush.msra.mxu1 %v2602_v17  ;;  %v1046_v17 = vrot.slane %v3036_v8, 2 }
  0xd3   : > { %1176 = vmatmul.f32.gmra.mxu2 %v3501_v19 }
  0xd4   : > { %v3592_v5 = vsel %vm1024_vm4, %v1045_v12, %v1046_v17  ;;  %v3617_v24 = vsel %vm1024_vm4, %v1046_v17, %v1048_v53  ;;  %v1053_v53 = vrot.slane %v3174_v47, 2 }
  0xd5   : > { %1338 = vmatmul.f32.gmra.mxu3 %v3254_v61  ;;  %1513 = vmatmul.f32.gmra.mxu0 %v3358_v52 }
  0xd6   : > { %v3662_v43 = vsel %vm1024_vm4, %v1051_v28, %v1053_v53 }
  0xd9   : > { %936 = vmatmul.f32.gmra.mxu1 %v3148_v26  ;;  %v2617_v26 = vld [vmem:[%s4302_s5 + $0x358] sm:$0xff] }
  0xda   : > { %1823 = vmatpush.msra.mxu2 %v2617_v26  ;;  %v2615_v26 = vld [vmem:[%s4302_s5 + $0x348] sm:$0xff] }
  0xdb   : > { %1179 = vmatmul.f32.gmra.mxu2 %v3518_v22 }
  0xdd   : > { %1341 = vmatmul.f32.gmra.mxu3 %v3264_v11  ;;  %1516 = vmatmul.f32.gmra.mxu0 %v3406_v37 }
  0xe1   : > { %939 = vmatmul.f32.gmra.mxu1 %v3254_v61  ;;  %v2601_v61 = vld [vmem:[%s4302_s5 + $0x2d8] sm:$0xff] }
  0xe2   : > { %1661 = vmatpush.msra.mxu1 %v2601_v61 }
  0xe3   : > { %1182 = vmatmul.f32.gmra.mxu2 %v3530_v30 }
  0xe5   : > { %1344 = vmatmul.f32.gmra.mxu3 %v3361_v56  ;;  %1519 = vmatmul.f32.gmra.mxu0 %v3441_v57 }
  0xe9   : > { %942 = vmatmul.f32.gmra.mxu1 %v3264_v11  ;;  %v2616_v11 = vld [vmem:[%s4302_s5 + $0x350] sm:$0xff] }
  0xea   : > { %1824 = vmatpush.msra.mxu2 %v2616_v11  ;;  %v1050_v11 = vrot.slane %v3107_v48, 2 }
  0xeb   : > { %1185 = vmatmul.f32.gmra.mxu2 %v3547_v42 }
  0xec   : > { %1825 = vmatpush.msra.mxu2 %v2615_v26  ;;  %v3637_v17 = vsel %vm1024_vm4, %v1050_v11, %v1051_v28  ;;  %v2614_v26 = vld [vmem:[%s4302_s5 + $0x340] sm:$0xff] }
  0xed   : > { %1347 = vmatmul.f32.gmra.mxu3 %v3367_v1  ;;  %1522 = vmatmul.f32.gmra.mxu0 %v3067_v29  ;;  %v3572_v38 = vpop.f32.mrf.mxu0  ;;  %v2598_v11 = vld [vmem:[%s4302_s5 + $0x2c0] sm:$0xff] }
  0xee   : > { %1826 = vmatpush.msra.mxu2 %v2614_v26 }
  0xf1   : > { %945 = vmatmul.f32.gmra.mxu1 %v3361_v56  ;;  %v2600_v56 = vld [vmem:[%s4302_s5 + $0x2d0] sm:$0xff] }
  0xf2   : > { %1662 = vmatpush.msra.mxu1 %v2600_v56 }
  0xf3   : > { %1188 = vmatmul.f32.gmra.mxu2 %v3559_v2 }
  0xf4   : > { %1663 = vmatpush.msra.mxu1 %v2599_v54 }
  0xf5   : > { %1350 = vmatmul.f32.gmra.mxu3 %v3032_v3  ;;  %1525 = vmatmul.f32.gmra.mxu0 %v3113_v63 }
  0xf6   : > { %1664 = vmatpush.msra.mxu1 %v2598_v11  ;;  %v2646_v11 = vld [vmem:[%s4302_s5 + $0x440] sm:$0xff] }
  0xf7   : > { %2167 = vmatpush.msra.mxu0 %v2646_v11 }
  0xf9   : > { %948 = vmatmul.f32.gmra.mxu1 %v3367_v1  ;;  %v3594_v1 = vpop.f32.mrf.mxu0 }
  0xfb   : > { %1191 = vmatmul.f32.gmra.mxu2 %v3578_v55 }
  0xfd   : > { %1353 = vmatmul.f32.gmra.mxu3 %v3036_v8  ;;  %1528 = vmatmul.f32.gmra.mxu0 %v3197_v62 }
  0xfe   : > { %v3589_v15 = vpop.f32.mrf.mxu1 }
 0x101   : > { %951 = vmatmul.f32.gmra.mxu1 %v3032_v3 }
 0x103   : > { %1194 = vmatmul.f32.gmra.mxu2 %v3592_v5 }
 0x105   : > { %1356 = vmatmul.f32.gmra.mxu3 %v3107_v48  ;;  %1531 = vmatmul.f32.gmra.mxu0 %v3251_v58 }
 0x106   : > { %v3607_v61 = vpop.f32.mrf.mxu2  ;;  %v3609_v3 = vpop.f32.mrf.mxu1 }
 0x108   : > { %v3614_v25 = vpop.f32.mrf.mxu3 }
 0x109   : > { %4405 = vst [vmem:[#allocation33_spill] sm:$0xff] %v3614_v25  ;;  %954 = vmatmul.f32.gmra.mxu1 %v3036_v8 }
 0x10a   : > { %v3620_v21 = vpop.f32.mrf.mxu0 }
 0x10b   : > { %1197 = vmatmul.f32.gmra.mxu2 %v3617_v24 }
 0x10d   : > { %1359 = vmatmul.f32.gmra.mxu3 %v3109_v60  ;;  %1534 = vmatmul.f32.gmra.mxu0 %v3323_v0  ;;  %v1058_v0 = vrot.slane %v3333_v14, 2 }
 0x10e   : > { %v3630_v56 = vpop.f32.mrf.mxu2  ;;  %v3632_v12 = vpop.f32.mrf.mxu1 }
 0x10f   : > { %v3707_v14 = vsel %vm1024_vm4, %v1056_v49, %v1058_v0  ;;  %v2645_v0 = vld [vmem:[%s4302_s5 + $0x438] sm:$0xff] }
 0x110   : > { %v3634_v8 = vpop.f32.mrf.mxu3  ;;  %4411 = vst [vmem:[#allocation39_spill] sm:$0xff] %v3707_v14  ;;  %2168 = vmatpush.msra.mxu0 %v2645_v0 }
 0x111   : > { %4406 = vst [vmem:[#allocation34_spill] sm:$0xff] %v3634_v8  ;;  %957 = vmatmul.f32.gmra.mxu1 %v3107_v48 }
 0x112   : > { %v3640_v33 = vpop.f32.mrf.mxu0 }
 0x113   : > { %1200 = vmatmul.f32.gmra.mxu2 %v3637_v17 }
 0x115   : > { %1362 = vmatmul.f32.gmra.mxu3 %v3262_v10  ;;  %1537 = vmatmul.f32.gmra.mxu0 %v3381_v20  ;;  %v1055_v20 = vrot.slane %v3262_v10, 2 }
 0x116   : > { %v3652_v48 = vpop.f32.mrf.mxu2  ;;  %v3654_v54 = vpop.f32.mrf.mxu1 }
 0x118   : > { %v3659_v47 = vpop.f32.mrf.mxu3 }
 0x119   : > { %4407 = vst [vmem:[#allocation35_spill] sm:$0xff] %v3659_v47  ;;  %960 = vmatmul.f32.gmra.mxu1 %v3109_v60  ;;  %v3682_v47 = vsel %vm1024_vm4, %v1055_v20, %v1056_v49  ;;  %v2629_v20 = vld [vmem:[%s4302_s5 + $0x3b8] sm:$0xff] }
 0x11a   : > { %v3665_v26 = vpop.f32.mrf.mxu0  ;;  %4409 = vst [vmem:[#allocation37_spill] sm:$0xff] %v3682_v47  ;;  %1999 = vmatpush.msra.mxu3 %v2629_v20  ;;  %v1061_v20 = vrot.slane %v3390_v7, 2 }
 0x11b   : > { %1203 = vmatmul.f32.gmra.mxu2 %v3662_v43 }
 0x11d   : > { %1365 = vmatmul.f32.gmra.mxu3 %v3272_v18  ;;  %1540 = vmatmul.f32.gmra.mxu0 %v3423_v39  ;;  %v2613_v39 = vld [vmem:[%s4302_s5 + $0x338] sm:$0xff] }
 0x11e   : > { %v3675_v28 = vpop.f32.mrf.mxu2  ;;  %v3677_v53 = vpop.f32.mrf.mxu1  ;;  %1827 = vmatpush.msra.mxu2 %v2613_v39 }
 0x120   : > { %v3679_v60 = vpop.f32.mrf.mxu3 }
 0x121   : > { %4408 = vst [vmem:[#allocation36_spill] sm:$0xff] %v3679_v60  ;;  %963 = vmatmul.f32.gmra.mxu1 %v3262_v10  ;;  %v2597_v60 = vld [vmem:[%s4302_s5 + $0x2b8] sm:$0xff] }
 0x122   : > { %v3685_v8 = vpop.f32.mrf.mxu0  ;;  %1665 = vmatpush.msra.mxu1 %v2597_v60 }
 0x123   : > { %1206 = vmatmul.f32.gmra.mxu2 %v3682_v47  ;;  %v1063_v47 = vrot.slane %v3428_v44, 2  ;;  %v3756_v44 = vld [vmem:[#allocation2 + $0xc0] sm:$0xff] }
 0x124   : > { %4416 = vst [vmem:[#allocation44_spill] sm:$0xff] %v3756_v44 }
 0x125   : > { %1368 = vmatmul.f32.gmra.mxu3 %v3388_v51  ;;  %1543 = vmatmul.f32.gmra.mxu0 %v3459_v45  ;;  %v1060_v45 = vrot.slane %v3388_v51, 2 }
 0x126   : > { %v3697_v10 = vpop.f32.mrf.mxu2  ;;  %v3699_v11 = vpop.f32.mrf.mxu1 }
 0x128   : > { %v3704_v25 = vpop.f32.mrf.mxu3 }
 0x129   : > { %4410 = vst [vmem:[#allocation38_spill] sm:$0xff] %v3704_v25  ;;  %966 = vmatmul.f32.gmra.mxu1 %v3272_v18  ;;  %v3727_v25 = vsel %vm1024_vm4, %v1060_v45, %v1061_v20  ;;  %v2628_v45 = vld [vmem:[%s4302_s5 + $0x3b0] sm:$0xff] }
 0x12a   : > { %v3710_v39 = vpop.f32.mrf.mxu0  ;;  %4413 = vst [vmem:[#allocation41_spill] sm:$0xff] %v3727_v25  ;;  %2000 = vmatpush.msra.mxu3 %v2628_v45  ;;  %v1066_v45 = vrot.slane %v3056_v23, 2 }
 0x12b   : > { %1209 = vmatmul.f32.gmra.mxu2 %v3707_v14 }
 0x12d   : > { %1371 = vmatmul.f32.gmra.mxu3 %v3390_v7  ;;  %1546 = vmatmul.f32.gmra.mxu0 %v3084_v40  ;;  %v2612_v40 = vld [vmem:[%s4302_s5 + $0x330] sm:$0xff] }
 0x12e   : > { %v3720_v49 = vpop.f32.mrf.mxu2  ;;  %v3722_v60 = vpop.f32.mrf.mxu1  ;;  %1828 = vmatpush.msra.mxu2 %v2612_v40  ;;  %v3752_v40 = vsel %vm1024_vm4, %v1061_v20, %v1063_v47  ;;  %v2644_v47 = vld [vmem:[%s4302_s5 + $0x430] sm:$0xff] }
 0x12f   : > { %4415 = vst [vmem:[#allocation43_spill] sm:$0xff] %v3752_v40  ;;  %2169 = vmatpush.msra.mxu0 %v2644_v47 }
 0x130   : > { %v3724_v18 = vpop.f32.mrf.mxu3 }
 0x131   : > { %4412 = vst [vmem:[#allocation40_spill] sm:$0xff] %v3724_v18  ;;  %969 = vmatmul.f32.gmra.mxu1 %v3388_v51  ;;  %v2596_v18 = vld [vmem:[%s4302_s5 + $0x2b0] sm:$0xff] }
 0x132   : > { %v3730_v14 = vpop.f32.mrf.mxu0  ;;  %1666 = vmatpush.msra.mxu1 %v2596_v18 }
 0x133   : > { %1212 = vmatmul.f32.gmra.mxu2 %v3727_v25 }
 0x135   : > { %1374 = vmatmul.f32.gmra.mxu3 %v3046_v16  ;;  %1549 = vmatmul.f32.gmra.mxu0 %v3130_v13  ;;  %v1065_v13 = vrot.slane %v3756_v44, 2 }
 0x136   : > { %v3742_v51 = vpop.f32.mrf.mxu2  ;;  %v3744_v0 = vpop.f32.mrf.mxu1 }
 0x138   : > { %v3749_v25 = vpop.f32.mrf.mxu3 }
 0x139   : > { %4414 = vst [vmem:[#allocation42_spill] sm:$0xff] %v3749_v25  ;;  %972 = vmatmul.f32.gmra.mxu1 %v3390_v7  ;;  %v3770_v25 = vsel %vm1024_vm4, %v1065_v13, %v1066_v45  ;;  %v2627_v13 = vld [vmem:[%s4302_s5 + $0x3a8] sm:$0xff] }
 0x13a   : > { %v1505_v16 = vpop.f32.mrf.mxu0  ;;  %4419 = vst [vmem:[#allocation47_spill] sm:$0xff] %v3770_v25  ;;  %2001 = vmatpush.msra.mxu3 %v2627_v13  ;;  %v1071_v13 = vrot.slane %v3125_v9, 2 }
 0x13b   : > { %1215 = vmatmul.f32.gmra.mxu2 %v3752_v40 }
 0x13d   : > { %1377 = vmatmul.f32.gmra.mxu3 %v3056_v23  ;;  %1552 = vmatmul.f32.gmra.mxu0 %v3208_v4  ;;  %v2611_v23 = vld [vmem:[%s4302_s5 + $0x328] sm:$0xff]  ;;  %v1068_v4 = vrot.slane %v3079_v36, 2 }
 0x13e   : > { %v3765_v20 = vpop.f32.mrf.mxu2  ;;  %v928_v7 = vpop.f32.mrf.mxu1  ;;  %1829 = vmatpush.msra.mxu2 %v2611_v23 }
 0x13f   : > { %4417 = vst [vmem:[#allocation45_spill] sm:$0xff] %v3765_v20  ;;  %v929_v58 = vadd.f32 %v928_v7, %v3572_v38  ;;  %v3788_v23 = vsel %vm1024_vm4, %v1066_v45, %v1068_v4  ;;  %v3790_v7 = vld [vmem:[#allocation2 + $0xc8] sm:$0xff] }
 0x140   : > { %v3767_v18 = vpop.f32.mrf.mxu3  ;;  %v2643_v4 = vld [vmem:[%s4302_s5 + $0x428] sm:$0xff] }
 0x141   : > { %4418 = vst [vmem:[#allocation46_spill] sm:$0xff] %v3767_v18  ;;  %975 = vmatmul.f32.gmra.mxu1 %v3756_v44  ;;  %2170 = vmatpush.msra.mxu0 %v2643_v4 }
 0x142   : > { %v1508_v40 = vpop.f32.mrf.mxu0 }
 0x143   : > { %1218 = vmatmul.f32.gmra.mxu2 %v3770_v25  ;;  %v2595_v25 = vld [vmem:[%s4302_s5 + $0x2a8] sm:$0xff] }
 0x144   : > { %1667 = vmatpush.msra.mxu1 %v2595_v25 }
 0x145   : > { %1380 = vmatmul.f32.gmra.mxu3 %v3123_v6  ;;  %1555 = vmatmul.f32.gmra.mxu0 %v3284_v34 }
 0x146   : > { %v1171_v47 = vpop.f32.mrf.mxu2  ;;  %v931_v18 = vpop.f32.mrf.mxu1 }
 0x147   : > { %v1267_v44 = vadd.f32 %v1171_v47, %v929_v58  ;;  %v1070_v58 = vrot.slane %v3123_v6, 2  ;;  %v932_v47 = vadd.f32 %v931_v18, %v3594_v1 }
 0x148   : > { %v1333_v36 = vpop.f32.mrf.mxu3 }
 0x149   : > { %v1429_v38 = vadd.f32 %v1333_v36, %v1267_v44  ;;  %978 = vmatmul.f32.gmra.mxu1 %v3790_v7  ;;  %v3805_v36 = vsel %vm1024_vm4, %v1070_v58, %v1071_v13 }
 0x14a   : > { %v1511_v34 = vpop.f32.mrf.mxu0 }
 0x14b   : > { %v3793_v20 = vadd.f32 %v1505_v16, %v1429_v38  ;;  %1221 = vmatmul.f32.gmra.mxu2 %v3788_v23 }
 0x14d   : > { %1383 = vmatmul.f32.gmra.mxu3 %v3125_v9  ;;  %1558 = vmatmul.f32.gmra.mxu0 %v3339_v31  ;;  %v2610_v9 = vld [vmem:[%s4302_s5 + $0x320] sm:$0xff]  ;;  %v1073_v31 = vrot.slane %v3226_v27, 2 }
 0x14e   : > { %v1174_v25 = vpop.f32.mrf.mxu2  ;;  %v934_v44 = vpop.f32.mrf.mxu1  ;;  %1830 = vmatpush.msra.mxu2 %v2610_v9  ;;  %v1075_v9 = vrot.slane %v3296_v41, 2 }
 0x14f   : > { %v1268_v16 = vadd.f32 %v1174_v25, %v932_v47  ;;  %v935_v47 = vadd.f32 %v934_v44, %v3620_v21  ;;  %v2594_v25 = vld [vmem:[%s4302_s5 + $0x2a0] sm:$0xff] }
 0x150   : > { %v1336_v45 = vpop.f32.mrf.mxu3  ;;  %1668 = vmatpush.msra.mxu1 %v2594_v25  ;;  %v3827_v44 = vld [vmem:[#allocation2 + $0xe0] sm:$0xff] }
 0x151   : > { %v1430_v38 = vadd.f32 %v1336_v45, %v1268_v16  ;;  %981 = vmatmul.f32.gmra.mxu1 %v3123_v6  ;;  %v2626_v6 = vld [vmem:[%s4302_s5 + $0x3a0] sm:$0xff]  ;;  %v3825_v16 = vsel %vm1024_vm4, %v1071_v13, %v1073_v31  ;;  %v4423_v31 = vld [vmem:[#allocation27_spill] sm:$0xff] }
 0x152   : > { %v1514_v1 = vpop.f32.mrf.mxu0  ;;  %2002 = vmatpush.msra.mxu3 %v2626_v6  ;;  %v2642_v13 = vld [vmem:[%s4302_s5 + $0x420] sm:$0xff] }
 0x153   : > { %v3808_v18 = vadd.f32 %v1508_v40, %v1430_v38  ;;  %1224 = vmatmul.f32.gmra.mxu2 %v3805_v36  ;;  %2171 = vmatpush.msra.mxu0 %v2642_v13  ;;  %v4426_v13 = vld [vmem:[#allocation21_spill] sm:$0xff] }
 0x155   : > { %4420 = vst [vmem:[#allocation48_spill] sm:$0xff] %v3808_v18  ;;  %1386 = vmatmul.f32.gmra.mxu3 %v3296_v41  ;;  %1561 = vmatmul.f32.gmra.mxu0 %v3393_v50  ;;  %v4425_v50 = vld [vmem:[#allocation17_spill] sm:$0xff] }
 0x156   : > { %v1177_v40 = vpop.f32.mrf.mxu2  ;;  %v937_v58 = vpop.f32.mrf.mxu1  ;;  %v1078_v18 = vrot.slane %v4425_v50, 2 }
 0x157   : > { %v1269_v4 = vadd.f32 %v1177_v40, %v935_v47  ;;  %v4422_v47 = vld [vmem:[#allocation14_spill] sm:$0xff]  ;;  %v938_v40 = vadd.f32 %v937_v58, %v3640_v33 }
 0x158   : > { %v1339_v27 = vpop.f32.mrf.mxu3  ;;  %v1076_v6 = vrot.slane %v4422_v47, 2 }
 0x159   : > { %v1431_v21 = vadd.f32 %v1339_v27, %v1269_v4  ;;  %984 = vmatmul.f32.gmra.mxu1 %v3827_v44 }
 0x15a   : > { %v1517_v45 = vpop.f32.mrf.mxu0 }
 0x15b   : > { %v3830_v38 = vadd.f32 %v1511_v34, %v1431_v21  ;;  %1227 = vmatmul.f32.gmra.mxu2 %v3825_v16  ;;  %v3842_v21 = vsel %vm1024_vm4, %v1075_v9, %v1076_v6 }
 0x15d   : > { %4421 = vst [vmem:[#allocation49_spill] sm:$0xff] %v3830_v38  ;;  %1389 = vmatmul.f32.gmra.mxu3 %v4422_v47  ;;  %1564 = vmatmul.f32.gmra.mxu0 %v4423_v31  ;;  %v2609_v31 = vld [vmem:[%s4302_s5 + $0x318] sm:$0xff] }
 0x15e   : > { %v1180_v4 = vpop.f32.mrf.mxu2  ;;  %v940_v25 = vpop.f32.mrf.mxu1  ;;  %1831 = vmatpush.msra.mxu2 %v2609_v31  ;;  %v3862_v31 = vsel %vm1024_vm4, %v1076_v6, %v1078_v18  ;;  %v2641_v18 = vld [vmem:[%s4302_s5 + $0x418] sm:$0xff] }
 0x15f   : > { %v1270_v34 = vadd.f32 %v1180_v4, %v938_v40  ;;  %v941_v40 = vadd.f32 %v940_v25, %v3665_v26  ;;  %v2593_v4 = vld [vmem:[%s4302_s5 + $0x298] sm:$0xff]  ;;  %2172 = vmatpush.msra.mxu0 %v2641_v18  ;;  %v3888_v18 = vld [vmem:[#allocation2 + $0x120] sm:$0xff] }
 0x160   : > { %v1342_v27 = vpop.f32.mrf.mxu3  ;;  %1669 = vmatpush.msra.mxu1 %v2593_v4 }
 0x161   : > { %v1432_v38 = vadd.f32 %v1342_v27, %v1270_v34  ;;  %987 = vmatmul.f32.gmra.mxu1 %v3296_v41  ;;  %v2625_v41 = vld [vmem:[%s4302_s5 + $0x398] sm:$0xff]  ;;  %v1080_v27 = vrot.slane %v4426_v13, 2 }
 0x162   : > { %v1520_v33 = vpop.f32.mrf.mxu0  ;;  %2003 = vmatpush.msra.mxu3 %v2625_v41 }
 0x163   : > { %v3845_v58 = vadd.f32 %v1514_v1, %v1432_v38  ;;  %1230 = vmatmul.f32.gmra.mxu2 %v3842_v21 }
 0x165   : > { %4424 = vst [vmem:[#allocation14_spill] sm:$0xff] %v3845_v58  ;;  %1392 = vmatmul.f32.gmra.mxu3 %v4426_v13  ;;  %1567 = vmatmul.f32.gmra.mxu0 %v3463_v59  ;;  %v4429_v59 = vld [vmem:[#allocation6_spill] sm:$0xff] }
 0x166   : > { %v1183_v1 = vpop.f32.mrf.mxu2  ;;  %v943_v38 = vpop.f32.mrf.mxu1 }
 0x167   : > { %v1271_v9 = vadd.f32 %v1183_v1, %v941_v40  ;;  %v4428_v40 = vld [vmem:[#allocation22_spill] sm:$0xff]  ;;  %v944_v1 = vadd.f32 %v943_v38, %v3685_v8 }
 0x168   : > { %v1345_v50 = vpop.f32.mrf.mxu3  ;;  %v1081_v41 = vrot.slane %v4428_v40, 2  ;;  %4432 = vst [vmem:[#allocation22_spill] sm:$0xff] %v3888_v18 }
 0x169   : > { %v1433_v26 = vadd.f32 %v1345_v50, %v1271_v9  ;;  %990 = vmatmul.f32.gmra.mxu1 %v4422_v47 }
 0x16a   : > { %v1523_v25 = vpop.f32.mrf.mxu0  ;;  %v3877_v4 = vsel %vm1024_vm4, %v1080_v27, %v1081_v41  ;;  %v4433_v27 = vld [vmem:[#allocation8_spill] sm:$0xff] }
 0x16b   : > { %v3865_v34 = vadd.f32 %v1517_v45, %v1433_v26  ;;  %1233 = vmatmul.f32.gmra.mxu2 %v3862_v31  ;;  %v2608_v26 = vld [vmem:[%s4302_s5 + $0x310] sm:$0xff] }
 0x16c   : > { %1832 = vmatpush.msra.mxu2 %v2608_v26 }
 0x16d   : > { %4427 = vst [vmem:[#allocation17_spill] sm:$0xff] %v3865_v34  ;;  %1395 = vmatmul.f32.gmra.mxu3 %v4428_v40  ;;  %1570 = vmatmul.f32.gmra.mxu0 %v4429_v59  ;;  %v4431_v59 = vld [vmem:[#allocation28_spill] sm:$0xff] }
 0x16e   : > { %v1186_v47 = vpop.f32.mrf.mxu2  ;;  %v946_v6 = vpop.f32.mrf.mxu1  ;;  %v1083_v34 = vrot.slane %v4431_v59, 2  ;;  %v2592_v59 = vld [vmem:[%s4302_s5 + $0x290] sm:$0xff] }
 0x16f   : > { %v1272_v45 = vadd.f32 %v1186_v47, %v944_v1  ;;  %v947_v1 = vadd.f32 %v946_v6, %v3710_v39  ;;  %1670 = vmatpush.msra.mxu1 %v2592_v59 }
 0x170   : > { %v1348_v9 = vpop.f32.mrf.mxu3  ;;  %v3899_v39 = vsel %vm1024_vm4, %v1081_v41, %v1083_v34  ;;  %v4436_v34 = vld [vmem:[#allocation10_spill] sm:$0xff] }
 0x171   : > { %v1434_v50 = vadd.f32 %v1348_v9, %v1272_v45  ;;  %993 = vmatmul.f32.gmra.mxu1 %v4426_v13  ;;  %4434 = vst [vmem:[#allocation28_spill] sm:$0xff] %v3899_v39 }
 0x172   : > { %v1526_v8 = vpop.f32.mrf.mxu0 }
 0x173   : > { %v3880_v38 = vadd.f32 %v1520_v33, %v1434_v50  ;;  %1236 = vmatmul.f32.gmra.mxu2 %v3877_v4  ;;  %v2624_v33 = vld [vmem:[%s4302_s5 + $0x390] sm:$0xff] }
 0x174   : > { %2004 = vmatpush.msra.mxu3 %v2624_v33  ;;  %v1085_v33 = vrot.slane %v3888_v18, 2 }
 0x175   : > { %4430 = vst [vmem:[#allocation21_spill] sm:$0xff] %v3880_v38  ;;  %1398 = vmatmul.f32.gmra.mxu3 %v3888_v18  ;;  %1573 = vmatmul.f32.gmra.mxu0 %v4433_v27 }
 0x176   : > { %v1189_v13 = vpop.f32.mrf.mxu2  ;;  %v949_v47 = vpop.f32.mrf.mxu1 }
 0x177   : > { %v1273_v45 = vadd.f32 %v1189_v13, %v947_v1  ;;  %v3906_v1 = vld [vmem:[#allocation2 + $0x128] sm:$0xff]  ;;  %v950_v27 = vadd.f32 %v949_v47, %v3730_v14 }
 0x178   : > { %v1351_v9 = vpop.f32.mrf.mxu3  ;;  %v1086_v13 = vrot.slane %v3906_v1, 2 }
 0x179   : > { %v1435_v6 = vadd.f32 %v1351_v9, %v1273_v45  ;;  %996 = vmatmul.f32.gmra.mxu1 %v4428_v40  ;;  %v2640_v40 = vld [vmem:[%s4302_s5 + $0x410] sm:$0xff] }
 0x17a   : > { %v1529_v50 = vpop.f32.mrf.mxu0  ;;  %2173 = vmatpush.msra.mxu0 %v2640_v40  ;;  %v3916_v9 = vsel %vm1024_vm4, %v1085_v33, %v1086_v13  ;;  %v3926_v33 = vld [vmem:[#allocation2 + $0x138] sm:$0xff] }
 0x17b   : > { %v3902_v26 = vadd.f32 %v1523_v25, %v1435_v6  ;;  %1239 = vmatmul.f32.gmra.mxu2 %v3899_v39  ;;  %4437 = vst [vmem:[#allocation51_spill] sm:$0xff] %v3916_v9  ;;  %v1090_v39 = vrot.slane %v3926_v33, 2 }
 0x17d   : > { %4435 = vst [vmem:[#allocation50_spill] sm:$0xff] %v3902_v26  ;;  %1401 = vmatmul.f32.gmra.mxu3 %v3906_v1  ;;  %1576 = vmatmul.f32.gmra.mxu0 %v4436_v34  ;;  %v2607_v34 = vld [vmem:[%s4302_s5 + $0x308] sm:$0xff]  ;;  %v2722_v26 = vld [vmem:[#allocation2 + $0x130] sm:$0x3] }
 0x17e   : > { %v1192_v25 = vpop.f32.mrf.mxu2  ;;  %v952_v41 = vpop.f32.mrf.mxu1  ;;  %v1088_v40 = vrot.slane %v2722_v26, 2  ;;  %1833 = vmatpush.msra.mxu2 %v2607_v34  ;;  %v4440_v26 = vld [vmem:[#allocation3_spill] sm:$0xff] }
 0x17f   : > { %v1274_v45 = vadd.f32 %v1192_v25, %v950_v27  ;;  %v953_v27 = vadd.f32 %v952_v41, %v3589_v15  ;;  %v4439_v25 = vld [vmem:[#allocation13_spill] sm:$0xff]  ;;  %v2591_v15 = vld [vmem:[%s4302_s5 + $0x288] sm:$0xff] }
 0x180   : > { %v1354_v59 = vpop.f32.mrf.mxu3  ;;  %v3939_v38 = vsel %vm1024_vm4, %v1086_v13, %v1088_v40  ;;  %1671 = vmatpush.msra.mxu1 %v2591_v15  ;;  %v4444_v15 = vld [vmem:[#allocation18_spill] sm:$0xff] }
 0x181   : > { %v1436_v6 = vadd.f32 %v1354_v59, %v1274_v45  ;;  %999 = vmatmul.f32.gmra.mxu1 %v3888_v18  ;;  %v4441_v18 = vld [vmem:[#allocation4_spill] sm:$0xff] }
 0x182   : > { %v1532_v14 = vpop.f32.mrf.mxu0 }
 0x183   : > { %v3919_v47 = vadd.f32 %v1526_v8, %v1436_v6  ;;  %1242 = vmatmul.f32.gmra.mxu2 %v3916_v9  ;;  %v2623_v8 = vld [vmem:[%s4302_s5 + $0x388] sm:$0xff]  ;;  %v413_v6 = vld [vmem:[%s2813_s11 + $0xf0] sm:$0xff] }
 0x184   : > { %2005 = vmatpush.msra.mxu3 %v2623_v8  ;;  %v448_v34 = vmul.f32 %v4440_v26, %v413_v6  ;;  %v3948_v6 = vld [vmem:[#allocation2 + $0x140] sm:$0xff] }
 0x185   : > { %4438 = vst [vmem:[#allocation52_spill] sm:$0xff] %v3919_v47  ;;  %1404 = vmatmul.f32.gmra.mxu3 %v3926_v33  ;;  %1579 = vmatmul.f32.gmra.mxu0 %v4439_v25  ;;  %v1091_v13 = vrot.slane %v3948_v6, 2 }
 0x186   : > { %v1195_v45 = vpop.f32.mrf.mxu2  ;;  %v955_v59 = vpop.f32.mrf.mxu1  ;;  %v483_v9 = vadd.f32 %v4441_v18, %v448_v34  ;;  %4443 = vst [vmem:[#allocation4_spill] sm:$0xff] %v3948_v6 }
 0x187   : > { %v1275_v47 = vadd.f32 %v1195_v45, %v953_v27  ;;  %v414_v45 = vld [vmem:[%s2813_s11 + $0xf8] sm:$0xff] }
 0x188   : > { %v1357_v41 = vpop.f32.mrf.mxu3  ;;  %v515_v27 = vmax.f32 %v483_v9, 0.0  ;;  %v449_v40 = vmul.f32 %v4440_v26, %v414_v45  ;;  %v3960_v26 = vsel %vm1024_vm4, %v1090_v39, %v1091_v13 }
 0x189   : > { %v1437_v25 = vadd.f32 %v1357_v41, %v1275_v47  ;;  %1002 = vmatmul.f32.gmra.mxu1 %v3906_v1  ;;  %v956_v47 = vadd.f32 %v955_v59, %v3609_v3 }
 0x18a   : > { %v1535_v58 = vpop.f32.mrf.mxu0  ;;  %548 = vst [vmem:[#allocation2 + $0x181] sm:$0xff] %v515_v27  ;;  %v484_v34 = vadd.f32 %v4441_v18, %v449_v40  ;;  %v2606_v27 = vld [vmem:[%s4302_s5 + $0x300] sm:$0xff]  ;;  %v2725_v18 = vld [vmem:[#allocation2 + $0x148] sm:$0x3] }
 0x18b   : > { %v3943_v8 = vadd.f32 %v1529_v50, %v1437_v25  ;;  %1245 = vmatmul.f32.gmra.mxu2 %v3939_v38  ;;  %v2639_v50 = vld [vmem:[%s4302_s5 + $0x408] sm:$0xff]  ;;  %v1093_v40 = vrot.slane %v2725_v18, 2 }
 0x18c   : > { %2174 = vmatpush.msra.mxu0 %v2639_v50  ;;  %v516_v3 = vmax.f32 %v484_v34, 0.0  ;;  %1834 = vmatpush.msra.mxu2 %v2606_v27 }
 0x18d   : > { %4442 = vst [vmem:[#allocation3_spill] sm:$0xff] %v3943_v8  ;;  %1407 = vmatmul.f32.gmra.mxu3 %v3948_v6  ;;  %1582 = vmatmul.f32.gmra.mxu0 %v4444_v15 }
 0x18e   : > { %v1198_v9 = vpop.f32.mrf.mxu2  ;;  %v958_v25 = vpop.f32.mrf.mxu1  ;;  %549 = vst [vmem:[#allocation2 + $0x189] sm:$0xff] %v516_v3 }
 0x18f   : > { %v1276_v41 = vadd.f32 %v1198_v9, %v956_v47  ;;  %v959_v39 = vadd.f32 %v958_v25, %v3632_v12  ;;  %v3970_v47 = vld [vmem:[#allocation2 + $0x150] sm:$0xff]  ;;  %v3981_v12 = vsel %vm1024_vm4, %v1091_v13, %v1093_v40  ;;  %v4450_v13 = vld [vmem:[#allocation29_spill] sm:$0xff] }
 0x190   : > { %v1360_v8 = vpop.f32.mrf.mxu3  ;;  %4446 = vst [vmem:[#allocation54_spill] sm:$0xff] %v3970_v47  ;;  %v1095_v18 = vrot.slane %v3970_v47, 2  ;;  %v2638_v40 = vld [vmem:[%s4302_s5 + $0x400] sm:$0xff] }
 0x191   : > { %v1438_v59 = vadd.f32 %v1360_v8, %v1276_v41  ;;  %1005 = vmatmul.f32.gmra.mxu1 %v3926_v33  ;;  %v4447_v8 = vld [vmem:[#allocation23_spill] sm:$0xff]  ;;  %v2590_v41 = vld [vmem:[%s4302_s5 + $0x280] sm:$0xff]  ;;  %2175 = vmatpush.msra.mxu0 %v2638_v40  ;;  %v4453_v40 = vld [vmem:[#allocation24_spill] sm:$0xff] }
 0x192   : > { %v1538_v45 = vpop.f32.mrf.mxu0  ;;  %1672 = vmatpush.msra.mxu1 %v2590_v41 }
 0x193   : > { %v3963_v15 = vadd.f32 %v1532_v14, %v1438_v59  ;;  %1248 = vmatmul.f32.gmra.mxu2 %v3960_v26  ;;  %v2622_v14 = vld [vmem:[%s4302_s5 + $0x380] sm:$0xff] }
 0x194   : > { %2006 = vmatpush.msra.mxu3 %v2622_v14 }
 0x195   : > { %4445 = vst [vmem:[#allocation53_spill] sm:$0xff] %v3963_v15  ;;  %1410 = vmatmul.f32.gmra.mxu3 %v3970_v47  ;;  %1585 = vmatmul.f32.gmra.mxu0 %v4447_v8  ;;  %v2728_v8 = vld [vmem:[#allocation2 + $0x160] sm:$0x3] }
 0x196   : > { %v1201_v50 = vpop.f32.mrf.mxu2  ;;  %v961_v9 = vpop.f32.mrf.mxu1  ;;  %v1098_v15 = vrot.slane %v2728_v8, 2 }
 0x197   : > { %v1277_v34 = vadd.f32 %v1201_v50, %v959_v39  ;;  %v3988_v39 = vld [vmem:[#allocation2 + $0x158] sm:$0xff]  ;;  %v962_v50 = vadd.f32 %v961_v9, %v3654_v54 }
 0x198   : > { %v1363_v3 = vpop.f32.mrf.mxu3  ;;  %4449 = vst [vmem:[#allocation56_spill] sm:$0xff] %v3988_v39  ;;  %v1096_v14 = vrot.slane %v3988_v39, 2 }
 0x199   : > { %v1439_v25 = vadd.f32 %v1363_v3, %v1277_v34  ;;  %1008 = vmatmul.f32.gmra.mxu1 %v3948_v6 }
 0x19a   : > { %v1541_v59 = vpop.f32.mrf.mxu0 }
 0x19b   : > { %v3984_v27 = vadd.f32 %v1535_v58, %v1439_v25  ;;  %1251 = vmatmul.f32.gmra.mxu2 %v3981_v12  ;;  %v3998_v25 = vsel %vm1024_vm4, %v1095_v18, %v1096_v14 }
 0x19c   : > { %4451 = vst [vmem:[#allocation57_spill] sm:$0xff] %v3998_v25 }
 0x19d   : > { %4448 = vst [vmem:[#allocation55_spill] sm:$0xff] %v3984_v27  ;;  %1413 = vmatmul.f32.gmra.mxu3 %v3988_v39  ;;  %1588 = vmatmul.f32.gmra.mxu0 %v4450_v13  ;;  %v4004_v13 = vld [vmem:[#allocation2 + $0x188] sm:$0xff] }
 0x19e   : > { %v1204_v58 = vpop.f32.mrf.mxu2  ;;  %v964_v34 = vpop.f32.mrf.mxu1 }
 0x19f   : > { %v1278_v41 = vadd.f32 %v1204_v58, %v962_v50  ;;  %v965_v6 = vadd.f32 %v964_v34, %v3677_v53  ;;  %v4008_v50 = vld [vmem:[#allocation2 + $0x180] sm:$0xff] }
 0x1a0   : > { %v1366_v3 = vpop.f32.mrf.mxu3 }
 0x1a1   : > { %v1440_v27 = vadd.f32 %v1366_v3, %v1278_v41  ;;  %1011 = vmatmul.f32.gmra.mxu1 %v3970_v47  ;;  %v1464_v41 = vrot.slane %v4008_v50, 1 }
 0x1a2   : > { %v1544_v54 = vpop.f32.mrf.mxu0 }
 0x1a3   : > { %v4001_v9 = vadd.f32 %v1538_v45, %v1440_v27  ;;  %1254 = vmatmul.f32.gmra.mxu2 %v3998_v25  ;;  %v1465_v45 = vrot.slane %v4004_v13, 1  ;;  %v1100_v25 = vrot.slane %v4453_v40, 2 }
 0x1a5   : > { %4452 = vst [vmem:[#allocation58_spill] sm:$0xff] %v4001_v9  ;;  %1416 = vmatmul.f32.gmra.mxu3 %v4453_v40  ;;  %1591 = vmatmul.f32.gmra.mxu0 %v3467_v32  ;;  %v4014_v9 = vsel %vm1024_vm4, %v1096_v14, %v1098_v15  ;;  %v4018_v34 = vsel %vm668_vm3, %v1464_v41, %v1465_v45  ;;  %v4023_v32 = vld [vmem:[#allocation2 + $0x190] sm:$0x3] }
 0x1a6   : > { %v1207_v18 = vpop.f32.mrf.mxu2  ;;  %v967_v58 = vpop.f32.mrf.mxu1  ;;  %4454 = vst [vmem:[#allocation24_spill] sm:$0xff] %v4018_v34  ;;  %v1467_v41 = vrot.slane %v4023_v32, 1 }
 0x1a7   : > { %v1279_v27 = vadd.f32 %v1207_v18, %v965_v6  ;;  %v4456_v6 = vld [vmem:[#allocation25_spill] sm:$0xff]  ;;  %v968_v15 = vadd.f32 %v967_v58, %v3699_v11 }
 0x1a8   : > { %v1369_v3 = vpop.f32.mrf.mxu3  ;;  %v1101_v18 = vrot.slane %v4456_v6, 2  ;;  %v4038_v11 = vsel %vm668_vm3, %v1465_v45, %v1467_v41 }
 0x1a9   : > { %v1441_v8 = vadd.f32 %v1369_v3, %v1279_v27  ;;  %1014 = vmatmul.f32.gmra.mxu1 %v3988_v39  ;;  %v4034_v39 = vld [vmem:[#allocation2 + $0x168] sm:$0xff] }
 0x1aa   : > { %v1547_v53 = vpop.f32.mrf.mxu0 }
 0x1ab   : > { %v4020_v47 = vadd.f32 %v1541_v59, %v1441_v8  ;;  %1257 = vmatmul.f32.gmra.mxu2 %v4014_v9  ;;  %v4032_v8 = vsel %vm1024_vm4, %v1100_v25, %v1101_v18 }
 0x1ad   : > { %4455 = vst [vmem:[#allocation59_spill] sm:$0xff] %v4020_v47  ;;  %1419 = vmatmul.f32.gmra.mxu3 %v4456_v6  ;;  %1594 = vmatmul.f32.gmra.mxu0 %v4018_v34  ;;  %v1103_v6 = vrot.slane %v3444_v35, 2 }
 0x1ae   : > { %v1210_v14 = vpop.f32.mrf.mxu2  ;;  %v970_v27 = vpop.f32.mrf.mxu1 }
 0x1af   : > { %v1280_v59 = vadd.f32 %v1210_v14, %v968_v15  ;;  %v971_v15 = vadd.f32 %v970_v27, %v3722_v60  ;;  %v4048_v34 = vsel %vm1024_vm4, %v1101_v18, %v1103_v6 }
 0x1b0   : > { %v1372_v3 = vpop.f32.mrf.mxu3 }
 0x1b1   : > { %v1442_v47 = vadd.f32 %v1372_v3, %v1280_v59  ;;  %1017 = vmatmul.f32.gmra.mxu1 %v4034_v39 }
 0x1b2   : > { %v1550_v40 = vpop.f32.mrf.mxu0 }
 0x1b3   : > { %v4040_v58 = vadd.f32 %v1544_v54, %v1442_v47  ;;  %1260 = vmatmul.f32.gmra.mxu2 %v4032_v8  ;;  %v4050_v47 = vld [vmem:[#allocation2 + $0x170] sm:$0xff] }
 0x1b5   : > { %1422 = vmatmul.f32.gmra.mxu3 %v4008_v50  ;;  %1597 = vmatmul.f32.gmra.mxu0 %v4038_v11 }
 0x1b6   : > { %v1213_v25 = vpop.f32.mrf.mxu2  ;;  %v973_v14 = vpop.f32.mrf.mxu1 }
 0x1b7   : > { %v1281_v59 = vadd.f32 %v1213_v25, %v971_v15  ;;  %v974_v60 = vadd.f32 %v973_v14, %v3744_v0 }
 0x1b8   : > { %v1375_v3 = vpop.f32.mrf.mxu3 }
 0x1b9   : > { %v1443_v45 = vadd.f32 %v1375_v3, %v1281_v59  ;;  %1020 = vmatmul.f32.gmra.mxu1 %v4050_v47 }
 0x1ba   : > { %v1553_v54 = vpop.f32.mrf.mxu0 }
 0x1bb   : > { %v4053_v35 = vadd.f32 %v1547_v53, %v1443_v45  ;;  %1263 = vmatmul.f32.gmra.mxu2 %v4048_v34  ;;  %v2731_v53 = vld [vmem:[#allocation2 + $0x30] sm:$0xff] }
 0x1bd   : > { %4457 = vst [vmem:[#allocation25_spill] sm:$0xff] %v4053_v35  ;;  %1425 = vmatmul.f32.gmra.mxu3 %v4004_v13  ;;  %2176 = vmatmul.f32.vlgmr.msra.gmra.mxu0 %v3530_v30 }
 0x1be   : > { %v1216_v27 = vpop.f32.mrf.mxu2  ;;  %v976_v41 = vpop.f32.mrf.mxu1 }
 0x1bf   : > { %v1282_v18 = vadd.f32 %v1216_v27, %v974_v60  ;;  %v977_v3 = vadd.f32 %v976_v41, %v3607_v61 }
 0x1c0   : > { %v1378_v6 = vpop.f32.mrf.mxu3 }
 0x1c1   : > { %v1444_v15 = vadd.f32 %v1378_v6, %v1282_v18  ;;  %1673 = vmatmul.f32.vlgmr.msra.gmra.mxu1 %v3501_v19 }
 0x1c2   : > { %v1556_v25 = vpop.f32.mrf.mxu0 }
 0x1c3   : > { %v4060_v59 = vadd.f32 %v1550_v40, %v1444_v15  ;;  %1835 = vmatmul.f32.vlgmr.msra.gmra.mxu2 %v2731_v53  ;;  %v2732_v40 = vld [vmem:[#allocation2 + $0x38] sm:$0xff] }
 0x1c5   : > { %2007 = vmatmul.f32.vlgmr.msra.gmra.mxu3 %v3304_v46  ;;  %2179 = vmatmul.f32.gmra.mxu0 %v3547_v42 }
 0x1c6   : > { %v1219_v0 = vpop.f32.mrf.mxu2  ;;  %v979_v14 = vpop.f32.mrf.mxu1 }
 0x1c7   : > { %v1283_v45 = vadd.f32 %v1219_v0, %v977_v3  ;;  %v980_v18 = vadd.f32 %v979_v14, %v3630_v56 }
 0x1c8   : > { %v1381_v35 = vpop.f32.mrf.mxu3 }
 0x1c9   : > { %v1445_v60 = vadd.f32 %v1381_v35, %v1283_v45  ;;  %1676 = vmatmul.f32.gmra.mxu1 %v3518_v22 }
 0x1ca   : > { %v1559_v27 = vpop.f32.mrf.mxu0 }
 0x1cb   : > { %v4066_v19 = vadd.f32 %v1553_v54, %v1445_v60  ;;  %1838 = vmatmul.f32.gmra.mxu2 %v2732_v40  ;;  %v2733_v54 = vld [vmem:[#allocation2 + $0x48] sm:$0xff] }
 0x1cd   : > { %2010 = vmatmul.f32.gmra.mxu3 %v3358_v52  ;;  %2182 = vmatmul.f32.gmra.mxu0 %v3559_v2 }
 0x1ce   : > { %v1222_v46 = vpop.f32.mrf.mxu2  ;;  %v982_v61 = vpop.f32.mrf.mxu1 }
 0x1cf   : > { %v1284_v41 = vadd.f32 %v1222_v46, %v980_v18  ;;  %v983_v53 = vadd.f32 %v982_v61, %v3652_v48 }
 0x1d0   : > { %v1384_v6 = vpop.f32.mrf.mxu3 }
 0x1d1   : > { %v1446_v15 = vadd.f32 %v1384_v6, %v1284_v41  ;;  %1679 = vmatmul.f32.gmra.mxu1 %v3530_v30 }
 0x1d2   : > { %v1562_v35 = vpop.f32.mrf.mxu0 }
 0x1d3   : > { %v4072_v22 = vadd.f32 %v1556_v25, %v1446_v15  ;;  %1841 = vmatmul.f32.gmra.mxu2 %v2733_v54  ;;  %v2734_v25 = vld [vmem:[#allocation2 + $0x50] sm:$0xff] }
 0x1d5   : > { %2013 = vmatmul.f32.gmra.mxu3 %v3406_v37  ;;  %2185 = vmatmul.f32.gmra.mxu0 %v3578_v55 }
 0x1d6   : > { %v1225_v52 = vpop.f32.mrf.mxu2  ;;  %v985_v56 = vpop.f32.mrf.mxu1 }
 0x1d7   : > { %v1285_v3 = vadd.f32 %v1225_v52, %v983_v53  ;;  %v986_v60 = vadd.f32 %v985_v56, %v3675_v28 }
 0x1d8   : > { %v1387_v0 = vpop.f32.mrf.mxu3 }
 0x1d9   : > { %v1447_v14 = vadd.f32 %v1387_v0, %v1285_v3  ;;  %1682 = vmatmul.f32.gmra.mxu1 %v3547_v42 }
 0x1da   : > { %v1565_v45 = vpop.f32.mrf.mxu0 }
 0x1db   : > { %v4078_v30 = vadd.f32 %v1559_v27, %v1447_v14  ;;  %1844 = vmatmul.f32.gmra.mxu2 %v2734_v25  ;;  %v2735_v27 = vld [vmem:[#allocation2 + $0x60] sm:$0xff] }
 0x1dd   : > { %2016 = vmatmul.f32.gmra.mxu3 %v3441_v57  ;;  %2188 = vmatmul.f32.gmra.mxu0 %v3592_v5 }
 0x1de   : > { %v1228_v37 = vpop.f32.mrf.mxu2  ;;  %v988_v48 = vpop.f32.mrf.mxu1 }
 0x1df   : > { %v1286_v40 = vadd.f32 %v1228_v37, %v986_v60  ;;  %v989_v41 = vadd.f32 %v988_v48, %v3697_v10 }
 0x1e0   : > { %v1390_v18 = vpop.f32.mrf.mxu3 }
 0x1e1   : > { %v1448_v46 = vadd.f32 %v1390_v18, %v1286_v40  ;;  %1685 = vmatmul.f32.gmra.mxu1 %v3559_v2  ;;  %v2738_v18 = vld [vmem:[#allocation2 + $0x80] sm:$0xff] }
 0x1e2   : > { %v1568_v61 = vpop.f32.mrf.mxu0 }
 0x1e3   : > { %v4084_v42 = vadd.f32 %v1562_v35, %v1448_v46  ;;  %1847 = vmatmul.f32.gmra.mxu2 %v2735_v27  ;;  %v2736_v35 = vld [vmem:[#allocation2 + $0x68] sm:$0xff]  ;;  %v4458_v46 = vld [vmem:[#allocation45_spill] sm:$0xff]  ;;  %v4459_v27 = vld [vmem:[#allocation11_spill] sm:$0xff] }
 0x1e5   : > { %2019 = vmatmul.f32.gmra.mxu3 %v3067_v29  ;;  %2191 = vmatmul.f32.gmra.mxu0 %v3617_v24 }
 0x1e6   : > { %v1231_v57 = vpop.f32.mrf.mxu2  ;;  %v991_v28 = vpop.f32.mrf.mxu1 }
 0x1e7   : > { %v1287_v6 = vadd.f32 %v1231_v57, %v989_v41  ;;  %v992_v52 = vadd.f32 %v991_v28, %v3720_v49 }
 0x1e8   : > { %v1393_v15 = vpop.f32.mrf.mxu3 }
 0x1e9   : > { %v1449_v54 = vadd.f32 %v1393_v15, %v1287_v6  ;;  %1688 = vmatmul.f32.gmra.mxu1 %v3578_v55 }
 0x1ea   : > { %v1571_v53 = vpop.f32.mrf.mxu0 }
 0x1eb   : > { %v4090_v2 = vadd.f32 %v1565_v45, %v1449_v54  ;;  %1850 = vmatmul.f32.gmra.mxu2 %v2736_v35  ;;  %v2737_v45 = vld [vmem:[#allocation2 + $0x78] sm:$0xff]  ;;  %v2739_v54 = vld [vmem:[#allocation2 + $0x90] sm:$0xff] }
 0x1ed   : > { %2022 = vmatmul.f32.gmra.mxu3 %v3113_v63  ;;  %2194 = vmatmul.f32.gmra.mxu0 %v3637_v17 }
 0x1ee   : > { %v1234_v29 = vpop.f32.mrf.mxu2  ;;  %v994_v10 = vpop.f32.mrf.mxu1 }
 0x1ef   : > { %v1288_v56 = vadd.f32 %v1234_v29, %v992_v52  ;;  %v995_v25 = vadd.f32 %v994_v10, %v3742_v51  ;;  %v4460_v51 = vld [vmem:[#allocation37_spill] sm:$0xff]  ;;  %v4462_v52 = vld [vmem:[#allocation15_spill] sm:$0xff] }
 0x1f0   : > { %v1396_v3 = vpop.f32.mrf.mxu3  ;;  %v4463_v29 = vld [vmem:[#allocation39_spill] sm:$0xff] }
 0x1f1   : > { %v1450_v0 = vadd.f32 %v1396_v3, %v1288_v56  ;;  %1691 = vmatmul.f32.gmra.mxu1 %v3592_v5 }
 0x1f2   : > { %v1574_v14 = vpop.f32.mrf.mxu0 }
 0x1f3   : > { %v4096_v55 = vadd.f32 %v1568_v61, %v1450_v0  ;;  %1853 = vmatmul.f32.gmra.mxu2 %v2737_v45 }
 0x1f5   : > { %2025 = vmatmul.f32.gmra.mxu3 %v3197_v62  ;;  %2197 = vmatmul.f32.gmra.mxu0 %v3662_v43 }
 0x1f6   : > { %v1237_v63 = vpop.f32.mrf.mxu2  ;;  %v997_v49 = vpop.f32.mrf.mxu1 }
 0x1f7   : > { %v1289_v60 = vadd.f32 %v1237_v63, %v995_v25  ;;  %v998_v61 = vadd.f32 %v997_v49, %v4458_v46  ;;  %v4464_v63 = vld [vmem:[#allocation34_spill] sm:$0xff] }
 0x1f8   : > { %v1399_v37 = vpop.f32.mrf.mxu3 }
 0x1f9   : > { %v1451_v48 = vadd.f32 %v1399_v37, %v1289_v60  ;;  %1694 = vmatmul.f32.gmra.mxu1 %v3617_v24  ;;  %v4465_v60 = vld [vmem:[#allocation19_spill] sm:$0xff]  ;;  %v4466_v37 = vld [vmem:[#allocation41_spill] sm:$0xff] }
 0x1fa   : > { %v1577_v40 = vpop.f32.mrf.mxu0 }
 0x1fb   : > { %v4102_v5 = vadd.f32 %v1571_v53, %v1451_v48  ;;  %1856 = vmatmul.f32.gmra.mxu2 %v2738_v18  ;;  %v4461_v53 = vld [vmem:[#allocation33_spill] sm:$0xff] }
 0x1fd   : > { %2028 = vmatmul.f32.gmra.mxu3 %v4459_v27  ;;  %2200 = vmatmul.f32.gmra.mxu0 %v4460_v51 }
 0x1fe   : > { %v1240_v62 = vpop.f32.mrf.mxu2  ;;  %v1000_v41 = vpop.f32.mrf.mxu1 }
 0x1ff   : > { %v1290_v57 = vadd.f32 %v1240_v62, %v998_v61  ;;  %v1001_v35 = vadd.f32 %v1000_v41, %v4461_v53  ;;  %v4467_v41 = vld [vmem:[#allocation35_spill] sm:$0xff] }
 0x200   : > { %v1402_v28 = vpop.f32.mrf.mxu3 }
 0x201   : > { %v1452_v6 = vadd.f32 %v1402_v28, %v1290_v57  ;;  %1697 = vmatmul.f32.gmra.mxu1 %v3637_v17  ;;  %v4468_v28 = vld [vmem:[#allocation26_spill] sm:$0xff] }
 0x202   : > { %v1580_v15 = vpop.f32.mrf.mxu0 }
 0x203   : > { %v4108_v24 = vadd.f32 %v1574_v14, %v1452_v6  ;;  %1859 = vmatmul.f32.gmra.mxu2 %v2739_v54  ;;  %v2740_v14 = vld [vmem:[#allocation2 + $0x98] sm:$0xff]  ;;  %v4469_v6 = vld [vmem:[#allocation43_spill] sm:$0xff] }
 0x205   : > { %2031 = vmatmul.f32.gmra.mxu3 %v4462_v52  ;;  %2203 = vmatmul.f32.gmra.mxu0 %v4463_v29 }
 0x206   : > { %v1243_v10 = vpop.f32.mrf.mxu2  ;;  %v1003_v56 = vpop.f32.mrf.mxu1 }
 0x207   : > { %v1291_v3 = vadd.f32 %v1243_v10, %v1001_v35  ;;  %v1004_v49 = vadd.f32 %v1003_v56, %v4464_v63 }
 0x208   : > { %v1405_v0 = vpop.f32.mrf.mxu3 }
 0x209   : > { %v1453_v45 = vadd.f32 %v1405_v0, %v1291_v3  ;;  %1700 = vmatmul.f32.gmra.mxu1 %v3662_v43  ;;  %v4470_v3 = vld [vmem:[#allocation36_spill] sm:$0xff] }
 0x20a   : > { %v1583_v25 = vpop.f32.mrf.mxu0 }
 0x20b   : > { %v4114_v17 = vadd.f32 %v1577_v40, %v1453_v45  ;;  %1862 = vmatmul.f32.gmra.mxu2 %v2740_v14  ;;  %v2741_v40 = vld [vmem:[#allocation2 + $0xa8] sm:$0xff]  ;;  %v4472_v14 = vld [vmem:[#allocation47_spill] sm:$0xff] }
 0x20c   : > { %v4471_v45 = vld [vmem:[#allocation30_spill] sm:$0xff] }
 0x20d   : > { %2034 = vmatmul.f32.gmra.mxu3 %v4465_v60  ;;  %2206 = vmatmul.f32.gmra.mxu0 %v4466_v37 }
 0x20e   : > { %v1246_v48 = vpop.f32.mrf.mxu2  ;;  %v1006_v18 = vpop.f32.mrf.mxu1 }
 0x20f   : > { %v1292_v46 = vadd.f32 %v1246_v48, %v1004_v49  ;;  %v1007_v57 = vadd.f32 %v1006_v18, %v4467_v41 }
 0x210   : > { %v1408_v61 = vpop.f32.mrf.mxu3 }
 0x211   : > { %v1454_v27 = vadd.f32 %v1408_v61, %v1292_v46  ;;  %1703 = vmatmul.f32.gmra.mxu1 %v4460_v51  ;;  %v4474_v61 = vld [vmem:[#allocation38_spill] sm:$0xff] }
 0x212   : > { %v1586_v62 = vpop.f32.mrf.mxu0 }
 0x213   : > { %v4120_v43 = vadd.f32 %v1580_v15, %v1454_v27  ;;  %1865 = vmatmul.f32.gmra.mxu2 %v2741_v40  ;;  %v2742_v15 = vld [vmem:[#allocation2 + $0xb0] sm:$0xff]  ;;  %v4475_v40 = vld [vmem:[#allocation5_spill] sm:$0xff] }
 0x215   : > { %2037 = vmatmul.f32.gmra.mxu3 %v4468_v28  ;;  %2209 = vmatmul.f32.gmra.mxu0 %v4469_v6 }
 0x216   : > { %v1249_v54 = vpop.f32.mrf.mxu2  ;;  %v1009_v53 = vpop.f32.mrf.mxu1 }
 0x217   : > { %v1293_v35 = vadd.f32 %v1249_v54, %v1007_v57  ;;  %v1010_v0 = vadd.f32 %v1009_v53, %v4470_v3 }
 0x218   : > { %v1411_v52 = vpop.f32.mrf.mxu3 }
 0x219   : > { %v1455_v10 = vadd.f32 %v1411_v52, %v1293_v35  ;;  %1706 = vmatmul.f32.gmra.mxu1 %v4463_v29 }
 0x21a   : > { %v1589_v56 = vpop.f32.mrf.mxu0 }
 0x21b   : > { %v4126_v51 = vadd.f32 %v1583_v25, %v1455_v10  ;;  %1868 = vmatmul.f32.gmra.mxu2 %v2742_v15  ;;  %v4473_v25 = vld [vmem:[#allocation44_spill] sm:$0xff]  ;;  %v4477_v10 = vld [vmem:[#allocation7_spill] sm:$0xff] }
 0x21d   : > { %2040 = vmatmul.f32.gmra.mxu3 %v4471_v45  ;;  %2212 = vmatmul.f32.gmra.mxu0 %v4472_v14 }
 0x21e   : > { %v1252_v63 = vpop.f32.mrf.mxu2  ;;  %v1012_v49 = vpop.f32.mrf.mxu1 }
 0x21f   : > { %v1294_v60 = vadd.f32 %v1252_v63, %v1010_v0  ;;  %v1013_v27 = vadd.f32 %v1012_v49, %v4474_v61 }
 0x220   : > { %v1414_v48 = vpop.f32.mrf.mxu3 }
 0x221   : > { %v1456_v18 = vadd.f32 %v1414_v48, %v1294_v60  ;;  %1709 = vmatmul.f32.gmra.mxu1 %v4466_v37  ;;  %v4478_v60 = vld [vmem:[#allocation42_spill] sm:$0xff]  ;;  %v4479_v48 = vld [vmem:[#allocation9_spill] sm:$0xff] }
 0x222   : > { %v1592_v46 = vpop.f32.mrf.mxu0 }
 0x223   : > { %v4132_v29 = vadd.f32 %v1586_v62, %v1456_v18  ;;  %1871 = vmatmul.f32.gmra.mxu2 %v4473_v25  ;;  %v4476_v62 = vld [vmem:[#allocation40_spill] sm:$0xff] }
 0x225   : > { %2043 = vmatmul.f32.gmra.mxu3 %v4475_v40  ;;  %2215 = vmatmul.f32.gmra.mxu0 %v3788_v23 }
 0x226   : > { %v1255_v41 = vpop.f32.mrf.mxu2  ;;  %v1015_v57 = vpop.f32.mrf.mxu1 }
 0x227   : > { %v1295_v28 = vadd.f32 %v1255_v41, %v1013_v27  ;;  %v1016_v52 = vadd.f32 %v1015_v57, %v4476_v62 }
 0x228   : > { %v1417_v54 = vpop.f32.mrf.mxu3 }
 0x229   : > { %v1457_v53 = vadd.f32 %v1417_v54, %v1295_v28  ;;  %1712 = vmatmul.f32.gmra.mxu1 %v4469_v6  ;;  %v4481_v28 = vld [vmem:[#allocation12_spill] sm:$0xff] }
 0x22a   : > { %v1595_v35 = vpop.f32.mrf.mxu0 }
 0x22b   : > { %v4139_v37 = vadd.f32 %v1589_v56, %v1457_v53  ;;  %1874 = vmatmul.f32.gmra.mxu2 %v3790_v7  ;;  %v2743_v56 = vld [vmem:[#allocation2 + $0xd8] sm:$0xff] }
 0x22d   : > { %2046 = vmatmul.f32.gmra.mxu3 %v4477_v10  ;;  %2218 = vmatmul.f32.gmra.mxu0 %v3805_v36 }
 0x22e   : > { %v1258_v15 = vpop.f32.mrf.mxu2  ;;  %v1018_v3 = vpop.f32.mrf.mxu1 }
 0x22f   : > { %v1296_v0 = vadd.f32 %v1258_v15, %v1016_v52  ;;  %v1019_v7 = vadd.f32 %v1018_v3, %v4478_v60  ;;  %v4482_v3 = vld [vmem:[#allocation16_spill] sm:$0xff] }
 0x230   : > { %v1420_v45 = vpop.f32.mrf.mxu3 }
 0x231   : > { %v1458_v63 = vadd.f32 %v1420_v45, %v1296_v0  ;;  %1715 = vmatmul.f32.gmra.mxu1 %v4472_v14 }
 0x232   : > { %v1598_v49 = vpop.f32.mrf.mxu0 }
 0x233   : > { %v4146_v6 = vadd.f32 %v1592_v46, %v1458_v63  ;;  %1877 = vmatmul.f32.gmra.mxu2 %v2743_v56  ;;  %v4480_v46 = vld [vmem:[#allocation46_spill] sm:$0xff] }
 0x235   : > { %2049 = vmatmul.f32.gmra.mxu3 %v4479_v48  ;;  %2221 = vmatmul.f32.gmra.mxu0 %v3825_v16  ;;  %v4483_v48 = vld [vmem:[#allocation48_spill] sm:$0xff] }
 0x236   : > { %v1261_v18 = vpop.f32.mrf.mxu2  ;;  %v1021_v25 = vpop.f32.mrf.mxu1 }
 0x237   : > { %v1297_v61 = vadd.f32 %v1261_v18, %v1019_v7  ;;  %v1022_v57 = vadd.f32 %v1021_v25, %v4480_v46 }
 0x238   : > { %v1423_v27 = vpop.f32.mrf.mxu3 }
 0x239   : > { %v1459_v40 = vadd.f32 %v1423_v27, %v1297_v61  ;;  %1718 = vmatmul.f32.gmra.mxu1 %v3788_v23 }
 0x23a   : > { %v2177_v41 = vpop.f32.mrf.mxu0 }
 0x23b   : > { %v4152_v14 = vadd.f32 %v1595_v35, %v1459_v40  ;;  %1880 = vmatmul.f32.gmra.mxu2 %v3827_v44  ;;  %v2744_v35 = vld [vmem:[#allocation2 + $0xf0] sm:$0xff] }
 0x23d   : > { %2052 = vmatmul.f32.gmra.mxu3 %v4481_v28  ;;  %2224 = vmatmul.f32.gmra.mxu0 %v3842_v21 }
 0x23e   : > { %v1264_v54 = vpop.f32.mrf.mxu2  ;;  %v1674_v53 = vpop.f32.mrf.mxu1 }
 0x23f   : > { %v1298_v62 = vadd.f32 %v1264_v54, %v1022_v57  ;;  %v1770_v44 = vadd.f32 %v1674_v53, %v3793_v20  ;;  %v4484_v20 = vld [vmem:[#allocation20_spill] sm:$0xff]  ;;  %v4485_v54 = vld [vmem:[#allocation49_spill] sm:$0xff] }
 0x240   : > { %v1426_v52 = vpop.f32.mrf.mxu3 }
 0x241   : > { %v1460_v10 = vadd.f32 %v1426_v52, %v1298_v62  ;;  %1721 = vmatmul.f32.gmra.mxu1 %v3805_v36 }
 0x242   : > { %v2180_v15 = vpop.f32.mrf.mxu0 }
 0x243   : > { %v4159_v23 = vadd.f32 %v1598_v49, %v1460_v10  ;;  %1883 = vmatmul.f32.gmra.mxu2 %v2744_v35  ;;  %v2745_v49 = vld [vmem:[#allocation2 + $0xf8] sm:$0xff]  ;;  %v4486_v10 = vld [vmem:[#allocation27_spill] sm:$0xff] }
 0x244   : > { %v4487_v35 = vld [vmem:[#allocation28_spill] sm:$0xff] }
 0x245   : > { %2055 = vmatmul.f32.gmra.mxu3 %v4482_v3  ;;  %2227 = vmatmul.f32.gmra.mxu0 %v3862_v31 }
 0x246   : > { %v1836_v0 = vpop.f32.mrf.mxu2  ;;  %v1677_v45 = vpop.f32.mrf.mxu1 }
 0x247   : > { %v1932_v63 = vadd.f32 %v1836_v0, %v1770_v44  ;;  %v1771_v18 = vadd.f32 %v1677_v45, %v4483_v48 }
 0x248   : > { %v2008_v56 = vpop.f32.mrf.mxu3 }
 0x249   : > { %v2104_v60 = vadd.f32 %v2008_v56, %v1932_v63  ;;  %1724 = vmatmul.f32.gmra.mxu1 %v3825_v16 }
 0x24a   : > { %v2183_v36 = vpop.f32.mrf.mxu0 }
 0x24b   : > { %v2273_v7 = vadd.f32 %v2177_v41, %v2104_v60  ;;  %1886 = vmatmul.f32.gmra.mxu2 %v2745_v49  ;;  %v2746_v41 = vld [vmem:[#allocation2 + $0x108] sm:$0xff]  ;;  %v2747_v60 = vld [vmem:[#allocation2 + $0x110] sm:$0xff] }
 0x24c   : > { %v4488_v49 = vld [vmem:[#allocation14_spill] sm:$0xff] }
 0x24d   : > { %2305 = vst [vmem:[%s2818_s14] sm:$0xff] %v2273_v7  ;;  %2058 = vmatmul.f32.gmra.mxu3 %v4484_v20  ;;  %2230 = vmatmul.f32.gmra.mxu0 %v3877_v4  ;;  %v2378_v28 = vmul.f32 %v2273_v7, %v2273_v7  ;;  %v4489_v20 = vld [vmem:[#allocation31_spill] sm:$0xff] }
 0x24e   : > { %v1839_v25 = vpop.f32.mrf.mxu2  ;;  %v1680_v61 = vpop.f32.mrf.mxu1 }
 0x24f   : > { %v1933_v27 = vadd.f32 %v1839_v25, %v1771_v18  ;;  %v1772_v53 = vadd.f32 %v1680_v61, %v4485_v54  ;;  %v4490_v25 = vld [vmem:[#allocation51_spill] sm:$0xff]  ;;  %v4492_v54 = vld [vmem:[#allocation17_spill] sm:$0xff] }
 0x250   : > { %v2011_v40 = vpop.f32.mrf.mxu3 }
 0x251   : > { %v2105_v46 = vadd.f32 %v2011_v40, %v1933_v27  ;;  %1727 = vmatmul.f32.gmra.mxu1 %v3842_v21 }
 0x252   : > { %v2186_v16 = vpop.f32.mrf.mxu0 }
 0x253   : > { %v2274_v57 = vadd.f32 %v2180_v15, %v2105_v46  ;;  %1889 = vmatmul.f32.gmra.mxu2 %v2746_v41 }
 0x255   : > { %2306 = vst [vmem:[%s2818_s14 + $0x8] sm:$0xff] %v2274_v57  ;;  %v2338_v62 = vadd.f32 %v2274_v57, %v2273_v7  ;;  %v2379_v52 = vmul.f32 %v2274_v57, %v2274_v57  ;;  %2061 = vmatmul.f32.gmra.mxu3 %v4486_v10  ;;  %2233 = vmatmul.f32.gmra.mxu0 %v4487_v35  ;;  %v4493_v10 = vld [vmem:[#allocation6_spill] sm:$0xff] }
 0x256   : > { %v1842_v44 = vpop.f32.mrf.mxu2  ;;  %v1683_v3 = vpop.f32.mrf.mxu1 }
 0x257   : > { %v2410_v0 = vadd.f32 %v2379_v52, %v2378_v28  ;;  %v1934_v45 = vadd.f32 %v1842_v44, %v1772_v53  ;;  %v1773_v7 = vadd.f32 %v1683_v3, %v4488_v49  ;;  %v4491_v28 = vld [vmem:[#allocation22_spill] sm:$0xff] }
 0x258   : > { %v2014_v21 = vpop.f32.mrf.mxu3 }
 0x259   : > { %v2106_v63 = vadd.f32 %v2014_v21, %v1934_v45  ;;  %1730 = vmatmul.f32.gmra.mxu1 %v3862_v31 }
 0x25a   : > { %v2189_v15 = vpop.f32.mrf.mxu0 }
 0x25b   : > { %v2275_v56 = vadd.f32 %v2183_v36, %v2106_v63  ;;  %1892 = vmatmul.f32.gmra.mxu2 %v2747_v60 }
 0x25d   : > { %2307 = vst [vmem:[%s2818_s14 + $0x10] sm:$0xff] %v2275_v56  ;;  %v2339_v48 = vadd.f32 %v2338_v62, %v2275_v56  ;;  %v2380_v18 = vmul.f32 %v2275_v56, %v2275_v56  ;;  %2064 = vmatmul.f32.gmra.mxu3 %v4489_v20  ;;  %2236 = vmatmul.f32.gmra.mxu0 %v4490_v25  ;;  %v4494_v56 = vld [vmem:[#allocation21_spill] sm:$0xff] }
 0x25e   : > { %v1845_v61 = vpop.f32.mrf.mxu2  ;;  %v1686_v27 = vpop.f32.mrf.mxu1 }
 0x25f   : > { %v2411_v40 = vadd.f32 %v2410_v0, %v2380_v18  ;;  %v1935_v46 = vadd.f32 %v1845_v61, %v1773_v7  ;;  %v1774_v53 = vadd.f32 %v1686_v27, %v4492_v54 }
 0x260   : > { %v2017_v57 = vpop.f32.mrf.mxu3 }
 0x261   : > { %v2107_v31 = vadd.f32 %v2017_v57, %v1935_v46  ;;  %1733 = vmatmul.f32.gmra.mxu1 %v3877_v4  ;;  %v4496_v46 = vld [vmem:[#allocation50_spill] sm:$0xff] }
 0x262   : > { %v2192_v36 = vpop.f32.mrf.mxu0 }
 0x263   : > { %v2276_v41 = vadd.f32 %v2186_v16, %v2107_v31  ;;  %1895 = vmatmul.f32.gmra.mxu2 %v4491_v28  ;;  %v4497_v28 = vld [vmem:[#allocation10_spill] sm:$0xff] }
 0x265   : > { %2308 = vst [vmem:[%s2818_s14 + $0x18] sm:$0xff] %v2276_v41  ;;  %v2340_v62 = vadd.f32 %v2339_v48, %v2276_v41  ;;  %v2381_v52 = vmul.f32 %v2276_v41, %v2276_v41  ;;  %2067 = vmatmul.f32.gmra.mxu3 %v4493_v10  ;;  %2239 = vmatmul.f32.gmra.mxu0 %v3939_v38  ;;  %v4495_v48 = vld [vmem:[#allocation8_spill] sm:$0xff] }
 0x266   : > { %v1848_v44 = vpop.f32.mrf.mxu2  ;;  %v1689_v3 = vpop.f32.mrf.mxu1 }
 0x267   : > { %v2412_v0 = vadd.f32 %v2411_v40, %v2381_v52  ;;  %v1936_v45 = vadd.f32 %v1848_v44, %v1774_v53  ;;  %v1775_v60 = vadd.f32 %v1689_v3, %v4494_v56  ;;  %v4498_v44 = vld [vmem:[#allocation4_spill] sm:$0xff] }
 0x268   : > { %v2020_v21 = vpop.f32.mrf.mxu3  ;;  %v4499_v3 = vld [vmem:[#allocation52_spill] sm:$0xff] }
 0x269   : > { %v2108_v4 = vadd.f32 %v2020_v21, %v1936_v45  ;;  %1736 = vmatmul.f32.gmra.mxu1 %v4487_v35 }
 0x26a   : > { %v2195_v16 = vpop.f32.mrf.mxu0 }
 0x26b   : > { %v2277_v63 = vadd.f32 %v2189_v15, %v2108_v4  ;;  %1898 = vmatmul.f32.gmra.mxu2 %v3906_v1  ;;  %v4500_v4 = vld [vmem:[#allocation13_spill] sm:$0xff] }
 0x26d   : > { %2309 = vst [vmem:[%s2818_s14 + $0x20] sm:$0xff] %v2277_v63  ;;  %v2341_v49 = vadd.f32 %v2340_v62, %v2277_v63  ;;  %v2382_v7 = vmul.f32 %v2277_v63, %v2277_v63  ;;  %2070 = vmatmul.f32.gmra.mxu3 %v4495_v48  ;;  %2242 = vmatmul.f32.gmra.mxu0 %v3960_v26  ;;  %v4501_v63 = vld [vmem:[#allocation57_spill] sm:$0xff] }
 0x26e   : > { %v1851_v18 = vpop.f32.mrf.mxu2  ;;  %v1692_v20 = vpop.f32.mrf.mxu1 }
 0x26f   : > { %v2413_v61 = vadd.f32 %v2412_v0, %v2382_v7  ;;  %v1937_v27 = vadd.f32 %v1851_v18, %v1775_v60  ;;  %v1776_v57 = vadd.f32 %v1692_v20, %v4496_v46  ;;  %v4502_v20 = vld [vmem:[#allocation54_spill] sm:$0xff] }
 0x270   : > { %v2023_v40 = vpop.f32.mrf.mxu3 }
 0x271   : > { %v2109_v35 = vadd.f32 %v2023_v40, %v1937_v27  ;;  %1739 = vmatmul.f32.gmra.mxu1 %v4490_v25 }
 0x272   : > { %v2198_v15 = vpop.f32.mrf.mxu0 }
 0x273   : > { %v2278_v1 = vadd.f32 %v2192_v36, %v2109_v35  ;;  %1901 = vmatmul.f32.gmra.mxu2 %v3926_v33 }
 0x275   : > { %2310 = vst [vmem:[%s2818_s14 + $0x28] sm:$0xff] %v2278_v1  ;;  %v2342_v31 = vadd.f32 %v2341_v49, %v2278_v1  ;;  %v2383_v41 = vmul.f32 %v2278_v1, %v2278_v1  ;;  %2073 = vmatmul.f32.gmra.mxu3 %v4497_v28  ;;  %2245 = vmatmul.f32.gmra.mxu0 %v3981_v12  ;;  %v4504_v1 = vld [vmem:[#allocation18_spill] sm:$0xff] }
 0x276   : > { %v1854_v54 = vpop.f32.mrf.mxu2  ;;  %v1695_v53 = vpop.f32.mrf.mxu1 }
 0x277   : > { %v2414_v62 = vadd.f32 %v2413_v61, %v2383_v41  ;;  %v1938_v52 = vadd.f32 %v1854_v54, %v1776_v57  ;;  %v1777_v0 = vadd.f32 %v1695_v53, %v4499_v3  ;;  %v4503_v61 = vld [vmem:[#allocation3_spill] sm:$0xff]  ;;  %v4505_v53 = vld [vmem:[#allocation56_spill] sm:$0xff] }
 0x278   : > { %v2026_v10 = vpop.f32.mrf.mxu3 }
 0x279   : > { %v2110_v25 = vadd.f32 %v2026_v10, %v1938_v52  ;;  %1742 = vmatmul.f32.gmra.mxu1 %v3939_v38 }
 0x27a   : > { %v2201_v36 = vpop.f32.mrf.mxu0 }
 0x27b   : > { %v2279_v33 = vadd.f32 %v2195_v16, %v2110_v25  ;;  %1904 = vmatmul.f32.gmra.mxu2 %v4498_v44 }
 0x27d   : > { %2311 = vst [vmem:[%s2818_s14 + $0x30] sm:$0xff] %v2279_v33  ;;  %v2343_v45 = vadd.f32 %v2342_v31, %v2279_v33  ;;  %v2384_v21 = vmul.f32 %v2279_v33, %v2279_v33  ;;  %2076 = vmatmul.f32.gmra.mxu3 %v4500_v4  ;;  %2248 = vmatmul.f32.gmra.mxu0 %v4501_v63  ;;  %v4507_v33 = vld [vmem:[#allocation23_spill] sm:$0xff] }
 0x27e   : > { %v1857_v56 = vpop.f32.mrf.mxu2  ;;  %v1698_v60 = vpop.f32.mrf.mxu1 }
 0x27f   : > { %v2415_v49 = vadd.f32 %v2414_v62, %v2384_v21  ;;  %v1939_v7 = vadd.f32 %v1857_v56, %v1777_v0  ;;  %v1778_v27 = vadd.f32 %v1698_v60, %v4503_v61  ;;  %v4506_v62 = vld [vmem:[#allocation53_spill] sm:$0xff]  ;;  %v4508_v56 = vld [vmem:[#allocation55_spill] sm:$0xff] }
 0x280   : > { %v2029_v48 = vpop.f32.mrf.mxu3 }
 0x281   : > { %v2111_v38 = vadd.f32 %v2029_v48, %v1939_v7  ;;  %1745 = vmatmul.f32.gmra.mxu1 %v3960_v26  ;;  %v4509_v48 = vld [vmem:[#allocation29_spill] sm:$0xff] }
 0x282   : > { %v2204_v16 = vpop.f32.mrf.mxu0 }
 0x283   : > { %v2280_v18 = vadd.f32 %v2198_v15, %v2111_v38  ;;  %1907 = vmatmul.f32.gmra.mxu2 %v4502_v20  ;;  %v1633_v20 = vrot.slane %v4008_v50, 2 }
 0x285   : > { %2312 = vst [vmem:[%s2818_s14 + $0x38] sm:$0xff] %v2280_v18  ;;  %v2344_v40 = vadd.f32 %v2343_v45, %v2280_v18  ;;  %v2385_v35 = vmul.f32 %v2280_v18, %v2280_v18  ;;  %2079 = vmatmul.f32.gmra.mxu3 %v4504_v1  ;;  %2251 = vmatmul.f32.gmra.mxu0 %v4014_v9 }
 0x286   : > { %v1860_v46 = vpop.f32.mrf.mxu2  ;;  %v1701_v57 = vpop.f32.mrf.mxu1 }
 0x287   : > { %v2416_v31 = vadd.f32 %v2415_v49, %v2385_v35  ;;  %v1940_v41 = vadd.f32 %v1860_v46, %v1778_v27  ;;  %v1779_v52 = vadd.f32 %v1701_v57, %v4506_v62  ;;  %v4510_v46 = vld [vmem:[#allocation58_spill] sm:$0xff] }
 0x288   : > { %v2032_v28 = vpop.f32.mrf.mxu3 }
 0x289   : > { %v2112_v26 = vadd.f32 %v2032_v28, %v1940_v41  ;;  %1748 = vmatmul.f32.gmra.mxu1 %v3981_v12  ;;  %v4511_v28 = vld [vmem:[#allocation32_spill] sm:$0xff] }
 0x28a   : > { %v2207_v15 = vpop.f32.mrf.mxu0 }
 0x28b   : > { %v2281_v54 = vadd.f32 %v2201_v36, %v2112_v26  ;;  %1910 = vmatmul.f32.gmra.mxu2 %v4505_v53  ;;  %v1636_v53 = vrot.slane %v4023_v32, 2  ;;  %v601_v32 = vld [vmem:[#allocation2 + $0x198] sm:$0xff] }
 0x28d   : > { %2313 = vst [vmem:[%s2818_s14 + $0x40] sm:$0xff] %v2281_v54  ;;  %v2345_v10 = vadd.f32 %v2344_v40, %v2281_v54  ;;  %v2386_v25 = vmul.f32 %v2281_v54, %v2281_v54  ;;  %2082 = vmatmul.f32.gmra.mxu3 %v4507_v33  ;;  %2254 = vmatmul.f32.gmra.mxu0 %v4032_v8  ;;  %v4512_v33 = vld [vmem:[#allocation59_spill] sm:$0xff] }
 0x28e   : > { %v1863_v44 = vpop.f32.mrf.mxu2  ;;  %v1704_v3 = vpop.f32.mrf.mxu1 }
 0x28f   : > { %v2417_v0 = vadd.f32 %v2416_v31, %v2386_v25  ;;  %v1941_v45 = vadd.f32 %v1863_v44, %v1779_v52  ;;  %v1780_v60 = vadd.f32 %v1704_v3, %v4508_v56 }
 0x290   : > { %v2035_v21 = vpop.f32.mrf.mxu3 }
 0x291   : > { %v2113_v12 = vadd.f32 %v2035_v21, %v1941_v45  ;;  %1751 = vmatmul.f32.gmra.mxu1 %v4501_v63  ;;  %v1634_v63 = vrot.slane %v4004_v13, 2  ;;  %v4513_v45 = vld [vmem:[#allocation24_spill] sm:$0xff]  ;;  %v602_v21 = vld [vmem:[#allocation2 + $0x1a0] sm:$0xff] }
 0x292   : > { %v2210_v36 = vpop.f32.mrf.mxu0  ;;  %v2137_v56 = vrot.slane %v602_v21, 2 }
 0x293   : > { %v2282_v4 = vadd.f32 %v2204_v16, %v2113_v12  ;;  %1913 = vmatmul.f32.gmra.mxu2 %v4034_v39  ;;  %v1635_v35 = vsel %vm1024_vm4, %v1633_v20, %v1634_v63 }
 0x295   : > { %2314 = vst [vmem:[%s2818_s14 + $0x48] sm:$0xff] %v2282_v4  ;;  %v2346_v49 = vadd.f32 %v2345_v10, %v2282_v4  ;;  %v2387_v7 = vmul.f32 %v2282_v4, %v2282_v4  ;;  %2085 = vmatmul.f32.gmra.mxu3 %v4509_v48  ;;  %2257 = vmatmul.f32.gmra.mxu0 %v4048_v34 }
 0x296   : > { %v1866_v38 = vpop.f32.mrf.mxu2  ;;  %v1707_v18 = vpop.f32.mrf.mxu1 }
 0x297   : > { %v2418_v61 = vadd.f32 %v2417_v0, %v2387_v7  ;;  %v1942_v16 = vadd.f32 %v1866_v38, %v1780_v60  ;;  %v1781_v57 = vadd.f32 %v1707_v18, %v4510_v46 }
 0x298   : > { %v2038_v27 = vpop.f32.mrf.mxu3 }
 0x299   : > { %v2114_v39 = vadd.f32 %v2038_v27, %v1942_v16  ;;  %1754 = vmatmul.f32.gmra.mxu1 %v4014_v9 }
 0x29a   : > { %v2213_v40 = vpop.f32.mrf.mxu0 }
 0x29b   : > { %v2283_v1 = vadd.f32 %v2207_v15, %v2114_v39  ;;  %1916 = vmatmul.f32.gmra.mxu2 %v4050_v47  ;;  %v1637_v15 = vsel %vm1024_vm4, %v1634_v63, %v1636_v53  ;;  %v1967_v39 = vrot.slane %v601_v32, 1 }
 0x29d   : > { %2315 = vst [vmem:[%s2818_s14 + $0x50] sm:$0xff] %v2283_v1  ;;  %v2347_v31 = vadd.f32 %v2346_v49, %v2283_v1  ;;  %v2388_v41 = vmul.f32 %v2283_v1, %v2283_v1  ;;  %2088 = vmatmul.f32.gmra.mxu3 %v4511_v28  ;;  %2260 = vmatmul.f32.gmra.mxu0 %v1635_v35 }
 0x29e   : > { %v1869_v26 = vpop.f32.mrf.mxu2  ;;  %v1710_v54 = vpop.f32.mrf.mxu1 }
 0x29f   : > { %v2419_v9 = vadd.f32 %v2418_v61, %v2388_v41  ;;  %v1943_v62 = vadd.f32 %v1869_v26, %v1781_v57  ;;  %v1782_v44 = vadd.f32 %v1710_v54, %v4512_v33  ;;  %v603_v61 = vld [vmem:[#allocation2 + $0x1a8] sm:$0x3] }
 0x2a0   : > { %v2041_v52 = vpop.f32.mrf.mxu3  ;;  %v2139_v1 = vrot.slane %v603_v61, 2 }
 0x2a1   : > { %v2115_v10 = vadd.f32 %v2041_v52, %v1943_v62  ;;  %1757 = vmatmul.f32.gmra.mxu1 %v4032_v8  ;;  %v2136_v8 = vrot.slane %v601_v32, 2  ;;  %v1970_v52 = vrot.slane %v603_v61, 1 }
 0x2a2   : > { %v2216_v47 = vpop.f32.mrf.mxu0  ;;  %v2140_v41 = vsel %vm1024_vm4, %v2137_v56, %v2139_v1 }
 0x2a3   : > { %v2284_v25 = vadd.f32 %v2210_v36, %v2115_v10  ;;  %1919 = vmatmul.f32.gmra.mxu2 %v4008_v50  ;;  %v2138_v48 = vsel %vm1024_vm4, %v2136_v8, %v2137_v56 }
 0x2a5   : > { %2316 = vst [vmem:[%s2818_s14 + $0x58] sm:$0xff] %v2284_v25  ;;  %v2348_v3 = vadd.f32 %v2347_v31, %v2284_v25  ;;  %v2389_v0 = vmul.f32 %v2284_v25, %v2284_v25  ;;  %2091 = vmatmul.f32.gmra.mxu3 %v4513_v45  ;;  %2263 = vmatmul.f32.gmra.mxu0 %v1637_v15 }
 0x2a6   : > { %v1872_v12 = vpop.f32.mrf.mxu2  ;;  %v1713_v4 = vpop.f32.mrf.mxu1 }
 0x2a7   : > { %v2420_v60 = vadd.f32 %v2419_v9, %v2389_v0  ;;  %v1944_v49 = vadd.f32 %v1872_v12, %v1782_v44  ;;  %v1783_v18 = vadd.f32 %v1713_v4, %v4040_v58 }
 0x2a8   : > { %v2044_v36 = vpop.f32.mrf.mxu3 }
 0x2a9   : > { %v2116_v7 = vadd.f32 %v2044_v36, %v1944_v49  ;;  %1760 = vmatmul.f32.gmra.mxu1 %v4048_v34  ;;  %v1968_v34 = vrot.slane %v602_v21, 1 }
 0x2aa   : > { %v2219_v50 = vpop.f32.mrf.mxu0 }
 0x2ab   : > { %v2285_v38 = vadd.f32 %v2213_v40, %v2116_v7  ;;  %1922 = vmatmul.f32.gmra.mxu2 %v4004_v13  ;;  %v1969_v13 = vsel %vm668_vm3, %v1967_v39, %v1968_v34  ;;  %v1971_v44 = vsel %vm668_vm3, %v1968_v34, %v1970_v52 }
 0x2ad   : > { %2317 = vst [vmem:[%s2818_s14 + $0x60] sm:$0xff] %v2285_v38  ;;  %v2349_v20 = vadd.f32 %v2348_v3, %v2285_v38  ;;  %v2390_v63 = vmul.f32 %v2285_v38, %v2285_v38  ;;  %2094 = vmatmul.f32.gmra.mxu3 %v4038_v11  ;;  %2266 = vmatmul.f32.gmra.mxu0 %v2138_v48  ;;  %v4514_v11 = vld [vmem:[#allocation25_spill] sm:$0xff] }
 0x2ae   : > { %v1875_v16 = vpop.f32.mrf.mxu2  ;;  %v1716_v27 = vpop.f32.mrf.mxu1 }
 0x2af   : > { %v2421_v46 = vadd.f32 %v2420_v60, %v2390_v63  ;;  %v1945_v57 = vadd.f32 %v1875_v16, %v1783_v18  ;;  %v1784_v26 = vadd.f32 %v1716_v27, %v4514_v11 }
 0x2b0   : > { %v2047_v40 = vpop.f32.mrf.mxu3 }
 0x2b1   : > { %v2117_v31 = vadd.f32 %v2047_v40, %v1945_v57  ;;  %1763 = vmatmul.f32.gmra.mxu1 %v1635_v35 }
 0x2b2   : > { %v2222_v58 = vpop.f32.mrf.mxu0 }
 0x2b3   : > { %v2286_v28 = vadd.f32 %v2216_v47, %v2117_v31  ;;  %1925 = vmatmul.f32.gmra.mxu2 %v601_v32 }
 0x2b5   : > { %2318 = vst [vmem:[%s2818_s14 + $0x68] sm:$0xff] %v2286_v28  ;;  %v2350_v54 = vadd.f32 %v2349_v20, %v2286_v28  ;;  %v2391_v53 = vmul.f32 %v2286_v28, %v2286_v28  ;;  %2097 = vmatmul.f32.gmra.mxu3 %v1969_v13  ;;  %2269 = vmatmul.f32.gmra.mxu0 %v2140_v41 }
 0x2b6   : > { %v1878_v9 = vpop.f32.mrf.mxu2  ;;  %v1719_v62 = vpop.f32.mrf.mxu1 }
 0x2b7   : > { %v2422_v10 = vadd.f32 %v2421_v46, %v2391_v53  ;;  %v1946_v35 = vadd.f32 %v1878_v9, %v1784_v26  ;;  %v1785_v0 = vadd.f32 %v1719_v62, %v4060_v59 }
 0x2b8   : > { %v2050_v25 = vpop.f32.mrf.mxu3 }
 0x2b9   : > { %v2118_v33 = vadd.f32 %v2050_v25, %v1946_v35  ;;  %1766 = vmatmul.f32.gmra.mxu1 %v1637_v15 }
 0x2ba   : > { %v2225_v47 = vpop.f32.mrf.mxu0 }
 0x2bb   : > { %v2287_v3 = vadd.f32 %v2219_v50, %v2118_v33  ;;  %1928 = vmatmul.f32.gmra.mxu2 %v602_v21 }
 0x2bd   : > { %2319 = vst [vmem:[%s2818_s14 + $0x70] sm:$0xff] %v2287_v3  ;;  %v2351_v45 = vadd.f32 %v2350_v54, %v2287_v3  ;;  %v2392_v32 = vmul.f32 %v2287_v3, %v2287_v3  ;;  %2100 = vmatmul.f32.gmra.mxu3 %v1971_v44 }
 0x2be   : > { %v1881_v12 = vpop.f32.mrf.mxu2  ;;  %v1722_v4 = vpop.f32.mrf.mxu1 }
 0x2bf   : > { %v2423_v8 = vadd.f32 %v2422_v10, %v2392_v32  ;;  %v1947_v56 = vadd.f32 %v1881_v12, %v1785_v0  ;;  %v1786_v7 = vadd.f32 %v1722_v4, %v4066_v19 }
 0x2c0   : > { %v2053_v60 = vpop.f32.mrf.mxu3 }
 0x2c1   : > { %v2119_v49 = vadd.f32 %v2053_v60, %v1947_v56 }
 0x2c2   : > { %v2228_v15 = vpop.f32.mrf.mxu0 }
 0x2c3   : > { %v2288_v36 = vadd.f32 %v2222_v58, %v2119_v49 }
 0x2c5   : > { %2320 = vst [vmem:[%s2818_s14 + $0x78] sm:$0xff] %v2288_v36  ;;  %v2352_v50 = vadd.f32 %v2351_v45, %v2288_v36  ;;  %v2393_v21 = vmul.f32 %v2288_v36, %v2288_v36 }
 0x2c6   : > { %v1884_v48 = vpop.f32.mrf.mxu2  ;;  %v1725_v59 = vpop.f32.mrf.mxu1 }
 0x2c7   : > { %v2424_v38 = vadd.f32 %v2423_v8, %v2393_v21  ;;  %v1948_v18 = vadd.f32 %v1884_v48, %v1786_v7  ;;  %v1787_v27 = vadd.f32 %v1725_v59, %v4072_v22 }
 0x2c8   : > { %v2056_v20 = vpop.f32.mrf.mxu3 }
 0x2c9   : > { %v2120_v63 = vadd.f32 %v2056_v20, %v1948_v18 }
 0x2ca   : > { %v2231_v61 = vpop.f32.mrf.mxu0 }
 0x2cb   : > { %v2289_v16 = vadd.f32 %v2225_v47, %v2120_v63 }
 0x2cd   : > { %2321 = vst [vmem:[%s2818_s14 + $0x80] sm:$0xff] %v2289_v16  ;;  %v2353_v39 = vadd.f32 %v2352_v50, %v2289_v16  ;;  %v2394_v34 = vmul.f32 %v2289_v16, %v2289_v16 }
 0x2ce   : > { %v1887_v1 = vpop.f32.mrf.mxu2  ;;  %v1728_v46 = vpop.f32.mrf.mxu1 }
 0x2cf   : > { %v2425_v19 = vadd.f32 %v2424_v38, %v2394_v34  ;;  %v1949_v57 = vadd.f32 %v1887_v1, %v1787_v27  ;;  %v1788_v41 = vadd.f32 %v1728_v46, %v4078_v30 }
 0x2d0   : > { %v2059_v40 = vpop.f32.mrf.mxu3 }
 0x2d1   : > { %v2121_v31 = vadd.f32 %v2059_v40, %v1949_v57 }
 0x2d2   : > { %v2234_v13 = vpop.f32.mrf.mxu0 }
 0x2d3   : > { %v2290_v58 = vadd.f32 %v2228_v15, %v2121_v31 }
 0x2d5   : > { %2322 = vst [vmem:[%s2818_s14 + $0x88] sm:$0xff] %v2290_v58  ;;  %v2354_v28 = vadd.f32 %v2353_v39, %v2290_v58  ;;  %v2395_v11 = vmul.f32 %v2290_v58, %v2290_v58 }
 0x2d6   : > { %v1890_v26 = vpop.f32.mrf.mxu2  ;;  %v1731_v54 = vpop.f32.mrf.mxu1 }
 0x2d7   : > { %v2426_v22 = vadd.f32 %v2425_v19, %v2395_v11  ;;  %v1950_v53 = vadd.f32 %v1890_v26, %v1788_v41  ;;  %v1789_v35 = vadd.f32 %v1731_v54, %v4084_v42 }
 0x2d8   : > { %v2062_v9 = vpop.f32.mrf.mxu3 }
 0x2d9   : > { %v2122_v62 = vadd.f32 %v2062_v9, %v1950_v53 }
 0x2da   : > { %v2237_v52 = vpop.f32.mrf.mxu0 }
 0x2db   : > { %v2291_v10 = vadd.f32 %v2231_v61, %v2122_v62 }
 0x2dd   : > { %2323 = vst [vmem:[%s2818_s14 + $0x90] sm:$0xff] %v2291_v10  ;;  %v2355_v25 = vadd.f32 %v2354_v28, %v2291_v10  ;;  %v2396_v33 = vmul.f32 %v2291_v10, %v2291_v10 }
 0x2de   : > { %v1893_v44 = vpop.f32.mrf.mxu2  ;;  %v1734_v47 = vpop.f32.mrf.mxu1 }
 0x2df   : > { %v2427_v30 = vadd.f32 %v2426_v22, %v2396_v33  ;;  %v1951_v3 = vadd.f32 %v1893_v44, %v1789_v35  ;;  %v1790_v4 = vadd.f32 %v1734_v47, %v4090_v2 }
 0x2e0   : > { %v2065_v0 = vpop.f32.mrf.mxu3 }
 0x2e1   : > { %v2123_v45 = vadd.f32 %v2065_v0, %v1951_v3 }
 0x2e2   : > { %v2240_v32 = vpop.f32.mrf.mxu0 }
 0x2e3   : > { %v2292_v12 = vadd.f32 %v2234_v13, %v2123_v45 }
 0x2e5   : > { %2324 = vst [vmem:[%s2818_s14 + $0x98] sm:$0xff] %v2292_v12  ;;  %v2356_v8 = vadd.f32 %v2355_v25, %v2292_v12  ;;  %v2397_v56 = vmul.f32 %v2292_v12, %v2292_v12 }
 0x2e6   : > { %v1896_v60 = vpop.f32.mrf.mxu2  ;;  %v1737_v49 = vpop.f32.mrf.mxu1 }
 0x2e7   : > { %v2428_v42 = vadd.f32 %v2427_v30, %v2397_v56  ;;  %v1952_v15 = vadd.f32 %v1896_v60, %v1790_v4  ;;  %v1791_v48 = vadd.f32 %v1737_v49, %v4096_v55 }
 0x2e8   : > { %v2068_v36 = vpop.f32.mrf.mxu3 }
 0x2e9   : > { %v2124_v7 = vadd.f32 %v2068_v36, %v1952_v15 }
 0x2ea   : > { %v2243_v50 = vpop.f32.mrf.mxu0 }
 0x2eb   : > { %v2293_v21 = vadd.f32 %v2237_v52, %v2124_v7 }
 0x2ed   : > { %2325 = vst [vmem:[%s2818_s14 + $0xa0] sm:$0xff] %v2293_v21  ;;  %v2357_v59 = vadd.f32 %v2356_v8, %v2293_v21  ;;  %v2398_v38 = vmul.f32 %v2293_v21, %v2293_v21 }
 0x2ee   : > { %v1899_v18 = vpop.f32.mrf.mxu2  ;;  %v1740_v20 = vpop.f32.mrf.mxu1 }
 0x2ef   : > { %v2429_v2 = vadd.f32 %v2428_v42, %v2398_v38  ;;  %v1953_v63 = vadd.f32 %v1899_v18, %v1791_v48  ;;  %v1792_v34 = vadd.f32 %v1740_v20, %v4102_v5 }
 0x2f0   : > { %v2071_v61 = vpop.f32.mrf.mxu3 }
 0x2f1   : > { %v2125_v16 = vadd.f32 %v2071_v61, %v1953_v63 }
 0x2f2   : > { %v2246_v27 = vpop.f32.mrf.mxu0 }
 0x2f3   : > { %v2294_v39 = vadd.f32 %v2240_v32, %v2125_v16 }
 0x2f5   : > { %2326 = vst [vmem:[%s2818_s14 + $0xa8] sm:$0xff] %v2294_v39  ;;  %v2358_v1 = vadd.f32 %v2357_v59, %v2294_v39  ;;  %v2399_v46 = vmul.f32 %v2294_v39, %v2294_v39 }
 0x2f6   : > { %v1902_v19 = vpop.f32.mrf.mxu2  ;;  %v1743_v57 = vpop.f32.mrf.mxu1 }
 0x2f7   : > { %v2430_v55 = vadd.f32 %v2429_v2, %v2399_v46  ;;  %v1954_v40 = vadd.f32 %v1902_v19, %v1792_v34  ;;  %v1793_v28 = vadd.f32 %v1743_v57, %v4108_v24 }
 0x2f8   : > { %v2074_v31 = vpop.f32.mrf.mxu3 }
 0x2f9   : > { %v2126_v13 = vadd.f32 %v2074_v31, %v1954_v40 }
 0x2fa   : > { %v2249_v58 = vpop.f32.mrf.mxu0 }
 0x2fb   : > { %v2295_v41 = vadd.f32 %v2243_v50, %v2126_v13 }
 0x2fd   : > { %2327 = vst [vmem:[%s2818_s14 + $0xb0] sm:$0xff] %v2295_v41  ;;  %v2359_v11 = vadd.f32 %v2358_v1, %v2295_v41  ;;  %v2400_v26 = vmul.f32 %v2295_v41, %v2295_v41 }
 0x2fe   : > { %v1905_v54 = vpop.f32.mrf.mxu2  ;;  %v1746_v22 = vpop.f32.mrf.mxu1 }
 0x2ff   : > { %v2431_v5 = vadd.f32 %v2430_v55, %v2400_v26  ;;  %v1955_v53 = vadd.f32 %v1905_v54, %v1793_v28  ;;  %v1794_v35 = vadd.f32 %v1746_v22, %v4114_v17 }
 0x300   : > { %v2077_v9 = vpop.f32.mrf.mxu3 }
 0x301   : > { %v2127_v62 = vadd.f32 %v2077_v9, %v1955_v53 }
 0x302   : > { %v2252_v10 = vpop.f32.mrf.mxu0 }
 0x303   : > { %v2296_v52 = vadd.f32 %v2246_v27, %v2127_v62 }
 0x305   : > { %2328 = vst [vmem:[%s2818_s14 + $0xb8] sm:$0xff] %v2296_v52  ;;  %v2360_v25 = vadd.f32 %v2359_v11, %v2296_v52  ;;  %v2401_v33 = vmul.f32 %v2296_v52, %v2296_v52 }
 0x306   : > { %v1908_v44 = vpop.f32.mrf.mxu2  ;;  %v1749_v47 = vpop.f32.mrf.mxu1 }
 0x307   : > { %v2432_v24 = vadd.f32 %v2431_v5, %v2401_v33  ;;  %v1956_v30 = vadd.f32 %v1908_v44, %v1794_v35  ;;  %v1795_v32 = vadd.f32 %v1749_v47, %v4120_v43 }
 0x308   : > { %v2080_v3 = vpop.f32.mrf.mxu3 }
 0x309   : > { %v2128_v0 = vadd.f32 %v2080_v3, %v1956_v30 }
 0x30a   : > { %v2255_v8 = vpop.f32.mrf.mxu0 }
 0x30b   : > { %v2297_v45 = vadd.f32 %v2249_v58, %v2128_v0 }
 0x30d   : > { %2329 = vst [vmem:[%s2818_s14 + $0xc0] sm:$0xff] %v2297_v45  ;;  %v2361_v12 = vadd.f32 %v2360_v25, %v2297_v45  ;;  %v2402_v4 = vmul.f32 %v2297_v45, %v2297_v45 }
 0x30e   : > { %v1911_v56 = vpop.f32.mrf.mxu2  ;;  %v1752_v60 = vpop.f32.mrf.mxu1 }
 0x30f   : > { %v2433_v17 = vadd.f32 %v2432_v24, %v2402_v4  ;;  %v1957_v49 = vadd.f32 %v1911_v56, %v1795_v32  ;;  %v1796_v7 = vadd.f32 %v1752_v60, %v4126_v51 }
 0x310   : > { %v2083_v42 = vpop.f32.mrf.mxu3 }
 0x311   : > { %v2129_v15 = vadd.f32 %v2083_v42, %v1957_v49 }
 0x312   : > { %v2258_v20 = vpop.f32.mrf.mxu0 }
 0x313   : > { %v2298_v36 = vadd.f32 %v2252_v10, %v2129_v15 }
 0x315   : > { %2330 = vst [vmem:[%s2818_s14 + $0xc8] sm:$0xff] %v2298_v36  ;;  %v2362_v50 = vadd.f32 %v2361_v12, %v2298_v36  ;;  %v2403_v21 = vmul.f32 %v2298_v36, %v2298_v36 }
 0x316   : > { %v1914_v48 = vpop.f32.mrf.mxu2  ;;  %v1755_v59 = vpop.f32.mrf.mxu1 }
 0x317   : > { %v2434_v43 = vadd.f32 %v2433_v17, %v2403_v21  ;;  %v1958_v38 = vadd.f32 %v1914_v48, %v1796_v7  ;;  %v1797_v61 = vadd.f32 %v1755_v59, %v4132_v29 }
 0x318   : > { %v2086_v18 = vpop.f32.mrf.mxu3 }
 0x319   : > { %v2130_v2 = vadd.f32 %v2086_v18, %v1958_v38 }
 0x31a   : > { %v2261_v57 = vpop.f32.mrf.mxu0 }
 0x31b   : > { %v2299_v63 = vadd.f32 %v2255_v8, %v2130_v2 }
 0x31d   : > { %2331 = vst [vmem:[%s2818_s14 + $0xd0] sm:$0xff] %v2299_v63  ;;  %v2363_v16 = vadd.f32 %v2362_v50, %v2299_v63  ;;  %v2404_v27 = vmul.f32 %v2299_v63, %v2299_v63 }
 0x31e   : > { %v1917_v39 = vpop.f32.mrf.mxu2  ;;  %v1758_v34 = vpop.f32.mrf.mxu1 }
 0x31f   : > { %v2435_v51 = vadd.f32 %v2434_v43, %v2404_v27  ;;  %v1959_v1 = vadd.f32 %v1917_v39, %v1797_v61  ;;  %v1798_v40 = vadd.f32 %v1758_v34, %v4139_v37  ;;  %v2377_v34 = vld [vmem:[%s4305_s8] sm:$0x1] }
 0x320   : > { %v2089_v46 = vpop.f32.mrf.mxu3 }
 0x321   : > { %v2131_v19 = vadd.f32 %v2089_v46, %v1959_v1 }
 0x322   : > { %v2264_v22 = vpop.f32.mrf.mxu0 }
 0x323   : > { %v2300_v55 = vadd.f32 %v2258_v20, %v2131_v19 }
 0x325   : > { %2332 = vst [vmem:[%s2818_s14 + $0xd8] sm:$0xff] %v2300_v55  ;;  %v2364_v31 = vadd.f32 %v2363_v16, %v2300_v55  ;;  %v2405_v13 = vmul.f32 %v2300_v55, %v2300_v55  ;;  %v2337_v16 = vld [vmem:[%s4304_s7] sm:$0x1] }
 0x326   : > { %v1920_v58 = vpop.f32.mrf.mxu2  ;;  %v1761_v41 = vpop.f32.mrf.mxu1 }
 0x327   : > { %v2436_v29 = vadd.f32 %v2435_v51, %v2405_v13  ;;  %v1960_v28 = vadd.f32 %v1920_v58, %v1798_v40  ;;  %v1799_v5 = vadd.f32 %v1761_v41, %v4146_v6 }
 0x328   : > { %v2092_v11 = vpop.f32.mrf.mxu3 }
 0x329   : > { %v2132_v26 = vadd.f32 %v2092_v11, %v1960_v28 }
 0x32a   : > { %v2267_v3 = vpop.f32.mrf.mxu0 }
 0x32b   : > { %v2301_v54 = vadd.f32 %v2261_v57, %v2132_v26 }
 0x32d   : > { %2333 = vst [vmem:[%s2818_s14 + $0xe0] sm:$0xff] %v2301_v54  ;;  %v2365_v53 = vadd.f32 %v2364_v31, %v2301_v54  ;;  %v2406_v9 = vmul.f32 %v2301_v54, %v2301_v54 }
 0x32e   : > { %v1923_v62 = vpop.f32.mrf.mxu2  ;;  %v1764_v10 = vpop.f32.mrf.mxu1 }
 0x32f   : > { %v2437_v52 = vadd.f32 %v2436_v29, %v2406_v9  ;;  %v1961_v37 = vadd.f32 %v1923_v62, %v1799_v5  ;;  %v1800_v44 = vadd.f32 %v1764_v10, %v4152_v14 }
 0x330   : > { %v2095_v35 = vpop.f32.mrf.mxu3 }
 0x331   : > { %v2133_v25 = vadd.f32 %v2095_v35, %v1961_v37 }
 0x332   : > { %v2270_v15 = vpop.f32.mrf.mxu0 }
 0x333   : > { %v2302_v33 = vadd.f32 %v2264_v22, %v2133_v25 }
 0x335   : > { %2334 = vst [vmem:[%s2818_s14 + $0xe8] sm:$0xff] %v2302_v33  ;;  %v2366_v47 = vadd.f32 %v2365_v53, %v2302_v33  ;;  %v2407_v24 = vmul.f32 %v2302_v33, %v2302_v33 }
 0x336   : > { %v1926_v30 = vpop.f32.mrf.mxu2  ;;  %v1767_v12 = vpop.f32.mrf.mxu1 }
 0x337   : > { %v2438_v0 = vadd.f32 %v2437_v52, %v2407_v24  ;;  %v1962_v6 = vadd.f32 %v1926_v30, %v1800_v44  ;;  %v1801_v8 = vadd.f32 %v1767_v12, %v4159_v23 }
 0x338   : > { %v2098_v45 = vpop.f32.mrf.mxu3 }
 0x339   : > { %v2134_v32 = vadd.f32 %v2098_v45, %v1962_v6 }
 0x33b   : > { %v2303_v4 = vadd.f32 %v2267_v3, %v2134_v32 }
 0x33d   : > { %2335 = vst [vmem:[%s2818_s14 + $0xf0] sm:$0xff] %v2303_v4  ;;  %v2367_v56 = vadd.f32 %v2366_v47, %v2303_v4  ;;  %v2408_v60 = vmul.f32 %v2303_v4, %v2303_v4 }
 0x33e   : > { %v1929_v17 = vpop.f32.mrf.mxu2 }
 0x33f   : > { %v2439_v49 = vadd.f32 %v2438_v0, %v2408_v60  ;;  %v1963_v14 = vadd.f32 %v1929_v17, %v1801_v8 }
 0x340   : > { %v2101_v42 = vpop.f32.mrf.mxu3 }
 0x341   : > { %v2135_v36 = vadd.f32 %v2101_v42, %v1963_v14 }
 0x343   : > { %v2304_v7 = vadd.f32 %v2270_v15, %v2135_v36 }
 0x345   : > { %2336 = vst [vmem:[%s2818_s14 + $0xf8] sm:$0xff] %v2304_v7  ;;  %v2368_v50 = vadd.f32 %v2367_v56, %v2304_v7  ;;  %v2409_v21 = vmul.f32 %v2304_v7, %v2304_v7 }
 0x347   : > { %v2369_v48 = vrot.slane %v2368_v50, 4  ;;  %v2440_v59 = vadd.f32 %v2439_v49, %v2409_v21 }
 0x349   : > { %v2370_v43 = vadd.f32 %v2369_v48, %v2368_v50  ;;  %v2441_v38 = vrot.slane %v2440_v59, 4 }
 0x34b   : > { %v2371_v18 = vrot.slane %v2370_v43, 2  ;;  %v2442_v20 = vadd.f32 %v2441_v38, %v2440_v59 }
 0x34d   : > { %v2372_v23 = vadd.f32 %v2371_v18, %v2370_v43  ;;  %v2443_v2 = vrot.slane %v2442_v20, 2 }
 0x34f   : > { %v2373_v63 = vrot.slane %v2372_v23, 1  ;;  %v2444_v61 = vadd.f32 %v2443_v2, %v2442_v20 }
 0x351   : > { %v2374_v27 = vadd.f32 %v2373_v63, %v2372_v23  ;;  %v2445_v39 = vrot.slane %v2444_v61, 1 }
 0x353   : > { %v2375_v51 = vadd.f32 %v2374_v27, %v2337_v16  ;;  %v2446_v1 = vadd.f32 %v2445_v39, %v2444_v61 }
 0x355   : > { %2376 = vst [vmem:[%s4304_s7] sm:$0x1] %v2375_v51  ;;  %v2447_v46 = vadd.f32 %v2446_v1, %v2377_v34 }
 0x357   : > { %2448 = vst [vmem:[%s4305_s8] sm:$0x1] %v2447_v46 }
 0x358 PF: > { %s19_s27 = sadd.s32 1, %s2754_s27  }
 0x359   : > { %p16_p5 = scmp.ge.s32.totalorder %s19_s27, 4  }
 0x35b   :  { %18 = sbr.rel (!%p16_p5) target bundleno = 1 (0x1), region = 103 }

</bundles_post_ra>
